<compile_context>
chip_gen: v6e
topology: v6e:2x2x1
jax: 0.10.0
libtpu: 0.0.40
codegen_flags: <defaults>
</compile_context>

<pallas_src>
import jax
import jax.numpy as jnp
from jax.experimental import pallas as pl
from jax.experimental.pallas import tpu as pltpu

# ---------------- model configuration (small synthetic sizes) ----------------
BATCH = 2
SEQ = 8
VOCAB = 64
MAX_POS = 16
D_MODEL = 32          # dim1 == dim2 == proj_dim (null projector => dims equal)
N_HEADS = 4
HEAD_DIM = D_MODEL // N_HEADS
MLP_DIM = 4 * D_MODEL
D_INNER = 64          # mamba expanded dim
D_STATE = 8
DT_RANK = 4
CONV_K = 4
N_BLOCKS = 2
TRANS_PER_BLOCK = 1
MAMBA_PER_BLOCK = 2
N_CLASSES = 4
LANE_PAD = 128        # lane-dense padded logits width

BS = BATCH * SEQ
N_TRANS_LAYERS = N_BLOCKS * TRANS_PER_BLOCK
N_MAMBA_LAYERS = N_BLOCKS * MAMBA_PER_BLOCK

assert SEQ & (SEQ - 1) == 0, "SEQ must be a power of two (bit-trick masks)"


# ------------------------------ tiny in-kernel helpers ------------------------------
def _mm(a, w):
    """Activation @ weight on the MXU; activation cast to the (bf16) weight dtype."""
    return jnp.dot(a.astype(w.dtype), w, preferred_element_type=jnp.float32)


def _layernorm(x, g, b):
    mu = jnp.mean(x, axis=-1, keepdims=True)
    xc = x - mu
    var = jnp.mean(xc * xc, axis=-1, keepdims=True)
    return xc * jax.lax.rsqrt(var + 1e-5) * g + b


def _gelu_tanh(x):
    c = 0.7978845608028654  # sqrt(2/pi)
    return 0.5 * x * (1.0 + jnp.tanh(c * (x + 0.044715 * x * x * x)))


def _sigmoid(x):
    return 1.0 / (1.0 + jnp.exp(-x))


def _silu(x):
    return x * _sigmoid(x)


def _softplus(x):
    # numerically stable softplus using only exp/log/abs/max (all Mosaic-supported)
    return jnp.maximum(x, 0.0) + jnp.log(1.0 + jnp.exp(-jnp.abs(x)))


# ------------------------------ sub-layers (batch folded) ------------------------------
def _transformer_layer(x, vecs, wqkv, wo, w1, w2, attn_mask):
    # vecs rows: 0 ln1_g, 1 ln1_b, 2 bo, 3 ln2_g, 4 ln2_b, 5 b2 (first D lanes), 6 b1 (full MLP)
    ln1_g = vecs[0:1, :D_MODEL]
    ln1_b = vecs[1:2, :D_MODEL]
    bo = vecs[2:3, :D_MODEL]
    ln2_g = vecs[3:4, :D_MODEL]
    ln2_b = vecs[4:5, :D_MODEL]
    b2 = vecs[5:6, :D_MODEL]
    b1 = vecs[6:7, :MLP_DIM]

    xn = _layernorm(x, ln1_g, ln1_b)
    qkv = _mm(xn, wqkv)                                    # (BS, 3*D) single MXU push
    q = qkv[:, :D_MODEL]
    k = qkv[:, D_MODEL:2 * D_MODEL]
    v = qkv[:, 2 * D_MODEL:]

    scale = 1.0 / (HEAD_DIM ** 0.5)
    ctx_parts = []
    for h in range(N_HEADS):
        lo, hi = h * HEAD_DIM, (h + 1) * HEAD_DIM
        qh, kh, vh = q[:, lo:hi], k[:, lo:hi], v[:, lo:hi]
        s_h = jnp.dot(qh, kh.T, preferred_element_type=jnp.float32) * scale   # (BS, BS)
        s_h = jnp.where(attn_mask, s_h, -1e30)
        m = jnp.max(s_h, axis=-1, keepdims=True)
        p = jnp.exp(s_h - m)
        p = p * pl.reciprocal(jnp.sum(p, axis=-1, keepdims=True), approx=True)
        ctx_parts.append(jnp.dot(p, vh, preferred_element_type=jnp.float32))  # (BS, HD)
    ctx = jnp.concatenate(ctx_parts, axis=-1)               # (BS, D)

    attn = _mm(ctx, wo) + bo
    x1 = x + attn

    xn2 = _layernorm(x1, ln2_g, ln2_b)
    hid = _gelu_tanh(_mm(xn2, w1) + b1)
    mlp = _mm(hid, w2) + b2
    return x1 + mlp


def _mamba_layer(x, vecs, w_in, w_xproj, w_dt, a_tiled, w_out, conv_pos):
    # vecs rows: 0 rms_g (first D lanes), 1 b_conv, 2 b_dt, 3 d, 4..4+K-1 w_conv taps
    rms_g = vecs[0:1, :D_MODEL]
    b_conv = vecs[1:2, :]
    b_dt = vecs[2:3, :]
    d_par = vecs[3:4, :]

    # RMSNorm
    xn = x * jax.lax.rsqrt(jnp.mean(x * x, axis=-1, keepdims=True) + 1e-5) * rms_g

    # merged in_proj: one lane-dense (BS, 2*DI) = (16, 128) result, split by static slice
    xz = _mm(xn, w_in)
    x_in = xz[:, :D_INNER]
    z = xz[:, D_INNER:]

    # causal depthwise conv1d via sublane rolls + batch-aware masks (pos = row mod SEQ)
    acc = x_in * vecs[4 + CONV_K - 1:4 + CONV_K, :]
    for kk in range(CONV_K - 1):
        sh = CONV_K - 1 - kk
        shifted = pltpu.roll(x_in, shift=sh, axis=0)
        shifted = jnp.where(conv_pos >= sh, shifted, 0.0)
        acc = acc + shifted * vecs[4 + kk:5 + kk, :]
    x_c = _silu(acc + b_conv)

    # merged x_proj: one (BS, DTR + 2*DS) matmul, slice dt/B/C from the single result
    xp = _mm(x_c, w_xproj)
    dt_in = xp[:, :DT_RANK]
    dt = _softplus(_mm(dt_in, w_dt) + b_dt)                 # (BS, DI)
    b_ssmT = xp[:, DT_RANK:DT_RANK + D_STATE].T             # (DS, BS)
    c_ssmT = xp[:, DT_RANK + D_STATE:].T                    # (DS, BS)

    # scan layout: rows = time, 128 lanes = batch-major channels (BATCH * D_INNER)
    dt_s = jnp.concatenate([dt[b * SEQ:(b + 1) * SEQ] for b in range(BATCH)], axis=-1)
    dtx = dt * x_c
    dtx_s = jnp.concatenate([dtx[b * SEQ:(b + 1) * SEQ] for b in range(BATCH)], axis=-1)

    # selective scan: state h stays in registers as a full (8, 128) vreg; no VMEM scratch
    h = None
    y_rows = []
    for t in range(SEQ):
        b_t = jnp.concatenate(
            [jnp.broadcast_to(b_ssmT[:, b * SEQ + t:b * SEQ + t + 1], (D_STATE, D_INNER))
             for b in range(BATCH)], axis=-1)                # (DS, B*DI)
        c_t = jnp.concatenate(
            [jnp.broadcast_to(c_ssmT[:, b * SEQ + t:b * SEQ + t + 1], (D_STATE, D_INNER))
             for b in range(BATCH)], axis=-1)                # (DS, B*DI)
        upd = dtx_s[t:t + 1, :] * b_t                        # dt * B * x   (DS, B*DI)
        if t == 0:
            h = upd
        else:
            dA_t = jnp.exp(dt_s[t:t + 1, :] * a_tiled)       # (DS, B*DI)
            h = dA_t * h + upd
        y_rows.append(jnp.sum(c_t * h, axis=0, keepdims=True))   # (1, B*DI)
    y = jnp.concatenate(y_rows, axis=0)                      # (SEQ, B*DI)

    # back to (BS, DI) layout
    y_bs = jnp.concatenate([y[:, b * D_INNER:(b + 1) * D_INNER] for b in range(BATCH)], axis=0)
    y_bs = y_bs + x_c * d_par
    y_bs = y_bs * _silu(z)                                   # gating
    out = _mm(y_bs, w_out)                                   # (BS, D)
    return x + out


# ------------------------------ fused forward kernel ------------------------------
def _fused_forward_kernel(ids_ref, wte_ref, pos_ref,
                          t_vecs_ref, t_wqkv_ref, t_wo_ref, t_w1_ref, t_w2_ref,
                          m_vecs_ref, m_win_ref, m_wxp_ref, m_wdt_ref, m_a_ref, m_wout_ref,
                          wcls_ref, bcls_ref, o_ref):
    # embedding: one-hot (BS, VOCAB) @ wte (VOCAB, D) on the MXU, plus tiled positions
    ids = ids_ref[...]                                                        # (BS, 1) int32
    vocab_iota = jax.lax.broadcasted_iota(jnp.int32, (BS, VOCAB), 1)
    onehot = (vocab_iota == ids).astype(jnp.bfloat16)
    x = jnp.dot(onehot, wte_ref[...], preferred_element_type=jnp.float32) + pos_ref[...]

    # shared masks (built once); rows are batch-major: r = b*SEQ + t
    r_i = jax.lax.broadcasted_iota(jnp.int32, (BS, BS), 0)
    c_i = jax.lax.broadcasted_iota(jnp.int32, (BS, BS), 1)
    attn_mask = (r_i >= c_i) & ((r_i - c_i) <= (r_i & (SEQ - 1)))   # causal & same-batch
    conv_pos = jax.lax.broadcasted_iota(jnp.int32, (BS, D_INNER), 0) & (SEQ - 1)

    for blk in range(N_BLOCKS):
        t_h = x
        m_h = x
        for j in range(TRANS_PER_BLOCK):
            li = blk * TRANS_PER_BLOCK + j
            t_h = _transformer_layer(t_h, t_vecs_ref[li], t_wqkv_ref[li], t_wo_ref[li],
                                     t_w1_ref[li], t_w2_ref[li], attn_mask)
        for j in range(MAMBA_PER_BLOCK):
            li = blk * MAMBA_PER_BLOCK + j
            m_h = _mamba_layer(m_h, m_vecs_ref[li], m_win_ref[li], m_wxp_ref[li],
                               m_wdt_ref[li], m_a_ref[li], m_wout_ref[li], conv_pos)
        x = 0.5 * (t_h + m_h)

    # lm_head of HybridModel is computed but unused by the classification head -> skipped.
    # classification head: per-batch mean over seq, then linear into a 128-wide padded row
    pooled = jnp.concatenate(
        [jnp.mean(x[b * SEQ:(b + 1) * SEQ], axis=0, keepdims=True) for b in range(BATCH)],
        axis=0)                                                               # (BATCH, D)
    logits = _mm(pooled, wcls_ref[...]) + bcls_ref[...]                       # (BATCH, 128)
    o_ref[...] = logits


# ------------------------- parameter init / preparation -----------------------
def _dense(key, shape, scale=0.02):
    return scale * jax.random.normal(key, shape, dtype=jnp.float32)


def init_params(key):
    keys = iter(jax.random.split(key, 256))
    params = {
        "wte": _dense(next(keys), (VOCAB, D_MODEL)),
        "wpe": _dense(next(keys), (MAX_POS, D_MODEL)),
        "w_cls": _dense(next(keys), (D_MODEL, N_CLASSES)),
        "b_cls": jnp.zeros((1, N_CLASSES), jnp.float32),
        "trans": [],
        "mamba": [],
    }
    for _ in range(N_TRANS_LAYERS):
        params["trans"].append({
            "ln1_g": jnp.ones((1, D_MODEL), jnp.float32),
            "ln1_b": jnp.zeros((1, D_MODEL), jnp.float32),
            "wq": _dense(next(keys), (D_MODEL, D_MODEL)),
            "wk": _dense(next(keys), (D_MODEL, D_MODEL)),
            "wv": _dense(next(keys), (D_MODEL, D_MODEL)),
            "wo": _dense(next(keys), (D_MODEL, D_MODEL)),
            "bo": jnp.zeros((1, D_MODEL), jnp.float32),
            "ln2_g": jnp.ones((1, D_MODEL), jnp.float32),
            "ln2_b": jnp.zeros((1, D_MODEL), jnp.float32),
            "w1": _dense(next(keys), (D_MODEL, MLP_DIM)),
            "b1": jnp.zeros((1, MLP_DIM), jnp.float32),
            "w2": _dense(next(keys), (MLP_DIM, D_MODEL)),
            "b2": jnp.zeros((1, D_MODEL), jnp.float32),
        })
    # S4D-real init: A = -[1..d_state] broadcast over channels, stored (d_state, d_inner)
    a_init = -jnp.broadcast_to(
        jnp.arange(1, D_STATE + 1, dtype=jnp.float32)[:, None], (D_STATE, D_INNER))
    for _ in range(N_MAMBA_LAYERS):
        params["mamba"].append({
            "rms_g": jnp.ones((1, D_MODEL), jnp.float32),
            "w_in": _dense(next(keys), (D_MODEL, 2 * D_INNER)),
            "w_conv": _dense(next(keys), (CONV_K, D_INNER), scale=0.1),
            "b_conv": jnp.zeros((1, D_INNER), jnp.float32),
            "w_xproj": _dense(next(keys), (D_INNER, DT_RANK + 2 * D_STATE)),
            "w_dt": _dense(next(keys), (DT_RANK, D_INNER)),
            "b_dt": _dense(next(keys), (1, D_INNER)),
            "a": a_init,
            "d": jnp.ones((1, D_INNER), jnp.float32),
            "w_out": _dense(next(keys), (D_INNER, D_MODEL)),
        })
    return params


def prepare_weights(params):
    """Pack parameters into a few stacked, lane-dense slabs for the fused kernel."""
    bf16 = jnp.bfloat16

    t_vecs, t_wqkv, t_wo, t_w1, t_w2 = [], [], [], [], []
    for p in params["trans"]:
        slab = jnp.zeros((8, MLP_DIM), jnp.float32)
        slab = slab.at[0, :D_MODEL].set(p["ln1_g"][0])
        slab = slab.at[1, :D_MODEL].set(p["ln1_b"][0])
        slab = slab.at[2, :D_MODEL].set(p["bo"][0])
        slab = slab.at[3, :D_MODEL].set(p["ln2_g"][0])
        slab = slab.at[4, :D_MODEL].set(p["ln2_b"][0])
        slab = slab.at[5, :D_MODEL].set(p["b2"][0])
        slab = slab.at[6, :].set(p["b1"][0])
        t_vecs.append(slab)
        t_wqkv.append(jnp.concatenate([p["wq"], p["wk"], p["wv"]], axis=1).astype(bf16))
        t_wo.append(p["wo"].astype(bf16))
        t_w1.append(p["w1"].astype(bf16))
        t_w2.append(p["w2"].astype(bf16))

    m_vecs, m_win, m_wxp, m_wdt, m_a, m_wout = [], [], [], [], [], []
    for p in params["mamba"]:
        slab = jnp.zeros((4 + CONV_K, D_INNER), jnp.float32)
        slab = slab.at[0, :D_MODEL].set(p["rms_g"][0])
        slab = slab.at[1, :].set(p["b_conv"][0])
        slab = slab.at[2, :].set(p["b_dt"][0])
        slab = slab.at[3, :].set(p["d"][0])
        slab = slab.at[4:4 + CONV_K, :].set(p["w_conv"])
        m_vecs.append(slab)
        m_win.append(p["w_in"].astype(bf16))
        m_wxp.append(p["w_xproj"].astype(bf16))
        m_wdt.append(p["w_dt"].astype(bf16))
        m_a.append(jnp.tile(p["a"], (1, BATCH)))            # (DS, BATCH*DI) tiled over batch
        m_wout.append(p["w_out"].astype(bf16))

    w_cls_pad = jnp.zeros((D_MODEL, LANE_PAD), jnp.float32)
    w_cls_pad = w_cls_pad.at[:, :N_CLASSES].set(params["w_cls"]).astype(bf16)
    b_cls_pad = jnp.zeros((1, LANE_PAD), jnp.float32)
    b_cls_pad = b_cls_pad.at[:, :N_CLASSES].set(params["b_cls"])

    return {
        "wte": params["wte"].astype(bf16),
        "pos": jnp.tile(params["wpe"][:SEQ], (BATCH, 1)),    # (BATCH*SEQ, D)
        "t_vecs": jnp.stack(t_vecs), "t_wqkv": jnp.stack(t_wqkv), "t_wo": jnp.stack(t_wo),
        "t_w1": jnp.stack(t_w1), "t_w2": jnp.stack(t_w2),
        "m_vecs": jnp.stack(m_vecs), "m_win": jnp.stack(m_win), "m_wxp": jnp.stack(m_wxp),
        "m_wdt": jnp.stack(m_wdt), "m_a": jnp.stack(m_a), "m_wout": jnp.stack(m_wout),
        "w_cls": w_cls_pad, "b_cls": b_cls_pad,
    }


# ------------------------------- full forward ---------------------------------
def hybrid_classification_forward(params, input_ids):
    w = prepare_weights(params)
    ids_col = input_ids.reshape(BATCH * SEQ, 1).astype(jnp.int32)   # batch-major rows

    logits_pad = pl.pallas_call(
        _fused_forward_kernel,
        out_shape=jax.ShapeDtypeStruct((BATCH, LANE_PAD), jnp.float32),
    )(ids_col, w["wte"], w["pos"],
      w["t_vecs"], w["t_wqkv"], w["t_wo"], w["t_w1"], w["t_w2"],
      w["m_vecs"], w["m_win"], w["m_wxp"], w["m_wdt"], w["m_a"], w["m_wout"],
      w["w_cls"], w["b_cls"])

    return logits_pad[:, :N_CLASSES]


if __name__ == "__main__":
    key = jax.random.PRNGKey(0)
    params = init_params(key)
    ids_key = jax.random.fold_in(key, 123)
    input_ids = jax.random.randint(ids_key, (BATCH, SEQ), 0, VOCAB, dtype=jnp.int32)

    fwd = jax.jit(hybrid_classification_forward)
    logits = fwd(params, input_ids)
    logits = jax.block_until_ready(logits)

    assert logits.shape == (BATCH, N_CLASSES)
    assert bool(jnp.all(jnp.isfinite(logits)))
    print("KERNEL_OK")
</pallas_src>

<mosaic_0001>
module attributes {stable_mosaic.version = 11 : i64} {
  func.func @_fused_forward_kernel(%arg0: memref<16x1xi32, #tpu.memory_space<vmem>>, %arg1: memref<64x32xbf16, #tpu.memory_space<vmem>>, %arg2: memref<16x32xf32, #tpu.memory_space<vmem>>, %arg3: memref<2x8x128xf32, #tpu.memory_space<vmem>>, %arg4: memref<2x32x96xbf16, #tpu.memory_space<vmem>>, %arg5: memref<2x32x32xbf16, #tpu.memory_space<vmem>>, %arg6: memref<2x32x128xbf16, #tpu.memory_space<vmem>>, %arg7: memref<2x128x32xbf16, #tpu.memory_space<vmem>>, %arg8: memref<4x8x64xf32, #tpu.memory_space<vmem>>, %arg9: memref<4x32x128xbf16, #tpu.memory_space<vmem>>, %arg10: memref<4x64x20xbf16, #tpu.memory_space<vmem>>, %arg11: memref<4x4x64xbf16, #tpu.memory_space<vmem>>, %arg12: memref<4x8x128xf32, #tpu.memory_space<vmem>>, %arg13: memref<4x64x32xbf16, #tpu.memory_space<vmem>>, %arg14: memref<32x128xbf16, #tpu.memory_space<vmem>>, %arg15: memref<1x128xf32, #tpu.memory_space<vmem>>, %arg16: memref<2x128xf32, #tpu.memory_space<vmem>>) attributes {dimension_semantics = [], scalar_prefetch = 0 : i64, scratch_operands = 0 : i64, tpu.core_type = #tpu.core_type<tc>} {
    %c0 = arith.constant 0 : index
    %c0_0 = arith.constant 0 : index
    %0 = vector.load %arg0[%c0, %c0_0] : memref<16x1xi32, #tpu.memory_space<vmem>>, vector<16x1xi32>
    %1 = tpu.iota {dimensions = array<i32: 1>} : vector<16x64xi32>
    %2 = vector.broadcast %0 : vector<16x1xi32> to vector<16x64xi32>
    %3 = arith.cmpi eq, %1, %2 : vector<16x64xi32>
    %4 = arith.extui %3 : vector<16x64xi1> to vector<16x64xi32>
    %5 = arith.sitofp %4 : vector<16x64xi32> to vector<16x64xf32>
    %6 = arith.truncf %5 : vector<16x64xf32> to vector<16x64xbf16>
    %c0_1 = arith.constant 0 : index
    %c0_2 = arith.constant 0 : index
    %7 = vector.load %arg1[%c0_1, %c0_2] : memref<64x32xbf16, #tpu.memory_space<vmem>>, vector<64x32xbf16>
    %cst = arith.constant dense<0.000000e+00> : vector<16x32xf32>
    %8 = tpu.matmul %6, %7, %cst {dimension_numbers = #tpu.dot_dimension_numbers<[1], [0], [0], [1], [0, 0, 1, 1], [], []>} : vector<16x64xbf16>, vector<64x32xbf16>, vector<16x32xf32> -> vector<16x32xf32>
    %c0_3 = arith.constant 0 : index
    %c0_4 = arith.constant 0 : index
    %9 = vector.load %arg2[%c0_3, %c0_4] : memref<16x32xf32, #tpu.memory_space<vmem>>, vector<16x32xf32>
    %10 = arith.addf %8, %9 : vector<16x32xf32>
    %11 = tpu.iota {dimensions = array<i32: 0>} : vector<16x16xi32>
    %12 = tpu.iota {dimensions = array<i32: 1>} : vector<16x16xi32>
    %13 = arith.cmpi sge, %11, %12 : vector<16x16xi32>
    %14 = arith.subi %11, %12 : vector<16x16xi32>
    %c7_i32 = arith.constant 7 : i32
    %15 = vector.broadcast %c7_i32 : i32 to vector<16x16xi32>
    %16 = arith.andi %11, %15 : vector<16x16xi32>
    %17 = arith.cmpi sle, %14, %16 : vector<16x16xi32>
    %18 = arith.andi %13, %17 : vector<16x16xi1>
    %19 = tpu.iota {dimensions = array<i32: 0>} : vector<16x64xi32>
    %c7_i32_5 = arith.constant 7 : i32
    %20 = vector.broadcast %c7_i32_5 : i32 to vector<16x64xi32>
    %21 = arith.andi %19, %20 : vector<16x64xi32>
    %c0_6 = arith.constant 0 : index
    %c0_7 = arith.constant 0 : index
    %c0_8 = arith.constant 0 : index
    %22 = vector.load %arg3[%c0_6, %c0_7, %c0_8] : memref<2x8x128xf32, #tpu.memory_space<vmem>>, vector<1x8x128xf32>
    %23 = vector.shape_cast %22 : vector<1x8x128xf32> to vector<8x128xf32>
    %c0_9 = arith.constant 0 : index
    %c0_10 = arith.constant 0 : index
    %c0_11 = arith.constant 0 : index
    %24 = vector.load %arg4[%c0_9, %c0_10, %c0_11] : memref<2x32x96xbf16, #tpu.memory_space<vmem>>, vector<1x32x96xbf16>
    %25 = vector.shape_cast %24 : vector<1x32x96xbf16> to vector<32x96xbf16>
    %c0_12 = arith.constant 0 : index
    %c0_13 = arith.constant 0 : index
    %c0_14 = arith.constant 0 : index
    %26 = vector.load %arg5[%c0_12, %c0_13, %c0_14] : memref<2x32x32xbf16, #tpu.memory_space<vmem>>, vector<1x32x32xbf16>
    %27 = vector.shape_cast %26 : vector<1x32x32xbf16> to vector<32x32xbf16>
    %c0_15 = arith.constant 0 : index
    %c0_16 = arith.constant 0 : index
    %c0_17 = arith.constant 0 : index
    %28 = vector.load %arg6[%c0_15, %c0_16, %c0_17] : memref<2x32x128xbf16, #tpu.memory_space<vmem>>, vector<1x32x128xbf16>
    %29 = vector.shape_cast %28 : vector<1x32x128xbf16> to vector<32x128xbf16>
    %c0_18 = arith.constant 0 : index
    %c0_19 = arith.constant 0 : index
    %c0_20 = arith.constant 0 : index
    %30 = vector.load %arg7[%c0_18, %c0_19, %c0_20] : memref<2x128x32xbf16, #tpu.memory_space<vmem>>, vector<1x128x32xbf16>
    %31 = vector.shape_cast %30 : vector<1x128x32xbf16> to vector<128x32xbf16>
    %32 = vector.extract_strided_slice %23 {offsets = [0, 0], sizes = [1, 32], strides = [1, 1]} : vector<8x128xf32> to vector<1x32xf32>
    %33 = vector.extract_strided_slice %23 {offsets = [1, 0], sizes = [1, 32], strides = [1, 1]} : vector<8x128xf32> to vector<1x32xf32>
    %34 = vector.extract_strided_slice %23 {offsets = [2, 0], sizes = [1, 32], strides = [1, 1]} : vector<8x128xf32> to vector<1x32xf32>
    %35 = vector.extract_strided_slice %23 {offsets = [3, 0], sizes = [1, 32], strides = [1, 1]} : vector<8x128xf32> to vector<1x32xf32>
    %36 = vector.extract_strided_slice %23 {offsets = [4, 0], sizes = [1, 32], strides = [1, 1]} : vector<8x128xf32> to vector<1x32xf32>
    %37 = vector.extract_strided_slice %23 {offsets = [5, 0], sizes = [1, 32], strides = [1, 1]} : vector<8x128xf32> to vector<1x32xf32>
    %38 = vector.extract_strided_slice %23 {offsets = [6, 0], sizes = [1, 128], strides = [1, 1]} : vector<8x128xf32> to vector<1x128xf32>
    %cst_21 = arith.constant dense<0.000000e+00> : vector<16xf32>
    %39 = vector.multi_reduction <add>, %10, %cst_21 [1] : vector<16x32xf32> to vector<16xf32>
    %40 = vector.shape_cast %39 : vector<16xf32> to vector<16x1xf32>
    %cst_22 = arith.constant 3.200000e+01 : f32
    %41 = vector.broadcast %cst_22 : f32 to vector<16x1xf32>
    %42 = arith.divf %40, %41 : vector<16x1xf32>
    %43 = vector.broadcast %42 : vector<16x1xf32> to vector<16x32xf32>
    %44 = arith.subf %10, %43 : vector<16x32xf32>
    %45 = arith.mulf %44, %44 : vector<16x32xf32>
    %cst_23 = arith.constant dense<0.000000e+00> : vector<16xf32>
    %46 = vector.multi_reduction <add>, %45, %cst_23 [1] : vector<16x32xf32> to vector<16xf32>
    %47 = vector.shape_cast %46 : vector<16xf32> to vector<16x1xf32>
    %cst_24 = arith.constant 3.200000e+01 : f32
    %48 = vector.broadcast %cst_24 : f32 to vector<16x1xf32>
    %49 = arith.divf %47, %48 : vector<16x1xf32>
    %cst_25 = arith.constant 9.99999974E-6 : f32
    %50 = vector.broadcast %cst_25 : f32 to vector<16x1xf32>
    %51 = arith.addf %49, %50 : vector<16x1xf32>
    %52 = math.rsqrt %51 : vector<16x1xf32>
    %53 = vector.broadcast %52 : vector<16x1xf32> to vector<16x32xf32>
    %54 = arith.mulf %44, %53 : vector<16x32xf32>
    %55 = vector.broadcast %32 : vector<1x32xf32> to vector<16x32xf32>
    %56 = arith.mulf %54, %55 : vector<16x32xf32>
    %57 = vector.broadcast %33 : vector<1x32xf32> to vector<16x32xf32>
    %58 = arith.addf %56, %57 : vector<16x32xf32>
    %59 = arith.truncf %58 : vector<16x32xf32> to vector<16x32xbf16>
    %cst_26 = arith.constant dense<0.000000e+00> : vector<16x96xf32>
    %60 = tpu.matmul %59, %25, %cst_26 {dimension_numbers = #tpu.dot_dimension_numbers<[1], [0], [0], [1], [0, 0, 1, 1], [], []>} : vector<16x32xbf16>, vector<32x96xbf16>, vector<16x96xf32> -> vector<16x96xf32>
    %61 = vector.extract_strided_slice %60 {offsets = [0, 0], sizes = [16, 32], strides = [1, 1]} : vector<16x96xf32> to vector<16x32xf32>
    %62 = vector.extract_strided_slice %60 {offsets = [0, 32], sizes = [16, 32], strides = [1, 1]} : vector<16x96xf32> to vector<16x32xf32>
    %63 = vector.extract_strided_slice %60 {offsets = [0, 64], sizes = [16, 32], strides = [1, 1]} : vector<16x96xf32> to vector<16x32xf32>
    %64 = vector.extract_strided_slice %61 {offsets = [0, 0], sizes = [16, 8], strides = [1, 1]} : vector<16x32xf32> to vector<16x8xf32>
    %65 = vector.extract_strided_slice %62 {offsets = [0, 0], sizes = [16, 8], strides = [1, 1]} : vector<16x32xf32> to vector<16x8xf32>
    %66 = vector.extract_strided_slice %63 {offsets = [0, 0], sizes = [16, 8], strides = [1, 1]} : vector<16x32xf32> to vector<16x8xf32>
    %67 = tpu.transpose %65, [1, 0] : vector<16x8xf32> -> vector<8x16xf32>
    %cst_27 = arith.constant dense<0.000000e+00> : vector<16x16xf32>
    %68 = tpu.matmul %64, %67, %cst_27 {dimension_numbers = #tpu.dot_dimension_numbers<[1], [0], [0], [1], [0, 0, 1, 1], [], []>} : vector<16x8xf32>, vector<8x16xf32>, vector<16x16xf32> -> vector<16x16xf32>
    %cst_28 = arith.constant 0.353553385 : f32
    %69 = vector.broadcast %cst_28 : f32 to vector<16x16xf32>
    %70 = arith.mulf %68, %69 : vector<16x16xf32>
    %cst_29 = arith.constant -1.000000e+30 : f32
    %71 = vector.broadcast %cst_29 : f32 to vector<16x16xf32>
    %72 = arith.select %18, %70, %71 : vector<16x16xi1>, vector<16x16xf32>
    %cst_30 = arith.constant dense<0xFF800000> : vector<16xf32>
    %73 = vector.multi_reduction <maximumf>, %72, %cst_30 [1] : vector<16x16xf32> to vector<16xf32>
    %74 = vector.shape_cast %73 : vector<16xf32> to vector<16x1xf32>
    %75 = vector.broadcast %74 : vector<16x1xf32> to vector<16x16xf32>
    %76 = arith.subf %72, %75 : vector<16x16xf32>
    %77 = math.exp %76 : vector<16x16xf32>
    %cst_31 = arith.constant dense<0.000000e+00> : vector<16xf32>
    %78 = vector.multi_reduction <add>, %77, %cst_31 [1] : vector<16x16xf32> to vector<16xf32>
    %79 = vector.shape_cast %78 : vector<16xf32> to vector<16x1xf32>
    %80 = tpu.reciprocal %79 {approx = true} : vector<16x1xf32> -> vector<16x1xf32>
    %81 = vector.broadcast %80 : vector<16x1xf32> to vector<16x16xf32>
    %82 = arith.mulf %77, %81 : vector<16x16xf32>
    %cst_32 = arith.constant dense<0.000000e+00> : vector<16x8xf32>
    %83 = tpu.matmul %82, %66, %cst_32 {dimension_numbers = #tpu.dot_dimension_numbers<[1], [0], [0], [1], [0, 0, 1, 1], [], []>} : vector<16x16xf32>, vector<16x8xf32>, vector<16x8xf32> -> vector<16x8xf32>
    %84 = vector.extract_strided_slice %61 {offsets = [0, 8], sizes = [16, 8], strides = [1, 1]} : vector<16x32xf32> to vector<16x8xf32>
    %85 = vector.extract_strided_slice %62 {offsets = [0, 8], sizes = [16, 8], strides = [1, 1]} : vector<16x32xf32> to vector<16x8xf32>
    %86 = vector.extract_strided_slice %63 {offsets = [0, 8], sizes = [16, 8], strides = [1, 1]} : vector<16x32xf32> to vector<16x8xf32>
    %87 = tpu.transpose %85, [1, 0] : vector<16x8xf32> -> vector<8x16xf32>
    %cst_33 = arith.constant dense<0.000000e+00> : vector<16x16xf32>
    %88 = tpu.matmul %84, %87, %cst_33 {dimension_numbers = #tpu.dot_dimension_numbers<[1], [0], [0], [1], [0, 0, 1, 1], [], []>} : vector<16x8xf32>, vector<8x16xf32>, vector<16x16xf32> -> vector<16x16xf32>
    %cst_34 = arith.constant 0.353553385 : f32
    %89 = vector.broadcast %cst_34 : f32 to vector<16x16xf32>
    %90 = arith.mulf %88, %89 : vector<16x16xf32>
    %cst_35 = arith.constant -1.000000e+30 : f32
    %91 = vector.broadcast %cst_35 : f32 to vector<16x16xf32>
    %92 = arith.select %18, %90, %91 : vector<16x16xi1>, vector<16x16xf32>
    %cst_36 = arith.constant dense<0xFF800000> : vector<16xf32>
    %93 = vector.multi_reduction <maximumf>, %92, %cst_36 [1] : vector<16x16xf32> to vector<16xf32>
    %94 = vector.shape_cast %93 : vector<16xf32> to vector<16x1xf32>
    %95 = vector.broadcast %94 : vector<16x1xf32> to vector<16x16xf32>
    %96 = arith.subf %92, %95 : vector<16x16xf32>
    %97 = math.exp %96 : vector<16x16xf32>
    %cst_37 = arith.constant dense<0.000000e+00> : vector<16xf32>
    %98 = vector.multi_reduction <add>, %97, %cst_37 [1] : vector<16x16xf32> to vector<16xf32>
    %99 = vector.shape_cast %98 : vector<16xf32> to vector<16x1xf32>
    %100 = tpu.reciprocal %99 {approx = true} : vector<16x1xf32> -> vector<16x1xf32>
    %101 = vector.broadcast %100 : vector<16x1xf32> to vector<16x16xf32>
    %102 = arith.mulf %97, %101 : vector<16x16xf32>
    %cst_38 = arith.constant dense<0.000000e+00> : vector<16x8xf32>
    %103 = tpu.matmul %102, %86, %cst_38 {dimension_numbers = #tpu.dot_dimension_numbers<[1], [0], [0], [1], [0, 0, 1, 1], [], []>} : vector<16x16xf32>, vector<16x8xf32>, vector<16x8xf32> -> vector<16x8xf32>
    %104 = vector.extract_strided_slice %61 {offsets = [0, 16], sizes = [16, 8], strides = [1, 1]} : vector<16x32xf32> to vector<16x8xf32>
    %105 = vector.extract_strided_slice %62 {offsets = [0, 16], sizes = [16, 8], strides = [1, 1]} : vector<16x32xf32> to vector<16x8xf32>
    %106 = vector.extract_strided_slice %63 {offsets = [0, 16], sizes = [16, 8], strides = [1, 1]} : vector<16x32xf32> to vector<16x8xf32>
    %107 = tpu.transpose %105, [1, 0] : vector<16x8xf32> -> vector<8x16xf32>
    %cst_39 = arith.constant dense<0.000000e+00> : vector<16x16xf32>
    %108 = tpu.matmul %104, %107, %cst_39 {dimension_numbers = #tpu.dot_dimension_numbers<[1], [0], [0], [1], [0, 0, 1, 1], [], []>} : vector<16x8xf32>, vector<8x16xf32>, vector<16x16xf32> -> vector<16x16xf32>
    %cst_40 = arith.constant 0.353553385 : f32
    %109 = vector.broadcast %cst_40 : f32 to vector<16x16xf32>
    %110 = arith.mulf %108, %109 : vector<16x16xf32>
    %cst_41 = arith.constant -1.000000e+30 : f32
    %111 = vector.broadcast %cst_41 : f32 to vector<16x16xf32>
    %112 = arith.select %18, %110, %111 : vector<16x16xi1>, vector<16x16xf32>
    %cst_42 = arith.constant dense<0xFF800000> : vector<16xf32>
    %113 = vector.multi_reduction <maximumf>, %112, %cst_42 [1] : vector<16x16xf32> to vector<16xf32>
    %114 = vector.shape_cast %113 : vector<16xf32> to vector<16x1xf32>
    %115 = vector.broadcast %114 : vector<16x1xf32> to vector<16x16xf32>
    %116 = arith.subf %112, %115 : vector<16x16xf32>
    %117 = math.exp %116 : vector<16x16xf32>
    %cst_43 = arith.constant dense<0.000000e+00> : vector<16xf32>
    %118 = vector.multi_reduction <add>, %117, %cst_43 [1] : vector<16x16xf32> to vector<16xf32>
    %119 = vector.shape_cast %118 : vector<16xf32> to vector<16x1xf32>
    %120 = tpu.reciprocal %119 {approx = true} : vector<16x1xf32> -> vector<16x1xf32>
    %121 = vector.broadcast %120 : vector<16x1xf32> to vector<16x16xf32>
    %122 = arith.mulf %117, %121 : vector<16x16xf32>
    %cst_44 = arith.constant dense<0.000000e+00> : vector<16x8xf32>
    %123 = tpu.matmul %122, %106, %cst_44 {dimension_numbers = #tpu.dot_dimension_numbers<[1], [0], [0], [1], [0, 0, 1, 1], [], []>} : vector<16x16xf32>, vector<16x8xf32>, vector<16x8xf32> -> vector<16x8xf32>
    %124 = vector.extract_strided_slice %61 {offsets = [0, 24], sizes = [16, 8], strides = [1, 1]} : vector<16x32xf32> to vector<16x8xf32>
    %125 = vector.extract_strided_slice %62 {offsets = [0, 24], sizes = [16, 8], strides = [1, 1]} : vector<16x32xf32> to vector<16x8xf32>
    %126 = vector.extract_strided_slice %63 {offsets = [0, 24], sizes = [16, 8], strides = [1, 1]} : vector<16x32xf32> to vector<16x8xf32>
    %127 = tpu.transpose %125, [1, 0] : vector<16x8xf32> -> vector<8x16xf32>
    %cst_45 = arith.constant dense<0.000000e+00> : vector<16x16xf32>
    %128 = tpu.matmul %124, %127, %cst_45 {dimension_numbers = #tpu.dot_dimension_numbers<[1], [0], [0], [1], [0, 0, 1, 1], [], []>} : vector<16x8xf32>, vector<8x16xf32>, vector<16x16xf32> -> vector<16x16xf32>
    %cst_46 = arith.constant 0.353553385 : f32
    %129 = vector.broadcast %cst_46 : f32 to vector<16x16xf32>
    %130 = arith.mulf %128, %129 : vector<16x16xf32>
    %cst_47 = arith.constant -1.000000e+30 : f32
    %131 = vector.broadcast %cst_47 : f32 to vector<16x16xf32>
    %132 = arith.select %18, %130, %131 : vector<16x16xi1>, vector<16x16xf32>
    %cst_48 = arith.constant dense<0xFF800000> : vector<16xf32>
    %133 = vector.multi_reduction <maximumf>, %132, %cst_48 [1] : vector<16x16xf32> to vector<16xf32>
    %134 = vector.shape_cast %133 : vector<16xf32> to vector<16x1xf32>
    %135 = vector.broadcast %134 : vector<16x1xf32> to vector<16x16xf32>
    %136 = arith.subf %132, %135 : vector<16x16xf32>
    %137 = math.exp %136 : vector<16x16xf32>
    %cst_49 = arith.constant dense<0.000000e+00> : vector<16xf32>
    %138 = vector.multi_reduction <add>, %137, %cst_49 [1] : vector<16x16xf32> to vector<16xf32>
    %139 = vector.shape_cast %138 : vector<16xf32> to vector<16x1xf32>
    %140 = tpu.reciprocal %139 {approx = true} : vector<16x1xf32> -> vector<16x1xf32>
    %141 = vector.broadcast %140 : vector<16x1xf32> to vector<16x16xf32>
    %142 = arith.mulf %137, %141 : vector<16x16xf32>
    %cst_50 = arith.constant dense<0.000000e+00> : vector<16x8xf32>
    %143 = tpu.matmul %142, %126, %cst_50 {dimension_numbers = #tpu.dot_dimension_numbers<[1], [0], [0], [1], [0, 0, 1, 1], [], []>} : vector<16x16xf32>, vector<16x8xf32>, vector<16x8xf32> -> vector<16x8xf32>
    %144 = tpu.concatenate %83, %103, %123, %143 in 1 : vector<16x8xf32>, vector<16x8xf32>, vector<16x8xf32>, vector<16x8xf32> -> vector<16x32xf32>
    %145 = arith.truncf %144 : vector<16x32xf32> to vector<16x32xbf16>
    %cst_51 = arith.constant dense<0.000000e+00> : vector<16x32xf32>
    %146 = tpu.matmul %145, %27, %cst_51 {dimension_numbers = #tpu.dot_dimension_numbers<[1], [0], [0], [1], [0, 0, 1, 1], [], []>} : vector<16x32xbf16>, vector<32x32xbf16>, vector<16x32xf32> -> vector<16x32xf32>
    %147 = vector.broadcast %34 : vector<1x32xf32> to vector<16x32xf32>
    %148 = arith.addf %146, %147 : vector<16x32xf32>
    %149 = arith.addf %10, %148 : vector<16x32xf32>
    %cst_52 = arith.constant dense<0.000000e+00> : vector<16xf32>
    %150 = vector.multi_reduction <add>, %149, %cst_52 [1] : vector<16x32xf32> to vector<16xf32>
    %151 = vector.shape_cast %150 : vector<16xf32> to vector<16x1xf32>
    %cst_53 = arith.constant 3.200000e+01 : f32
    %152 = vector.broadcast %cst_53 : f32 to vector<16x1xf32>
    %153 = arith.divf %151, %152 : vector<16x1xf32>
    %154 = vector.broadcast %153 : vector<16x1xf32> to vector<16x32xf32>
    %155 = arith.subf %149, %154 : vector<16x32xf32>
    %156 = arith.mulf %155, %155 : vector<16x32xf32>
    %cst_54 = arith.constant dense<0.000000e+00> : vector<16xf32>
    %157 = vector.multi_reduction <add>, %156, %cst_54 [1] : vector<16x32xf32> to vector<16xf32>
    %158 = vector.shape_cast %157 : vector<16xf32> to vector<16x1xf32>
    %cst_55 = arith.constant 3.200000e+01 : f32
    %159 = vector.broadcast %cst_55 : f32 to vector<16x1xf32>
    %160 = arith.divf %158, %159 : vector<16x1xf32>
    %cst_56 = arith.constant 9.99999974E-6 : f32
    %161 = vector.broadcast %cst_56 : f32 to vector<16x1xf32>
    %162 = arith.addf %160, %161 : vector<16x1xf32>
    %163 = math.rsqrt %162 : vector<16x1xf32>
    %164 = vector.broadcast %163 : vector<16x1xf32> to vector<16x32xf32>
    %165 = arith.mulf %155, %164 : vector<16x32xf32>
    %166 = vector.broadcast %35 : vector<1x32xf32> to vector<16x32xf32>
    %167 = arith.mulf %165, %166 : vector<16x32xf32>
    %168 = vector.broadcast %36 : vector<1x32xf32> to vector<16x32xf32>
    %169 = arith.addf %167, %168 : vector<16x32xf32>
    %170 = arith.truncf %169 : vector<16x32xf32> to vector<16x32xbf16>
    %cst_57 = arith.constant dense<0.000000e+00> : vector<16x128xf32>
    %171 = tpu.matmul %170, %29, %cst_57 {dimension_numbers = #tpu.dot_dimension_numbers<[1], [0], [0], [1], [0, 0, 1, 1], [], []>} : vector<16x32xbf16>, vector<32x128xbf16>, vector<16x128xf32> -> vector<16x128xf32>
    %172 = vector.broadcast %38 : vector<1x128xf32> to vector<16x128xf32>
    %173 = arith.addf %171, %172 : vector<16x128xf32>
    %cst_58 = arith.constant 5.000000e-01 : f32
    %174 = vector.broadcast %cst_58 : f32 to vector<16x128xf32>
    %175 = arith.mulf %174, %173 : vector<16x128xf32>
    %cst_59 = arith.constant 4.471500e-02 : f32
    %176 = vector.broadcast %cst_59 : f32 to vector<16x128xf32>
    %177 = arith.mulf %176, %173 : vector<16x128xf32>
    %178 = arith.mulf %177, %173 : vector<16x128xf32>
    %179 = arith.mulf %178, %173 : vector<16x128xf32>
    %180 = arith.addf %173, %179 : vector<16x128xf32>
    %cst_60 = arith.constant 0.797884583 : f32
    %181 = vector.broadcast %cst_60 : f32 to vector<16x128xf32>
    %182 = arith.mulf %181, %180 : vector<16x128xf32>
    %183 = math.tanh %182 : vector<16x128xf32>
    %cst_61 = arith.constant 1.000000e+00 : f32
    %184 = vector.broadcast %cst_61 : f32 to vector<16x128xf32>
    %185 = arith.addf %184, %183 : vector<16x128xf32>
    %186 = arith.mulf %175, %185 : vector<16x128xf32>
    %187 = arith.truncf %186 : vector<16x128xf32> to vector<16x128xbf16>
    %cst_62 = arith.constant dense<0.000000e+00> : vector<16x32xf32>
    %188 = tpu.matmul %187, %31, %cst_62 {dimension_numbers = #tpu.dot_dimension_numbers<[1], [0], [0], [1], [0, 0, 1, 1], [], []>} : vector<16x128xbf16>, vector<128x32xbf16>, vector<16x32xf32> -> vector<16x32xf32>
    %189 = vector.broadcast %37 : vector<1x32xf32> to vector<16x32xf32>
    %190 = arith.addf %188, %189 : vector<16x32xf32>
    %191 = arith.addf %149, %190 : vector<16x32xf32>
    %c0_63 = arith.constant 0 : index
    %c0_64 = arith.constant 0 : index
    %c0_65 = arith.constant 0 : index
    %192 = vector.load %arg8[%c0_63, %c0_64, %c0_65] : memref<4x8x64xf32, #tpu.memory_space<vmem>>, vector<1x8x64xf32>
    %193 = vector.shape_cast %192 : vector<1x8x64xf32> to vector<8x64xf32>
    %c0_66 = arith.constant 0 : index
    %c0_67 = arith.constant 0 : index
    %c0_68 = arith.constant 0 : index
    %194 = vector.load %arg9[%c0_66, %c0_67, %c0_68] : memref<4x32x128xbf16, #tpu.memory_space<vmem>>, vector<1x32x128xbf16>
    %195 = vector.shape_cast %194 : vector<1x32x128xbf16> to vector<32x128xbf16>
    %c0_69 = arith.constant 0 : index
    %c0_70 = arith.constant 0 : index
    %c0_71 = arith.constant 0 : index
    %196 = vector.load %arg10[%c0_69, %c0_70, %c0_71] : memref<4x64x20xbf16, #tpu.memory_space<vmem>>, vector<1x64x20xbf16>
    %197 = vector.shape_cast %196 : vector<1x64x20xbf16> to vector<64x20xbf16>
    %c0_72 = arith.constant 0 : index
    %c0_73 = arith.constant 0 : index
    %c0_74 = arith.constant 0 : index
    %198 = vector.load %arg11[%c0_72, %c0_73, %c0_74] : memref<4x4x64xbf16, #tpu.memory_space<vmem>>, vector<1x4x64xbf16>
    %199 = vector.shape_cast %198 : vector<1x4x64xbf16> to vector<4x64xbf16>
    %c0_75 = arith.constant 0 : index
    %c0_76 = arith.constant 0 : index
    %c0_77 = arith.constant 0 : index
    %200 = vector.load %arg12[%c0_75, %c0_76, %c0_77] : memref<4x8x128xf32, #tpu.memory_space<vmem>>, vector<1x8x128xf32>
    %201 = vector.shape_cast %200 : vector<1x8x128xf32> to vector<8x128xf32>
    %c0_78 = arith.constant 0 : index
    %c0_79 = arith.constant 0 : index
    %c0_80 = arith.constant 0 : index
    %202 = vector.load %arg13[%c0_78, %c0_79, %c0_80] : memref<4x64x32xbf16, #tpu.memory_space<vmem>>, vector<1x64x32xbf16>
    %203 = vector.shape_cast %202 : vector<1x64x32xbf16> to vector<64x32xbf16>
    %204 = vector.extract_strided_slice %193 {offsets = [0, 0], sizes = [1, 32], strides = [1, 1]} : vector<8x64xf32> to vector<1x32xf32>
    %205 = vector.extract_strided_slice %193 {offsets = [1, 0], sizes = [1, 64], strides = [1, 1]} : vector<8x64xf32> to vector<1x64xf32>
    %206 = vector.extract_strided_slice %193 {offsets = [2, 0], sizes = [1, 64], strides = [1, 1]} : vector<8x64xf32> to vector<1x64xf32>
    %207 = vector.extract_strided_slice %193 {offsets = [3, 0], sizes = [1, 64], strides = [1, 1]} : vector<8x64xf32> to vector<1x64xf32>
    %208 = arith.mulf %10, %10 : vector<16x32xf32>
    %cst_81 = arith.constant dense<0.000000e+00> : vector<16xf32>
    %209 = vector.multi_reduction <add>, %208, %cst_81 [1] : vector<16x32xf32> to vector<16xf32>
    %210 = vector.shape_cast %209 : vector<16xf32> to vector<16x1xf32>
    %cst_82 = arith.constant 3.200000e+01 : f32
    %211 = vector.broadcast %cst_82 : f32 to vector<16x1xf32>
    %212 = arith.divf %210, %211 : vector<16x1xf32>
    %cst_83 = arith.constant 9.99999974E-6 : f32
    %213 = vector.broadcast %cst_83 : f32 to vector<16x1xf32>
    %214 = arith.addf %212, %213 : vector<16x1xf32>
    %215 = math.rsqrt %214 : vector<16x1xf32>
    %216 = vector.broadcast %215 : vector<16x1xf32> to vector<16x32xf32>
    %217 = arith.mulf %10, %216 : vector<16x32xf32>
    %218 = vector.broadcast %204 : vector<1x32xf32> to vector<16x32xf32>
    %219 = arith.mulf %217, %218 : vector<16x32xf32>
    %220 = arith.truncf %219 : vector<16x32xf32> to vector<16x32xbf16>
    %cst_84 = arith.constant dense<0.000000e+00> : vector<16x128xf32>
    %221 = tpu.matmul %220, %195, %cst_84 {dimension_numbers = #tpu.dot_dimension_numbers<[1], [0], [0], [1], [0, 0, 1, 1], [], []>} : vector<16x32xbf16>, vector<32x128xbf16>, vector<16x128xf32> -> vector<16x128xf32>
    %222 = vector.extract_strided_slice %221 {offsets = [0, 0], sizes = [16, 64], strides = [1, 1]} : vector<16x128xf32> to vector<16x64xf32>
    %223 = vector.extract_strided_slice %221 {offsets = [0, 64], sizes = [16, 64], strides = [1, 1]} : vector<16x128xf32> to vector<16x64xf32>
    %224 = vector.extract_strided_slice %193 {offsets = [7, 0], sizes = [1, 64], strides = [1, 1]} : vector<8x64xf32> to vector<1x64xf32>
    %225 = vector.broadcast %224 : vector<1x64xf32> to vector<16x64xf32>
    %226 = arith.mulf %222, %225 : vector<16x64xf32>
    %c3_i32 = arith.constant 3 : i32
    %227 = tpu.dynamic_rotate %222 by %c3_i32 dim 0 : vector<16x64xf32>, i32 -> vector<16x64xf32>
    %c3_i32_85 = arith.constant 3 : i32
    %228 = vector.broadcast %c3_i32_85 : i32 to vector<16x64xi32>
    %229 = arith.cmpi sge, %21, %228 : vector<16x64xi32>
    %cst_86 = arith.constant 0.000000e+00 : f32
    %230 = vector.broadcast %cst_86 : f32 to vector<16x64xf32>
    %231 = arith.select %229, %227, %230 : vector<16x64xi1>, vector<16x64xf32>
    %232 = vector.extract_strided_slice %193 {offsets = [4, 0], sizes = [1, 64], strides = [1, 1]} : vector<8x64xf32> to vector<1x64xf32>
    %233 = vector.broadcast %232 : vector<1x64xf32> to vector<16x64xf32>
    %234 = arith.mulf %231, %233 : vector<16x64xf32>
    %235 = arith.addf %226, %234 : vector<16x64xf32>
    %c2_i32 = arith.constant 2 : i32
    %236 = tpu.dynamic_rotate %222 by %c2_i32 dim 0 : vector<16x64xf32>, i32 -> vector<16x64xf32>
    %c2_i32_87 = arith.constant 2 : i32
    %237 = vector.broadcast %c2_i32_87 : i32 to vector<16x64xi32>
    %238 = arith.cmpi sge, %21, %237 : vector<16x64xi32>
    %cst_88 = arith.constant 0.000000e+00 : f32
    %239 = vector.broadcast %cst_88 : f32 to vector<16x64xf32>
    %240 = arith.select %238, %236, %239 : vector<16x64xi1>, vector<16x64xf32>
    %241 = vector.extract_strided_slice %193 {offsets = [5, 0], sizes = [1, 64], strides = [1, 1]} : vector<8x64xf32> to vector<1x64xf32>
    %242 = vector.broadcast %241 : vector<1x64xf32> to vector<16x64xf32>
    %243 = arith.mulf %240, %242 : vector<16x64xf32>
    %244 = arith.addf %235, %243 : vector<16x64xf32>
    %c1_i32 = arith.constant 1 : i32
    %245 = tpu.dynamic_rotate %222 by %c1_i32 dim 0 : vector<16x64xf32>, i32 -> vector<16x64xf32>
    %c1_i32_89 = arith.constant 1 : i32
    %246 = vector.broadcast %c1_i32_89 : i32 to vector<16x64xi32>
    %247 = arith.cmpi sge, %21, %246 : vector<16x64xi32>
    %cst_90 = arith.constant 0.000000e+00 : f32
    %248 = vector.broadcast %cst_90 : f32 to vector<16x64xf32>
    %249 = arith.select %247, %245, %248 : vector<16x64xi1>, vector<16x64xf32>
    %250 = vector.extract_strided_slice %193 {offsets = [6, 0], sizes = [1, 64], strides = [1, 1]} : vector<8x64xf32> to vector<1x64xf32>
    %251 = vector.broadcast %250 : vector<1x64xf32> to vector<16x64xf32>
    %252 = arith.mulf %249, %251 : vector<16x64xf32>
    %253 = arith.addf %244, %252 : vector<16x64xf32>
    %254 = vector.broadcast %205 : vector<1x64xf32> to vector<16x64xf32>
    %255 = arith.addf %253, %254 : vector<16x64xf32>
    %cst_91 = arith.constant 0.000000e+00 : f32
    %256 = vector.broadcast %cst_91 : f32 to vector<16x64xf32>
    %257 = arith.subf %256, %255 : vector<16x64xf32>
    %258 = math.exp %257 : vector<16x64xf32>
    %cst_92 = arith.constant 1.000000e+00 : f32
    %259 = vector.broadcast %cst_92 : f32 to vector<16x64xf32>
    %260 = arith.addf %259, %258 : vector<16x64xf32>
    %cst_93 = arith.constant 1.000000e+00 : f32
    %261 = vector.broadcast %cst_93 : f32 to vector<16x64xf32>
    %262 = arith.divf %261, %260 : vector<16x64xf32>
    %263 = arith.mulf %255, %262 : vector<16x64xf32>
    %264 = arith.truncf %263 : vector<16x64xf32> to vector<16x64xbf16>
    %cst_94 = arith.constant dense<0.000000e+00> : vector<16x20xf32>
    %265 = tpu.matmul %264, %197, %cst_94 {dimension_numbers = #tpu.dot_dimension_numbers<[1], [0], [0], [1], [0, 0, 1, 1], [], []>} : vector<16x64xbf16>, vector<64x20xbf16>, vector<16x20xf32> -> vector<16x20xf32>
    %266 = vector.extract_strided_slice %265 {offsets = [0, 0], sizes = [16, 4], strides = [1, 1]} : vector<16x20xf32> to vector<16x4xf32>
    %267 = arith.truncf %266 : vector<16x4xf32> to vector<16x4xbf16>
    %cst_95 = arith.constant dense<0.000000e+00> : vector<16x64xf32>
    %268 = tpu.matmul %267, %199, %cst_95 {dimension_numbers = #tpu.dot_dimension_numbers<[1], [0], [0], [1], [0, 0, 1, 1], [], []>} : vector<16x4xbf16>, vector<4x64xbf16>, vector<16x64xf32> -> vector<16x64xf32>
    %269 = vector.broadcast %206 : vector<1x64xf32> to vector<16x64xf32>
    %270 = arith.addf %268, %269 : vector<16x64xf32>
    %cst_96 = arith.constant 0.000000e+00 : f32
    %271 = vector.broadcast %cst_96 : f32 to vector<16x64xf32>
    %272 = arith.maximumf %270, %271 : vector<16x64xf32>
    %273 = math.absf %270 : vector<16x64xf32>
    %cst_97 = arith.constant 0.000000e+00 : f32
    %274 = vector.broadcast %cst_97 : f32 to vector<16x64xf32>
    %275 = arith.subf %274, %273 : vector<16x64xf32>
    %276 = math.exp %275 : vector<16x64xf32>
    %cst_98 = arith.constant 1.000000e+00 : f32
    %277 = vector.broadcast %cst_98 : f32 to vector<16x64xf32>
    %278 = arith.addf %277, %276 : vector<16x64xf32>
    %279 = math.log %278 : vector<16x64xf32>
    %280 = arith.addf %272, %279 : vector<16x64xf32>
    %281 = vector.extract_strided_slice %265 {offsets = [0, 4], sizes = [16, 8], strides = [1, 1]} : vector<16x20xf32> to vector<16x8xf32>
    %282 = tpu.transpose %281, [1, 0] : vector<16x8xf32> -> vector<8x16xf32>
    %283 = vector.extract_strided_slice %265 {offsets = [0, 12], sizes = [16, 8], strides = [1, 1]} : vector<16x20xf32> to vector<16x8xf32>
    %284 = tpu.transpose %283, [1, 0] : vector<16x8xf32> -> vector<8x16xf32>
    %285 = vector.extract_strided_slice %280 {offsets = [0, 0], sizes = [8, 64], strides = [1, 1]} : vector<16x64xf32> to vector<8x64xf32>
    %286 = vector.extract_strided_slice %280 {offsets = [8, 0], sizes = [8, 64], strides = [1, 1]} : vector<16x64xf32> to vector<8x64xf32>
    %287 = tpu.concatenate %285, %286 in 1 : vector<8x64xf32>, vector<8x64xf32> -> vector<8x128xf32>
    %288 = arith.mulf %280, %263 : vector<16x64xf32>
    %289 = vector.extract_strided_slice %288 {offsets = [0, 0], sizes = [8, 64], strides = [1, 1]} : vector<16x64xf32> to vector<8x64xf32>
    %290 = vector.extract_strided_slice %288 {offsets = [8, 0], sizes = [8, 64], strides = [1, 1]} : vector<16x64xf32> to vector<8x64xf32>
    %291 = tpu.concatenate %289, %290 in 1 : vector<8x64xf32>, vector<8x64xf32> -> vector<8x128xf32>
    %292 = vector.extract_strided_slice %282 {offsets = [0, 0], sizes = [8, 1], strides = [1, 1]} : vector<8x16xf32> to vector<8x1xf32>
    %293 = vector.shape_cast %292 : vector<8x1xf32> to vector<8x1xf32>
    %294 = vector.broadcast %293 : vector<8x1xf32> to vector<8x64xf32>
    %295 = vector.extract_strided_slice %282 {offsets = [0, 8], sizes = [8, 1], strides = [1, 1]} : vector<8x16xf32> to vector<8x1xf32>
    %296 = vector.shape_cast %295 : vector<8x1xf32> to vector<8x1xf32>
    %297 = vector.broadcast %296 : vector<8x1xf32> to vector<8x64xf32>
    %298 = tpu.concatenate %294, %297 in 1 : vector<8x64xf32>, vector<8x64xf32> -> vector<8x128xf32>
    %299 = vector.extract_strided_slice %284 {offsets = [0, 0], sizes = [8, 1], strides = [1, 1]} : vector<8x16xf32> to vector<8x1xf32>
    %300 = vector.shape_cast %299 : vector<8x1xf32> to vector<8x1xf32>
    %301 = vector.broadcast %300 : vector<8x1xf32> to vector<8x64xf32>
    %302 = vector.extract_strided_slice %284 {offsets = [0, 8], sizes = [8, 1], strides = [1, 1]} : vector<8x16xf32> to vector<8x1xf32>
    %303 = vector.shape_cast %302 : vector<8x1xf32> to vector<8x1xf32>
    %304 = vector.broadcast %303 : vector<8x1xf32> to vector<8x64xf32>
    %305 = tpu.concatenate %301, %304 in 1 : vector<8x64xf32>, vector<8x64xf32> -> vector<8x128xf32>
    %306 = vector.extract_strided_slice %291 {offsets = [0, 0], sizes = [1, 128], strides = [1, 1]} : vector<8x128xf32> to vector<1x128xf32>
    %307 = vector.broadcast %306 : vector<1x128xf32> to vector<8x128xf32>
    %308 = arith.mulf %307, %298 : vector<8x128xf32>
    %309 = arith.mulf %305, %308 : vector<8x128xf32>
    %cst_99 = arith.constant dense<0.000000e+00> : vector<128xf32>
    %310 = vector.multi_reduction <add>, %309, %cst_99 [0] : vector<8x128xf32> to vector<128xf32>
    %311 = vector.shape_cast %310 : vector<128xf32> to vector<1x128xf32>
    %312 = vector.extract_strided_slice %282 {offsets = [0, 1], sizes = [8, 1], strides = [1, 1]} : vector<8x16xf32> to vector<8x1xf32>
    %313 = vector.shape_cast %312 : vector<8x1xf32> to vector<8x1xf32>
    %314 = vector.broadcast %313 : vector<8x1xf32> to vector<8x64xf32>
    %315 = vector.extract_strided_slice %282 {offsets = [0, 9], sizes = [8, 1], strides = [1, 1]} : vector<8x16xf32> to vector<8x1xf32>
    %316 = vector.shape_cast %315 : vector<8x1xf32> to vector<8x1xf32>
    %317 = vector.broadcast %316 : vector<8x1xf32> to vector<8x64xf32>
    %318 = tpu.concatenate %314, %317 in 1 : vector<8x64xf32>, vector<8x64xf32> -> vector<8x128xf32>
    %319 = vector.extract_strided_slice %284 {offsets = [0, 1], sizes = [8, 1], strides = [1, 1]} : vector<8x16xf32> to vector<8x1xf32>
    %320 = vector.shape_cast %319 : vector<8x1xf32> to vector<8x1xf32>
    %321 = vector.broadcast %320 : vector<8x1xf32> to vector<8x64xf32>
    %322 = vector.extract_strided_slice %284 {offsets = [0, 9], sizes = [8, 1], strides = [1, 1]} : vector<8x16xf32> to vector<8x1xf32>
    %323 = vector.shape_cast %322 : vector<8x1xf32> to vector<8x1xf32>
    %324 = vector.broadcast %323 : vector<8x1xf32> to vector<8x64xf32>
    %325 = tpu.concatenate %321, %324 in 1 : vector<8x64xf32>, vector<8x64xf32> -> vector<8x128xf32>
    %326 = vector.extract_strided_slice %291 {offsets = [1, 0], sizes = [1, 128], strides = [1, 1]} : vector<8x128xf32> to vector<1x128xf32>
    %327 = vector.broadcast %326 : vector<1x128xf32> to vector<8x128xf32>
    %328 = arith.mulf %327, %318 : vector<8x128xf32>
    %329 = vector.extract_strided_slice %287 {offsets = [1, 0], sizes = [1, 128], strides = [1, 1]} : vector<8x128xf32> to vector<1x128xf32>
    %330 = vector.broadcast %329 : vector<1x128xf32> to vector<8x128xf32>
    %331 = arith.mulf %330, %201 : vector<8x128xf32>
    %332 = math.exp %331 : vector<8x128xf32>
    %333 = arith.mulf %332, %308 : vector<8x128xf32>
    %334 = arith.addf %333, %328 : vector<8x128xf32>
    %335 = arith.mulf %325, %334 : vector<8x128xf32>
    %cst_100 = arith.constant dense<0.000000e+00> : vector<128xf32>
    %336 = vector.multi_reduction <add>, %335, %cst_100 [0] : vector<8x128xf32> to vector<128xf32>
    %337 = vector.shape_cast %336 : vector<128xf32> to vector<1x128xf32>
    %338 = vector.extract_strided_slice %282 {offsets = [0, 2], sizes = [8, 1], strides = [1, 1]} : vector<8x16xf32> to vector<8x1xf32>
    %339 = vector.shape_cast %338 : vector<8x1xf32> to vector<8x1xf32>
    %340 = vector.broadcast %339 : vector<8x1xf32> to vector<8x64xf32>
    %341 = vector.extract_strided_slice %282 {offsets = [0, 10], sizes = [8, 1], strides = [1, 1]} : vector<8x16xf32> to vector<8x1xf32>
    %342 = vector.shape_cast %341 : vector<8x1xf32> to vector<8x1xf32>
    %343 = vector.broadcast %342 : vector<8x1xf32> to vector<8x64xf32>
    %344 = tpu.concatenate %340, %343 in 1 : vector<8x64xf32>, vector<8x64xf32> -> vector<8x128xf32>
    %345 = vector.extract_strided_slice %284 {offsets = [0, 2], sizes = [8, 1], strides = [1, 1]} : vector<8x16xf32> to vector<8x1xf32>
    %346 = vector.shape_cast %345 : vector<8x1xf32> to vector<8x1xf32>
    %347 = vector.broadcast %346 : vector<8x1xf32> to vector<8x64xf32>
    %348 = vector.extract_strided_slice %284 {offsets = [0, 10], sizes = [8, 1], strides = [1, 1]} : vector<8x16xf32> to vector<8x1xf32>
    %349 = vector.shape_cast %348 : vector<8x1xf32> to vector<8x1xf32>
    %350 = vector.broadcast %349 : vector<8x1xf32> to vector<8x64xf32>
    %351 = tpu.concatenate %347, %350 in 1 : vector<8x64xf32>, vector<8x64xf32> -> vector<8x128xf32>
    %352 = vector.extract_strided_slice %291 {offsets = [2, 0], sizes = [1, 128], strides = [1, 1]} : vector<8x128xf32> to vector<1x128xf32>
    %353 = vector.broadcast %352 : vector<1x128xf32> to vector<8x128xf32>
    %354 = arith.mulf %353, %344 : vector<8x128xf32>
    %355 = vector.extract_strided_slice %287 {offsets = [2, 0], sizes = [1, 128], strides = [1, 1]} : vector<8x128xf32> to vector<1x128xf32>
    %356 = vector.broadcast %355 : vector<1x128xf32> to vector<8x128xf32>
    %357 = arith.mulf %356, %201 : vector<8x128xf32>
    %358 = math.exp %357 : vector<8x128xf32>
    %359 = arith.mulf %358, %334 : vector<8x128xf32>
    %360 = arith.addf %359, %354 : vector<8x128xf32>
    %361 = arith.mulf %351, %360 : vector<8x128xf32>
    %cst_101 = arith.constant dense<0.000000e+00> : vector<128xf32>
    %362 = vector.multi_reduction <add>, %361, %cst_101 [0] : vector<8x128xf32> to vector<128xf32>
    %363 = vector.shape_cast %362 : vector<128xf32> to vector<1x128xf32>
    %364 = vector.extract_strided_slice %282 {offsets = [0, 3], sizes = [8, 1], strides = [1, 1]} : vector<8x16xf32> to vector<8x1xf32>
    %365 = vector.shape_cast %364 : vector<8x1xf32> to vector<8x1xf32>
    %366 = vector.broadcast %365 : vector<8x1xf32> to vector<8x64xf32>
    %367 = vector.extract_strided_slice %282 {offsets = [0, 11], sizes = [8, 1], strides = [1, 1]} : vector<8x16xf32> to vector<8x1xf32>
    %368 = vector.shape_cast %367 : vector<8x1xf32> to vector<8x1xf32>
    %369 = vector.broadcast %368 : vector<8x1xf32> to vector<8x64xf32>
    %370 = tpu.concatenate %366, %369 in 1 : vector<8x64xf32>, vector<8x64xf32> -> vector<8x128xf32>
    %371 = vector.extract_strided_slice %284 {offsets = [0, 3], sizes = [8, 1], strides = [1, 1]} : vector<8x16xf32> to vector<8x1xf32>
    %372 = vector.shape_cast %371 : vector<8x1xf32> to vector<8x1xf32>
    %373 = vector.broadcast %372 : vector<8x1xf32> to vector<8x64xf32>
    %374 = vector.extract_strided_slice %284 {offsets = [0, 11], sizes = [8, 1], strides = [1, 1]} : vector<8x16xf32> to vector<8x1xf32>
    %375 = vector.shape_cast %374 : vector<8x1xf32> to vector<8x1xf32>
    %376 = vector.broadcast %375 : vector<8x1xf32> to vector<8x64xf32>
    %377 = tpu.concatenate %373, %376 in 1 : vector<8x64xf32>, vector<8x64xf32> -> vector<8x128xf32>
    %378 = vector.extract_strided_slice %291 {offsets = [3, 0], sizes = [1, 128], strides = [1, 1]} : vector<8x128xf32> to vector<1x128xf32>
    %379 = vector.broadcast %378 : vector<1x128xf32> to vector<8x128xf32>
    %380 = arith.mulf %379, %370 : vector<8x128xf32>
    %381 = vector.extract_strided_slice %287 {offsets = [3, 0], sizes = [1, 128], strides = [1, 1]} : vector<8x128xf32> to vector<1x128xf32>
    %382 = vector.broadcast %381 : vector<1x128xf32> to vector<8x128xf32>
    %383 = arith.mulf %382, %201 : vector<8x128xf32>
    %384 = math.exp %383 : vector<8x128xf32>
    %385 = arith.mulf %384, %360 : vector<8x128xf32>
    %386 = arith.addf %385, %380 : vector<8x128xf32>
    %387 = arith.mulf %377, %386 : vector<8x128xf32>
    %cst_102 = arith.constant dense<0.000000e+00> : vector<128xf32>
    %388 = vector.multi_reduction <add>, %387, %cst_102 [0] : vector<8x128xf32> to vector<128xf32>
    %389 = vector.shape_cast %388 : vector<128xf32> to vector<1x128xf32>
    %390 = vector.extract_strided_slice %282 {offsets = [0, 4], sizes = [8, 1], strides = [1, 1]} : vector<8x16xf32> to vector<8x1xf32>
    %391 = vector.shape_cast %390 : vector<8x1xf32> to vector<8x1xf32>
    %392 = vector.broadcast %391 : vector<8x1xf32> to vector<8x64xf32>
    %393 = vector.extract_strided_slice %282 {offsets = [0, 12], sizes = [8, 1], strides = [1, 1]} : vector<8x16xf32> to vector<8x1xf32>
    %394 = vector.shape_cast %393 : vector<8x1xf32> to vector<8x1xf32>
    %395 = vector.broadcast %394 : vector<8x1xf32> to vector<8x64xf32>
    %396 = tpu.concatenate %392, %395 in 1 : vector<8x64xf32>, vector<8x64xf32> -> vector<8x128xf32>
    %397 = vector.extract_strided_slice %284 {offsets = [0, 4], sizes = [8, 1], strides = [1, 1]} : vector<8x16xf32> to vector<8x1xf32>
    %398 = vector.shape_cast %397 : vector<8x1xf32> to vector<8x1xf32>
    %399 = vector.broadcast %398 : vector<8x1xf32> to vector<8x64xf32>
    %400 = vector.extract_strided_slice %284 {offsets = [0, 12], sizes = [8, 1], strides = [1, 1]} : vector<8x16xf32> to vector<8x1xf32>
    %401 = vector.shape_cast %400 : vector<8x1xf32> to vector<8x1xf32>
    %402 = vector.broadcast %401 : vector<8x1xf32> to vector<8x64xf32>
    %403 = tpu.concatenate %399, %402 in 1 : vector<8x64xf32>, vector<8x64xf32> -> vector<8x128xf32>
    %404 = vector.extract_strided_slice %291 {offsets = [4, 0], sizes = [1, 128], strides = [1, 1]} : vector<8x128xf32> to vector<1x128xf32>
    %405 = vector.broadcast %404 : vector<1x128xf32> to vector<8x128xf32>
    %406 = arith.mulf %405, %396 : vector<8x128xf32>
    %407 = vector.extract_strided_slice %287 {offsets = [4, 0], sizes = [1, 128], strides = [1, 1]} : vector<8x128xf32> to vector<1x128xf32>
    %408 = vector.broadcast %407 : vector<1x128xf32> to vector<8x128xf32>
    %409 = arith.mulf %408, %201 : vector<8x128xf32>
    %410 = math.exp %409 : vector<8x128xf32>
    %411 = arith.mulf %410, %386 : vector<8x128xf32>
    %412 = arith.addf %411, %406 : vector<8x128xf32>
    %413 = arith.mulf %403, %412 : vector<8x128xf32>
    %cst_103 = arith.constant dense<0.000000e+00> : vector<128xf32>
    %414 = vector.multi_reduction <add>, %413, %cst_103 [0] : vector<8x128xf32> to vector<128xf32>
    %415 = vector.shape_cast %414 : vector<128xf32> to vector<1x128xf32>
    %416 = vector.extract_strided_slice %282 {offsets = [0, 5], sizes = [8, 1], strides = [1, 1]} : vector<8x16xf32> to vector<8x1xf32>
    %417 = vector.shape_cast %416 : vector<8x1xf32> to vector<8x1xf32>
    %418 = vector.broadcast %417 : vector<8x1xf32> to vector<8x64xf32>
    %419 = vector.extract_strided_slice %282 {offsets = [0, 13], sizes = [8, 1], strides = [1, 1]} : vector<8x16xf32> to vector<8x1xf32>
    %420 = vector.shape_cast %419 : vector<8x1xf32> to vector<8x1xf32>
    %421 = vector.broadcast %420 : vector<8x1xf32> to vector<8x64xf32>
    %422 = tpu.concatenate %418, %421 in 1 : vector<8x64xf32>, vector<8x64xf32> -> vector<8x128xf32>
    %423 = vector.extract_strided_slice %284 {offsets = [0, 5], sizes = [8, 1], strides = [1, 1]} : vector<8x16xf32> to vector<8x1xf32>
    %424 = vector.shape_cast %423 : vector<8x1xf32> to vector<8x1xf32>
    %425 = vector.broadcast %424 : vector<8x1xf32> to vector<8x64xf32>
    %426 = vector.extract_strided_slice %284 {offsets = [0, 13], sizes = [8, 1], strides = [1, 1]} : vector<8x16xf32> to vector<8x1xf32>
    %427 = vector.shape_cast %426 : vector<8x1xf32> to vector<8x1xf32>
    %428 = vector.broadcast %427 : vector<8x1xf32> to vector<8x64xf32>
    %429 = tpu.concatenate %425, %428 in 1 : vector<8x64xf32>, vector<8x64xf32> -> vector<8x128xf32>
    %430 = vector.extract_strided_slice %291 {offsets = [5, 0], sizes = [1, 128], strides = [1, 1]} : vector<8x128xf32> to vector<1x128xf32>
    %431 = vector.broadcast %430 : vector<1x128xf32> to vector<8x128xf32>
    %432 = arith.mulf %431, %422 : vector<8x128xf32>
    %433 = vector.extract_strided_slice %287 {offsets = [5, 0], sizes = [1, 128], strides = [1, 1]} : vector<8x128xf32> to vector<1x128xf32>
    %434 = vector.broadcast %433 : vector<1x128xf32> to vector<8x128xf32>
    %435 = arith.mulf %434, %201 : vector<8x128xf32>
    %436 = math.exp %435 : vector<8x128xf32>
    %437 = arith.mulf %436, %412 : vector<8x128xf32>
    %438 = arith.addf %437, %432 : vector<8x128xf32>
    %439 = arith.mulf %429, %438 : vector<8x128xf32>
    %cst_104 = arith.constant dense<0.000000e+00> : vector<128xf32>
    %440 = vector.multi_reduction <add>, %439, %cst_104 [0] : vector<8x128xf32> to vector<128xf32>
    %441 = vector.shape_cast %440 : vector<128xf32> to vector<1x128xf32>
    %442 = vector.extract_strided_slice %282 {offsets = [0, 6], sizes = [8, 1], strides = [1, 1]} : vector<8x16xf32> to vector<8x1xf32>
    %443 = vector.shape_cast %442 : vector<8x1xf32> to vector<8x1xf32>
    %444 = vector.broadcast %443 : vector<8x1xf32> to vector<8x64xf32>
    %445 = vector.extract_strided_slice %282 {offsets = [0, 14], sizes = [8, 1], strides = [1, 1]} : vector<8x16xf32> to vector<8x1xf32>
    %446 = vector.shape_cast %445 : vector<8x1xf32> to vector<8x1xf32>
    %447 = vector.broadcast %446 : vector<8x1xf32> to vector<8x64xf32>
    %448 = tpu.concatenate %444, %447 in 1 : vector<8x64xf32>, vector<8x64xf32> -> vector<8x128xf32>
    %449 = vector.extract_strided_slice %284 {offsets = [0, 6], sizes = [8, 1], strides = [1, 1]} : vector<8x16xf32> to vector<8x1xf32>
    %450 = vector.shape_cast %449 : vector<8x1xf32> to vector<8x1xf32>
    %451 = vector.broadcast %450 : vector<8x1xf32> to vector<8x64xf32>
    %452 = vector.extract_strided_slice %284 {offsets = [0, 14], sizes = [8, 1], strides = [1, 1]} : vector<8x16xf32> to vector<8x1xf32>
    %453 = vector.shape_cast %452 : vector<8x1xf32> to vector<8x1xf32>
    %454 = vector.broadcast %453 : vector<8x1xf32> to vector<8x64xf32>
    %455 = tpu.concatenate %451, %454 in 1 : vector<8x64xf32>, vector<8x64xf32> -> vector<8x128xf32>
    %456 = vector.extract_strided_slice %291 {offsets = [6, 0], sizes = [1, 128], strides = [1, 1]} : vector<8x128xf32> to vector<1x128xf32>
    %457 = vector.broadcast %456 : vector<1x128xf32> to vector<8x128xf32>
    %458 = arith.mulf %457, %448 : vector<8x128xf32>
    %459 = vector.extract_strided_slice %287 {offsets = [6, 0], sizes = [1, 128], strides = [1, 1]} : vector<8x128xf32> to vector<1x128xf32>
    %460 = vector.broadcast %459 : vector<1x128xf32> to vector<8x128xf32>
    %461 = arith.mulf %460, %201 : vector<8x128xf32>
    %462 = math.exp %461 : vector<8x128xf32>
    %463 = arith.mulf %462, %438 : vector<8x128xf32>
    %464 = arith.addf %463, %458 : vector<8x128xf32>
    %465 = arith.mulf %455, %464 : vector<8x128xf32>
    %cst_105 = arith.constant dense<0.000000e+00> : vector<128xf32>
    %466 = vector.multi_reduction <add>, %465, %cst_105 [0] : vector<8x128xf32> to vector<128xf32>
    %467 = vector.shape_cast %466 : vector<128xf32> to vector<1x128xf32>
    %468 = vector.extract_strided_slice %282 {offsets = [0, 7], sizes = [8, 1], strides = [1, 1]} : vector<8x16xf32> to vector<8x1xf32>
    %469 = vector.shape_cast %468 : vector<8x1xf32> to vector<8x1xf32>
    %470 = vector.broadcast %469 : vector<8x1xf32> to vector<8x64xf32>
    %471 = vector.extract_strided_slice %282 {offsets = [0, 15], sizes = [8, 1], strides = [1, 1]} : vector<8x16xf32> to vector<8x1xf32>
    %472 = vector.shape_cast %471 : vector<8x1xf32> to vector<8x1xf32>
    %473 = vector.broadcast %472 : vector<8x1xf32> to vector<8x64xf32>
    %474 = tpu.concatenate %470, %473 in 1 : vector<8x64xf32>, vector<8x64xf32> -> vector<8x128xf32>
    %475 = vector.extract_strided_slice %284 {offsets = [0, 7], sizes = [8, 1], strides = [1, 1]} : vector<8x16xf32> to vector<8x1xf32>
    %476 = vector.shape_cast %475 : vector<8x1xf32> to vector<8x1xf32>
    %477 = vector.broadcast %476 : vector<8x1xf32> to vector<8x64xf32>
    %478 = vector.extract_strided_slice %284 {offsets = [0, 15], sizes = [8, 1], strides = [1, 1]} : vector<8x16xf32> to vector<8x1xf32>
    %479 = vector.shape_cast %478 : vector<8x1xf32> to vector<8x1xf32>
    %480 = vector.broadcast %479 : vector<8x1xf32> to vector<8x64xf32>
    %481 = tpu.concatenate %477, %480 in 1 : vector<8x64xf32>, vector<8x64xf32> -> vector<8x128xf32>
    %482 = vector.extract_strided_slice %291 {offsets = [7, 0], sizes = [1, 128], strides = [1, 1]} : vector<8x128xf32> to vector<1x128xf32>
    %483 = vector.broadcast %482 : vector<1x128xf32> to vector<8x128xf32>
    %484 = arith.mulf %483, %474 : vector<8x128xf32>
    %485 = vector.extract_strided_slice %287 {offsets = [7, 0], sizes = [1, 128], strides = [1, 1]} : vector<8x128xf32> to vector<1x128xf32>
    %486 = vector.broadcast %485 : vector<1x128xf32> to vector<8x128xf32>
    %487 = arith.mulf %486, %201 : vector<8x128xf32>
    %488 = math.exp %487 : vector<8x128xf32>
    %489 = arith.mulf %488, %464 : vector<8x128xf32>
    %490 = arith.addf %489, %484 : vector<8x128xf32>
    %491 = arith.mulf %481, %490 : vector<8x128xf32>
    %cst_106 = arith.constant dense<0.000000e+00> : vector<128xf32>
    %492 = vector.multi_reduction <add>, %491, %cst_106 [0] : vector<8x128xf32> to vector<128xf32>
    %493 = vector.shape_cast %492 : vector<128xf32> to vector<1x128xf32>
    %494 = tpu.concatenate %311, %337, %363, %389, %415, %441, %467, %493 in 0 : vector<1x128xf32>, vector<1x128xf32>, vector<1x128xf32>, vector<1x128xf32>, vector<1x128xf32>, vector<1x128xf32>, vector<1x128xf32>, vector<1x128xf32> -> vector<8x128xf32>
    %495 = vector.extract_strided_slice %494 {offsets = [0, 0], sizes = [8, 64], strides = [1, 1]} : vector<8x128xf32> to vector<8x64xf32>
    %496 = vector.extract_strided_slice %494 {offsets = [0, 64], sizes = [8, 64], strides = [1, 1]} : vector<8x128xf32> to vector<8x64xf32>
    %497 = tpu.concatenate %495, %496 in 0 : vector<8x64xf32>, vector<8x64xf32> -> vector<16x64xf32>
    %498 = vector.broadcast %207 : vector<1x64xf32> to vector<16x64xf32>
    %499 = arith.mulf %263, %498 : vector<16x64xf32>
    %500 = arith.addf %497, %499 : vector<16x64xf32>
    %cst_107 = arith.constant 0.000000e+00 : f32
    %501 = vector.broadcast %cst_107 : f32 to vector<16x64xf32>
    %502 = arith.subf %501, %223 : vector<16x64xf32>
    %503 = math.exp %502 : vector<16x64xf32>
    %cst_108 = arith.constant 1.000000e+00 : f32
    %504 = vector.broadcast %cst_108 : f32 to vector<16x64xf32>
    %505 = arith.addf %504, %503 : vector<16x64xf32>
    %cst_109 = arith.constant 1.000000e+00 : f32
    %506 = vector.broadcast %cst_109 : f32 to vector<16x64xf32>
    %507 = arith.divf %506, %505 : vector<16x64xf32>
    %508 = arith.mulf %223, %507 : vector<16x64xf32>
    %509 = arith.mulf %500, %508 : vector<16x64xf32>
    %510 = arith.truncf %509 : vector<16x64xf32> to vector<16x64xbf16>
    %cst_110 = arith.constant dense<0.000000e+00> : vector<16x32xf32>
    %511 = tpu.matmul %510, %203, %cst_110 {dimension_numbers = #tpu.dot_dimension_numbers<[1], [0], [0], [1], [0, 0, 1, 1], [], []>} : vector<16x64xbf16>, vector<64x32xbf16>, vector<16x32xf32> -> vector<16x32xf32>
    %512 = arith.addf %10, %511 : vector<16x32xf32>
    %c1 = arith.constant 1 : index
    %c0_111 = arith.constant 0 : index
    %c0_112 = arith.constant 0 : index
    %513 = vector.load %arg8[%c1, %c0_111, %c0_112] : memref<4x8x64xf32, #tpu.memory_space<vmem>>, vector<1x8x64xf32>
    %514 = vector.shape_cast %513 : vector<1x8x64xf32> to vector<8x64xf32>
    %c1_113 = arith.constant 1 : index
    %c0_114 = arith.constant 0 : index
    %c0_115 = arith.constant 0 : index
    %515 = vector.load %arg9[%c1_113, %c0_114, %c0_115] : memref<4x32x128xbf16, #tpu.memory_space<vmem>>, vector<1x32x128xbf16>
    %516 = vector.shape_cast %515 : vector<1x32x128xbf16> to vector<32x128xbf16>
    %c1_116 = arith.constant 1 : index
    %c0_117 = arith.constant 0 : index
    %c0_118 = arith.constant 0 : index
    %517 = vector.load %arg10[%c1_116, %c0_117, %c0_118] : memref<4x64x20xbf16, #tpu.memory_space<vmem>>, vector<1x64x20xbf16>
    %518 = vector.shape_cast %517 : vector<1x64x20xbf16> to vector<64x20xbf16>
    %c1_119 = arith.constant 1 : index
    %c0_120 = arith.constant 0 : index
    %c0_121 = arith.constant 0 : index
    %519 = vector.load %arg11[%c1_119, %c0_120, %c0_121] : memref<4x4x64xbf16, #tpu.memory_space<vmem>>, vector<1x4x64xbf16>
    %520 = vector.shape_cast %519 : vector<1x4x64xbf16> to vector<4x64xbf16>
    %c1_122 = arith.constant 1 : index
    %c0_123 = arith.constant 0 : index
    %c0_124 = arith.constant 0 : index
    %521 = vector.load %arg12[%c1_122, %c0_123, %c0_124] : memref<4x8x128xf32, #tpu.memory_space<vmem>>, vector<1x8x128xf32>
    %522 = vector.shape_cast %521 : vector<1x8x128xf32> to vector<8x128xf32>
    %c1_125 = arith.constant 1 : index
    %c0_126 = arith.constant 0 : index
    %c0_127 = arith.constant 0 : index
    %523 = vector.load %arg13[%c1_125, %c0_126, %c0_127] : memref<4x64x32xbf16, #tpu.memory_space<vmem>>, vector<1x64x32xbf16>
    %524 = vector.shape_cast %523 : vector<1x64x32xbf16> to vector<64x32xbf16>
    %525 = vector.extract_strided_slice %514 {offsets = [0, 0], sizes = [1, 32], strides = [1, 1]} : vector<8x64xf32> to vector<1x32xf32>
    %526 = vector.extract_strided_slice %514 {offsets = [1, 0], sizes = [1, 64], strides = [1, 1]} : vector<8x64xf32> to vector<1x64xf32>
    %527 = vector.extract_strided_slice %514 {offsets = [2, 0], sizes = [1, 64], strides = [1, 1]} : vector<8x64xf32> to vector<1x64xf32>
    %528 = vector.extract_strided_slice %514 {offsets = [3, 0], sizes = [1, 64], strides = [1, 1]} : vector<8x64xf32> to vector<1x64xf32>
    %529 = arith.mulf %512, %512 : vector<16x32xf32>
    %cst_128 = arith.constant dense<0.000000e+00> : vector<16xf32>
    %530 = vector.multi_reduction <add>, %529, %cst_128 [1] : vector<16x32xf32> to vector<16xf32>
    %531 = vector.shape_cast %530 : vector<16xf32> to vector<16x1xf32>
    %cst_129 = arith.constant 3.200000e+01 : f32
    %532 = vector.broadcast %cst_129 : f32 to vector<16x1xf32>
    %533 = arith.divf %531, %532 : vector<16x1xf32>
    %cst_130 = arith.constant 9.99999974E-6 : f32
    %534 = vector.broadcast %cst_130 : f32 to vector<16x1xf32>
    %535 = arith.addf %533, %534 : vector<16x1xf32>
    %536 = math.rsqrt %535 : vector<16x1xf32>
    %537 = vector.broadcast %536 : vector<16x1xf32> to vector<16x32xf32>
    %538 = arith.mulf %512, %537 : vector<16x32xf32>
    %539 = vector.broadcast %525 : vector<1x32xf32> to vector<16x32xf32>
    %540 = arith.mulf %538, %539 : vector<16x32xf32>
    %541 = arith.truncf %540 : vector<16x32xf32> to vector<16x32xbf16>
    %cst_131 = arith.constant dense<0.000000e+00> : vector<16x128xf32>
    %542 = tpu.matmul %541, %516, %cst_131 {dimension_numbers = #tpu.dot_dimension_numbers<[1], [0], [0], [1], [0, 0, 1, 1], [], []>} : vector<16x32xbf16>, vector<32x128xbf16>, vector<16x128xf32> -> vector<16x128xf32>
    %543 = vector.extract_strided_slice %542 {offsets = [0, 0], sizes = [16, 64], strides = [1, 1]} : vector<16x128xf32> to vector<16x64xf32>
    %544 = vector.extract_strided_slice %542 {offsets = [0, 64], sizes = [16, 64], strides = [1, 1]} : vector<16x128xf32> to vector<16x64xf32>
    %545 = vector.extract_strided_slice %514 {offsets = [7, 0], sizes = [1, 64], strides = [1, 1]} : vector<8x64xf32> to vector<1x64xf32>
    %546 = vector.broadcast %545 : vector<1x64xf32> to vector<16x64xf32>
    %547 = arith.mulf %543, %546 : vector<16x64xf32>
    %c3_i32_132 = arith.constant 3 : i32
    %548 = tpu.dynamic_rotate %543 by %c3_i32_132 dim 0 : vector<16x64xf32>, i32 -> vector<16x64xf32>
    %c3_i32_133 = arith.constant 3 : i32
    %549 = vector.broadcast %c3_i32_133 : i32 to vector<16x64xi32>
    %550 = arith.cmpi sge, %21, %549 : vector<16x64xi32>
    %cst_134 = arith.constant 0.000000e+00 : f32
    %551 = vector.broadcast %cst_134 : f32 to vector<16x64xf32>
    %552 = arith.select %550, %548, %551 : vector<16x64xi1>, vector<16x64xf32>
    %553 = vector.extract_strided_slice %514 {offsets = [4, 0], sizes = [1, 64], strides = [1, 1]} : vector<8x64xf32> to vector<1x64xf32>
    %554 = vector.broadcast %553 : vector<1x64xf32> to vector<16x64xf32>
    %555 = arith.mulf %552, %554 : vector<16x64xf32>
    %556 = arith.addf %547, %555 : vector<16x64xf32>
    %c2_i32_135 = arith.constant 2 : i32
    %557 = tpu.dynamic_rotate %543 by %c2_i32_135 dim 0 : vector<16x64xf32>, i32 -> vector<16x64xf32>
    %c2_i32_136 = arith.constant 2 : i32
    %558 = vector.broadcast %c2_i32_136 : i32 to vector<16x64xi32>
    %559 = arith.cmpi sge, %21, %558 : vector<16x64xi32>
    %cst_137 = arith.constant 0.000000e+00 : f32
    %560 = vector.broadcast %cst_137 : f32 to vector<16x64xf32>
    %561 = arith.select %559, %557, %560 : vector<16x64xi1>, vector<16x64xf32>
    %562 = vector.extract_strided_slice %514 {offsets = [5, 0], sizes = [1, 64], strides = [1, 1]} : vector<8x64xf32> to vector<1x64xf32>
    %563 = vector.broadcast %562 : vector<1x64xf32> to vector<16x64xf32>
    %564 = arith.mulf %561, %563 : vector<16x64xf32>
    %565 = arith.addf %556, %564 : vector<16x64xf32>
    %c1_i32_138 = arith.constant 1 : i32
    %566 = tpu.dynamic_rotate %543 by %c1_i32_138 dim 0 : vector<16x64xf32>, i32 -> vector<16x64xf32>
    %c1_i32_139 = arith.constant 1 : i32
    %567 = vector.broadcast %c1_i32_139 : i32 to vector<16x64xi32>
    %568 = arith.cmpi sge, %21, %567 : vector<16x64xi32>
    %cst_140 = arith.constant 0.000000e+00 : f32
    %569 = vector.broadcast %cst_140 : f32 to vector<16x64xf32>
    %570 = arith.select %568, %566, %569 : vector<16x64xi1>, vector<16x64xf32>
    %571 = vector.extract_strided_slice %514 {offsets = [6, 0], sizes = [1, 64], strides = [1, 1]} : vector<8x64xf32> to vector<1x64xf32>
    %572 = vector.broadcast %571 : vector<1x64xf32> to vector<16x64xf32>
    %573 = arith.mulf %570, %572 : vector<16x64xf32>
    %574 = arith.addf %565, %573 : vector<16x64xf32>
    %575 = vector.broadcast %526 : vector<1x64xf32> to vector<16x64xf32>
    %576 = arith.addf %574, %575 : vector<16x64xf32>
    %cst_141 = arith.constant 0.000000e+00 : f32
    %577 = vector.broadcast %cst_141 : f32 to vector<16x64xf32>
    %578 = arith.subf %577, %576 : vector<16x64xf32>
    %579 = math.exp %578 : vector<16x64xf32>
    %cst_142 = arith.constant 1.000000e+00 : f32
    %580 = vector.broadcast %cst_142 : f32 to vector<16x64xf32>
    %581 = arith.addf %580, %579 : vector<16x64xf32>
    %cst_143 = arith.constant 1.000000e+00 : f32
    %582 = vector.broadcast %cst_143 : f32 to vector<16x64xf32>
    %583 = arith.divf %582, %581 : vector<16x64xf32>
    %584 = arith.mulf %576, %583 : vector<16x64xf32>
    %585 = arith.truncf %584 : vector<16x64xf32> to vector<16x64xbf16>
    %cst_144 = arith.constant dense<0.000000e+00> : vector<16x20xf32>
    %586 = tpu.matmul %585, %518, %cst_144 {dimension_numbers = #tpu.dot_dimension_numbers<[1], [0], [0], [1], [0, 0, 1, 1], [], []>} : vector<16x64xbf16>, vector<64x20xbf16>, vector<16x20xf32> -> vector<16x20xf32>
    %587 = vector.extract_strided_slice %586 {offsets = [0, 0], sizes = [16, 4], strides = [1, 1]} : vector<16x20xf32> to vector<16x4xf32>
    %588 = arith.truncf %587 : vector<16x4xf32> to vector<16x4xbf16>
    %cst_145 = arith.constant dense<0.000000e+00> : vector<16x64xf32>
    %589 = tpu.matmul %588, %520, %cst_145 {dimension_numbers = #tpu.dot_dimension_numbers<[1], [0], [0], [1], [0, 0, 1, 1], [], []>} : vector<16x4xbf16>, vector<4x64xbf16>, vector<16x64xf32> -> vector<16x64xf32>
    %590 = vector.broadcast %527 : vector<1x64xf32> to vector<16x64xf32>
    %591 = arith.addf %589, %590 : vector<16x64xf32>
    %cst_146 = arith.constant 0.000000e+00 : f32
    %592 = vector.broadcast %cst_146 : f32 to vector<16x64xf32>
    %593 = arith.maximumf %591, %592 : vector<16x64xf32>
    %594 = math.absf %591 : vector<16x64xf32>
    %cst_147 = arith.constant 0.000000e+00 : f32
    %595 = vector.broadcast %cst_147 : f32 to vector<16x64xf32>
    %596 = arith.subf %595, %594 : vector<16x64xf32>
    %597 = math.exp %596 : vector<16x64xf32>
    %cst_148 = arith.constant 1.000000e+00 : f32
    %598 = vector.broadcast %cst_148 : f32 to vector<16x64xf32>
    %599 = arith.addf %598, %597 : vector<16x64xf32>
    %600 = math.log %599 : vector<16x64xf32>
    %601 = arith.addf %593, %600 : vector<16x64xf32>
    %602 = vector.extract_strided_slice %586 {offsets = [0, 4], sizes = [16, 8], strides = [1, 1]} : vector<16x20xf32> to vector<16x8xf32>
    %603 = tpu.transpose %602, [1, 0] : vector<16x8xf32> -> vector<8x16xf32>
    %604 = vector.extract_strided_slice %586 {offsets = [0, 12], sizes = [16, 8], strides = [1, 1]} : vector<16x20xf32> to vector<16x8xf32>
    %605 = tpu.transpose %604, [1, 0] : vector<16x8xf32> -> vector<8x16xf32>
    %606 = vector.extract_strided_slice %601 {offsets = [0, 0], sizes = [8, 64], strides = [1, 1]} : vector<16x64xf32> to vector<8x64xf32>
    %607 = vector.extract_strided_slice %601 {offsets = [8, 0], sizes = [8, 64], strides = [1, 1]} : vector<16x64xf32> to vector<8x64xf32>
    %608 = tpu.concatenate %606, %607 in 1 : vector<8x64xf32>, vector<8x64xf32> -> vector<8x128xf32>
    %609 = arith.mulf %601, %584 : vector<16x64xf32>
    %610 = vector.extract_strided_slice %609 {offsets = [0, 0], sizes = [8, 64], strides = [1, 1]} : vector<16x64xf32> to vector<8x64xf32>
    %611 = vector.extract_strided_slice %609 {offsets = [8, 0], sizes = [8, 64], strides = [1, 1]} : vector<16x64xf32> to vector<8x64xf32>
    %612 = tpu.concatenate %610, %611 in 1 : vector<8x64xf32>, vector<8x64xf32> -> vector<8x128xf32>
    %613 = vector.extract_strided_slice %603 {offsets = [0, 0], sizes = [8, 1], strides = [1, 1]} : vector<8x16xf32> to vector<8x1xf32>
    %614 = vector.shape_cast %613 : vector<8x1xf32> to vector<8x1xf32>
    %615 = vector.broadcast %614 : vector<8x1xf32> to vector<8x64xf32>
    %616 = vector.extract_strided_slice %603 {offsets = [0, 8], sizes = [8, 1], strides = [1, 1]} : vector<8x16xf32> to vector<8x1xf32>
    %617 = vector.shape_cast %616 : vector<8x1xf32> to vector<8x1xf32>
    %618 = vector.broadcast %617 : vector<8x1xf32> to vector<8x64xf32>
    %619 = tpu.concatenate %615, %618 in 1 : vector<8x64xf32>, vector<8x64xf32> -> vector<8x128xf32>
    %620 = vector.extract_strided_slice %605 {offsets = [0, 0], sizes = [8, 1], strides = [1, 1]} : vector<8x16xf32> to vector<8x1xf32>
    %621 = vector.shape_cast %620 : vector<8x1xf32> to vector<8x1xf32>
    %622 = vector.broadcast %621 : vector<8x1xf32> to vector<8x64xf32>
    %623 = vector.extract_strided_slice %605 {offsets = [0, 8], sizes = [8, 1], strides = [1, 1]} : vector<8x16xf32> to vector<8x1xf32>
    %624 = vector.shape_cast %623 : vector<8x1xf32> to vector<8x1xf32>
    %625 = vector.broadcast %624 : vector<8x1xf32> to vector<8x64xf32>
    %626 = tpu.concatenate %622, %625 in 1 : vector<8x64xf32>, vector<8x64xf32> -> vector<8x128xf32>
    %627 = vector.extract_strided_slice %612 {offsets = [0, 0], sizes = [1, 128], strides = [1, 1]} : vector<8x128xf32> to vector<1x128xf32>
    %628 = vector.broadcast %627 : vector<1x128xf32> to vector<8x128xf32>
    %629 = arith.mulf %628, %619 : vector<8x128xf32>
    %630 = arith.mulf %626, %629 : vector<8x128xf32>
    %cst_149 = arith.constant dense<0.000000e+00> : vector<128xf32>
    %631 = vector.multi_reduction <add>, %630, %cst_149 [0] : vector<8x128xf32> to vector<128xf32>
    %632 = vector.shape_cast %631 : vector<128xf32> to vector<1x128xf32>
    %633 = vector.extract_strided_slice %603 {offsets = [0, 1], sizes = [8, 1], strides = [1, 1]} : vector<8x16xf32> to vector<8x1xf32>
    %634 = vector.shape_cast %633 : vector<8x1xf32> to vector<8x1xf32>
    %635 = vector.broadcast %634 : vector<8x1xf32> to vector<8x64xf32>
    %636 = vector.extract_strided_slice %603 {offsets = [0, 9], sizes = [8, 1], strides = [1, 1]} : vector<8x16xf32> to vector<8x1xf32>
    %637 = vector.shape_cast %636 : vector<8x1xf32> to vector<8x1xf32>
    %638 = vector.broadcast %637 : vector<8x1xf32> to vector<8x64xf32>
    %639 = tpu.concatenate %635, %638 in 1 : vector<8x64xf32>, vector<8x64xf32> -> vector<8x128xf32>
    %640 = vector.extract_strided_slice %605 {offsets = [0, 1], sizes = [8, 1], strides = [1, 1]} : vector<8x16xf32> to vector<8x1xf32>
    %641 = vector.shape_cast %640 : vector<8x1xf32> to vector<8x1xf32>
    %642 = vector.broadcast %641 : vector<8x1xf32> to vector<8x64xf32>
    %643 = vector.extract_strided_slice %605 {offsets = [0, 9], sizes = [8, 1], strides = [1, 1]} : vector<8x16xf32> to vector<8x1xf32>
    %644 = vector.shape_cast %643 : vector<8x1xf32> to vector<8x1xf32>
    %645 = vector.broadcast %644 : vector<8x1xf32> to vector<8x64xf32>
    %646 = tpu.concatenate %642, %645 in 1 : vector<8x64xf32>, vector<8x64xf32> -> vector<8x128xf32>
    %647 = vector.extract_strided_slice %612 {offsets = [1, 0], sizes = [1, 128], strides = [1, 1]} : vector<8x128xf32> to vector<1x128xf32>
    %648 = vector.broadcast %647 : vector<1x128xf32> to vector<8x128xf32>
    %649 = arith.mulf %648, %639 : vector<8x128xf32>
    %650 = vector.extract_strided_slice %608 {offsets = [1, 0], sizes = [1, 128], strides = [1, 1]} : vector<8x128xf32> to vector<1x128xf32>
    %651 = vector.broadcast %650 : vector<1x128xf32> to vector<8x128xf32>
    %652 = arith.mulf %651, %522 : vector<8x128xf32>
    %653 = math.exp %652 : vector<8x128xf32>
    %654 = arith.mulf %653, %629 : vector<8x128xf32>
    %655 = arith.addf %654, %649 : vector<8x128xf32>
    %656 = arith.mulf %646, %655 : vector<8x128xf32>
    %cst_150 = arith.constant dense<0.000000e+00> : vector<128xf32>
    %657 = vector.multi_reduction <add>, %656, %cst_150 [0] : vector<8x128xf32> to vector<128xf32>
    %658 = vector.shape_cast %657 : vector<128xf32> to vector<1x128xf32>
    %659 = vector.extract_strided_slice %603 {offsets = [0, 2], sizes = [8, 1], strides = [1, 1]} : vector<8x16xf32> to vector<8x1xf32>
    %660 = vector.shape_cast %659 : vector<8x1xf32> to vector<8x1xf32>
    %661 = vector.broadcast %660 : vector<8x1xf32> to vector<8x64xf32>
    %662 = vector.extract_strided_slice %603 {offsets = [0, 10], sizes = [8, 1], strides = [1, 1]} : vector<8x16xf32> to vector<8x1xf32>
    %663 = vector.shape_cast %662 : vector<8x1xf32> to vector<8x1xf32>
    %664 = vector.broadcast %663 : vector<8x1xf32> to vector<8x64xf32>
    %665 = tpu.concatenate %661, %664 in 1 : vector<8x64xf32>, vector<8x64xf32> -> vector<8x128xf32>
    %666 = vector.extract_strided_slice %605 {offsets = [0, 2], sizes = [8, 1], strides = [1, 1]} : vector<8x16xf32> to vector<8x1xf32>
    %667 = vector.shape_cast %666 : vector<8x1xf32> to vector<8x1xf32>
    %668 = vector.broadcast %667 : vector<8x1xf32> to vector<8x64xf32>
    %669 = vector.extract_strided_slice %605 {offsets = [0, 10], sizes = [8, 1], strides = [1, 1]} : vector<8x16xf32> to vector<8x1xf32>
    %670 = vector.shape_cast %669 : vector<8x1xf32> to vector<8x1xf32>
    %671 = vector.broadcast %670 : vector<8x1xf32> to vector<8x64xf32>
    %672 = tpu.concatenate %668, %671 in 1 : vector<8x64xf32>, vector<8x64xf32> -> vector<8x128xf32>
    %673 = vector.extract_strided_slice %612 {offsets = [2, 0], sizes = [1, 128], strides = [1, 1]} : vector<8x128xf32> to vector<1x128xf32>
    %674 = vector.broadcast %673 : vector<1x128xf32> to vector<8x128xf32>
    %675 = arith.mulf %674, %665 : vector<8x128xf32>
    %676 = vector.extract_strided_slice %608 {offsets = [2, 0], sizes = [1, 128], strides = [1, 1]} : vector<8x128xf32> to vector<1x128xf32>
    %677 = vector.broadcast %676 : vector<1x128xf32> to vector<8x128xf32>
    %678 = arith.mulf %677, %522 : vector<8x128xf32>
    %679 = math.exp %678 : vector<8x128xf32>
    %680 = arith.mulf %679, %655 : vector<8x128xf32>
    %681 = arith.addf %680, %675 : vector<8x128xf32>
    %682 = arith.mulf %672, %681 : vector<8x128xf32>
    %cst_151 = arith.constant dense<0.000000e+00> : vector<128xf32>
    %683 = vector.multi_reduction <add>, %682, %cst_151 [0] : vector<8x128xf32> to vector<128xf32>
    %684 = vector.shape_cast %683 : vector<128xf32> to vector<1x128xf32>
    %685 = vector.extract_strided_slice %603 {offsets = [0, 3], sizes = [8, 1], strides = [1, 1]} : vector<8x16xf32> to vector<8x1xf32>
    %686 = vector.shape_cast %685 : vector<8x1xf32> to vector<8x1xf32>
    %687 = vector.broadcast %686 : vector<8x1xf32> to vector<8x64xf32>
    %688 = vector.extract_strided_slice %603 {offsets = [0, 11], sizes = [8, 1], strides = [1, 1]} : vector<8x16xf32> to vector<8x1xf32>
    %689 = vector.shape_cast %688 : vector<8x1xf32> to vector<8x1xf32>
    %690 = vector.broadcast %689 : vector<8x1xf32> to vector<8x64xf32>
    %691 = tpu.concatenate %687, %690 in 1 : vector<8x64xf32>, vector<8x64xf32> -> vector<8x128xf32>
    %692 = vector.extract_strided_slice %605 {offsets = [0, 3], sizes = [8, 1], strides = [1, 1]} : vector<8x16xf32> to vector<8x1xf32>
    %693 = vector.shape_cast %692 : vector<8x1xf32> to vector<8x1xf32>
    %694 = vector.broadcast %693 : vector<8x1xf32> to vector<8x64xf32>
    %695 = vector.extract_strided_slice %605 {offsets = [0, 11], sizes = [8, 1], strides = [1, 1]} : vector<8x16xf32> to vector<8x1xf32>
    %696 = vector.shape_cast %695 : vector<8x1xf32> to vector<8x1xf32>
    %697 = vector.broadcast %696 : vector<8x1xf32> to vector<8x64xf32>
    %698 = tpu.concatenate %694, %697 in 1 : vector<8x64xf32>, vector<8x64xf32> -> vector<8x128xf32>
    %699 = vector.extract_strided_slice %612 {offsets = [3, 0], sizes = [1, 128], strides = [1, 1]} : vector<8x128xf32> to vector<1x128xf32>
    %700 = vector.broadcast %699 : vector<1x128xf32> to vector<8x128xf32>
    %701 = arith.mulf %700, %691 : vector<8x128xf32>
    %702 = vector.extract_strided_slice %608 {offsets = [3, 0], sizes = [1, 128], strides = [1, 1]} : vector<8x128xf32> to vector<1x128xf32>
    %703 = vector.broadcast %702 : vector<1x128xf32> to vector<8x128xf32>
    %704 = arith.mulf %703, %522 : vector<8x128xf32>
    %705 = math.exp %704 : vector<8x128xf32>
    %706 = arith.mulf %705, %681 : vector<8x128xf32>
    %707 = arith.addf %706, %701 : vector<8x128xf32>
    %708 = arith.mulf %698, %707 : vector<8x128xf32>
    %cst_152 = arith.constant dense<0.000000e+00> : vector<128xf32>
    %709 = vector.multi_reduction <add>, %708, %cst_152 [0] : vector<8x128xf32> to vector<128xf32>
    %710 = vector.shape_cast %709 : vector<128xf32> to vector<1x128xf32>
    %711 = vector.extract_strided_slice %603 {offsets = [0, 4], sizes = [8, 1], strides = [1, 1]} : vector<8x16xf32> to vector<8x1xf32>
    %712 = vector.shape_cast %711 : vector<8x1xf32> to vector<8x1xf32>
    %713 = vector.broadcast %712 : vector<8x1xf32> to vector<8x64xf32>
    %714 = vector.extract_strided_slice %603 {offsets = [0, 12], sizes = [8, 1], strides = [1, 1]} : vector<8x16xf32> to vector<8x1xf32>
    %715 = vector.shape_cast %714 : vector<8x1xf32> to vector<8x1xf32>
    %716 = vector.broadcast %715 : vector<8x1xf32> to vector<8x64xf32>
    %717 = tpu.concatenate %713, %716 in 1 : vector<8x64xf32>, vector<8x64xf32> -> vector<8x128xf32>
    %718 = vector.extract_strided_slice %605 {offsets = [0, 4], sizes = [8, 1], strides = [1, 1]} : vector<8x16xf32> to vector<8x1xf32>
    %719 = vector.shape_cast %718 : vector<8x1xf32> to vector<8x1xf32>
    %720 = vector.broadcast %719 : vector<8x1xf32> to vector<8x64xf32>
    %721 = vector.extract_strided_slice %605 {offsets = [0, 12], sizes = [8, 1], strides = [1, 1]} : vector<8x16xf32> to vector<8x1xf32>
    %722 = vector.shape_cast %721 : vector<8x1xf32> to vector<8x1xf32>
    %723 = vector.broadcast %722 : vector<8x1xf32> to vector<8x64xf32>
    %724 = tpu.concatenate %720, %723 in 1 : vector<8x64xf32>, vector<8x64xf32> -> vector<8x128xf32>
    %725 = vector.extract_strided_slice %612 {offsets = [4, 0], sizes = [1, 128], strides = [1, 1]} : vector<8x128xf32> to vector<1x128xf32>
    %726 = vector.broadcast %725 : vector<1x128xf32> to vector<8x128xf32>
    %727 = arith.mulf %726, %717 : vector<8x128xf32>
    %728 = vector.extract_strided_slice %608 {offsets = [4, 0], sizes = [1, 128], strides = [1, 1]} : vector<8x128xf32> to vector<1x128xf32>
    %729 = vector.broadcast %728 : vector<1x128xf32> to vector<8x128xf32>
    %730 = arith.mulf %729, %522 : vector<8x128xf32>
    %731 = math.exp %730 : vector<8x128xf32>
    %732 = arith.mulf %731, %707 : vector<8x128xf32>
    %733 = arith.addf %732, %727 : vector<8x128xf32>
    %734 = arith.mulf %724, %733 : vector<8x128xf32>
    %cst_153 = arith.constant dense<0.000000e+00> : vector<128xf32>
    %735 = vector.multi_reduction <add>, %734, %cst_153 [0] : vector<8x128xf32> to vector<128xf32>
    %736 = vector.shape_cast %735 : vector<128xf32> to vector<1x128xf32>
    %737 = vector.extract_strided_slice %603 {offsets = [0, 5], sizes = [8, 1], strides = [1, 1]} : vector<8x16xf32> to vector<8x1xf32>
    %738 = vector.shape_cast %737 : vector<8x1xf32> to vector<8x1xf32>
    %739 = vector.broadcast %738 : vector<8x1xf32> to vector<8x64xf32>
    %740 = vector.extract_strided_slice %603 {offsets = [0, 13], sizes = [8, 1], strides = [1, 1]} : vector<8x16xf32> to vector<8x1xf32>
    %741 = vector.shape_cast %740 : vector<8x1xf32> to vector<8x1xf32>
    %742 = vector.broadcast %741 : vector<8x1xf32> to vector<8x64xf32>
    %743 = tpu.concatenate %739, %742 in 1 : vector<8x64xf32>, vector<8x64xf32> -> vector<8x128xf32>
    %744 = vector.extract_strided_slice %605 {offsets = [0, 5], sizes = [8, 1], strides = [1, 1]} : vector<8x16xf32> to vector<8x1xf32>
    %745 = vector.shape_cast %744 : vector<8x1xf32> to vector<8x1xf32>
    %746 = vector.broadcast %745 : vector<8x1xf32> to vector<8x64xf32>
    %747 = vector.extract_strided_slice %605 {offsets = [0, 13], sizes = [8, 1], strides = [1, 1]} : vector<8x16xf32> to vector<8x1xf32>
    %748 = vector.shape_cast %747 : vector<8x1xf32> to vector<8x1xf32>
    %749 = vector.broadcast %748 : vector<8x1xf32> to vector<8x64xf32>
    %750 = tpu.concatenate %746, %749 in 1 : vector<8x64xf32>, vector<8x64xf32> -> vector<8x128xf32>
    %751 = vector.extract_strided_slice %612 {offsets = [5, 0], sizes = [1, 128], strides = [1, 1]} : vector<8x128xf32> to vector<1x128xf32>
    %752 = vector.broadcast %751 : vector<1x128xf32> to vector<8x128xf32>
    %753 = arith.mulf %752, %743 : vector<8x128xf32>
    %754 = vector.extract_strided_slice %608 {offsets = [5, 0], sizes = [1, 128], strides = [1, 1]} : vector<8x128xf32> to vector<1x128xf32>
    %755 = vector.broadcast %754 : vector<1x128xf32> to vector<8x128xf32>
    %756 = arith.mulf %755, %522 : vector<8x128xf32>
    %757 = math.exp %756 : vector<8x128xf32>
    %758 = arith.mulf %757, %733 : vector<8x128xf32>
    %759 = arith.addf %758, %753 : vector<8x128xf32>
    %760 = arith.mulf %750, %759 : vector<8x128xf32>
    %cst_154 = arith.constant dense<0.000000e+00> : vector<128xf32>
    %761 = vector.multi_reduction <add>, %760, %cst_154 [0] : vector<8x128xf32> to vector<128xf32>
    %762 = vector.shape_cast %761 : vector<128xf32> to vector<1x128xf32>
    %763 = vector.extract_strided_slice %603 {offsets = [0, 6], sizes = [8, 1], strides = [1, 1]} : vector<8x16xf32> to vector<8x1xf32>
    %764 = vector.shape_cast %763 : vector<8x1xf32> to vector<8x1xf32>
    %765 = vector.broadcast %764 : vector<8x1xf32> to vector<8x64xf32>
    %766 = vector.extract_strided_slice %603 {offsets = [0, 14], sizes = [8, 1], strides = [1, 1]} : vector<8x16xf32> to vector<8x1xf32>
    %767 = vector.shape_cast %766 : vector<8x1xf32> to vector<8x1xf32>
    %768 = vector.broadcast %767 : vector<8x1xf32> to vector<8x64xf32>
    %769 = tpu.concatenate %765, %768 in 1 : vector<8x64xf32>, vector<8x64xf32> -> vector<8x128xf32>
    %770 = vector.extract_strided_slice %605 {offsets = [0, 6], sizes = [8, 1], strides = [1, 1]} : vector<8x16xf32> to vector<8x1xf32>
    %771 = vector.shape_cast %770 : vector<8x1xf32> to vector<8x1xf32>
    %772 = vector.broadcast %771 : vector<8x1xf32> to vector<8x64xf32>
    %773 = vector.extract_strided_slice %605 {offsets = [0, 14], sizes = [8, 1], strides = [1, 1]} : vector<8x16xf32> to vector<8x1xf32>
    %774 = vector.shape_cast %773 : vector<8x1xf32> to vector<8x1xf32>
    %775 = vector.broadcast %774 : vector<8x1xf32> to vector<8x64xf32>
    %776 = tpu.concatenate %772, %775 in 1 : vector<8x64xf32>, vector<8x64xf32> -> vector<8x128xf32>
    %777 = vector.extract_strided_slice %612 {offsets = [6, 0], sizes = [1, 128], strides = [1, 1]} : vector<8x128xf32> to vector<1x128xf32>
    %778 = vector.broadcast %777 : vector<1x128xf32> to vector<8x128xf32>
    %779 = arith.mulf %778, %769 : vector<8x128xf32>
    %780 = vector.extract_strided_slice %608 {offsets = [6, 0], sizes = [1, 128], strides = [1, 1]} : vector<8x128xf32> to vector<1x128xf32>
    %781 = vector.broadcast %780 : vector<1x128xf32> to vector<8x128xf32>
    %782 = arith.mulf %781, %522 : vector<8x128xf32>
    %783 = math.exp %782 : vector<8x128xf32>
    %784 = arith.mulf %783, %759 : vector<8x128xf32>
    %785 = arith.addf %784, %779 : vector<8x128xf32>
    %786 = arith.mulf %776, %785 : vector<8x128xf32>
    %cst_155 = arith.constant dense<0.000000e+00> : vector<128xf32>
    %787 = vector.multi_reduction <add>, %786, %cst_155 [0] : vector<8x128xf32> to vector<128xf32>
    %788 = vector.shape_cast %787 : vector<128xf32> to vector<1x128xf32>
    %789 = vector.extract_strided_slice %603 {offsets = [0, 7], sizes = [8, 1], strides = [1, 1]} : vector<8x16xf32> to vector<8x1xf32>
    %790 = vector.shape_cast %789 : vector<8x1xf32> to vector<8x1xf32>
    %791 = vector.broadcast %790 : vector<8x1xf32> to vector<8x64xf32>
    %792 = vector.extract_strided_slice %603 {offsets = [0, 15], sizes = [8, 1], strides = [1, 1]} : vector<8x16xf32> to vector<8x1xf32>
    %793 = vector.shape_cast %792 : vector<8x1xf32> to vector<8x1xf32>
    %794 = vector.broadcast %793 : vector<8x1xf32> to vector<8x64xf32>
    %795 = tpu.concatenate %791, %794 in 1 : vector<8x64xf32>, vector<8x64xf32> -> vector<8x128xf32>
    %796 = vector.extract_strided_slice %605 {offsets = [0, 7], sizes = [8, 1], strides = [1, 1]} : vector<8x16xf32> to vector<8x1xf32>
    %797 = vector.shape_cast %796 : vector<8x1xf32> to vector<8x1xf32>
    %798 = vector.broadcast %797 : vector<8x1xf32> to vector<8x64xf32>
    %799 = vector.extract_strided_slice %605 {offsets = [0, 15], sizes = [8, 1], strides = [1, 1]} : vector<8x16xf32> to vector<8x1xf32>
    %800 = vector.shape_cast %799 : vector<8x1xf32> to vector<8x1xf32>
    %801 = vector.broadcast %800 : vector<8x1xf32> to vector<8x64xf32>
    %802 = tpu.concatenate %798, %801 in 1 : vector<8x64xf32>, vector<8x64xf32> -> vector<8x128xf32>
    %803 = vector.extract_strided_slice %612 {offsets = [7, 0], sizes = [1, 128], strides = [1, 1]} : vector<8x128xf32> to vector<1x128xf32>
    %804 = vector.broadcast %803 : vector<1x128xf32> to vector<8x128xf32>
    %805 = arith.mulf %804, %795 : vector<8x128xf32>
    %806 = vector.extract_strided_slice %608 {offsets = [7, 0], sizes = [1, 128], strides = [1, 1]} : vector<8x128xf32> to vector<1x128xf32>
    %807 = vector.broadcast %806 : vector<1x128xf32> to vector<8x128xf32>
    %808 = arith.mulf %807, %522 : vector<8x128xf32>
    %809 = math.exp %808 : vector<8x128xf32>
    %810 = arith.mulf %809, %785 : vector<8x128xf32>
    %811 = arith.addf %810, %805 : vector<8x128xf32>
    %812 = arith.mulf %802, %811 : vector<8x128xf32>
    %cst_156 = arith.constant dense<0.000000e+00> : vector<128xf32>
    %813 = vector.multi_reduction <add>, %812, %cst_156 [0] : vector<8x128xf32> to vector<128xf32>
    %814 = vector.shape_cast %813 : vector<128xf32> to vector<1x128xf32>
    %815 = tpu.concatenate %632, %658, %684, %710, %736, %762, %788, %814 in 0 : vector<1x128xf32>, vector<1x128xf32>, vector<1x128xf32>, vector<1x128xf32>, vector<1x128xf32>, vector<1x128xf32>, vector<1x128xf32>, vector<1x128xf32> -> vector<8x128xf32>
    %816 = vector.extract_strided_slice %815 {offsets = [0, 0], sizes = [8, 64], strides = [1, 1]} : vector<8x128xf32> to vector<8x64xf32>
    %817 = vector.extract_strided_slice %815 {offsets = [0, 64], sizes = [8, 64], strides = [1, 1]} : vector<8x128xf32> to vector<8x64xf32>
    %818 = tpu.concatenate %816, %817 in 0 : vector<8x64xf32>, vector<8x64xf32> -> vector<16x64xf32>
    %819 = vector.broadcast %528 : vector<1x64xf32> to vector<16x64xf32>
    %820 = arith.mulf %584, %819 : vector<16x64xf32>
    %821 = arith.addf %818, %820 : vector<16x64xf32>
    %cst_157 = arith.constant 0.000000e+00 : f32
    %822 = vector.broadcast %cst_157 : f32 to vector<16x64xf32>
    %823 = arith.subf %822, %544 : vector<16x64xf32>
    %824 = math.exp %823 : vector<16x64xf32>
    %cst_158 = arith.constant 1.000000e+00 : f32
    %825 = vector.broadcast %cst_158 : f32 to vector<16x64xf32>
    %826 = arith.addf %825, %824 : vector<16x64xf32>
    %cst_159 = arith.constant 1.000000e+00 : f32
    %827 = vector.broadcast %cst_159 : f32 to vector<16x64xf32>
    %828 = arith.divf %827, %826 : vector<16x64xf32>
    %829 = arith.mulf %544, %828 : vector<16x64xf32>
    %830 = arith.mulf %821, %829 : vector<16x64xf32>
    %831 = arith.truncf %830 : vector<16x64xf32> to vector<16x64xbf16>
    %cst_160 = arith.constant dense<0.000000e+00> : vector<16x32xf32>
    %832 = tpu.matmul %831, %524, %cst_160 {dimension_numbers = #tpu.dot_dimension_numbers<[1], [0], [0], [1], [0, 0, 1, 1], [], []>} : vector<16x64xbf16>, vector<64x32xbf16>, vector<16x32xf32> -> vector<16x32xf32>
    %833 = arith.addf %512, %832 : vector<16x32xf32>
    %834 = arith.addf %191, %833 : vector<16x32xf32>
    %cst_161 = arith.constant 5.000000e-01 : f32
    %835 = vector.broadcast %cst_161 : f32 to vector<16x32xf32>
    %836 = arith.mulf %835, %834 : vector<16x32xf32>
    %c1_162 = arith.constant 1 : index
    %c0_163 = arith.constant 0 : index
    %c0_164 = arith.constant 0 : index
    %837 = vector.load %arg3[%c1_162, %c0_163, %c0_164] : memref<2x8x128xf32, #tpu.memory_space<vmem>>, vector<1x8x128xf32>
    %838 = vector.shape_cast %837 : vector<1x8x128xf32> to vector<8x128xf32>
    %c1_165 = arith.constant 1 : index
    %c0_166 = arith.constant 0 : index
    %c0_167 = arith.constant 0 : index
    %839 = vector.load %arg4[%c1_165, %c0_166, %c0_167] : memref<2x32x96xbf16, #tpu.memory_space<vmem>>, vector<1x32x96xbf16>
    %840 = vector.shape_cast %839 : vector<1x32x96xbf16> to vector<32x96xbf16>
    %c1_168 = arith.constant 1 : index
    %c0_169 = arith.constant 0 : index
    %c0_170 = arith.constant 0 : index
    %841 = vector.load %arg5[%c1_168, %c0_169, %c0_170] : memref<2x32x32xbf16, #tpu.memory_space<vmem>>, vector<1x32x32xbf16>
    %842 = vector.shape_cast %841 : vector<1x32x32xbf16> to vector<32x32xbf16>
    %c1_171 = arith.constant 1 : index
    %c0_172 = arith.constant 0 : index
    %c0_173 = arith.constant 0 : index
    %843 = vector.load %arg6[%c1_171, %c0_172, %c0_173] : memref<2x32x128xbf16, #tpu.memory_space<vmem>>, vector<1x32x128xbf16>
    %844 = vector.shape_cast %843 : vector<1x32x128xbf16> to vector<32x128xbf16>
    %c1_174 = arith.constant 1 : index
    %c0_175 = arith.constant 0 : index
    %c0_176 = arith.constant 0 : index
    %845 = vector.load %arg7[%c1_174, %c0_175, %c0_176] : memref<2x128x32xbf16, #tpu.memory_space<vmem>>, vector<1x128x32xbf16>
    %846 = vector.shape_cast %845 : vector<1x128x32xbf16> to vector<128x32xbf16>
    %847 = vector.extract_strided_slice %838 {offsets = [0, 0], sizes = [1, 32], strides = [1, 1]} : vector<8x128xf32> to vector<1x32xf32>
    %848 = vector.extract_strided_slice %838 {offsets = [1, 0], sizes = [1, 32], strides = [1, 1]} : vector<8x128xf32> to vector<1x32xf32>
    %849 = vector.extract_strided_slice %838 {offsets = [2, 0], sizes = [1, 32], strides = [1, 1]} : vector<8x128xf32> to vector<1x32xf32>
    %850 = vector.extract_strided_slice %838 {offsets = [3, 0], sizes = [1, 32], strides = [1, 1]} : vector<8x128xf32> to vector<1x32xf32>
    %851 = vector.extract_strided_slice %838 {offsets = [4, 0], sizes = [1, 32], strides = [1, 1]} : vector<8x128xf32> to vector<1x32xf32>
    %852 = vector.extract_strided_slice %838 {offsets = [5, 0], sizes = [1, 32], strides = [1, 1]} : vector<8x128xf32> to vector<1x32xf32>
    %853 = vector.extract_strided_slice %838 {offsets = [6, 0], sizes = [1, 128], strides = [1, 1]} : vector<8x128xf32> to vector<1x128xf32>
    %cst_177 = arith.constant dense<0.000000e+00> : vector<16xf32>
    %854 = vector.multi_reduction <add>, %836, %cst_177 [1] : vector<16x32xf32> to vector<16xf32>
    %855 = vector.shape_cast %854 : vector<16xf32> to vector<16x1xf32>
    %cst_178 = arith.constant 3.200000e+01 : f32
    %856 = vector.broadcast %cst_178 : f32 to vector<16x1xf32>
    %857 = arith.divf %855, %856 : vector<16x1xf32>
    %858 = vector.broadcast %857 : vector<16x1xf32> to vector<16x32xf32>
    %859 = arith.subf %836, %858 : vector<16x32xf32>
    %860 = arith.mulf %859, %859 : vector<16x32xf32>
    %cst_179 = arith.constant dense<0.000000e+00> : vector<16xf32>
    %861 = vector.multi_reduction <add>, %860, %cst_179 [1] : vector<16x32xf32> to vector<16xf32>
    %862 = vector.shape_cast %861 : vector<16xf32> to vector<16x1xf32>
    %cst_180 = arith.constant 3.200000e+01 : f32
    %863 = vector.broadcast %cst_180 : f32 to vector<16x1xf32>
    %864 = arith.divf %862, %863 : vector<16x1xf32>
    %cst_181 = arith.constant 9.99999974E-6 : f32
    %865 = vector.broadcast %cst_181 : f32 to vector<16x1xf32>
    %866 = arith.addf %864, %865 : vector<16x1xf32>
    %867 = math.rsqrt %866 : vector<16x1xf32>
    %868 = vector.broadcast %867 : vector<16x1xf32> to vector<16x32xf32>
    %869 = arith.mulf %859, %868 : vector<16x32xf32>
    %870 = vector.broadcast %847 : vector<1x32xf32> to vector<16x32xf32>
    %871 = arith.mulf %869, %870 : vector<16x32xf32>
    %872 = vector.broadcast %848 : vector<1x32xf32> to vector<16x32xf32>
    %873 = arith.addf %871, %872 : vector<16x32xf32>
    %874 = arith.truncf %873 : vector<16x32xf32> to vector<16x32xbf16>
    %cst_182 = arith.constant dense<0.000000e+00> : vector<16x96xf32>
    %875 = tpu.matmul %874, %840, %cst_182 {dimension_numbers = #tpu.dot_dimension_numbers<[1], [0], [0], [1], [0, 0, 1, 1], [], []>} : vector<16x32xbf16>, vector<32x96xbf16>, vector<16x96xf32> -> vector<16x96xf32>
    %876 = vector.extract_strided_slice %875 {offsets = [0, 0], sizes = [16, 32], strides = [1, 1]} : vector<16x96xf32> to vector<16x32xf32>
    %877 = vector.extract_strided_slice %875 {offsets = [0, 32], sizes = [16, 32], strides = [1, 1]} : vector<16x96xf32> to vector<16x32xf32>
    %878 = vector.extract_strided_slice %875 {offsets = [0, 64], sizes = [16, 32], strides = [1, 1]} : vector<16x96xf32> to vector<16x32xf32>
    %879 = vector.extract_strided_slice %876 {offsets = [0, 0], sizes = [16, 8], strides = [1, 1]} : vector<16x32xf32> to vector<16x8xf32>
    %880 = vector.extract_strided_slice %877 {offsets = [0, 0], sizes = [16, 8], strides = [1, 1]} : vector<16x32xf32> to vector<16x8xf32>
    %881 = vector.extract_strided_slice %878 {offsets = [0, 0], sizes = [16, 8], strides = [1, 1]} : vector<16x32xf32> to vector<16x8xf32>
    %882 = tpu.transpose %880, [1, 0] : vector<16x8xf32> -> vector<8x16xf32>
    %cst_183 = arith.constant dense<0.000000e+00> : vector<16x16xf32>
    %883 = tpu.matmul %879, %882, %cst_183 {dimension_numbers = #tpu.dot_dimension_numbers<[1], [0], [0], [1], [0, 0, 1, 1], [], []>} : vector<16x8xf32>, vector<8x16xf32>, vector<16x16xf32> -> vector<16x16xf32>
    %cst_184 = arith.constant 0.353553385 : f32
    %884 = vector.broadcast %cst_184 : f32 to vector<16x16xf32>
    %885 = arith.mulf %883, %884 : vector<16x16xf32>
    %cst_185 = arith.constant -1.000000e+30 : f32
    %886 = vector.broadcast %cst_185 : f32 to vector<16x16xf32>
    %887 = arith.select %18, %885, %886 : vector<16x16xi1>, vector<16x16xf32>
    %cst_186 = arith.constant dense<0xFF800000> : vector<16xf32>
    %888 = vector.multi_reduction <maximumf>, %887, %cst_186 [1] : vector<16x16xf32> to vector<16xf32>
    %889 = vector.shape_cast %888 : vector<16xf32> to vector<16x1xf32>
    %890 = vector.broadcast %889 : vector<16x1xf32> to vector<16x16xf32>
    %891 = arith.subf %887, %890 : vector<16x16xf32>
    %892 = math.exp %891 : vector<16x16xf32>
    %cst_187 = arith.constant dense<0.000000e+00> : vector<16xf32>
    %893 = vector.multi_reduction <add>, %892, %cst_187 [1] : vector<16x16xf32> to vector<16xf32>
    %894 = vector.shape_cast %893 : vector<16xf32> to vector<16x1xf32>
    %895 = tpu.reciprocal %894 {approx = true} : vector<16x1xf32> -> vector<16x1xf32>
    %896 = vector.broadcast %895 : vector<16x1xf32> to vector<16x16xf32>
    %897 = arith.mulf %892, %896 : vector<16x16xf32>
    %cst_188 = arith.constant dense<0.000000e+00> : vector<16x8xf32>
    %898 = tpu.matmul %897, %881, %cst_188 {dimension_numbers = #tpu.dot_dimension_numbers<[1], [0], [0], [1], [0, 0, 1, 1], [], []>} : vector<16x16xf32>, vector<16x8xf32>, vector<16x8xf32> -> vector<16x8xf32>
    %899 = vector.extract_strided_slice %876 {offsets = [0, 8], sizes = [16, 8], strides = [1, 1]} : vector<16x32xf32> to vector<16x8xf32>
    %900 = vector.extract_strided_slice %877 {offsets = [0, 8], sizes = [16, 8], strides = [1, 1]} : vector<16x32xf32> to vector<16x8xf32>
    %901 = vector.extract_strided_slice %878 {offsets = [0, 8], sizes = [16, 8], strides = [1, 1]} : vector<16x32xf32> to vector<16x8xf32>
    %902 = tpu.transpose %900, [1, 0] : vector<16x8xf32> -> vector<8x16xf32>
    %cst_189 = arith.constant dense<0.000000e+00> : vector<16x16xf32>
    %903 = tpu.matmul %899, %902, %cst_189 {dimension_numbers = #tpu.dot_dimension_numbers<[1], [0], [0], [1], [0, 0, 1, 1], [], []>} : vector<16x8xf32>, vector<8x16xf32>, vector<16x16xf32> -> vector<16x16xf32>
    %cst_190 = arith.constant 0.353553385 : f32
    %904 = vector.broadcast %cst_190 : f32 to vector<16x16xf32>
    %905 = arith.mulf %903, %904 : vector<16x16xf32>
    %cst_191 = arith.constant -1.000000e+30 : f32
    %906 = vector.broadcast %cst_191 : f32 to vector<16x16xf32>
    %907 = arith.select %18, %905, %906 : vector<16x16xi1>, vector<16x16xf32>
    %cst_192 = arith.constant dense<0xFF800000> : vector<16xf32>
    %908 = vector.multi_reduction <maximumf>, %907, %cst_192 [1] : vector<16x16xf32> to vector<16xf32>
    %909 = vector.shape_cast %908 : vector<16xf32> to vector<16x1xf32>
    %910 = vector.broadcast %909 : vector<16x1xf32> to vector<16x16xf32>
    %911 = arith.subf %907, %910 : vector<16x16xf32>
    %912 = math.exp %911 : vector<16x16xf32>
    %cst_193 = arith.constant dense<0.000000e+00> : vector<16xf32>
    %913 = vector.multi_reduction <add>, %912, %cst_193 [1] : vector<16x16xf32> to vector<16xf32>
    %914 = vector.shape_cast %913 : vector<16xf32> to vector<16x1xf32>
    %915 = tpu.reciprocal %914 {approx = true} : vector<16x1xf32> -> vector<16x1xf32>
    %916 = vector.broadcast %915 : vector<16x1xf32> to vector<16x16xf32>
    %917 = arith.mulf %912, %916 : vector<16x16xf32>
    %cst_194 = arith.constant dense<0.000000e+00> : vector<16x8xf32>
    %918 = tpu.matmul %917, %901, %cst_194 {dimension_numbers = #tpu.dot_dimension_numbers<[1], [0], [0], [1], [0, 0, 1, 1], [], []>} : vector<16x16xf32>, vector<16x8xf32>, vector<16x8xf32> -> vector<16x8xf32>
    %919 = vector.extract_strided_slice %876 {offsets = [0, 16], sizes = [16, 8], strides = [1, 1]} : vector<16x32xf32> to vector<16x8xf32>
    %920 = vector.extract_strided_slice %877 {offsets = [0, 16], sizes = [16, 8], strides = [1, 1]} : vector<16x32xf32> to vector<16x8xf32>
    %921 = vector.extract_strided_slice %878 {offsets = [0, 16], sizes = [16, 8], strides = [1, 1]} : vector<16x32xf32> to vector<16x8xf32>
    %922 = tpu.transpose %920, [1, 0] : vector<16x8xf32> -> vector<8x16xf32>
    %cst_195 = arith.constant dense<0.000000e+00> : vector<16x16xf32>
    %923 = tpu.matmul %919, %922, %cst_195 {dimension_numbers = #tpu.dot_dimension_numbers<[1], [0], [0], [1], [0, 0, 1, 1], [], []>} : vector<16x8xf32>, vector<8x16xf32>, vector<16x16xf32> -> vector<16x16xf32>
    %cst_196 = arith.constant 0.353553385 : f32
    %924 = vector.broadcast %cst_196 : f32 to vector<16x16xf32>
    %925 = arith.mulf %923, %924 : vector<16x16xf32>
    %cst_197 = arith.constant -1.000000e+30 : f32
    %926 = vector.broadcast %cst_197 : f32 to vector<16x16xf32>
    %927 = arith.select %18, %925, %926 : vector<16x16xi1>, vector<16x16xf32>
    %cst_198 = arith.constant dense<0xFF800000> : vector<16xf32>
    %928 = vector.multi_reduction <maximumf>, %927, %cst_198 [1] : vector<16x16xf32> to vector<16xf32>
    %929 = vector.shape_cast %928 : vector<16xf32> to vector<16x1xf32>
    %930 = vector.broadcast %929 : vector<16x1xf32> to vector<16x16xf32>
    %931 = arith.subf %927, %930 : vector<16x16xf32>
    %932 = math.exp %931 : vector<16x16xf32>
    %cst_199 = arith.constant dense<0.000000e+00> : vector<16xf32>
    %933 = vector.multi_reduction <add>, %932, %cst_199 [1] : vector<16x16xf32> to vector<16xf32>
    %934 = vector.shape_cast %933 : vector<16xf32> to vector<16x1xf32>
    %935 = tpu.reciprocal %934 {approx = true} : vector<16x1xf32> -> vector<16x1xf32>
    %936 = vector.broadcast %935 : vector<16x1xf32> to vector<16x16xf32>
    %937 = arith.mulf %932, %936 : vector<16x16xf32>
    %cst_200 = arith.constant dense<0.000000e+00> : vector<16x8xf32>
    %938 = tpu.matmul %937, %921, %cst_200 {dimension_numbers = #tpu.dot_dimension_numbers<[1], [0], [0], [1], [0, 0, 1, 1], [], []>} : vector<16x16xf32>, vector<16x8xf32>, vector<16x8xf32> -> vector<16x8xf32>
    %939 = vector.extract_strided_slice %876 {offsets = [0, 24], sizes = [16, 8], strides = [1, 1]} : vector<16x32xf32> to vector<16x8xf32>
    %940 = vector.extract_strided_slice %877 {offsets = [0, 24], sizes = [16, 8], strides = [1, 1]} : vector<16x32xf32> to vector<16x8xf32>
    %941 = vector.extract_strided_slice %878 {offsets = [0, 24], sizes = [16, 8], strides = [1, 1]} : vector<16x32xf32> to vector<16x8xf32>
    %942 = tpu.transpose %940, [1, 0] : vector<16x8xf32> -> vector<8x16xf32>
    %cst_201 = arith.constant dense<0.000000e+00> : vector<16x16xf32>
    %943 = tpu.matmul %939, %942, %cst_201 {dimension_numbers = #tpu.dot_dimension_numbers<[1], [0], [0], [1], [0, 0, 1, 1], [], []>} : vector<16x8xf32>, vector<8x16xf32>, vector<16x16xf32> -> vector<16x16xf32>
    %cst_202 = arith.constant 0.353553385 : f32
    %944 = vector.broadcast %cst_202 : f32 to vector<16x16xf32>
    %945 = arith.mulf %943, %944 : vector<16x16xf32>
    %cst_203 = arith.constant -1.000000e+30 : f32
    %946 = vector.broadcast %cst_203 : f32 to vector<16x16xf32>
    %947 = arith.select %18, %945, %946 : vector<16x16xi1>, vector<16x16xf32>
    %cst_204 = arith.constant dense<0xFF800000> : vector<16xf32>
    %948 = vector.multi_reduction <maximumf>, %947, %cst_204 [1] : vector<16x16xf32> to vector<16xf32>
    %949 = vector.shape_cast %948 : vector<16xf32> to vector<16x1xf32>
    %950 = vector.broadcast %949 : vector<16x1xf32> to vector<16x16xf32>
    %951 = arith.subf %947, %950 : vector<16x16xf32>
    %952 = math.exp %951 : vector<16x16xf32>
    %cst_205 = arith.constant dense<0.000000e+00> : vector<16xf32>
    %953 = vector.multi_reduction <add>, %952, %cst_205 [1] : vector<16x16xf32> to vector<16xf32>
    %954 = vector.shape_cast %953 : vector<16xf32> to vector<16x1xf32>
    %955 = tpu.reciprocal %954 {approx = true} : vector<16x1xf32> -> vector<16x1xf32>
    %956 = vector.broadcast %955 : vector<16x1xf32> to vector<16x16xf32>
    %957 = arith.mulf %952, %956 : vector<16x16xf32>
    %cst_206 = arith.constant dense<0.000000e+00> : vector<16x8xf32>
    %958 = tpu.matmul %957, %941, %cst_206 {dimension_numbers = #tpu.dot_dimension_numbers<[1], [0], [0], [1], [0, 0, 1, 1], [], []>} : vector<16x16xf32>, vector<16x8xf32>, vector<16x8xf32> -> vector<16x8xf32>
    %959 = tpu.concatenate %898, %918, %938, %958 in 1 : vector<16x8xf32>, vector<16x8xf32>, vector<16x8xf32>, vector<16x8xf32> -> vector<16x32xf32>
    %960 = arith.truncf %959 : vector<16x32xf32> to vector<16x32xbf16>
    %cst_207 = arith.constant dense<0.000000e+00> : vector<16x32xf32>
    %961 = tpu.matmul %960, %842, %cst_207 {dimension_numbers = #tpu.dot_dimension_numbers<[1], [0], [0], [1], [0, 0, 1, 1], [], []>} : vector<16x32xbf16>, vector<32x32xbf16>, vector<16x32xf32> -> vector<16x32xf32>
    %962 = vector.broadcast %849 : vector<1x32xf32> to vector<16x32xf32>
    %963 = arith.addf %961, %962 : vector<16x32xf32>
    %964 = arith.addf %836, %963 : vector<16x32xf32>
    %cst_208 = arith.constant dense<0.000000e+00> : vector<16xf32>
    %965 = vector.multi_reduction <add>, %964, %cst_208 [1] : vector<16x32xf32> to vector<16xf32>
    %966 = vector.shape_cast %965 : vector<16xf32> to vector<16x1xf32>
    %cst_209 = arith.constant 3.200000e+01 : f32
    %967 = vector.broadcast %cst_209 : f32 to vector<16x1xf32>
    %968 = arith.divf %966, %967 : vector<16x1xf32>
    %969 = vector.broadcast %968 : vector<16x1xf32> to vector<16x32xf32>
    %970 = arith.subf %964, %969 : vector<16x32xf32>
    %971 = arith.mulf %970, %970 : vector<16x32xf32>
    %cst_210 = arith.constant dense<0.000000e+00> : vector<16xf32>
    %972 = vector.multi_reduction <add>, %971, %cst_210 [1] : vector<16x32xf32> to vector<16xf32>
    %973 = vector.shape_cast %972 : vector<16xf32> to vector<16x1xf32>
    %cst_211 = arith.constant 3.200000e+01 : f32
    %974 = vector.broadcast %cst_211 : f32 to vector<16x1xf32>
    %975 = arith.divf %973, %974 : vector<16x1xf32>
    %cst_212 = arith.constant 9.99999974E-6 : f32
    %976 = vector.broadcast %cst_212 : f32 to vector<16x1xf32>
    %977 = arith.addf %975, %976 : vector<16x1xf32>
    %978 = math.rsqrt %977 : vector<16x1xf32>
    %979 = vector.broadcast %978 : vector<16x1xf32> to vector<16x32xf32>
    %980 = arith.mulf %970, %979 : vector<16x32xf32>
    %981 = vector.broadcast %850 : vector<1x32xf32> to vector<16x32xf32>
    %982 = arith.mulf %980, %981 : vector<16x32xf32>
    %983 = vector.broadcast %851 : vector<1x32xf32> to vector<16x32xf32>
    %984 = arith.addf %982, %983 : vector<16x32xf32>
    %985 = arith.truncf %984 : vector<16x32xf32> to vector<16x32xbf16>
    %cst_213 = arith.constant dense<0.000000e+00> : vector<16x128xf32>
    %986 = tpu.matmul %985, %844, %cst_213 {dimension_numbers = #tpu.dot_dimension_numbers<[1], [0], [0], [1], [0, 0, 1, 1], [], []>} : vector<16x32xbf16>, vector<32x128xbf16>, vector<16x128xf32> -> vector<16x128xf32>
    %987 = vector.broadcast %853 : vector<1x128xf32> to vector<16x128xf32>
    %988 = arith.addf %986, %987 : vector<16x128xf32>
    %cst_214 = arith.constant 5.000000e-01 : f32
    %989 = vector.broadcast %cst_214 : f32 to vector<16x128xf32>
    %990 = arith.mulf %989, %988 : vector<16x128xf32>
    %cst_215 = arith.constant 4.471500e-02 : f32
    %991 = vector.broadcast %cst_215 : f32 to vector<16x128xf32>
    %992 = arith.mulf %991, %988 : vector<16x128xf32>
    %993 = arith.mulf %992, %988 : vector<16x128xf32>
    %994 = arith.mulf %993, %988 : vector<16x128xf32>
    %995 = arith.addf %988, %994 : vector<16x128xf32>
    %cst_216 = arith.constant 0.797884583 : f32
    %996 = vector.broadcast %cst_216 : f32 to vector<16x128xf32>
    %997 = arith.mulf %996, %995 : vector<16x128xf32>
    %998 = math.tanh %997 : vector<16x128xf32>
    %cst_217 = arith.constant 1.000000e+00 : f32
    %999 = vector.broadcast %cst_217 : f32 to vector<16x128xf32>
    %1000 = arith.addf %999, %998 : vector<16x128xf32>
    %1001 = arith.mulf %990, %1000 : vector<16x128xf32>
    %1002 = arith.truncf %1001 : vector<16x128xf32> to vector<16x128xbf16>
    %cst_218 = arith.constant dense<0.000000e+00> : vector<16x32xf32>
    %1003 = tpu.matmul %1002, %846, %cst_218 {dimension_numbers = #tpu.dot_dimension_numbers<[1], [0], [0], [1], [0, 0, 1, 1], [], []>} : vector<16x128xbf16>, vector<128x32xbf16>, vector<16x32xf32> -> vector<16x32xf32>
    %1004 = vector.broadcast %852 : vector<1x32xf32> to vector<16x32xf32>
    %1005 = arith.addf %1003, %1004 : vector<16x32xf32>
    %1006 = arith.addf %964, %1005 : vector<16x32xf32>
    %c2 = arith.constant 2 : index
    %c0_219 = arith.constant 0 : index
    %c0_220 = arith.constant 0 : index
    %1007 = vector.load %arg8[%c2, %c0_219, %c0_220] : memref<4x8x64xf32, #tpu.memory_space<vmem>>, vector<1x8x64xf32>
    %1008 = vector.shape_cast %1007 : vector<1x8x64xf32> to vector<8x64xf32>
    %c2_221 = arith.constant 2 : index
    %c0_222 = arith.constant 0 : index
    %c0_223 = arith.constant 0 : index
    %1009 = vector.load %arg9[%c2_221, %c0_222, %c0_223] : memref<4x32x128xbf16, #tpu.memory_space<vmem>>, vector<1x32x128xbf16>
    %1010 = vector.shape_cast %1009 : vector<1x32x128xbf16> to vector<32x128xbf16>
    %c2_224 = arith.constant 2 : index
    %c0_225 = arith.constant 0 : index
    %c0_226 = arith.constant 0 : index
    %1011 = vector.load %arg10[%c2_224, %c0_225, %c0_226] : memref<4x64x20xbf16, #tpu.memory_space<vmem>>, vector<1x64x20xbf16>
    %1012 = vector.shape_cast %1011 : vector<1x64x20xbf16> to vector<64x20xbf16>
    %c2_227 = arith.constant 2 : index
    %c0_228 = arith.constant 0 : index
    %c0_229 = arith.constant 0 : index
    %1013 = vector.load %arg11[%c2_227, %c0_228, %c0_229] : memref<4x4x64xbf16, #tpu.memory_space<vmem>>, vector<1x4x64xbf16>
    %1014 = vector.shape_cast %1013 : vector<1x4x64xbf16> to vector<4x64xbf16>
    %c2_230 = arith.constant 2 : index
    %c0_231 = arith.constant 0 : index
    %c0_232 = arith.constant 0 : index
    %1015 = vector.load %arg12[%c2_230, %c0_231, %c0_232] : memref<4x8x128xf32, #tpu.memory_space<vmem>>, vector<1x8x128xf32>
    %1016 = vector.shape_cast %1015 : vector<1x8x128xf32> to vector<8x128xf32>
    %c2_233 = arith.constant 2 : index
    %c0_234 = arith.constant 0 : index
    %c0_235 = arith.constant 0 : index
    %1017 = vector.load %arg13[%c2_233, %c0_234, %c0_235] : memref<4x64x32xbf16, #tpu.memory_space<vmem>>, vector<1x64x32xbf16>
    %1018 = vector.shape_cast %1017 : vector<1x64x32xbf16> to vector<64x32xbf16>
    %1019 = vector.extract_strided_slice %1008 {offsets = [0, 0], sizes = [1, 32], strides = [1, 1]} : vector<8x64xf32> to vector<1x32xf32>
    %1020 = vector.extract_strided_slice %1008 {offsets = [1, 0], sizes = [1, 64], strides = [1, 1]} : vector<8x64xf32> to vector<1x64xf32>
    %1021 = vector.extract_strided_slice %1008 {offsets = [2, 0], sizes = [1, 64], strides = [1, 1]} : vector<8x64xf32> to vector<1x64xf32>
    %1022 = vector.extract_strided_slice %1008 {offsets = [3, 0], sizes = [1, 64], strides = [1, 1]} : vector<8x64xf32> to vector<1x64xf32>
    %1023 = arith.mulf %836, %836 : vector<16x32xf32>
    %cst_236 = arith.constant dense<0.000000e+00> : vector<16xf32>
    %1024 = vector.multi_reduction <add>, %1023, %cst_236 [1] : vector<16x32xf32> to vector<16xf32>
    %1025 = vector.shape_cast %1024 : vector<16xf32> to vector<16x1xf32>
    %cst_237 = arith.constant 3.200000e+01 : f32
    %1026 = vector.broadcast %cst_237 : f32 to vector<16x1xf32>
    %1027 = arith.divf %1025, %1026 : vector<16x1xf32>
    %cst_238 = arith.constant 9.99999974E-6 : f32
    %1028 = vector.broadcast %cst_238 : f32 to vector<16x1xf32>
    %1029 = arith.addf %1027, %1028 : vector<16x1xf32>
    %1030 = math.rsqrt %1029 : vector<16x1xf32>
    %1031 = vector.broadcast %1030 : vector<16x1xf32> to vector<16x32xf32>
    %1032 = arith.mulf %836, %1031 : vector<16x32xf32>
    %1033 = vector.broadcast %1019 : vector<1x32xf32> to vector<16x32xf32>
    %1034 = arith.mulf %1032, %1033 : vector<16x32xf32>
    %1035 = arith.truncf %1034 : vector<16x32xf32> to vector<16x32xbf16>
    %cst_239 = arith.constant dense<0.000000e+00> : vector<16x128xf32>
    %1036 = tpu.matmul %1035, %1010, %cst_239 {dimension_numbers = #tpu.dot_dimension_numbers<[1], [0], [0], [1], [0, 0, 1, 1], [], []>} : vector<16x32xbf16>, vector<32x128xbf16>, vector<16x128xf32> -> vector<16x128xf32>
    %1037 = vector.extract_strided_slice %1036 {offsets = [0, 0], sizes = [16, 64], strides = [1, 1]} : vector<16x128xf32> to vector<16x64xf32>
    %1038 = vector.extract_strided_slice %1036 {offsets = [0, 64], sizes = [16, 64], strides = [1, 1]} : vector<16x128xf32> to vector<16x64xf32>
    %1039 = vector.extract_strided_slice %1008 {offsets = [7, 0], sizes = [1, 64], strides = [1, 1]} : vector<8x64xf32> to vector<1x64xf32>
    %1040 = vector.broadcast %1039 : vector<1x64xf32> to vector<16x64xf32>
    %1041 = arith.mulf %1037, %1040 : vector<16x64xf32>
    %c3_i32_240 = arith.constant 3 : i32
    %1042 = tpu.dynamic_rotate %1037 by %c3_i32_240 dim 0 : vector<16x64xf32>, i32 -> vector<16x64xf32>
    %c3_i32_241 = arith.constant 3 : i32
    %1043 = vector.broadcast %c3_i32_241 : i32 to vector<16x64xi32>
    %1044 = arith.cmpi sge, %21, %1043 : vector<16x64xi32>
    %cst_242 = arith.constant 0.000000e+00 : f32
    %1045 = vector.broadcast %cst_242 : f32 to vector<16x64xf32>
    %1046 = arith.select %1044, %1042, %1045 : vector<16x64xi1>, vector<16x64xf32>
    %1047 = vector.extract_strided_slice %1008 {offsets = [4, 0], sizes = [1, 64], strides = [1, 1]} : vector<8x64xf32> to vector<1x64xf32>
    %1048 = vector.broadcast %1047 : vector<1x64xf32> to vector<16x64xf32>
    %1049 = arith.mulf %1046, %1048 : vector<16x64xf32>
    %1050 = arith.addf %1041, %1049 : vector<16x64xf32>
    %c2_i32_243 = arith.constant 2 : i32
    %1051 = tpu.dynamic_rotate %1037 by %c2_i32_243 dim 0 : vector<16x64xf32>, i32 -> vector<16x64xf32>
    %c2_i32_244 = arith.constant 2 : i32
    %1052 = vector.broadcast %c2_i32_244 : i32 to vector<16x64xi32>
    %1053 = arith.cmpi sge, %21, %1052 : vector<16x64xi32>
    %cst_245 = arith.constant 0.000000e+00 : f32
    %1054 = vector.broadcast %cst_245 : f32 to vector<16x64xf32>
    %1055 = arith.select %1053, %1051, %1054 : vector<16x64xi1>, vector<16x64xf32>
    %1056 = vector.extract_strided_slice %1008 {offsets = [5, 0], sizes = [1, 64], strides = [1, 1]} : vector<8x64xf32> to vector<1x64xf32>
    %1057 = vector.broadcast %1056 : vector<1x64xf32> to vector<16x64xf32>
    %1058 = arith.mulf %1055, %1057 : vector<16x64xf32>
    %1059 = arith.addf %1050, %1058 : vector<16x64xf32>
    %c1_i32_246 = arith.constant 1 : i32
    %1060 = tpu.dynamic_rotate %1037 by %c1_i32_246 dim 0 : vector<16x64xf32>, i32 -> vector<16x64xf32>
    %c1_i32_247 = arith.constant 1 : i32
    %1061 = vector.broadcast %c1_i32_247 : i32 to vector<16x64xi32>
    %1062 = arith.cmpi sge, %21, %1061 : vector<16x64xi32>
    %cst_248 = arith.constant 0.000000e+00 : f32
    %1063 = vector.broadcast %cst_248 : f32 to vector<16x64xf32>
    %1064 = arith.select %1062, %1060, %1063 : vector<16x64xi1>, vector<16x64xf32>
    %1065 = vector.extract_strided_slice %1008 {offsets = [6, 0], sizes = [1, 64], strides = [1, 1]} : vector<8x64xf32> to vector<1x64xf32>
    %1066 = vector.broadcast %1065 : vector<1x64xf32> to vector<16x64xf32>
    %1067 = arith.mulf %1064, %1066 : vector<16x64xf32>
    %1068 = arith.addf %1059, %1067 : vector<16x64xf32>
    %1069 = vector.broadcast %1020 : vector<1x64xf32> to vector<16x64xf32>
    %1070 = arith.addf %1068, %1069 : vector<16x64xf32>
    %cst_249 = arith.constant 0.000000e+00 : f32
    %1071 = vector.broadcast %cst_249 : f32 to vector<16x64xf32>
    %1072 = arith.subf %1071, %1070 : vector<16x64xf32>
    %1073 = math.exp %1072 : vector<16x64xf32>
    %cst_250 = arith.constant 1.000000e+00 : f32
    %1074 = vector.broadcast %cst_250 : f32 to vector<16x64xf32>
    %1075 = arith.addf %1074, %1073 : vector<16x64xf32>
    %cst_251 = arith.constant 1.000000e+00 : f32
    %1076 = vector.broadcast %cst_251 : f32 to vector<16x64xf32>
    %1077 = arith.divf %1076, %1075 : vector<16x64xf32>
    %1078 = arith.mulf %1070, %1077 : vector<16x64xf32>
    %1079 = arith.truncf %1078 : vector<16x64xf32> to vector<16x64xbf16>
    %cst_252 = arith.constant dense<0.000000e+00> : vector<16x20xf32>
    %1080 = tpu.matmul %1079, %1012, %cst_252 {dimension_numbers = #tpu.dot_dimension_numbers<[1], [0], [0], [1], [0, 0, 1, 1], [], []>} : vector<16x64xbf16>, vector<64x20xbf16>, vector<16x20xf32> -> vector<16x20xf32>
    %1081 = vector.extract_strided_slice %1080 {offsets = [0, 0], sizes = [16, 4], strides = [1, 1]} : vector<16x20xf32> to vector<16x4xf32>
    %1082 = arith.truncf %1081 : vector<16x4xf32> to vector<16x4xbf16>
    %cst_253 = arith.constant dense<0.000000e+00> : vector<16x64xf32>
    %1083 = tpu.matmul %1082, %1014, %cst_253 {dimension_numbers = #tpu.dot_dimension_numbers<[1], [0], [0], [1], [0, 0, 1, 1], [], []>} : vector<16x4xbf16>, vector<4x64xbf16>, vector<16x64xf32> -> vector<16x64xf32>
    %1084 = vector.broadcast %1021 : vector<1x64xf32> to vector<16x64xf32>
    %1085 = arith.addf %1083, %1084 : vector<16x64xf32>
    %cst_254 = arith.constant 0.000000e+00 : f32
    %1086 = vector.broadcast %cst_254 : f32 to vector<16x64xf32>
    %1087 = arith.maximumf %1085, %1086 : vector<16x64xf32>
    %1088 = math.absf %1085 : vector<16x64xf32>
    %cst_255 = arith.constant 0.000000e+00 : f32
    %1089 = vector.broadcast %cst_255 : f32 to vector<16x64xf32>
    %1090 = arith.subf %1089, %1088 : vector<16x64xf32>
    %1091 = math.exp %1090 : vector<16x64xf32>
    %cst_256 = arith.constant 1.000000e+00 : f32
    %1092 = vector.broadcast %cst_256 : f32 to vector<16x64xf32>
    %1093 = arith.addf %1092, %1091 : vector<16x64xf32>
    %1094 = math.log %1093 : vector<16x64xf32>
    %1095 = arith.addf %1087, %1094 : vector<16x64xf32>
    %1096 = vector.extract_strided_slice %1080 {offsets = [0, 4], sizes = [16, 8], strides = [1, 1]} : vector<16x20xf32> to vector<16x8xf32>
    %1097 = tpu.transpose %1096, [1, 0] : vector<16x8xf32> -> vector<8x16xf32>
    %1098 = vector.extract_strided_slice %1080 {offsets = [0, 12], sizes = [16, 8], strides = [1, 1]} : vector<16x20xf32> to vector<16x8xf32>
    %1099 = tpu.transpose %1098, [1, 0] : vector<16x8xf32> -> vector<8x16xf32>
    %1100 = vector.extract_strided_slice %1095 {offsets = [0, 0], sizes = [8, 64], strides = [1, 1]} : vector<16x64xf32> to vector<8x64xf32>
    %1101 = vector.extract_strided_slice %1095 {offsets = [8, 0], sizes = [8, 64], strides = [1, 1]} : vector<16x64xf32> to vector<8x64xf32>
    %1102 = tpu.concatenate %1100, %1101 in 1 : vector<8x64xf32>, vector<8x64xf32> -> vector<8x128xf32>
    %1103 = arith.mulf %1095, %1078 : vector<16x64xf32>
    %1104 = vector.extract_strided_slice %1103 {offsets = [0, 0], sizes = [8, 64], strides = [1, 1]} : vector<16x64xf32> to vector<8x64xf32>
    %1105 = vector.extract_strided_slice %1103 {offsets = [8, 0], sizes = [8, 64], strides = [1, 1]} : vector<16x64xf32> to vector<8x64xf32>
    %1106 = tpu.concatenate %1104, %1105 in 1 : vector<8x64xf32>, vector<8x64xf32> -> vector<8x128xf32>
    %1107 = vector.extract_strided_slice %1097 {offsets = [0, 0], sizes = [8, 1], strides = [1, 1]} : vector<8x16xf32> to vector<8x1xf32>
    %1108 = vector.shape_cast %1107 : vector<8x1xf32> to vector<8x1xf32>
    %1109 = vector.broadcast %1108 : vector<8x1xf32> to vector<8x64xf32>
    %1110 = vector.extract_strided_slice %1097 {offsets = [0, 8], sizes = [8, 1], strides = [1, 1]} : vector<8x16xf32> to vector<8x1xf32>
    %1111 = vector.shape_cast %1110 : vector<8x1xf32> to vector<8x1xf32>
    %1112 = vector.broadcast %1111 : vector<8x1xf32> to vector<8x64xf32>
    %1113 = tpu.concatenate %1109, %1112 in 1 : vector<8x64xf32>, vector<8x64xf32> -> vector<8x128xf32>
    %1114 = vector.extract_strided_slice %1099 {offsets = [0, 0], sizes = [8, 1], strides = [1, 1]} : vector<8x16xf32> to vector<8x1xf32>
    %1115 = vector.shape_cast %1114 : vector<8x1xf32> to vector<8x1xf32>
    %1116 = vector.broadcast %1115 : vector<8x1xf32> to vector<8x64xf32>
    %1117 = vector.extract_strided_slice %1099 {offsets = [0, 8], sizes = [8, 1], strides = [1, 1]} : vector<8x16xf32> to vector<8x1xf32>
    %1118 = vector.shape_cast %1117 : vector<8x1xf32> to vector<8x1xf32>
    %1119 = vector.broadcast %1118 : vector<8x1xf32> to vector<8x64xf32>
    %1120 = tpu.concatenate %1116, %1119 in 1 : vector<8x64xf32>, vector<8x64xf32> -> vector<8x128xf32>
    %1121 = vector.extract_strided_slice %1106 {offsets = [0, 0], sizes = [1, 128], strides = [1, 1]} : vector<8x128xf32> to vector<1x128xf32>
    %1122 = vector.broadcast %1121 : vector<1x128xf32> to vector<8x128xf32>
    %1123 = arith.mulf %1122, %1113 : vector<8x128xf32>
    %1124 = arith.mulf %1120, %1123 : vector<8x128xf32>
    %cst_257 = arith.constant dense<0.000000e+00> : vector<128xf32>
    %1125 = vector.multi_reduction <add>, %1124, %cst_257 [0] : vector<8x128xf32> to vector<128xf32>
    %1126 = vector.shape_cast %1125 : vector<128xf32> to vector<1x128xf32>
    %1127 = vector.extract_strided_slice %1097 {offsets = [0, 1], sizes = [8, 1], strides = [1, 1]} : vector<8x16xf32> to vector<8x1xf32>
    %1128 = vector.shape_cast %1127 : vector<8x1xf32> to vector<8x1xf32>
    %1129 = vector.broadcast %1128 : vector<8x1xf32> to vector<8x64xf32>
    %1130 = vector.extract_strided_slice %1097 {offsets = [0, 9], sizes = [8, 1], strides = [1, 1]} : vector<8x16xf32> to vector<8x1xf32>
    %1131 = vector.shape_cast %1130 : vector<8x1xf32> to vector<8x1xf32>
    %1132 = vector.broadcast %1131 : vector<8x1xf32> to vector<8x64xf32>
    %1133 = tpu.concatenate %1129, %1132 in 1 : vector<8x64xf32>, vector<8x64xf32> -> vector<8x128xf32>
    %1134 = vector.extract_strided_slice %1099 {offsets = [0, 1], sizes = [8, 1], strides = [1, 1]} : vector<8x16xf32> to vector<8x1xf32>
    %1135 = vector.shape_cast %1134 : vector<8x1xf32> to vector<8x1xf32>
    %1136 = vector.broadcast %1135 : vector<8x1xf32> to vector<8x64xf32>
    %1137 = vector.extract_strided_slice %1099 {offsets = [0, 9], sizes = [8, 1], strides = [1, 1]} : vector<8x16xf32> to vector<8x1xf32>
    %1138 = vector.shape_cast %1137 : vector<8x1xf32> to vector<8x1xf32>
    %1139 = vector.broadcast %1138 : vector<8x1xf32> to vector<8x64xf32>
    %1140 = tpu.concatenate %1136, %1139 in 1 : vector<8x64xf32>, vector<8x64xf32> -> vector<8x128xf32>
    %1141 = vector.extract_strided_slice %1106 {offsets = [1, 0], sizes = [1, 128], strides = [1, 1]} : vector<8x128xf32> to vector<1x128xf32>
    %1142 = vector.broadcast %1141 : vector<1x128xf32> to vector<8x128xf32>
    %1143 = arith.mulf %1142, %1133 : vector<8x128xf32>
    %1144 = vector.extract_strided_slice %1102 {offsets = [1, 0], sizes = [1, 128], strides = [1, 1]} : vector<8x128xf32> to vector<1x128xf32>
    %1145 = vector.broadcast %1144 : vector<1x128xf32> to vector<8x128xf32>
    %1146 = arith.mulf %1145, %1016 : vector<8x128xf32>
    %1147 = math.exp %1146 : vector<8x128xf32>
    %1148 = arith.mulf %1147, %1123 : vector<8x128xf32>
    %1149 = arith.addf %1148, %1143 : vector<8x128xf32>
    %1150 = arith.mulf %1140, %1149 : vector<8x128xf32>
    %cst_258 = arith.constant dense<0.000000e+00> : vector<128xf32>
    %1151 = vector.multi_reduction <add>, %1150, %cst_258 [0] : vector<8x128xf32> to vector<128xf32>
    %1152 = vector.shape_cast %1151 : vector<128xf32> to vector<1x128xf32>
    %1153 = vector.extract_strided_slice %1097 {offsets = [0, 2], sizes = [8, 1], strides = [1, 1]} : vector<8x16xf32> to vector<8x1xf32>
    %1154 = vector.shape_cast %1153 : vector<8x1xf32> to vector<8x1xf32>
    %1155 = vector.broadcast %1154 : vector<8x1xf32> to vector<8x64xf32>
    %1156 = vector.extract_strided_slice %1097 {offsets = [0, 10], sizes = [8, 1], strides = [1, 1]} : vector<8x16xf32> to vector<8x1xf32>
    %1157 = vector.shape_cast %1156 : vector<8x1xf32> to vector<8x1xf32>
    %1158 = vector.broadcast %1157 : vector<8x1xf32> to vector<8x64xf32>
    %1159 = tpu.concatenate %1155, %1158 in 1 : vector<8x64xf32>, vector<8x64xf32> -> vector<8x128xf32>
    %1160 = vector.extract_strided_slice %1099 {offsets = [0, 2], sizes = [8, 1], strides = [1, 1]} : vector<8x16xf32> to vector<8x1xf32>
    %1161 = vector.shape_cast %1160 : vector<8x1xf32> to vector<8x1xf32>
    %1162 = vector.broadcast %1161 : vector<8x1xf32> to vector<8x64xf32>
    %1163 = vector.extract_strided_slice %1099 {offsets = [0, 10], sizes = [8, 1], strides = [1, 1]} : vector<8x16xf32> to vector<8x1xf32>
    %1164 = vector.shape_cast %1163 : vector<8x1xf32> to vector<8x1xf32>
    %1165 = vector.broadcast %1164 : vector<8x1xf32> to vector<8x64xf32>
    %1166 = tpu.concatenate %1162, %1165 in 1 : vector<8x64xf32>, vector<8x64xf32> -> vector<8x128xf32>
    %1167 = vector.extract_strided_slice %1106 {offsets = [2, 0], sizes = [1, 128], strides = [1, 1]} : vector<8x128xf32> to vector<1x128xf32>
    %1168 = vector.broadcast %1167 : vector<1x128xf32> to vector<8x128xf32>
    %1169 = arith.mulf %1168, %1159 : vector<8x128xf32>
    %1170 = vector.extract_strided_slice %1102 {offsets = [2, 0], sizes = [1, 128], strides = [1, 1]} : vector<8x128xf32> to vector<1x128xf32>
    %1171 = vector.broadcast %1170 : vector<1x128xf32> to vector<8x128xf32>
    %1172 = arith.mulf %1171, %1016 : vector<8x128xf32>
    %1173 = math.exp %1172 : vector<8x128xf32>
    %1174 = arith.mulf %1173, %1149 : vector<8x128xf32>
    %1175 = arith.addf %1174, %1169 : vector<8x128xf32>
    %1176 = arith.mulf %1166, %1175 : vector<8x128xf32>
    %cst_259 = arith.constant dense<0.000000e+00> : vector<128xf32>
    %1177 = vector.multi_reduction <add>, %1176, %cst_259 [0] : vector<8x128xf32> to vector<128xf32>
    %1178 = vector.shape_cast %1177 : vector<128xf32> to vector<1x128xf32>
    %1179 = vector.extract_strided_slice %1097 {offsets = [0, 3], sizes = [8, 1], strides = [1, 1]} : vector<8x16xf32> to vector<8x1xf32>
    %1180 = vector.shape_cast %1179 : vector<8x1xf32> to vector<8x1xf32>
    %1181 = vector.broadcast %1180 : vector<8x1xf32> to vector<8x64xf32>
    %1182 = vector.extract_strided_slice %1097 {offsets = [0, 11], sizes = [8, 1], strides = [1, 1]} : vector<8x16xf32> to vector<8x1xf32>
    %1183 = vector.shape_cast %1182 : vector<8x1xf32> to vector<8x1xf32>
    %1184 = vector.broadcast %1183 : vector<8x1xf32> to vector<8x64xf32>
    %1185 = tpu.concatenate %1181, %1184 in 1 : vector<8x64xf32>, vector<8x64xf32> -> vector<8x128xf32>
    %1186 = vector.extract_strided_slice %1099 {offsets = [0, 3], sizes = [8, 1], strides = [1, 1]} : vector<8x16xf32> to vector<8x1xf32>
    %1187 = vector.shape_cast %1186 : vector<8x1xf32> to vector<8x1xf32>
    %1188 = vector.broadcast %1187 : vector<8x1xf32> to vector<8x64xf32>
    %1189 = vector.extract_strided_slice %1099 {offsets = [0, 11], sizes = [8, 1], strides = [1, 1]} : vector<8x16xf32> to vector<8x1xf32>
    %1190 = vector.shape_cast %1189 : vector<8x1xf32> to vector<8x1xf32>
    %1191 = vector.broadcast %1190 : vector<8x1xf32> to vector<8x64xf32>
    %1192 = tpu.concatenate %1188, %1191 in 1 : vector<8x64xf32>, vector<8x64xf32> -> vector<8x128xf32>
    %1193 = vector.extract_strided_slice %1106 {offsets = [3, 0], sizes = [1, 128], strides = [1, 1]} : vector<8x128xf32> to vector<1x128xf32>
    %1194 = vector.broadcast %1193 : vector<1x128xf32> to vector<8x128xf32>
    %1195 = arith.mulf %1194, %1185 : vector<8x128xf32>
    %1196 = vector.extract_strided_slice %1102 {offsets = [3, 0], sizes = [1, 128], strides = [1, 1]} : vector<8x128xf32> to vector<1x128xf32>
    %1197 = vector.broadcast %1196 : vector<1x128xf32> to vector<8x128xf32>
    %1198 = arith.mulf %1197, %1016 : vector<8x128xf32>
    %1199 = math.exp %1198 : vector<8x128xf32>
    %1200 = arith.mulf %1199, %1175 : vector<8x128xf32>
    %1201 = arith.addf %1200, %1195 : vector<8x128xf32>
    %1202 = arith.mulf %1192, %1201 : vector<8x128xf32>
    %cst_260 = arith.constant dense<0.000000e+00> : vector<128xf32>
    %1203 = vector.multi_reduction <add>, %1202, %cst_260 [0] : vector<8x128xf32> to vector<128xf32>
    %1204 = vector.shape_cast %1203 : vector<128xf32> to vector<1x128xf32>
    %1205 = vector.extract_strided_slice %1097 {offsets = [0, 4], sizes = [8, 1], strides = [1, 1]} : vector<8x16xf32> to vector<8x1xf32>
    %1206 = vector.shape_cast %1205 : vector<8x1xf32> to vector<8x1xf32>
    %1207 = vector.broadcast %1206 : vector<8x1xf32> to vector<8x64xf32>
    %1208 = vector.extract_strided_slice %1097 {offsets = [0, 12], sizes = [8, 1], strides = [1, 1]} : vector<8x16xf32> to vector<8x1xf32>
    %1209 = vector.shape_cast %1208 : vector<8x1xf32> to vector<8x1xf32>
    %1210 = vector.broadcast %1209 : vector<8x1xf32> to vector<8x64xf32>
    %1211 = tpu.concatenate %1207, %1210 in 1 : vector<8x64xf32>, vector<8x64xf32> -> vector<8x128xf32>
    %1212 = vector.extract_strided_slice %1099 {offsets = [0, 4], sizes = [8, 1], strides = [1, 1]} : vector<8x16xf32> to vector<8x1xf32>
    %1213 = vector.shape_cast %1212 : vector<8x1xf32> to vector<8x1xf32>
    %1214 = vector.broadcast %1213 : vector<8x1xf32> to vector<8x64xf32>
    %1215 = vector.extract_strided_slice %1099 {offsets = [0, 12], sizes = [8, 1], strides = [1, 1]} : vector<8x16xf32> to vector<8x1xf32>
    %1216 = vector.shape_cast %1215 : vector<8x1xf32> to vector<8x1xf32>
    %1217 = vector.broadcast %1216 : vector<8x1xf32> to vector<8x64xf32>
    %1218 = tpu.concatenate %1214, %1217 in 1 : vector<8x64xf32>, vector<8x64xf32> -> vector<8x128xf32>
    %1219 = vector.extract_strided_slice %1106 {offsets = [4, 0], sizes = [1, 128], strides = [1, 1]} : vector<8x128xf32> to vector<1x128xf32>
    %1220 = vector.broadcast %1219 : vector<1x128xf32> to vector<8x128xf32>
    %1221 = arith.mulf %1220, %1211 : vector<8x128xf32>
    %1222 = vector.extract_strided_slice %1102 {offsets = [4, 0], sizes = [1, 128], strides = [1, 1]} : vector<8x128xf32> to vector<1x128xf32>
    %1223 = vector.broadcast %1222 : vector<1x128xf32> to vector<8x128xf32>
    %1224 = arith.mulf %1223, %1016 : vector<8x128xf32>
    %1225 = math.exp %1224 : vector<8x128xf32>
    %1226 = arith.mulf %1225, %1201 : vector<8x128xf32>
    %1227 = arith.addf %1226, %1221 : vector<8x128xf32>
    %1228 = arith.mulf %1218, %1227 : vector<8x128xf32>
    %cst_261 = arith.constant dense<0.000000e+00> : vector<128xf32>
    %1229 = vector.multi_reduction <add>, %1228, %cst_261 [0] : vector<8x128xf32> to vector<128xf32>
    %1230 = vector.shape_cast %1229 : vector<128xf32> to vector<1x128xf32>
    %1231 = vector.extract_strided_slice %1097 {offsets = [0, 5], sizes = [8, 1], strides = [1, 1]} : vector<8x16xf32> to vector<8x1xf32>
    %1232 = vector.shape_cast %1231 : vector<8x1xf32> to vector<8x1xf32>
    %1233 = vector.broadcast %1232 : vector<8x1xf32> to vector<8x64xf32>
    %1234 = vector.extract_strided_slice %1097 {offsets = [0, 13], sizes = [8, 1], strides = [1, 1]} : vector<8x16xf32> to vector<8x1xf32>
    %1235 = vector.shape_cast %1234 : vector<8x1xf32> to vector<8x1xf32>
    %1236 = vector.broadcast %1235 : vector<8x1xf32> to vector<8x64xf32>
    %1237 = tpu.concatenate %1233, %1236 in 1 : vector<8x64xf32>, vector<8x64xf32> -> vector<8x128xf32>
    %1238 = vector.extract_strided_slice %1099 {offsets = [0, 5], sizes = [8, 1], strides = [1, 1]} : vector<8x16xf32> to vector<8x1xf32>
    %1239 = vector.shape_cast %1238 : vector<8x1xf32> to vector<8x1xf32>
    %1240 = vector.broadcast %1239 : vector<8x1xf32> to vector<8x64xf32>
    %1241 = vector.extract_strided_slice %1099 {offsets = [0, 13], sizes = [8, 1], strides = [1, 1]} : vector<8x16xf32> to vector<8x1xf32>
    %1242 = vector.shape_cast %1241 : vector<8x1xf32> to vector<8x1xf32>
    %1243 = vector.broadcast %1242 : vector<8x1xf32> to vector<8x64xf32>
    %1244 = tpu.concatenate %1240, %1243 in 1 : vector<8x64xf32>, vector<8x64xf32> -> vector<8x128xf32>
    %1245 = vector.extract_strided_slice %1106 {offsets = [5, 0], sizes = [1, 128], strides = [1, 1]} : vector<8x128xf32> to vector<1x128xf32>
    %1246 = vector.broadcast %1245 : vector<1x128xf32> to vector<8x128xf32>
    %1247 = arith.mulf %1246, %1237 : vector<8x128xf32>
    %1248 = vector.extract_strided_slice %1102 {offsets = [5, 0], sizes = [1, 128], strides = [1, 1]} : vector<8x128xf32> to vector<1x128xf32>
    %1249 = vector.broadcast %1248 : vector<1x128xf32> to vector<8x128xf32>
    %1250 = arith.mulf %1249, %1016 : vector<8x128xf32>
    %1251 = math.exp %1250 : vector<8x128xf32>
    %1252 = arith.mulf %1251, %1227 : vector<8x128xf32>
    %1253 = arith.addf %1252, %1247 : vector<8x128xf32>
    %1254 = arith.mulf %1244, %1253 : vector<8x128xf32>
    %cst_262 = arith.constant dense<0.000000e+00> : vector<128xf32>
    %1255 = vector.multi_reduction <add>, %1254, %cst_262 [0] : vector<8x128xf32> to vector<128xf32>
    %1256 = vector.shape_cast %1255 : vector<128xf32> to vector<1x128xf32>
    %1257 = vector.extract_strided_slice %1097 {offsets = [0, 6], sizes = [8, 1], strides = [1, 1]} : vector<8x16xf32> to vector<8x1xf32>
    %1258 = vector.shape_cast %1257 : vector<8x1xf32> to vector<8x1xf32>
    %1259 = vector.broadcast %1258 : vector<8x1xf32> to vector<8x64xf32>
    %1260 = vector.extract_strided_slice %1097 {offsets = [0, 14], sizes = [8, 1], strides = [1, 1]} : vector<8x16xf32> to vector<8x1xf32>
    %1261 = vector.shape_cast %1260 : vector<8x1xf32> to vector<8x1xf32>
    %1262 = vector.broadcast %1261 : vector<8x1xf32> to vector<8x64xf32>
    %1263 = tpu.concatenate %1259, %1262 in 1 : vector<8x64xf32>, vector<8x64xf32> -> vector<8x128xf32>
    %1264 = vector.extract_strided_slice %1099 {offsets = [0, 6], sizes = [8, 1], strides = [1, 1]} : vector<8x16xf32> to vector<8x1xf32>
    %1265 = vector.shape_cast %1264 : vector<8x1xf32> to vector<8x1xf32>
    %1266 = vector.broadcast %1265 : vector<8x1xf32> to vector<8x64xf32>
    %1267 = vector.extract_strided_slice %1099 {offsets = [0, 14], sizes = [8, 1], strides = [1, 1]} : vector<8x16xf32> to vector<8x1xf32>
    %1268 = vector.shape_cast %1267 : vector<8x1xf32> to vector<8x1xf32>
    %1269 = vector.broadcast %1268 : vector<8x1xf32> to vector<8x64xf32>
    %1270 = tpu.concatenate %1266, %1269 in 1 : vector<8x64xf32>, vector<8x64xf32> -> vector<8x128xf32>
    %1271 = vector.extract_strided_slice %1106 {offsets = [6, 0], sizes = [1, 128], strides = [1, 1]} : vector<8x128xf32> to vector<1x128xf32>
    %1272 = vector.broadcast %1271 : vector<1x128xf32> to vector<8x128xf32>
    %1273 = arith.mulf %1272, %1263 : vector<8x128xf32>
    %1274 = vector.extract_strided_slice %1102 {offsets = [6, 0], sizes = [1, 128], strides = [1, 1]} : vector<8x128xf32> to vector<1x128xf32>
    %1275 = vector.broadcast %1274 : vector<1x128xf32> to vector<8x128xf32>
    %1276 = arith.mulf %1275, %1016 : vector<8x128xf32>
    %1277 = math.exp %1276 : vector<8x128xf32>
    %1278 = arith.mulf %1277, %1253 : vector<8x128xf32>
    %1279 = arith.addf %1278, %1273 : vector<8x128xf32>
    %1280 = arith.mulf %1270, %1279 : vector<8x128xf32>
    %cst_263 = arith.constant dense<0.000000e+00> : vector<128xf32>
    %1281 = vector.multi_reduction <add>, %1280, %cst_263 [0] : vector<8x128xf32> to vector<128xf32>
    %1282 = vector.shape_cast %1281 : vector<128xf32> to vector<1x128xf32>
    %1283 = vector.extract_strided_slice %1097 {offsets = [0, 7], sizes = [8, 1], strides = [1, 1]} : vector<8x16xf32> to vector<8x1xf32>
    %1284 = vector.shape_cast %1283 : vector<8x1xf32> to vector<8x1xf32>
    %1285 = vector.broadcast %1284 : vector<8x1xf32> to vector<8x64xf32>
    %1286 = vector.extract_strided_slice %1097 {offsets = [0, 15], sizes = [8, 1], strides = [1, 1]} : vector<8x16xf32> to vector<8x1xf32>
    %1287 = vector.shape_cast %1286 : vector<8x1xf32> to vector<8x1xf32>
    %1288 = vector.broadcast %1287 : vector<8x1xf32> to vector<8x64xf32>
    %1289 = tpu.concatenate %1285, %1288 in 1 : vector<8x64xf32>, vector<8x64xf32> -> vector<8x128xf32>
    %1290 = vector.extract_strided_slice %1099 {offsets = [0, 7], sizes = [8, 1], strides = [1, 1]} : vector<8x16xf32> to vector<8x1xf32>
    %1291 = vector.shape_cast %1290 : vector<8x1xf32> to vector<8x1xf32>
    %1292 = vector.broadcast %1291 : vector<8x1xf32> to vector<8x64xf32>
    %1293 = vector.extract_strided_slice %1099 {offsets = [0, 15], sizes = [8, 1], strides = [1, 1]} : vector<8x16xf32> to vector<8x1xf32>
    %1294 = vector.shape_cast %1293 : vector<8x1xf32> to vector<8x1xf32>
    %1295 = vector.broadcast %1294 : vector<8x1xf32> to vector<8x64xf32>
    %1296 = tpu.concatenate %1292, %1295 in 1 : vector<8x64xf32>, vector<8x64xf32> -> vector<8x128xf32>
    %1297 = vector.extract_strided_slice %1106 {offsets = [7, 0], sizes = [1, 128], strides = [1, 1]} : vector<8x128xf32> to vector<1x128xf32>
    %1298 = vector.broadcast %1297 : vector<1x128xf32> to vector<8x128xf32>
    %1299 = arith.mulf %1298, %1289 : vector<8x128xf32>
    %1300 = vector.extract_strided_slice %1102 {offsets = [7, 0], sizes = [1, 128], strides = [1, 1]} : vector<8x128xf32> to vector<1x128xf32>
    %1301 = vector.broadcast %1300 : vector<1x128xf32> to vector<8x128xf32>
    %1302 = arith.mulf %1301, %1016 : vector<8x128xf32>
    %1303 = math.exp %1302 : vector<8x128xf32>
    %1304 = arith.mulf %1303, %1279 : vector<8x128xf32>
    %1305 = arith.addf %1304, %1299 : vector<8x128xf32>
    %1306 = arith.mulf %1296, %1305 : vector<8x128xf32>
    %cst_264 = arith.constant dense<0.000000e+00> : vector<128xf32>
    %1307 = vector.multi_reduction <add>, %1306, %cst_264 [0] : vector<8x128xf32> to vector<128xf32>
    %1308 = vector.shape_cast %1307 : vector<128xf32> to vector<1x128xf32>
    %1309 = tpu.concatenate %1126, %1152, %1178, %1204, %1230, %1256, %1282, %1308 in 0 : vector<1x128xf32>, vector<1x128xf32>, vector<1x128xf32>, vector<1x128xf32>, vector<1x128xf32>, vector<1x128xf32>, vector<1x128xf32>, vector<1x128xf32> -> vector<8x128xf32>
    %1310 = vector.extract_strided_slice %1309 {offsets = [0, 0], sizes = [8, 64], strides = [1, 1]} : vector<8x128xf32> to vector<8x64xf32>
    %1311 = vector.extract_strided_slice %1309 {offsets = [0, 64], sizes = [8, 64], strides = [1, 1]} : vector<8x128xf32> to vector<8x64xf32>
    %1312 = tpu.concatenate %1310, %1311 in 0 : vector<8x64xf32>, vector<8x64xf32> -> vector<16x64xf32>
    %1313 = vector.broadcast %1022 : vector<1x64xf32> to vector<16x64xf32>
    %1314 = arith.mulf %1078, %1313 : vector<16x64xf32>
    %1315 = arith.addf %1312, %1314 : vector<16x64xf32>
    %cst_265 = arith.constant 0.000000e+00 : f32
    %1316 = vector.broadcast %cst_265 : f32 to vector<16x64xf32>
    %1317 = arith.subf %1316, %1038 : vector<16x64xf32>
    %1318 = math.exp %1317 : vector<16x64xf32>
    %cst_266 = arith.constant 1.000000e+00 : f32
    %1319 = vector.broadcast %cst_266 : f32 to vector<16x64xf32>
    %1320 = arith.addf %1319, %1318 : vector<16x64xf32>
    %cst_267 = arith.constant 1.000000e+00 : f32
    %1321 = vector.broadcast %cst_267 : f32 to vector<16x64xf32>
    %1322 = arith.divf %1321, %1320 : vector<16x64xf32>
    %1323 = arith.mulf %1038, %1322 : vector<16x64xf32>
    %1324 = arith.mulf %1315, %1323 : vector<16x64xf32>
    %1325 = arith.truncf %1324 : vector<16x64xf32> to vector<16x64xbf16>
    %cst_268 = arith.constant dense<0.000000e+00> : vector<16x32xf32>
    %1326 = tpu.matmul %1325, %1018, %cst_268 {dimension_numbers = #tpu.dot_dimension_numbers<[1], [0], [0], [1], [0, 0, 1, 1], [], []>} : vector<16x64xbf16>, vector<64x32xbf16>, vector<16x32xf32> -> vector<16x32xf32>
    %1327 = arith.addf %836, %1326 : vector<16x32xf32>
    %c3 = arith.constant 3 : index
    %c0_269 = arith.constant 0 : index
    %c0_270 = arith.constant 0 : index
    %1328 = vector.load %arg8[%c3, %c0_269, %c0_270] : memref<4x8x64xf32, #tpu.memory_space<vmem>>, vector<1x8x64xf32>
    %1329 = vector.shape_cast %1328 : vector<1x8x64xf32> to vector<8x64xf32>
    %c3_271 = arith.constant 3 : index
    %c0_272 = arith.constant 0 : index
    %c0_273 = arith.constant 0 : index
    %1330 = vector.load %arg9[%c3_271, %c0_272, %c0_273] : memref<4x32x128xbf16, #tpu.memory_space<vmem>>, vector<1x32x128xbf16>
    %1331 = vector.shape_cast %1330 : vector<1x32x128xbf16> to vector<32x128xbf16>
    %c3_274 = arith.constant 3 : index
    %c0_275 = arith.constant 0 : index
    %c0_276 = arith.constant 0 : index
    %1332 = vector.load %arg10[%c3_274, %c0_275, %c0_276] : memref<4x64x20xbf16, #tpu.memory_space<vmem>>, vector<1x64x20xbf16>
    %1333 = vector.shape_cast %1332 : vector<1x64x20xbf16> to vector<64x20xbf16>
    %c3_277 = arith.constant 3 : index
    %c0_278 = arith.constant 0 : index
    %c0_279 = arith.constant 0 : index
    %1334 = vector.load %arg11[%c3_277, %c0_278, %c0_279] : memref<4x4x64xbf16, #tpu.memory_space<vmem>>, vector<1x4x64xbf16>
    %1335 = vector.shape_cast %1334 : vector<1x4x64xbf16> to vector<4x64xbf16>
    %c3_280 = arith.constant 3 : index
    %c0_281 = arith.constant 0 : index
    %c0_282 = arith.constant 0 : index
    %1336 = vector.load %arg12[%c3_280, %c0_281, %c0_282] : memref<4x8x128xf32, #tpu.memory_space<vmem>>, vector<1x8x128xf32>
    %1337 = vector.shape_cast %1336 : vector<1x8x128xf32> to vector<8x128xf32>
    %c3_283 = arith.constant 3 : index
    %c0_284 = arith.constant 0 : index
    %c0_285 = arith.constant 0 : index
    %1338 = vector.load %arg13[%c3_283, %c0_284, %c0_285] : memref<4x64x32xbf16, #tpu.memory_space<vmem>>, vector<1x64x32xbf16>
    %1339 = vector.shape_cast %1338 : vector<1x64x32xbf16> to vector<64x32xbf16>
    %1340 = vector.extract_strided_slice %1329 {offsets = [0, 0], sizes = [1, 32], strides = [1, 1]} : vector<8x64xf32> to vector<1x32xf32>
    %1341 = vector.extract_strided_slice %1329 {offsets = [1, 0], sizes = [1, 64], strides = [1, 1]} : vector<8x64xf32> to vector<1x64xf32>
    %1342 = vector.extract_strided_slice %1329 {offsets = [2, 0], sizes = [1, 64], strides = [1, 1]} : vector<8x64xf32> to vector<1x64xf32>
    %1343 = vector.extract_strided_slice %1329 {offsets = [3, 0], sizes = [1, 64], strides = [1, 1]} : vector<8x64xf32> to vector<1x64xf32>
    %1344 = arith.mulf %1327, %1327 : vector<16x32xf32>
    %cst_286 = arith.constant dense<0.000000e+00> : vector<16xf32>
    %1345 = vector.multi_reduction <add>, %1344, %cst_286 [1] : vector<16x32xf32> to vector<16xf32>
    %1346 = vector.shape_cast %1345 : vector<16xf32> to vector<16x1xf32>
    %cst_287 = arith.constant 3.200000e+01 : f32
    %1347 = vector.broadcast %cst_287 : f32 to vector<16x1xf32>
    %1348 = arith.divf %1346, %1347 : vector<16x1xf32>
    %cst_288 = arith.constant 9.99999974E-6 : f32
    %1349 = vector.broadcast %cst_288 : f32 to vector<16x1xf32>
    %1350 = arith.addf %1348, %1349 : vector<16x1xf32>
    %1351 = math.rsqrt %1350 : vector<16x1xf32>
    %1352 = vector.broadcast %1351 : vector<16x1xf32> to vector<16x32xf32>
    %1353 = arith.mulf %1327, %1352 : vector<16x32xf32>
    %1354 = vector.broadcast %1340 : vector<1x32xf32> to vector<16x32xf32>
    %1355 = arith.mulf %1353, %1354 : vector<16x32xf32>
    %1356 = arith.truncf %1355 : vector<16x32xf32> to vector<16x32xbf16>
    %cst_289 = arith.constant dense<0.000000e+00> : vector<16x128xf32>
    %1357 = tpu.matmul %1356, %1331, %cst_289 {dimension_numbers = #tpu.dot_dimension_numbers<[1], [0], [0], [1], [0, 0, 1, 1], [], []>} : vector<16x32xbf16>, vector<32x128xbf16>, vector<16x128xf32> -> vector<16x128xf32>
    %1358 = vector.extract_strided_slice %1357 {offsets = [0, 0], sizes = [16, 64], strides = [1, 1]} : vector<16x128xf32> to vector<16x64xf32>
    %1359 = vector.extract_strided_slice %1357 {offsets = [0, 64], sizes = [16, 64], strides = [1, 1]} : vector<16x128xf32> to vector<16x64xf32>
    %1360 = vector.extract_strided_slice %1329 {offsets = [7, 0], sizes = [1, 64], strides = [1, 1]} : vector<8x64xf32> to vector<1x64xf32>
    %1361 = vector.broadcast %1360 : vector<1x64xf32> to vector<16x64xf32>
    %1362 = arith.mulf %1358, %1361 : vector<16x64xf32>
    %c3_i32_290 = arith.constant 3 : i32
    %1363 = tpu.dynamic_rotate %1358 by %c3_i32_290 dim 0 : vector<16x64xf32>, i32 -> vector<16x64xf32>
    %c3_i32_291 = arith.constant 3 : i32
    %1364 = vector.broadcast %c3_i32_291 : i32 to vector<16x64xi32>
    %1365 = arith.cmpi sge, %21, %1364 : vector<16x64xi32>
    %cst_292 = arith.constant 0.000000e+00 : f32
    %1366 = vector.broadcast %cst_292 : f32 to vector<16x64xf32>
    %1367 = arith.select %1365, %1363, %1366 : vector<16x64xi1>, vector<16x64xf32>
    %1368 = vector.extract_strided_slice %1329 {offsets = [4, 0], sizes = [1, 64], strides = [1, 1]} : vector<8x64xf32> to vector<1x64xf32>
    %1369 = vector.broadcast %1368 : vector<1x64xf32> to vector<16x64xf32>
    %1370 = arith.mulf %1367, %1369 : vector<16x64xf32>
    %1371 = arith.addf %1362, %1370 : vector<16x64xf32>
    %c2_i32_293 = arith.constant 2 : i32
    %1372 = tpu.dynamic_rotate %1358 by %c2_i32_293 dim 0 : vector<16x64xf32>, i32 -> vector<16x64xf32>
    %c2_i32_294 = arith.constant 2 : i32
    %1373 = vector.broadcast %c2_i32_294 : i32 to vector<16x64xi32>
    %1374 = arith.cmpi sge, %21, %1373 : vector<16x64xi32>
    %cst_295 = arith.constant 0.000000e+00 : f32
    %1375 = vector.broadcast %cst_295 : f32 to vector<16x64xf32>
    %1376 = arith.select %1374, %1372, %1375 : vector<16x64xi1>, vector<16x64xf32>
    %1377 = vector.extract_strided_slice %1329 {offsets = [5, 0], sizes = [1, 64], strides = [1, 1]} : vector<8x64xf32> to vector<1x64xf32>
    %1378 = vector.broadcast %1377 : vector<1x64xf32> to vector<16x64xf32>
    %1379 = arith.mulf %1376, %1378 : vector<16x64xf32>
    %1380 = arith.addf %1371, %1379 : vector<16x64xf32>
    %c1_i32_296 = arith.constant 1 : i32
    %1381 = tpu.dynamic_rotate %1358 by %c1_i32_296 dim 0 : vector<16x64xf32>, i32 -> vector<16x64xf32>
    %c1_i32_297 = arith.constant 1 : i32
    %1382 = vector.broadcast %c1_i32_297 : i32 to vector<16x64xi32>
    %1383 = arith.cmpi sge, %21, %1382 : vector<16x64xi32>
    %cst_298 = arith.constant 0.000000e+00 : f32
    %1384 = vector.broadcast %cst_298 : f32 to vector<16x64xf32>
    %1385 = arith.select %1383, %1381, %1384 : vector<16x64xi1>, vector<16x64xf32>
    %1386 = vector.extract_strided_slice %1329 {offsets = [6, 0], sizes = [1, 64], strides = [1, 1]} : vector<8x64xf32> to vector<1x64xf32>
    %1387 = vector.broadcast %1386 : vector<1x64xf32> to vector<16x64xf32>
    %1388 = arith.mulf %1385, %1387 : vector<16x64xf32>
    %1389 = arith.addf %1380, %1388 : vector<16x64xf32>
    %1390 = vector.broadcast %1341 : vector<1x64xf32> to vector<16x64xf32>
    %1391 = arith.addf %1389, %1390 : vector<16x64xf32>
    %cst_299 = arith.constant 0.000000e+00 : f32
    %1392 = vector.broadcast %cst_299 : f32 to vector<16x64xf32>
    %1393 = arith.subf %1392, %1391 : vector<16x64xf32>
    %1394 = math.exp %1393 : vector<16x64xf32>
    %cst_300 = arith.constant 1.000000e+00 : f32
    %1395 = vector.broadcast %cst_300 : f32 to vector<16x64xf32>
    %1396 = arith.addf %1395, %1394 : vector<16x64xf32>
    %cst_301 = arith.constant 1.000000e+00 : f32
    %1397 = vector.broadcast %cst_301 : f32 to vector<16x64xf32>
    %1398 = arith.divf %1397, %1396 : vector<16x64xf32>
    %1399 = arith.mulf %1391, %1398 : vector<16x64xf32>
    %1400 = arith.truncf %1399 : vector<16x64xf32> to vector<16x64xbf16>
    %cst_302 = arith.constant dense<0.000000e+00> : vector<16x20xf32>
    %1401 = tpu.matmul %1400, %1333, %cst_302 {dimension_numbers = #tpu.dot_dimension_numbers<[1], [0], [0], [1], [0, 0, 1, 1], [], []>} : vector<16x64xbf16>, vector<64x20xbf16>, vector<16x20xf32> -> vector<16x20xf32>
    %1402 = vector.extract_strided_slice %1401 {offsets = [0, 0], sizes = [16, 4], strides = [1, 1]} : vector<16x20xf32> to vector<16x4xf32>
    %1403 = arith.truncf %1402 : vector<16x4xf32> to vector<16x4xbf16>
    %cst_303 = arith.constant dense<0.000000e+00> : vector<16x64xf32>
    %1404 = tpu.matmul %1403, %1335, %cst_303 {dimension_numbers = #tpu.dot_dimension_numbers<[1], [0], [0], [1], [0, 0, 1, 1], [], []>} : vector<16x4xbf16>, vector<4x64xbf16>, vector<16x64xf32> -> vector<16x64xf32>
    %1405 = vector.broadcast %1342 : vector<1x64xf32> to vector<16x64xf32>
    %1406 = arith.addf %1404, %1405 : vector<16x64xf32>
    %cst_304 = arith.constant 0.000000e+00 : f32
    %1407 = vector.broadcast %cst_304 : f32 to vector<16x64xf32>
    %1408 = arith.maximumf %1406, %1407 : vector<16x64xf32>
    %1409 = math.absf %1406 : vector<16x64xf32>
    %cst_305 = arith.constant 0.000000e+00 : f32
    %1410 = vector.broadcast %cst_305 : f32 to vector<16x64xf32>
    %1411 = arith.subf %1410, %1409 : vector<16x64xf32>
    %1412 = math.exp %1411 : vector<16x64xf32>
    %cst_306 = arith.constant 1.000000e+00 : f32
    %1413 = vector.broadcast %cst_306 : f32 to vector<16x64xf32>
    %1414 = arith.addf %1413, %1412 : vector<16x64xf32>
    %1415 = math.log %1414 : vector<16x64xf32>
    %1416 = arith.addf %1408, %1415 : vector<16x64xf32>
    %1417 = vector.extract_strided_slice %1401 {offsets = [0, 4], sizes = [16, 8], strides = [1, 1]} : vector<16x20xf32> to vector<16x8xf32>
    %1418 = tpu.transpose %1417, [1, 0] : vector<16x8xf32> -> vector<8x16xf32>
    %1419 = vector.extract_strided_slice %1401 {offsets = [0, 12], sizes = [16, 8], strides = [1, 1]} : vector<16x20xf32> to vector<16x8xf32>
    %1420 = tpu.transpose %1419, [1, 0] : vector<16x8xf32> -> vector<8x16xf32>
    %1421 = vector.extract_strided_slice %1416 {offsets = [0, 0], sizes = [8, 64], strides = [1, 1]} : vector<16x64xf32> to vector<8x64xf32>
    %1422 = vector.extract_strided_slice %1416 {offsets = [8, 0], sizes = [8, 64], strides = [1, 1]} : vector<16x64xf32> to vector<8x64xf32>
    %1423 = tpu.concatenate %1421, %1422 in 1 : vector<8x64xf32>, vector<8x64xf32> -> vector<8x128xf32>
    %1424 = arith.mulf %1416, %1399 : vector<16x64xf32>
    %1425 = vector.extract_strided_slice %1424 {offsets = [0, 0], sizes = [8, 64], strides = [1, 1]} : vector<16x64xf32> to vector<8x64xf32>
    %1426 = vector.extract_strided_slice %1424 {offsets = [8, 0], sizes = [8, 64], strides = [1, 1]} : vector<16x64xf32> to vector<8x64xf32>
    %1427 = tpu.concatenate %1425, %1426 in 1 : vector<8x64xf32>, vector<8x64xf32> -> vector<8x128xf32>
    %1428 = vector.extract_strided_slice %1418 {offsets = [0, 0], sizes = [8, 1], strides = [1, 1]} : vector<8x16xf32> to vector<8x1xf32>
    %1429 = vector.shape_cast %1428 : vector<8x1xf32> to vector<8x1xf32>
    %1430 = vector.broadcast %1429 : vector<8x1xf32> to vector<8x64xf32>
    %1431 = vector.extract_strided_slice %1418 {offsets = [0, 8], sizes = [8, 1], strides = [1, 1]} : vector<8x16xf32> to vector<8x1xf32>
    %1432 = vector.shape_cast %1431 : vector<8x1xf32> to vector<8x1xf32>
    %1433 = vector.broadcast %1432 : vector<8x1xf32> to vector<8x64xf32>
    %1434 = tpu.concatenate %1430, %1433 in 1 : vector<8x64xf32>, vector<8x64xf32> -> vector<8x128xf32>
    %1435 = vector.extract_strided_slice %1420 {offsets = [0, 0], sizes = [8, 1], strides = [1, 1]} : vector<8x16xf32> to vector<8x1xf32>
    %1436 = vector.shape_cast %1435 : vector<8x1xf32> to vector<8x1xf32>
    %1437 = vector.broadcast %1436 : vector<8x1xf32> to vector<8x64xf32>
    %1438 = vector.extract_strided_slice %1420 {offsets = [0, 8], sizes = [8, 1], strides = [1, 1]} : vector<8x16xf32> to vector<8x1xf32>
    %1439 = vector.shape_cast %1438 : vector<8x1xf32> to vector<8x1xf32>
    %1440 = vector.broadcast %1439 : vector<8x1xf32> to vector<8x64xf32>
    %1441 = tpu.concatenate %1437, %1440 in 1 : vector<8x64xf32>, vector<8x64xf32> -> vector<8x128xf32>
    %1442 = vector.extract_strided_slice %1427 {offsets = [0, 0], sizes = [1, 128], strides = [1, 1]} : vector<8x128xf32> to vector<1x128xf32>
    %1443 = vector.broadcast %1442 : vector<1x128xf32> to vector<8x128xf32>
    %1444 = arith.mulf %1443, %1434 : vector<8x128xf32>
    %1445 = arith.mulf %1441, %1444 : vector<8x128xf32>
    %cst_307 = arith.constant dense<0.000000e+00> : vector<128xf32>
    %1446 = vector.multi_reduction <add>, %1445, %cst_307 [0] : vector<8x128xf32> to vector<128xf32>
    %1447 = vector.shape_cast %1446 : vector<128xf32> to vector<1x128xf32>
    %1448 = vector.extract_strided_slice %1418 {offsets = [0, 1], sizes = [8, 1], strides = [1, 1]} : vector<8x16xf32> to vector<8x1xf32>
    %1449 = vector.shape_cast %1448 : vector<8x1xf32> to vector<8x1xf32>
    %1450 = vector.broadcast %1449 : vector<8x1xf32> to vector<8x64xf32>
    %1451 = vector.extract_strided_slice %1418 {offsets = [0, 9], sizes = [8, 1], strides = [1, 1]} : vector<8x16xf32> to vector<8x1xf32>
    %1452 = vector.shape_cast %1451 : vector<8x1xf32> to vector<8x1xf32>
    %1453 = vector.broadcast %1452 : vector<8x1xf32> to vector<8x64xf32>
    %1454 = tpu.concatenate %1450, %1453 in 1 : vector<8x64xf32>, vector<8x64xf32> -> vector<8x128xf32>
    %1455 = vector.extract_strided_slice %1420 {offsets = [0, 1], sizes = [8, 1], strides = [1, 1]} : vector<8x16xf32> to vector<8x1xf32>
    %1456 = vector.shape_cast %1455 : vector<8x1xf32> to vector<8x1xf32>
    %1457 = vector.broadcast %1456 : vector<8x1xf32> to vector<8x64xf32>
    %1458 = vector.extract_strided_slice %1420 {offsets = [0, 9], sizes = [8, 1], strides = [1, 1]} : vector<8x16xf32> to vector<8x1xf32>
    %1459 = vector.shape_cast %1458 : vector<8x1xf32> to vector<8x1xf32>
    %1460 = vector.broadcast %1459 : vector<8x1xf32> to vector<8x64xf32>
    %1461 = tpu.concatenate %1457, %1460 in 1 : vector<8x64xf32>, vector<8x64xf32> -> vector<8x128xf32>
    %1462 = vector.extract_strided_slice %1427 {offsets = [1, 0], sizes = [1, 128], strides = [1, 1]} : vector<8x128xf32> to vector<1x128xf32>
    %1463 = vector.broadcast %1462 : vector<1x128xf32> to vector<8x128xf32>
    %1464 = arith.mulf %1463, %1454 : vector<8x128xf32>
    %1465 = vector.extract_strided_slice %1423 {offsets = [1, 0], sizes = [1, 128], strides = [1, 1]} : vector<8x128xf32> to vector<1x128xf32>
    %1466 = vector.broadcast %1465 : vector<1x128xf32> to vector<8x128xf32>
    %1467 = arith.mulf %1466, %1337 : vector<8x128xf32>
    %1468 = math.exp %1467 : vector<8x128xf32>
    %1469 = arith.mulf %1468, %1444 : vector<8x128xf32>
    %1470 = arith.addf %1469, %1464 : vector<8x128xf32>
    %1471 = arith.mulf %1461, %1470 : vector<8x128xf32>
    %cst_308 = arith.constant dense<0.000000e+00> : vector<128xf32>
    %1472 = vector.multi_reduction <add>, %1471, %cst_308 [0] : vector<8x128xf32> to vector<128xf32>
    %1473 = vector.shape_cast %1472 : vector<128xf32> to vector<1x128xf32>
    %1474 = vector.extract_strided_slice %1418 {offsets = [0, 2], sizes = [8, 1], strides = [1, 1]} : vector<8x16xf32> to vector<8x1xf32>
    %1475 = vector.shape_cast %1474 : vector<8x1xf32> to vector<8x1xf32>
    %1476 = vector.broadcast %1475 : vector<8x1xf32> to vector<8x64xf32>
    %1477 = vector.extract_strided_slice %1418 {offsets = [0, 10], sizes = [8, 1], strides = [1, 1]} : vector<8x16xf32> to vector<8x1xf32>
    %1478 = vector.shape_cast %1477 : vector<8x1xf32> to vector<8x1xf32>
    %1479 = vector.broadcast %1478 : vector<8x1xf32> to vector<8x64xf32>
    %1480 = tpu.concatenate %1476, %1479 in 1 : vector<8x64xf32>, vector<8x64xf32> -> vector<8x128xf32>
    %1481 = vector.extract_strided_slice %1420 {offsets = [0, 2], sizes = [8, 1], strides = [1, 1]} : vector<8x16xf32> to vector<8x1xf32>
    %1482 = vector.shape_cast %1481 : vector<8x1xf32> to vector<8x1xf32>
    %1483 = vector.broadcast %1482 : vector<8x1xf32> to vector<8x64xf32>
    %1484 = vector.extract_strided_slice %1420 {offsets = [0, 10], sizes = [8, 1], strides = [1, 1]} : vector<8x16xf32> to vector<8x1xf32>
    %1485 = vector.shape_cast %1484 : vector<8x1xf32> to vector<8x1xf32>
    %1486 = vector.broadcast %1485 : vector<8x1xf32> to vector<8x64xf32>
    %1487 = tpu.concatenate %1483, %1486 in 1 : vector<8x64xf32>, vector<8x64xf32> -> vector<8x128xf32>
    %1488 = vector.extract_strided_slice %1427 {offsets = [2, 0], sizes = [1, 128], strides = [1, 1]} : vector<8x128xf32> to vector<1x128xf32>
    %1489 = vector.broadcast %1488 : vector<1x128xf32> to vector<8x128xf32>
    %1490 = arith.mulf %1489, %1480 : vector<8x128xf32>
    %1491 = vector.extract_strided_slice %1423 {offsets = [2, 0], sizes = [1, 128], strides = [1, 1]} : vector<8x128xf32> to vector<1x128xf32>
    %1492 = vector.broadcast %1491 : vector<1x128xf32> to vector<8x128xf32>
    %1493 = arith.mulf %1492, %1337 : vector<8x128xf32>
    %1494 = math.exp %1493 : vector<8x128xf32>
    %1495 = arith.mulf %1494, %1470 : vector<8x128xf32>
    %1496 = arith.addf %1495, %1490 : vector<8x128xf32>
    %1497 = arith.mulf %1487, %1496 : vector<8x128xf32>
    %cst_309 = arith.constant dense<0.000000e+00> : vector<128xf32>
    %1498 = vector.multi_reduction <add>, %1497, %cst_309 [0] : vector<8x128xf32> to vector<128xf32>
    %1499 = vector.shape_cast %1498 : vector<128xf32> to vector<1x128xf32>
    %1500 = vector.extract_strided_slice %1418 {offsets = [0, 3], sizes = [8, 1], strides = [1, 1]} : vector<8x16xf32> to vector<8x1xf32>
    %1501 = vector.shape_cast %1500 : vector<8x1xf32> to vector<8x1xf32>
    %1502 = vector.broadcast %1501 : vector<8x1xf32> to vector<8x64xf32>
    %1503 = vector.extract_strided_slice %1418 {offsets = [0, 11], sizes = [8, 1], strides = [1, 1]} : vector<8x16xf32> to vector<8x1xf32>
    %1504 = vector.shape_cast %1503 : vector<8x1xf32> to vector<8x1xf32>
    %1505 = vector.broadcast %1504 : vector<8x1xf32> to vector<8x64xf32>
    %1506 = tpu.concatenate %1502, %1505 in 1 : vector<8x64xf32>, vector<8x64xf32> -> vector<8x128xf32>
    %1507 = vector.extract_strided_slice %1420 {offsets = [0, 3], sizes = [8, 1], strides = [1, 1]} : vector<8x16xf32> to vector<8x1xf32>
    %1508 = vector.shape_cast %1507 : vector<8x1xf32> to vector<8x1xf32>
    %1509 = vector.broadcast %1508 : vector<8x1xf32> to vector<8x64xf32>
    %1510 = vector.extract_strided_slice %1420 {offsets = [0, 11], sizes = [8, 1], strides = [1, 1]} : vector<8x16xf32> to vector<8x1xf32>
    %1511 = vector.shape_cast %1510 : vector<8x1xf32> to vector<8x1xf32>
    %1512 = vector.broadcast %1511 : vector<8x1xf32> to vector<8x64xf32>
    %1513 = tpu.concatenate %1509, %1512 in 1 : vector<8x64xf32>, vector<8x64xf32> -> vector<8x128xf32>
    %1514 = vector.extract_strided_slice %1427 {offsets = [3, 0], sizes = [1, 128], strides = [1, 1]} : vector<8x128xf32> to vector<1x128xf32>
    %1515 = vector.broadcast %1514 : vector<1x128xf32> to vector<8x128xf32>
    %1516 = arith.mulf %1515, %1506 : vector<8x128xf32>
    %1517 = vector.extract_strided_slice %1423 {offsets = [3, 0], sizes = [1, 128], strides = [1, 1]} : vector<8x128xf32> to vector<1x128xf32>
    %1518 = vector.broadcast %1517 : vector<1x128xf32> to vector<8x128xf32>
    %1519 = arith.mulf %1518, %1337 : vector<8x128xf32>
    %1520 = math.exp %1519 : vector<8x128xf32>
    %1521 = arith.mulf %1520, %1496 : vector<8x128xf32>
    %1522 = arith.addf %1521, %1516 : vector<8x128xf32>
    %1523 = arith.mulf %1513, %1522 : vector<8x128xf32>
    %cst_310 = arith.constant dense<0.000000e+00> : vector<128xf32>
    %1524 = vector.multi_reduction <add>, %1523, %cst_310 [0] : vector<8x128xf32> to vector<128xf32>
    %1525 = vector.shape_cast %1524 : vector<128xf32> to vector<1x128xf32>
    %1526 = vector.extract_strided_slice %1418 {offsets = [0, 4], sizes = [8, 1], strides = [1, 1]} : vector<8x16xf32> to vector<8x1xf32>
    %1527 = vector.shape_cast %1526 : vector<8x1xf32> to vector<8x1xf32>
    %1528 = vector.broadcast %1527 : vector<8x1xf32> to vector<8x64xf32>
    %1529 = vector.extract_strided_slice %1418 {offsets = [0, 12], sizes = [8, 1], strides = [1, 1]} : vector<8x16xf32> to vector<8x1xf32>
    %1530 = vector.shape_cast %1529 : vector<8x1xf32> to vector<8x1xf32>
    %1531 = vector.broadcast %1530 : vector<8x1xf32> to vector<8x64xf32>
    %1532 = tpu.concatenate %1528, %1531 in 1 : vector<8x64xf32>, vector<8x64xf32> -> vector<8x128xf32>
    %1533 = vector.extract_strided_slice %1420 {offsets = [0, 4], sizes = [8, 1], strides = [1, 1]} : vector<8x16xf32> to vector<8x1xf32>
    %1534 = vector.shape_cast %1533 : vector<8x1xf32> to vector<8x1xf32>
    %1535 = vector.broadcast %1534 : vector<8x1xf32> to vector<8x64xf32>
    %1536 = vector.extract_strided_slice %1420 {offsets = [0, 12], sizes = [8, 1], strides = [1, 1]} : vector<8x16xf32> to vector<8x1xf32>
    %1537 = vector.shape_cast %1536 : vector<8x1xf32> to vector<8x1xf32>
    %1538 = vector.broadcast %1537 : vector<8x1xf32> to vector<8x64xf32>
    %1539 = tpu.concatenate %1535, %1538 in 1 : vector<8x64xf32>, vector<8x64xf32> -> vector<8x128xf32>
    %1540 = vector.extract_strided_slice %1427 {offsets = [4, 0], sizes = [1, 128], strides = [1, 1]} : vector<8x128xf32> to vector<1x128xf32>
    %1541 = vector.broadcast %1540 : vector<1x128xf32> to vector<8x128xf32>
    %1542 = arith.mulf %1541, %1532 : vector<8x128xf32>
    %1543 = vector.extract_strided_slice %1423 {offsets = [4, 0], sizes = [1, 128], strides = [1, 1]} : vector<8x128xf32> to vector<1x128xf32>
    %1544 = vector.broadcast %1543 : vector<1x128xf32> to vector<8x128xf32>
    %1545 = arith.mulf %1544, %1337 : vector<8x128xf32>
    %1546 = math.exp %1545 : vector<8x128xf32>
    %1547 = arith.mulf %1546, %1522 : vector<8x128xf32>
    %1548 = arith.addf %1547, %1542 : vector<8x128xf32>
    %1549 = arith.mulf %1539, %1548 : vector<8x128xf32>
    %cst_311 = arith.constant dense<0.000000e+00> : vector<128xf32>
    %1550 = vector.multi_reduction <add>, %1549, %cst_311 [0] : vector<8x128xf32> to vector<128xf32>
    %1551 = vector.shape_cast %1550 : vector<128xf32> to vector<1x128xf32>
    %1552 = vector.extract_strided_slice %1418 {offsets = [0, 5], sizes = [8, 1], strides = [1, 1]} : vector<8x16xf32> to vector<8x1xf32>
    %1553 = vector.shape_cast %1552 : vector<8x1xf32> to vector<8x1xf32>
    %1554 = vector.broadcast %1553 : vector<8x1xf32> to vector<8x64xf32>
    %1555 = vector.extract_strided_slice %1418 {offsets = [0, 13], sizes = [8, 1], strides = [1, 1]} : vector<8x16xf32> to vector<8x1xf32>
    %1556 = vector.shape_cast %1555 : vector<8x1xf32> to vector<8x1xf32>
    %1557 = vector.broadcast %1556 : vector<8x1xf32> to vector<8x64xf32>
    %1558 = tpu.concatenate %1554, %1557 in 1 : vector<8x64xf32>, vector<8x64xf32> -> vector<8x128xf32>
    %1559 = vector.extract_strided_slice %1420 {offsets = [0, 5], sizes = [8, 1], strides = [1, 1]} : vector<8x16xf32> to vector<8x1xf32>
    %1560 = vector.shape_cast %1559 : vector<8x1xf32> to vector<8x1xf32>
    %1561 = vector.broadcast %1560 : vector<8x1xf32> to vector<8x64xf32>
    %1562 = vector.extract_strided_slice %1420 {offsets = [0, 13], sizes = [8, 1], strides = [1, 1]} : vector<8x16xf32> to vector<8x1xf32>
    %1563 = vector.shape_cast %1562 : vector<8x1xf32> to vector<8x1xf32>
    %1564 = vector.broadcast %1563 : vector<8x1xf32> to vector<8x64xf32>
    %1565 = tpu.concatenate %1561, %1564 in 1 : vector<8x64xf32>, vector<8x64xf32> -> vector<8x128xf32>
    %1566 = vector.extract_strided_slice %1427 {offsets = [5, 0], sizes = [1, 128], strides = [1, 1]} : vector<8x128xf32> to vector<1x128xf32>
    %1567 = vector.broadcast %1566 : vector<1x128xf32> to vector<8x128xf32>
    %1568 = arith.mulf %1567, %1558 : vector<8x128xf32>
    %1569 = vector.extract_strided_slice %1423 {offsets = [5, 0], sizes = [1, 128], strides = [1, 1]} : vector<8x128xf32> to vector<1x128xf32>
    %1570 = vector.broadcast %1569 : vector<1x128xf32> to vector<8x128xf32>
    %1571 = arith.mulf %1570, %1337 : vector<8x128xf32>
    %1572 = math.exp %1571 : vector<8x128xf32>
    %1573 = arith.mulf %1572, %1548 : vector<8x128xf32>
    %1574 = arith.addf %1573, %1568 : vector<8x128xf32>
    %1575 = arith.mulf %1565, %1574 : vector<8x128xf32>
    %cst_312 = arith.constant dense<0.000000e+00> : vector<128xf32>
    %1576 = vector.multi_reduction <add>, %1575, %cst_312 [0] : vector<8x128xf32> to vector<128xf32>
    %1577 = vector.shape_cast %1576 : vector<128xf32> to vector<1x128xf32>
    %1578 = vector.extract_strided_slice %1418 {offsets = [0, 6], sizes = [8, 1], strides = [1, 1]} : vector<8x16xf32> to vector<8x1xf32>
    %1579 = vector.shape_cast %1578 : vector<8x1xf32> to vector<8x1xf32>
    %1580 = vector.broadcast %1579 : vector<8x1xf32> to vector<8x64xf32>
    %1581 = vector.extract_strided_slice %1418 {offsets = [0, 14], sizes = [8, 1], strides = [1, 1]} : vector<8x16xf32> to vector<8x1xf32>
    %1582 = vector.shape_cast %1581 : vector<8x1xf32> to vector<8x1xf32>
    %1583 = vector.broadcast %1582 : vector<8x1xf32> to vector<8x64xf32>
    %1584 = tpu.concatenate %1580, %1583 in 1 : vector<8x64xf32>, vector<8x64xf32> -> vector<8x128xf32>
    %1585 = vector.extract_strided_slice %1420 {offsets = [0, 6], sizes = [8, 1], strides = [1, 1]} : vector<8x16xf32> to vector<8x1xf32>
    %1586 = vector.shape_cast %1585 : vector<8x1xf32> to vector<8x1xf32>
    %1587 = vector.broadcast %1586 : vector<8x1xf32> to vector<8x64xf32>
    %1588 = vector.extract_strided_slice %1420 {offsets = [0, 14], sizes = [8, 1], strides = [1, 1]} : vector<8x16xf32> to vector<8x1xf32>
    %1589 = vector.shape_cast %1588 : vector<8x1xf32> to vector<8x1xf32>
    %1590 = vector.broadcast %1589 : vector<8x1xf32> to vector<8x64xf32>
    %1591 = tpu.concatenate %1587, %1590 in 1 : vector<8x64xf32>, vector<8x64xf32> -> vector<8x128xf32>
    %1592 = vector.extract_strided_slice %1427 {offsets = [6, 0], sizes = [1, 128], strides = [1, 1]} : vector<8x128xf32> to vector<1x128xf32>
    %1593 = vector.broadcast %1592 : vector<1x128xf32> to vector<8x128xf32>
    %1594 = arith.mulf %1593, %1584 : vector<8x128xf32>
    %1595 = vector.extract_strided_slice %1423 {offsets = [6, 0], sizes = [1, 128], strides = [1, 1]} : vector<8x128xf32> to vector<1x128xf32>
    %1596 = vector.broadcast %1595 : vector<1x128xf32> to vector<8x128xf32>
    %1597 = arith.mulf %1596, %1337 : vector<8x128xf32>
    %1598 = math.exp %1597 : vector<8x128xf32>
    %1599 = arith.mulf %1598, %1574 : vector<8x128xf32>
    %1600 = arith.addf %1599, %1594 : vector<8x128xf32>
    %1601 = arith.mulf %1591, %1600 : vector<8x128xf32>
    %cst_313 = arith.constant dense<0.000000e+00> : vector<128xf32>
    %1602 = vector.multi_reduction <add>, %1601, %cst_313 [0] : vector<8x128xf32> to vector<128xf32>
    %1603 = vector.shape_cast %1602 : vector<128xf32> to vector<1x128xf32>
    %1604 = vector.extract_strided_slice %1418 {offsets = [0, 7], sizes = [8, 1], strides = [1, 1]} : vector<8x16xf32> to vector<8x1xf32>
    %1605 = vector.shape_cast %1604 : vector<8x1xf32> to vector<8x1xf32>
    %1606 = vector.broadcast %1605 : vector<8x1xf32> to vector<8x64xf32>
    %1607 = vector.extract_strided_slice %1418 {offsets = [0, 15], sizes = [8, 1], strides = [1, 1]} : vector<8x16xf32> to vector<8x1xf32>
    %1608 = vector.shape_cast %1607 : vector<8x1xf32> to vector<8x1xf32>
    %1609 = vector.broadcast %1608 : vector<8x1xf32> to vector<8x64xf32>
    %1610 = tpu.concatenate %1606, %1609 in 1 : vector<8x64xf32>, vector<8x64xf32> -> vector<8x128xf32>
    %1611 = vector.extract_strided_slice %1420 {offsets = [0, 7], sizes = [8, 1], strides = [1, 1]} : vector<8x16xf32> to vector<8x1xf32>
    %1612 = vector.shape_cast %1611 : vector<8x1xf32> to vector<8x1xf32>
    %1613 = vector.broadcast %1612 : vector<8x1xf32> to vector<8x64xf32>
    %1614 = vector.extract_strided_slice %1420 {offsets = [0, 15], sizes = [8, 1], strides = [1, 1]} : vector<8x16xf32> to vector<8x1xf32>
    %1615 = vector.shape_cast %1614 : vector<8x1xf32> to vector<8x1xf32>
    %1616 = vector.broadcast %1615 : vector<8x1xf32> to vector<8x64xf32>
    %1617 = tpu.concatenate %1613, %1616 in 1 : vector<8x64xf32>, vector<8x64xf32> -> vector<8x128xf32>
    %1618 = vector.extract_strided_slice %1427 {offsets = [7, 0], sizes = [1, 128], strides = [1, 1]} : vector<8x128xf32> to vector<1x128xf32>
    %1619 = vector.broadcast %1618 : vector<1x128xf32> to vector<8x128xf32>
    %1620 = arith.mulf %1619, %1610 : vector<8x128xf32>
    %1621 = vector.extract_strided_slice %1423 {offsets = [7, 0], sizes = [1, 128], strides = [1, 1]} : vector<8x128xf32> to vector<1x128xf32>
    %1622 = vector.broadcast %1621 : vector<1x128xf32> to vector<8x128xf32>
    %1623 = arith.mulf %1622, %1337 : vector<8x128xf32>
    %1624 = math.exp %1623 : vector<8x128xf32>
    %1625 = arith.mulf %1624, %1600 : vector<8x128xf32>
    %1626 = arith.addf %1625, %1620 : vector<8x128xf32>
    %1627 = arith.mulf %1617, %1626 : vector<8x128xf32>
    %cst_314 = arith.constant dense<0.000000e+00> : vector<128xf32>
    %1628 = vector.multi_reduction <add>, %1627, %cst_314 [0] : vector<8x128xf32> to vector<128xf32>
    %1629 = vector.shape_cast %1628 : vector<128xf32> to vector<1x128xf32>
    %1630 = tpu.concatenate %1447, %1473, %1499, %1525, %1551, %1577, %1603, %1629 in 0 : vector<1x128xf32>, vector<1x128xf32>, vector<1x128xf32>, vector<1x128xf32>, vector<1x128xf32>, vector<1x128xf32>, vector<1x128xf32>, vector<1x128xf32> -> vector<8x128xf32>
    %1631 = vector.extract_strided_slice %1630 {offsets = [0, 0], sizes = [8, 64], strides = [1, 1]} : vector<8x128xf32> to vector<8x64xf32>
    %1632 = vector.extract_strided_slice %1630 {offsets = [0, 64], sizes = [8, 64], strides = [1, 1]} : vector<8x128xf32> to vector<8x64xf32>
    %1633 = tpu.concatenate %1631, %1632 in 0 : vector<8x64xf32>, vector<8x64xf32> -> vector<16x64xf32>
    %1634 = vector.broadcast %1343 : vector<1x64xf32> to vector<16x64xf32>
    %1635 = arith.mulf %1399, %1634 : vector<16x64xf32>
    %1636 = arith.addf %1633, %1635 : vector<16x64xf32>
    %cst_315 = arith.constant 0.000000e+00 : f32
    %1637 = vector.broadcast %cst_315 : f32 to vector<16x64xf32>
    %1638 = arith.subf %1637, %1359 : vector<16x64xf32>
    %1639 = math.exp %1638 : vector<16x64xf32>
    %cst_316 = arith.constant 1.000000e+00 : f32
    %1640 = vector.broadcast %cst_316 : f32 to vector<16x64xf32>
    %1641 = arith.addf %1640, %1639 : vector<16x64xf32>
    %cst_317 = arith.constant 1.000000e+00 : f32
    %1642 = vector.broadcast %cst_317 : f32 to vector<16x64xf32>
    %1643 = arith.divf %1642, %1641 : vector<16x64xf32>
    %1644 = arith.mulf %1359, %1643 : vector<16x64xf32>
    %1645 = arith.mulf %1636, %1644 : vector<16x64xf32>
    %1646 = arith.truncf %1645 : vector<16x64xf32> to vector<16x64xbf16>
    %cst_318 = arith.constant dense<0.000000e+00> : vector<16x32xf32>
    %1647 = tpu.matmul %1646, %1339, %cst_318 {dimension_numbers = #tpu.dot_dimension_numbers<[1], [0], [0], [1], [0, 0, 1, 1], [], []>} : vector<16x64xbf16>, vector<64x32xbf16>, vector<16x32xf32> -> vector<16x32xf32>
    %1648 = arith.addf %1327, %1647 : vector<16x32xf32>
    %1649 = arith.addf %1006, %1648 : vector<16x32xf32>
    %cst_319 = arith.constant 5.000000e-01 : f32
    %1650 = vector.broadcast %cst_319 : f32 to vector<16x32xf32>
    %1651 = arith.mulf %1650, %1649 : vector<16x32xf32>
    %1652 = vector.extract_strided_slice %1651 {offsets = [0, 0], sizes = [8, 32], strides = [1, 1]} : vector<16x32xf32> to vector<8x32xf32>
    %cst_320 = arith.constant dense<0.000000e+00> : vector<32xf32>
    %1653 = vector.multi_reduction <add>, %1652, %cst_320 [0] : vector<8x32xf32> to vector<32xf32>
    %1654 = vector.shape_cast %1653 : vector<32xf32> to vector<1x32xf32>
    %cst_321 = arith.constant 8.000000e+00 : f32
    %1655 = vector.broadcast %cst_321 : f32 to vector<1x32xf32>
    %1656 = arith.divf %1654, %1655 : vector<1x32xf32>
    %1657 = vector.extract_strided_slice %1651 {offsets = [8, 0], sizes = [8, 32], strides = [1, 1]} : vector<16x32xf32> to vector<8x32xf32>
    %cst_322 = arith.constant dense<0.000000e+00> : vector<32xf32>
    %1658 = vector.multi_reduction <add>, %1657, %cst_322 [0] : vector<8x32xf32> to vector<32xf32>
    %1659 = vector.shape_cast %1658 : vector<32xf32> to vector<1x32xf32>
    %cst_323 = arith.constant 8.000000e+00 : f32
    %1660 = vector.broadcast %cst_323 : f32 to vector<1x32xf32>
    %1661 = arith.divf %1659, %1660 : vector<1x32xf32>
    %1662 = tpu.concatenate %1656, %1661 in 0 : vector<1x32xf32>, vector<1x32xf32> -> vector<2x32xf32>
    %c0_324 = arith.constant 0 : index
    %c0_325 = arith.constant 0 : index
    %1663 = vector.load %arg14[%c0_324, %c0_325] : memref<32x128xbf16, #tpu.memory_space<vmem>>, vector<32x128xbf16>
    %1664 = arith.truncf %1662 : vector<2x32xf32> to vector<2x32xbf16>
    %cst_326 = arith.constant dense<0.000000e+00> : vector<2x128xf32>
    %1665 = tpu.matmul %1664, %1663, %cst_326 {dimension_numbers = #tpu.dot_dimension_numbers<[1], [0], [0], [1], [0, 0, 1, 1], [], []>} : vector<2x32xbf16>, vector<32x128xbf16>, vector<2x128xf32> -> vector<2x128xf32>
    %c0_327 = arith.constant 0 : index
    %c0_328 = arith.constant 0 : index
    %1666 = vector.load %arg15[%c0_327, %c0_328] : memref<1x128xf32, #tpu.memory_space<vmem>>, vector<1x128xf32>
    %1667 = vector.broadcast %1666 : vector<1x128xf32> to vector<2x128xf32>
    %1668 = arith.addf %1665, %1667 : vector<2x128xf32>
    %c0_329 = arith.constant 0 : index
    %c0_330 = arith.constant 0 : index
    %1669 = vector.load %arg16[%c0_329, %c0_330] : memref<2x128xf32, #tpu.memory_space<vmem>>, vector<2x128xf32>
    tpu.vector_store %arg16[%c0_329, %c0_330], %1668 {strides = array<i32>} : memref<2x128xf32, #tpu.memory_space<vmem>>, vector<2x128xf32>,
    return
  }
}

</mosaic_0001>

<bundles_post_ra>
// kernel: hybrid_classification_forward.1
= control target key start
LH: loop header
LB: loop body
LE: loop exit
PB: predicated region body
PF: predicated region fallthrough
CT: control target
= control target key end

     0   :  { %s9347_s0 = inlined_call_operand.vmem [shape: s32[16,1], index: 0, kind: input, shape index: {}]   ;;  %s9348_s1 = inlined_call_operand.vmem [shape: bf16[64,32], index: 1, kind: input, shape index: {}]   ;;  %s9349_s2 = inlined_call_operand.vmem [shape: f32[16,32], index: 2, kind: input, shape index: {}]   ;;  %s9350_s3 = inlined_call_operand.vmem [shape: f32[2,8,128], index: 3, kind: input, shape index: {}]   ;;  %s9351_s4 = inlined_call_operand.vmem [shape: bf16[2,32,96], index: 4, kind: input, shape index: {}]   ;;  %s9352_s5 = inlined_call_operand.vmem [shape: bf16[2,32,32], index: 5, kind: input, shape index: {}]   ;;  %s9353_s6 = inlined_call_operand.vmem [shape: bf16[2,32,128], index: 6, kind: input, shape index: {}]   ;;  %s9354_s7 = inlined_call_operand.vmem [shape: bf16[2,128,32], index: 7, kind: input, shape index: {}]   ;;  %s9355_s8 = inlined_call_operand.vmem [shape: f32[4,8,64], index: 8, kind: input, shape index: {}]   ;;  %s9356_s9 = inlined_call_operand.vmem [shape: bf16[4,32,128], index: 9, kind: input, shape index: {}]   ;;  %s9357_s10 = inlined_call_operand.vmem [shape: bf16[4,64,20], index: 10, kind: input, shape index: {}]   ;;  %s9358_s11 = inlined_call_operand.vmem [shape: bf16[4,4,64], index: 11, kind: input, shape index: {}]   ;;  %s9359_s12 = inlined_call_operand.vmem [shape: f32[4,8,128], index: 12, kind: input, shape index: {}]   ;;  %s9360_s13 = inlined_call_operand.vmem [shape: bf16[4,64,32], index: 13, kind: input, shape index: {}]   ;;  %s9361_s14 = inlined_call_operand.vmem [shape: bf16[32,128], index: 14, kind: input, shape index: {}]   ;;  %s9362_s15 = inlined_call_operand.vmem [shape: f32[1,128], index: 15, kind: input, shape index: {}]   ;;  %s9363_s16 = inlined_call_operand.hbm [shape: f32[2,128], index: 16, kind: output, shape index: {}]  }
   0x1   :  { %9450 = sst [smem:[#allocation9_spill]] %s9347_s0 }
   0x2   :  { %s9451_s23 = sld [smem:[#allocation9_spill]]  ;;  %v9417_v1 = vmov 0   ;;  %v9421_v2 = vmov 0.0   ;;  %v7058_v3 = vld [vmem:[%s9348_s1 + $0x18] sm:$0xff]   ;;  %v7059_v5 = vld [vmem:[%s9348_s1 + $0x10] sm:$0xff]   ;;  %vm7415_vm0 = vmmov 0  }
   0x3   :  { %6899 = vset.pattern.permute.xlu0 %v9417_v1  ;;  %6492 = vmatprep.subr.bf16.mxu0 %v9421_v2  ;;  %v7060_v6 = vld [vmem:[%s9348_s1 + $0x8] sm:$0xff]   ;;  %v7061_v7 = vld [vmem:[%s9348_s1] sm:$0xff]  }
   0x4   :  { %6504 = vmatprep.subr.bf16.mxu1 %v9421_v2  ;;  %6493 = vmatpush3.bf16.msra.mxu0 %v7058_v3 }
   0x5   :  { %6494 = vmatprep.subr.bf16.mxu0 %v9421_v2  ;;  %6500 = vmatprep.mubr.msk.bf16.mxu0 %vm7415_vm0, %v9421_v2 }
   0x6   :  { %6508 = vmatprep.mubr.msk.bf16.mxu1 %vm7415_vm0, %v9421_v2 }
   0x8   :  { %v55_v0 = vld [vmem:[%s9451_s23] sm:$0xff]  ;;  %v56_v4 = vld [vmem:[%s9451_s23 + $0x8] sm:$0xff]  ;;  %6495 = vmatpush3.bf16.msra.mxu0 %v7059_v5 }
   0x9   :  { %60 = vperm.xlu0 %6899, %v55_v0   ;;  %6496 = vmatprep.subr.bf16.mxu0 %v9421_v2 }
   0xc   :  { %6497 = vmatpush3.bf16.msra.mxu0 %v7060_v6 }
   0xd   :  { %63 = vperm.xlu0 %6899, %v56_v4   ;;  %6498 = vmatprep.subr.bf16.mxu0 %v9421_v2 }
  0x10   :  { %6499 = vmatpush3.bf16.msra.mxu0 %v7061_v7 }
  0x11   :  { %21 = vsyncpa [#allocation3], 0  ;;  %v57_v8 = vlaneseq  ;;  %vm106_vm3 = vcmask 523264   ;;  %v80_v15 = vld [vmem:[%s9349_s2] sm:$0xff]  ;;  %vm9409_vm4 = vcmask 261120   ;;  %v81_v19 = vld [vmem:[%s9349_s2 + $0x8] sm:$0xff] }
  0x12   :  { %v7062_v35 = vld [vmem:[%s9351_s4 + $0x8] sm:$0xff]   ;;  %v7063_v36 = vld [vmem:[%s9351_s4] sm:$0xff]   ;;  %vm9374_vm5 = vcmask 64512   ;;  %s7416_s27 = smov 120   ;;  %s7417_s28 = smov 96   ;;  %vm9373_vm9 = vcmask 130048  }
  0x13   :  { %v7561_v9 = vand.u32 127, %v57_v8  ;;  %6505 = vmatpush3.bf16.msra.mxu1 %v7062_v35  ;;  %v7593_v43 = vshrl.u32 %v57_v8, 7  ;;  %v7601_v45 = vld [vmem:[%s9350_s3] sm:$0xff]  ;;  %s7418_s29 = smov 88   ;;  %s7419_s30 = smov 80   ;;  %vm9372_vm11 = vcmask 195584  }
  0x14   :  { %6506 = vmatprep.subr.bf16.mxu1 %v9421_v2  ;;  %s7420_s0 = smov 112   ;;  %s7421_s17 = smov 64  }
  0x15   :  { %v7596_v44 = vsub.s32 0, %v7593_v43  ;;  %v7606_v49 = vsub.s32 1, %v7593_v43  ;;  %vm7670_vm10 = vcmp.ge.s32.totalorder %v7593_v43, %v7561_v9  ;;  %s7422_s18 = smov 56   ;;  %s9407_s1 = smov 48   ;;  %vm1523_vm12 = vcmp.lt.s32.totalorder %v7593_v43, 3 }
  0x16   :  { %s9405_s19 = smov 72   ;;  %s9370_s20 = smov 104   ;;  %vm9411_vm14 = vcmp.lt.s32.totalorder %v7593_v43, 2 }
  0x17   :  { %6507 = vmatpush3.bf16.msra.mxu1 %v7063_v36  ;;  %v224_v48 = vrot.slane %v7601_v45, %v7596_v44  ;;  %v230_v53 = vrot.slane %v7601_v45, %v7606_v49  ;;  %s9368_s21 = smov 40   ;;  %s9367_s2 = smov 8  }
  0x18   :  { %s9365_s22 = smov 16   ;;  %s7431_s25 = smov 124  }
  0x19   :  { %s7447_s24 = smov [#allocation2]  }
  0x84   :  { %v61_v10 = vpop.permute.xlu0 %60 }
  0x85   :  { %vm65_vm1 = vcmp.eq.s32.totalorder %v7561_v9, %v61_v10 }
  0x86   :  { %v6077_v12 = vsel %vm65_vm1, 1.0, %v9421_v2 }
  0x88   :  { %v64_v11 = vpop.permute.xlu0 %63 }
  0x89   :  { %vm66_vm2 = vcmp.eq.s32.totalorder %v7561_v9, %v64_v11  ;;  %v153_v11 = vadd.s32 8, %v7593_v43 }
  0x8a   :  { %v6078_v13 = vsel %vm66_vm2, 1.0, %v9421_v2 }
  0x8b   :  { %v71_v14 = vpack.c.bf16 %v6078_v13, %v6077_v12  ;;  %v157_v12 = vsub.s32 %v153_v11, %v7561_v9  ;;  %v7660_v13 = vand.u32 7, %v153_v11  ;;  %vm155_vm6 = vcmp.ge.s32.totalorder %v153_v11, %v7561_v9 }
  0x8d   :  { %6501 = vmatmul.mubr.msk.bf16.vlgmr.msra.gmra.mxu0 %vm106_vm3, %v71_v14  ;;  %vm161_vm7 = vcmp.le.s32.totalorder %v157_v12, %v7660_v13  ;;  %vm1527_vm15 = vcmp.ge.s32.totalorder %v7660_v13, 3  ;;  %vm9403_vm2 = vcmp.ge.s32.totalorder %v7660_v13, 2 }
  0x8e   :  { %vm7664_vm8 = vmand %vm155_vm6, %vm161_vm7  ;;  %vm9402_vm6 = vcmp.lt.s32.totalorder %v7593_v43, 1 }
 0x14d   :  { %v144_v16 = vpop.f32.mrf.mxu0 }
 0x14e   :  { %v7571_v17 = vadd.f32 %v144_v16, %v80_v15 }
 0x14f   :  { %v6502_v18 = vpop.f32.mrf.mxu0 }
 0x150   :  { %v194_v20 = vsel %vm9409_vm4, %v7571_v17, 0.0 }
 0x151   :  { %195 = vadd.xlane.f32.xlu1 %v194_v20  ;;  %v147_v21 = vpop.f32.mrf.mxu0 }
 0x152   :  { %v7578_v22 = vadd.f32 %v147_v21, %v81_v19 }
 0x153   :  { %v6503_v23 = vpop.f32.mrf.mxu0 }
 0x154   :  { %v197_v24 = vsel %vm9409_vm4, %v7578_v22, 0.0 }
 0x155   :  { %198 = vadd.xlane.f32.xlu1 %v197_v24 }
 0x1da   :  { %v196_v25 = vpop.xlane.xlu1 %195 }
 0x1db   :  { %v201_v26 = vmul.f32 0.03125, %v196_v25 }
 0x1dd   :  { %v203_v27 = vsub.f32 %v7571_v17, %v201_v26 }
 0x1de   :  { %v199_v28 = vpop.xlane.xlu1 %198 }
 0x1df   :  { %v202_v29 = vmul.f32 0.03125, %v199_v28  ;;  %v205_v30 = vmul.f32 %v203_v27, %v203_v27 }
 0x1e1   :  { %v204_v31 = vsub.f32 %v7578_v22, %v202_v29  ;;  %v207_v32 = vsel %vm9409_vm4, %v205_v30, 0.0 }
 0x1e2   :  { %208 = vadd.xlane.f32.xlu0 %v207_v32 }
 0x1e3   :  { %v206_v33 = vmul.f32 %v204_v31, %v204_v31 }
 0x1e5   :  { %v210_v34 = vsel %vm9409_vm4, %v206_v33, 0.0 }
 0x1e6   :  { %211 = vadd.xlane.f32.xlu1 %v210_v34 }
 0x26b   :  { %v209_v37 = vpop.xlane.xlu0 %208 }
 0x26c   :  { %v213_v38 = vmul.f32 0.03125, %v209_v37 }
 0x26e   :  { %v215_v39 = vadd.f32 1e-05, %v213_v38 }
 0x26f   :  { %v212_v40 = vpop.xlane.xlu1 %211 }
 0x270   :  { %7132 = vrsqrt.f32 %v215_v39  ;;  %v214_v41 = vmul.f32 0.03125, %v212_v40 }
 0x272   :  { %v216_v42 = vadd.f32 1e-05, %v214_v41 }
 0x274   :  { %7134 = vrsqrt.f32 %v216_v42 }
 0x27d   :  { %v7133_v46 = vpop.eup %7132 }
 0x27e   :  { %v219_v47 = vmul.f32 %v7133_v46, %v203_v27 }
 0x280   :  { %v225_v52 = vmul.f32 %v224_v48, %v219_v47 }
 0x281   :  { %v7135_v50 = vpop.eup %7134 }
 0x282   :  { %v220_v51 = vmul.f32 %v7135_v50, %v204_v31  ;;  %v231_v55 = vadd.f32 %v230_v53, %v225_v52 }
 0x284   :  { %v226_v54 = vmul.f32 %v224_v48, %v220_v51 }
 0x286   :  { %v232_v56 = vadd.f32 %v230_v53, %v226_v54 }
 0x288   :  { %v233_v57 = vpack.c.bf16 %v232_v56, %v231_v55 }
 0x28a   :  { %6509 = vmatmul.mubr.msk.bf16.vlgmr.msra.gmra.mxu1 %vm9409_vm4, %v233_v57 }
 0x34a   :  { %v7611_v58 = vpop.f32.mrf.mxu1 }
 0x34b   :  { %494 = vrot.lane.b32.xlu0 %v7611_v58, %s7416_s27  ;;  %292 = vrot.lane.b32.xlu1 %v7611_v58, %s7417_s28 }
 0x34c   :  { %6516 = vmatprep.mubr.msk.f32.mxu1 %vm9374_vm5, %v7611_v58  ;;  %v6510_v59 = vpop.f32.mrf.mxu1 }
 0x34e   :  { %v7619_v60 = vpop.f32.mrf.mxu1 }
 0x34f   :  { %498 = vrot.lane.b32.xlu1 %v7611_v58, %s7418_s29 }
 0x350   :  { %v6511_v61 = vpop.f32.mrf.mxu1 }
 0x353   :  { %702 = vrot.lane.b32.xlu1 %v7611_v58, %s7419_s30 }
 0x357   :  { %294 = vrot.lane.b32.xlu1 %v7619_v60, %s7417_s28 }
 0x35b   :  { %500 = vrot.lane.b32.xlu1 %v7619_v60, %s7418_s29 }
 0x35f   :  { %704 = vrot.lane.b32.xlu1 %v7619_v60, %s7419_s30 }
 0x363   :  { %496 = vrot.lane.b32.xlu1 %v7619_v60, %s7416_s27 }
 0x367   :  { %698 = vrot.lane.b32.xlu1 %v7611_v58, %s7420_s0 }
 0x36b   :  { %700 = vrot.lane.b32.xlu1 %v7619_v60, %s7420_s0 }
 0x3bd   :  { %v495_v62 = vpop.permute.xlu0 %494  ;;  %v293_v63 = vpop.permute.xlu1 %292 }
 0x3be   :  { %6530 = vmatprep.mubr.msk.f32.mxu0 %vm9374_vm5, %v495_v62 }
 0x3c1   :  { %v499_v0 = vpop.permute.xlu1 %498 }
 0x3c5   :  { %v703_v3 = vpop.permute.xlu1 %702 }
 0x3c9   :  { %v295_v4 = vpop.permute.xlu1 %294 }
 0x3ca   :  { %6512 = vmatprep.subr.msk.mxu1 %vm9374_vm5, %v295_v4 }
 0x3cb   :  { %6513 = vmatpush3.xpose.msk.msra.mxu1 %vm9374_vm5, %v295_v4 }
 0x3cc   :  { %6514 = vmatprep.subr.msk.mxu1 %vm9374_vm5, %v293_v63 }
 0x3cd   :  { %v501_v5 = vpop.permute.xlu1 %500 }
 0x3ce   :  { %6526 = vmatprep.subr.msk.mxu0 %vm9374_vm5, %v501_v5 }
 0x3cf   :  { %6515 = vmatpush3.xpose.msk.msra.mxu1 %vm9374_vm5, %v293_v63  ;;  %6527 = vmatpush3.xpose.msk.msra.mxu0 %vm9374_vm5, %v501_v5 }
 0x3d0   :  { %6528 = vmatprep.subr.msk.mxu0 %vm9374_vm5, %v499_v0 }
 0x3d1   :  { %v705_v6 = vpop.permute.xlu1 %704 }
 0x3d2   :  { %6517 = vmatmul.mubr.msk.f32.vlgmr.msra.gmra.mxu1 %vm9374_vm5, %v7619_v60 }
 0x3d3   :  { %6529 = vmatpush3.xpose.msk.msra.mxu0 %vm9374_vm5, %v499_v0 }
 0x3d4   :  { %6540 = vmatprep.subr.msk.mxu0 %vm9374_vm5, %v705_v6 }
 0x3d5   :  { %v497_v7 = vpop.permute.xlu1 %496 }
 0x3d6   :  { %6531 = vmatmul.mubr.msk.f32.vlgmr.msra.gmra.mxu0 %vm9374_vm5, %v497_v7 }
 0x3d7   :  { %6541 = vmatpush3.xpose.msk.msra.mxu0 %vm9374_vm5, %v705_v6 }
 0x3d8   :  { %6542 = vmatprep.subr.msk.mxu0 %vm9374_vm5, %v703_v3 }
 0x3d9   :  { %v699_v8 = vpop.permute.xlu1 %698 }
 0x3da   :  { %6544 = vmatprep.mubr.msk.f32.mxu0 %vm9374_vm5, %v699_v8 }
 0x3db   :  { %6543 = vmatpush3.xpose.msk.msra.mxu0 %vm9374_vm5, %v703_v3 }
 0x3dc   :  { %6568 = vmatprep.subr.bf16.mxu0 %v9421_v2 }
 0x3dd   :  { %v701_v10 = vpop.permute.xlu1 %700 }
 0x3de   :  { %6545 = vmatmul.mubr.msk.f32.vlgmr.msra.gmra.mxu0 %vm9374_vm5, %v701_v10 }
 0x3df   :  { %6572 = vmatprep.mubr.msk.bf16.mxu0 %vm7415_vm0, %v9421_v2 }
 0x492   :  { %v6518_v14 = vpop.f32.mrf.mxu1 }
 0x493   :  { %v381_v16 = vmul.f32 0.35355338, %v6518_v14 }
 0x494   :  { %v371_v18 = vpop.f32.mrf.mxu1 }
 0x495   :  { %v380_v20 = vmul.f32 0.35355338, %v371_v18  ;;  %v383_v21 = vsel %vm7664_vm8, %v381_v16, -1e+30 }
 0x496   :  { %v6532_v23 = vpop.f32.mrf.mxu0  ;;  %v388_v24 = vsel %vm9373_vm9, %v383_v21, -inf }
 0x497   :  { %389 = vmax.xlane.f32.xlu1 %v388_v24  ;;  %v382_v25 = vsel %vm7670_vm10, %v380_v20, -1e+30  ;;  %v586_v28 = vmul.f32 0.35355338, %v6532_v23 }
 0x498   :  { %v576_v26 = vpop.f32.mrf.mxu0  ;;  %v385_v27 = vsel %vm9373_vm9, %v382_v25, -inf }
 0x499   :  { %v585_v29 = vmul.f32 0.35355338, %v576_v26  ;;  %386 = vmax.xlane.f32.xlu0 %v385_v27  ;;  %v588_v31 = vsel %vm7664_vm8, %v586_v28, -1e+30 }
 0x49a   :  { %v592_v34 = vsel %vm9373_vm9, %v588_v31, -inf }
 0x49b   :  { %v587_v9 = vsel %vm7670_vm10, %v585_v29, -1e+30 }
 0x49c   :  { %v589_v30 = vsel %vm9373_vm9, %v587_v9, -inf }
 0x49d   :  { %590 = vmax.xlane.f32.xlu0 %v589_v30 }
 0x49e   :  { %v6546_v32 = vpop.f32.mrf.mxu0 }
 0x49f   :  { %v790_v33 = vmul.f32 0.35355338, %v6546_v32 }
 0x4a0   :  { %v780_v37 = vpop.f32.mrf.mxu0 }
 0x4a1   :  { %593 = vmax.xlane.f32.xlu0 %v592_v34  ;;  %v792_v35 = vsel %vm7664_vm8, %v790_v33, -1e+30  ;;  %v789_v38 = vmul.f32 0.35355338, %v780_v37 }
 0x4a2   :  { %v796_v36 = vsel %vm9373_vm9, %v792_v35, -inf }
 0x4a3   :  { %v791_v39 = vsel %vm7670_vm10, %v789_v38, -1e+30 }
 0x4a4   :  { %v793_v40 = vsel %vm9373_vm9, %v791_v39, -inf }
 0x4a5   :  { %797 = vmax.xlane.f32.xlu0 %v796_v36 }
 0x4a8   :  { %409 = vrot.lane.b32.xlu1 %v7619_v60, %s7421_s17 }
 0x4ac   :  { %613 = vrot.lane.b32.xlu1 %v7619_v60, %s7422_s18 }
 0x4b0   :  { %611 = vrot.lane.b32.xlu1 %v7611_v58, %s7422_s18 }
 0x4bb   :  { %407 = vrot.lane.b32.xlu0 %v7611_v58, %s7421_s17 }
 0x4bf   :  { %817 = vrot.lane.b32.xlu0 %v7619_v60, %s9407_s1 }
 0x4d4   :  { %794 = vmax.xlane.f32.xlu1 %v793_v40 }
 0x4e5   :  { %815 = vrot.lane.b32.xlu1 %v7611_v58, %s9407_s1 }
 0x520   :  { %v390_v41 = vpop.xlane.xlu1 %389 }
 0x521   :  { %v392_v42 = vsub.f32 %v383_v21, %v390_v41 }
 0x522   :  { %v387_v46 = vpop.xlane.xlu0 %386 }
 0x523   :  { %v395_v47 = vmul.f32 1.442695, %v392_v42  ;;  %v391_v48 = vsub.f32 %v382_v25, %v387_v46 }
 0x524   :  { %v410_v50 = vpop.permute.xlu1 %409 }
 0x525   :  { %7136 = vpow2.f32 %v395_v47  ;;  %v393_v51 = vmul.f32 1.442695, %v391_v48  ;;  %6519 = vmatprep.subr.mxu1 %v410_v50 }
 0x526   :  { %6520 = vmatpush3.msra.mxu1 %v410_v50  ;;  %v591_v52 = vpop.xlane.xlu0 %590 }
 0x527   :  { %7138 = vpow2.f32 %v393_v51  ;;  %v595_v53 = vsub.f32 %v587_v9, %v591_v52 }
 0x528   :  { %v614_v5 = vpop.permute.xlu1 %613 }
 0x529   :  { %v597_v54 = vmul.f32 1.442695, %v595_v53 }
 0x52a   :  { %v594_v55 = vpop.xlane.xlu0 %593 }
 0x52b   :  { %7140 = vpow2.f32 %v597_v54  ;;  %v596_v56 = vsub.f32 %v588_v31, %v594_v55 }
 0x52c   :  { %v612_v16 = vpop.permute.xlu1 %611 }
 0x52d   :  { %v599_v57 = vmul.f32 1.442695, %v596_v56 }
 0x52e   :  { %v798_v59 = vpop.xlane.xlu0 %797 }
 0x52f   :  { %7142 = vpow2.f32 %v599_v57  ;;  %v800_v61 = vsub.f32 %v792_v35, %v798_v59 }
 0x531   :  { %v803_v62 = vmul.f32 1.442695, %v800_v61 }
 0x532   :  { %v7137_v63 = vpop.eup %7136  ;;  %v408_v0 = vpop.permute.xlu0 %407 }
 0x533   :  { %7144 = vpow2.f32 %v803_v62  ;;  %6521 = vmatprep.subr.mxu1 %v408_v0  ;;  %v400_v3 = vsel %vm9373_vm9, %v7137_v63, 0.0 }
 0x534   :  { %v7139_v4 = vpop.eup %7138  ;;  %401 = vadd.xlane.f32.xlu0 %v400_v3  ;;  %6522 = vmatpush3.msra.mxu1 %v408_v0 }
 0x535   :  { %6533 = vmatprep.subr.mxu1 %v614_v5  ;;  %v397_v6 = vsel %vm9373_vm9, %v7139_v4, 0.0 }
 0x536   :  { %398 = vadd.xlane.f32.xlu1 %v397_v6  ;;  %v818_v25 = vpop.permute.xlu0 %817 }
 0x538   :  { %v7141_v7 = vpop.eup %7140 }
 0x539   :  { %v601_v8 = vsel %vm9373_vm9, %v7141_v7, 0.0 }
 0x53a   :  { %602 = vadd.xlane.f32.xlu1 %v601_v8 }
 0x53c   :  { %v7143_v10 = vpop.eup %7142 }
 0x53d   :  { %v604_v11 = vsel %vm9373_vm9, %v7143_v10, 0.0 }
 0x53e   :  { %605 = vadd.xlane.f32.xlu0 %v604_v11 }
 0x540   :  { %v7145_v12 = vpop.eup %7144 }
 0x541   :  { %v808_v14 = vsel %vm9373_vm9, %v7145_v12, 0.0 }
 0x542   :  { %809 = vadd.xlane.f32.xlu0 %v808_v14 }
 0x54b   :  { %906 = vrot.lane.b32.xlu1 %v7611_v58, %s9405_s19 }
 0x558   :  { %908 = vrot.lane.b32.xlu0 %v7619_v60, %s9405_s19 }
 0x55c   :  { %902 = vrot.lane.b32.xlu0 %v7611_v58, %s9370_s20 }
 0x55d   :  { %v795_v18 = vpop.xlane.xlu1 %794 }
 0x55e   :  { %v799_v20 = vsub.f32 %v791_v39, %v795_v18 }
 0x560   :  { %v801_v21 = vmul.f32 1.442695, %v799_v20 }
 0x561   :  { %v816_v26 = vpop.permute.xlu1 %815 }
 0x562   :  { %7146 = vpow2.f32 %v801_v21 }
 0x56f   :  { %v7147_v23 = vpop.eup %7146 }
 0x570   :  { %v805_v24 = vsel %vm9373_vm9, %v7147_v23, 0.0 }
 0x571   :  { %806 = vadd.xlane.f32.xlu1 %v805_v24 }
 0x582   :  { %904 = vrot.lane.b32.xlu1 %v7619_v60, %s9370_s20 }
 0x5bd   :  { %v402_v27 = vpop.xlane.xlu0 %401 }
 0x5be   :  { %7148 = vrcp.f32 %v402_v27 }
 0x5bf   :  { %v399_v28 = vpop.xlane.xlu1 %398 }
 0x5c0   :  { %7150 = vrcp.f32 %v399_v28 }
 0x5c3   :  { %v603_v29 = vpop.xlane.xlu1 %602 }
 0x5c4   :  { %7152 = vrcp.f32 %v603_v29 }
 0x5c7   :  { %v606_v9 = vpop.xlane.xlu0 %605  ;;  %v907_v40 = vpop.permute.xlu1 %906 }
 0x5c8   :  { %7154 = vrcp.f32 %v606_v9 }
 0x5cb   :  { %v7149_v30 = vpop.eup %7148  ;;  %v810_v37 = vpop.xlane.xlu0 %809 }
 0x5cc   :  { %v406_v33 = vmul.f32 %v7149_v30, %v7137_v63  ;;  %7156 = vrcp.f32 %v810_v37  ;;  %v7065_v30 = vld [vmem:[%s9352_s5] sm:$0xff]  }
 0x5cd   :  { %v7151_v31 = vpop.eup %7150 }
 0x5ce   :  { %v405_v32 = vmul.f32 %v7151_v31, %v7139_v4 }
 0x5cf   :  { %v909_v39 = vpop.permute.xlu0 %908 }
 0x5d0   :  { %6523 = vmatprep.mubr.msk.f32.mxu1 %vm9373_vm9, %v405_v32 }
 0x5d1   :  { %v7153_v34 = vpop.eup %7152  ;;  %6524 = vmatmul.mubr.msk.f32.vlgmr.msra.gmra.mxu1 %vm9373_vm9, %v406_v33 }
 0x5d2   :  { %6534 = vmatpush3.msra.mxu1 %v614_v5  ;;  %v609_v35 = vmul.f32 %v7153_v34, %v7141_v7 }
 0x5d3   :  { %6535 = vmatprep.subr.mxu1 %v612_v16  ;;  %v903_v50 = vpop.permute.xlu0 %902 }
 0x5d4   :  { %6536 = vmatpush3.msra.mxu1 %v612_v16  ;;  %6537 = vmatprep.mubr.msk.f32.mxu1 %vm9373_vm9, %v609_v35 }
 0x5d5   :  { %v7155_v36 = vpop.eup %7154  ;;  %6547 = vmatprep.subr.mxu1 %v818_v25 }
 0x5d6   :  { %v610_v38 = vmul.f32 %v7155_v36, %v7143_v10 }
 0x5d8   :  { %6538 = vmatmul.mubr.msk.f32.vlgmr.msra.gmra.mxu1 %vm9373_vm9, %v610_v38 }
 0x5d9   :  { %6548 = vmatpush3.msra.mxu1 %v818_v25  ;;  %v7157_v42 = vpop.eup %7156 }
 0x5da   :  { %6549 = vmatprep.subr.mxu1 %v816_v26  ;;  %v814_v48 = vmul.f32 %v7157_v42, %v7145_v12 }
 0x5db   :  { %6550 = vmatpush3.msra.mxu1 %v816_v26 }
 0x5dc   :  { %6554 = vmatprep.subr.msk.mxu1 %vm9374_vm5, %v909_v39 }
 0x5fa   :  { %v807_v41 = vpop.xlane.xlu1 %806 }
 0x5fb   :  { %7158 = vrcp.f32 %v807_v41 }
 0x5fe   :  { %v905_v51 = vpop.permute.xlu1 %904 }
 0x608   :  { %v7159_v46 = vpop.eup %7158 }
 0x609   :  { %v813_v47 = vmul.f32 %v7159_v46, %v7147_v23 }
 0x60b   :  { %6551 = vmatprep.mubr.msk.f32.mxu1 %vm9373_vm9, %v813_v47 }
 0x60c   :  { %6552 = vmatmul.mubr.msk.f32.vlgmr.msra.gmra.mxu1 %vm9373_vm9, %v814_v48 }
 0x60d   :  { %6555 = vmatpush3.xpose.msk.msra.mxu1 %vm9374_vm5, %v909_v39  ;;  %6558 = vmatprep.mubr.msk.f32.mxu1 %vm9374_vm5, %v903_v50 }
 0x60e   :  { %6556 = vmatprep.subr.msk.mxu1 %vm9374_vm5, %v907_v40 }
 0x611   :  { %6557 = vmatpush3.xpose.msk.msra.mxu1 %vm9374_vm5, %v907_v40 }
 0x614   :  { %6559 = vmatmul.mubr.msk.f32.vlgmr.msra.gmra.mxu1 %vm9374_vm5, %v905_v51 }
 0x691   :  { %v7730_v52 = vpop.f32.mrf.mxu1 }
 0x693   :  { %v7732_v53 = vpop.f32.mrf.mxu1 }
 0x698   :  { %v6539_v54 = vpop.f32.mrf.mxu1 }
 0x69a   :  { %v689_v55 = vpop.f32.mrf.mxu1 }
 0x69b   :  { %v6900_v6 = vpack.i.bf16 %v6539_v54, %v689_v55 }
 0x6cc   :  { %v6553_v56 = vpop.f32.mrf.mxu1 }
 0x6ce   :  { %v893_v57 = vpop.f32.mrf.mxu1 }
 0x6cf   :  { %v6905_v7 = vpack.i.bf16 %v6553_v56, %v893_v57 }
 0x6d4   :  { %v6560_v59 = vpop.f32.mrf.mxu1 }
 0x6d5   :  { %v994_v61 = vmul.f32 0.35355338, %v6560_v59 }
 0x6d6   :  { %v984_v62 = vpop.f32.mrf.mxu1 }
 0x6d7   :  { %v993_v63 = vmul.f32 0.35355338, %v984_v62  ;;  %v996_v0 = vsel %vm7664_vm8, %v994_v61, -1e+30 }
 0x6d8   :  { %v1000_v3 = vsel %vm9373_vm9, %v996_v0, -inf }
 0x6d9   :  { %1001 = vmax.xlane.f32.xlu1 %v1000_v3  ;;  %v995_v4 = vsel %vm7670_vm10, %v993_v63, -1e+30 }
 0x6da   :  { %v997_v5 = vsel %vm9373_vm9, %v995_v4, -inf }
 0x6db   :  { %998 = vmax.xlane.f32.xlu0 %v997_v5 }
 0x6ea   :  { %1021 = vrot.lane.b32.xlu1 %v7619_v60, %s9368_s21 }
 0x6ee   :  { %6901 = vrot.lane.b32.xlu1 %v6900_v6, %s9367_s2  ;;  %s9532_s2 = smov 24  }
 0x6f2   :  { %6906 = vrot.lane.b32.xlu1 %v6905_v7, %s9365_s22  ;;  %s9366_s22 = smov 24  }
 0x762   :  { %v1002_v8 = vpop.xlane.xlu1 %1001 }
 0x763   :  { %v1004_v10 = vsub.f32 %v996_v0, %v1002_v8 }
 0x764   :  { %v999_v11 = vpop.xlane.xlu0 %998 }
 0x765   :  { %v1007_v12 = vmul.f32 1.442695, %v1004_v10  ;;  %v1003_v14 = vsub.f32 %v995_v4, %v999_v11 }
 0x766   :  { %v1022_v16 = vpop.permute.xlu1 %1021 }
 0x767   :  { %7160 = vpow2.f32 %v1007_v12  ;;  %v1005_v18 = vmul.f32 1.442695, %v1003_v14  ;;  %6561 = vmatprep.subr.mxu1 %v1022_v16 }
 0x768   :  { %6562 = vmatpush3.msra.mxu1 %v1022_v16 }
 0x769   :  { %7162 = vpow2.f32 %v1005_v18  ;;  %v1436_v18 = vmul.f32 %v7571_v17, %v7571_v17 }
 0x76a   :  { %v6902_v34 = vpop.permute.xlu1 %6901 }
 0x76b   :  { %v6904_v36 = vunpack.i.h.bf16 %v6902_v34  ;;  %v6903_v37 = vunpack.i.l.bf16 %v6902_v34 }
 0x76d   :  { %v1131_v41 = vsel %vm9374_vm5, %v7730_v52, %v6904_v36  ;;  %v1130_v42 = vsel %vm9374_vm5, %v7732_v53, %v6903_v37  ;;  %v7774_v52 = vsub.s32 2, %v7593_v43  ;;  %v7807_v37 = vsub.s32 3, %v7593_v43 }
 0x76e   :  { %v6907_v35 = vpop.permute.xlu1 %6906  ;;  %vm9399_vm5 = vcmask 31744  }
 0x76f   :  { %v6909_v38 = vunpack.i.h.bf16 %v6907_v35  ;;  %v6908_v39 = vunpack.i.l.bf16 %v6907_v35  ;;  %v1141_v53 = vrot.slane %v7601_v45, %v7774_v52 }
 0x771   :  { %v1132_v48 = vsel %vm9373_vm9, %v1130_v42, %v6908_v39  ;;  %v1133_v50 = vsel %vm9373_vm9, %v1131_v41, %v6909_v38  ;;  %v7812_v41 = vsub.s32 4, %v7593_v43 }
 0x774   :  { %v7161_v60 = vpop.eup %7160 }
 0x775   :  { %v1012_v20 = vsel %vm9373_vm9, %v7161_v60, 0.0 }
 0x776   :  { %v7163_v21 = vpop.eup %7162  ;;  %1013 = vadd.xlane.f32.xlu0 %v1012_v20  ;;  %v1438_v20 = vsel %vm9409_vm4, %v1436_v18, 0.0  ;;  %v7076_v18 = vld [vmem:[%s9354_s7 + $0x8] sm:$0xff]  }
 0x777   :  { %v1009_v23 = vsel %vm9373_vm9, %v7163_v21, 0.0 }
 0x77a   :  { %1010 = vadd.xlane.f32.xlu0 %v1009_v23  ;;  %v1437_v23 = vmul.f32 %v7578_v22, %v7578_v22 }
 0x790   :  { %1019 = vrot.lane.b32.xlu0 %v7611_v58, %s9368_s21  ;;  %v7064_v58 = vld [vmem:[%s9352_s5 + $0x8] sm:$0xff]  }
 0x791   :  { %6569 = vmatpush3.bf16.msra.mxu0 %v7064_v58 }
 0x792   :  { %6570 = vmatprep.subr.bf16.mxu0 %v9421_v2 }
 0x795   :  { %6571 = vmatpush3.bf16.msra.mxu0 %v7065_v30 }
 0x796   :  { %6584 = vmatprep.subr.bf16.mxu0 %v9421_v2 }
 0x7ff   :  { %v1014_v24 = vpop.xlane.xlu0 %1013 }
 0x800   :  { %7164 = vrcp.f32 %v1014_v24  ;;  %v1441_v24 = vsel %vm9409_vm4, %v1437_v23, 0.0  ;;  %v7080_v23 = vld [vmem:[%s9357_s10 + $0x8] sm:$0xff]  }
 0x803   :  { %v1011_v25 = vpop.xlane.xlu0 %1010 }
 0x804   :  { %7166 = vrcp.f32 %v1011_v25  ;;  %v7066_v25 = vld [vmem:[%s9353_s6 + $0x8] sm:$0xff]  }
 0x807   :  { %v1020_v26 = vpop.permute.xlu0 %1019 }
 0x808   :  { %6563 = vmatprep.subr.mxu1 %v1020_v26 }
 0x809   :  { %6564 = vmatpush3.msra.mxu1 %v1020_v26  ;;  %v7067_v26 = vld [vmem:[%s9353_s6] sm:$0xff]  }
 0x80a   :  { %6576 = vmatprep.subr.bf16.mxu1 %v9421_v2 }
 0x80d   :  { %v7165_v27 = vpop.eup %7164 }
 0x80e   :  { %v1018_v9 = vmul.f32 %v7165_v27, %v7161_v60 }
 0x811   :  { %v7167_v28 = vpop.eup %7166 }
 0x812   :  { %v1017_v29 = vmul.f32 %v7167_v28, %v7163_v21 }
 0x814   :  { %6565 = vmatprep.mubr.msk.f32.mxu1 %vm9373_vm9, %v1017_v29 }
 0x815   :  { %6566 = vmatmul.mubr.msk.f32.vlgmr.msra.gmra.mxu1 %vm9373_vm9, %v1018_v9  ;;  %vm1670_vm9 = vcmask 1041408  }
 0x816   :  { %6580 = vmatprep.mubr.msk.bf16.mxu1 %vm7415_vm0, %v9421_v2  ;;  %6577 = vmatpush3.bf16.msra.mxu1 %v7066_v25  ;;  %v7888_v25 = vsub.s32 6, %v7593_v43 }
 0x817   :  { %6578 = vmatprep.subr.bf16.mxu1 %v9421_v2 }
 0x81a   :  { %6579 = vmatpush3.bf16.msra.mxu1 %v7067_v26  ;;  %v1242_v26 = vrot.slane %v7601_v45, %v7888_v25 }
 0x81b   :  { %6604 = vmatprep.subr.bf16.mxu1 %v9421_v2 }
 0x8d5   :  { %v6567_v31 = vpop.f32.mrf.mxu1 }
 0x8d7   :  { %v1097_v32 = vpop.f32.mrf.mxu1 }
 0x8d8   :  { %v6910_v33 = vpack.i.bf16 %v6567_v31, %v1097_v32 }
 0x8da   :  { %6911 = vrot.lane.b32.xlu0 %v6910_v33, %s9366_s22  ;;  %s7430_s22 = smov 116  }
 0x94c   :  { %v6912_v40 = vpop.permute.xlu0 %6911 }
 0x94d   :  { %v6914_v46 = vunpack.i.h.bf16 %v6912_v40  ;;  %v6913_v47 = vunpack.i.l.bf16 %v6912_v40  ;;  %v1229_v40 = vrot.slane %v7601_v45, %v7807_v37 }
 0x94f   :  { %v1136_v51 = vsel %vm9372_vm11, %v1133_v50, %v6914_v46  ;;  %v1135_v54 = vsel %vm9372_vm11, %v1132_v48, %v6913_v47  ;;  %v1235_v48 = vrot.slane %v7601_v45, %v7812_v41  ;;  %v7905_v45 = vsub.s32 5, %v7593_v43 }
 0x950   :  { %v1137_v55 = vpack.c.bf16 %v1136_v51, %v1135_v54  ;;  %vm9400_vm11 = vcmp.ge.s32.totalorder %v7660_v13, 1 }
 0x952   :  { %6573 = vmatmul.mubr.msk.bf16.vlgmr.msra.gmra.mxu0 %vm9409_vm4, %v1137_v55 }
 0x953   :  { %6600 = vmatprep.mubr.msk.bf16.mxu0 %vm7415_vm0, %v9421_v2 }
 0xa12   :  { %v1191_v56 = vpop.f32.mrf.mxu0 }
 0xa13   :  { %v1192_v57 = vadd.f32 %v1191_v56, %v1141_v53  ;;  %v7068_v56 = vld [vmem:[%s9356_s9 + $0x8] sm:$0xff]  }
 0xa14   :  { %v6574_v59 = vpop.f32.mrf.mxu0 }
 0xa15   :  { %v7779_v61 = vadd.f32 %v1192_v57, %v7571_v17  ;;  %v7822_v57 = vld [vmem:[%s9355_s8] sm:$0xff] }
 0xa16   :  { %v1194_v62 = vpop.f32.mrf.mxu0 }
 0xa17   :  { %v1195_v63 = vadd.f32 %v1194_v62, %v1141_v53  ;;  %v1200_v0 = vsel %vm9409_vm4, %v7779_v61, 0.0 }
 0xa18   :  { %1201 = vadd.xlane.f32.xlu1 %v1200_v0  ;;  %v6575_v3 = vpop.f32.mrf.mxu0  ;;  %v1455_v0 = vrot.slane %v7822_v57, %v7596_v44 }
 0xa19   :  { %v7784_v4 = vadd.f32 %v1195_v63, %v7578_v22  ;;  %v7069_v3 = vld [vmem:[%s9356_s9] sm:$0xff]  }
 0xa1b   :  { %v1203_v5 = vsel %vm9409_vm4, %v7784_v4, 0.0 }
 0xa1c   :  { %1204 = vadd.xlane.f32.xlu0 %v1203_v5 }
 0xaa1   :  { %v1202_v6 = vpop.xlane.xlu1 %1201 }
 0xaa2   :  { %v1206_v7 = vmul.f32 0.03125, %v1202_v6 }
 0xaa4   :  { %v1208_v8 = vsub.f32 %v7779_v61, %v1206_v7 }
 0xaa5   :  { %v1205_v10 = vpop.xlane.xlu0 %1204 }
 0xaa6   :  { %v1207_v11 = vmul.f32 0.03125, %v1205_v10  ;;  %v1210_v12 = vmul.f32 %v1208_v8, %v1208_v8  ;;  %v7071_v10 = vld [vmem:[%s9354_s7 + $0x30] sm:$0xff]  }
 0xaa8   :  { %v1209_v14 = vsub.f32 %v7784_v4, %v1207_v11  ;;  %v1212_v16 = vsel %vm9409_vm4, %v1210_v12, 0.0  ;;  %v7072_v11 = vld [vmem:[%s9354_s7 + $0x28] sm:$0xff]   ;;  %v7073_v12 = vld [vmem:[%s9354_s7 + $0x20] sm:$0xff]  }
 0xaa9   :  { %1213 = vadd.xlane.f32.xlu0 %v1212_v16  ;;  %v7075_v16 = vld [vmem:[%s9354_s7 + $0x10] sm:$0xff]  }
 0xaaa   :  { %v1211_v60 = vmul.f32 %v1209_v14, %v1209_v14 }
 0xaac   :  { %v1215_v21 = vsel %vm9409_vm4, %v1211_v60, 0.0  ;;  %v7077_v60 = vld [vmem:[%s9354_s7] sm:$0xff]  }
 0xaad   :  { %1439 = vadd.xlane.f32.xlu0 %v1438_v20  ;;  %1216 = vadd.xlane.f32.xlu1 %v1215_v21  ;;  %v7078_v20 = vld [vmem:[%s9357_s10 + $0x18] sm:$0xff]   ;;  %v7079_v21 = vld [vmem:[%s9357_s10 + $0x10] sm:$0xff]  }
 0xab1   :  { %1442 = vadd.xlane.f32.xlu1 %v1441_v24  ;;  %v7081_v24 = vld [vmem:[%s9357_s10] sm:$0xff]  }
 0xb32   :  { %v1214_v27 = vpop.xlane.xlu0 %1213 }
 0xb33   :  { %v1218_v28 = vmul.f32 0.03125, %v1214_v27 }
 0xb35   :  { %v1220_v29 = vadd.f32 1e-05, %v1218_v28 }
 0xb36   :  { %v1217_v9 = vpop.xlane.xlu1 %1216  ;;  %v1440_v58 = vpop.xlane.xlu0 %1439 }
 0xb37   :  { %7168 = vrsqrt.f32 %v1220_v29  ;;  %v1219_v30 = vmul.f32 0.03125, %v1217_v9  ;;  %v1444_v32 = vmul.f32 0.03125, %v1440_v58 }
 0xb39   :  { %v1221_v31 = vadd.f32 1e-05, %v1219_v30  ;;  %v1446_v35 = vadd.f32 1e-05, %v1444_v32  ;;  %v7896_v30 = vsub.s32 7, %v7593_v43 }
 0xb3a   :  { %v1443_v33 = vpop.xlane.xlu1 %1442 }
 0xb3b   :  { %7170 = vrsqrt.f32 %v1221_v31  ;;  %v1445_v34 = vmul.f32 0.03125, %v1443_v33  ;;  %v7902_v33 = vand.u32 7, %v7593_v43 }
 0xb3d   :  { %v1447_v36 = vadd.f32 1e-05, %v1445_v34  ;;  %vm9412_vm13 = vcmp.ge.s32.totalorder %v7902_v33, 3  ;;  %vm9404_vm1 = vcmp.ge.s32.totalorder %v7902_v33, 2  ;;  %vm9401_vm7 = vcmp.ge.s32.totalorder %v7902_v33, 1 }
 0xb3f   :  { %7172 = vrsqrt.f32 %v1447_v36 }
 0xb40   :  { %7174 = vrsqrt.f32 %v1446_v35 }
 0xb44   :  { %v7169_v38 = vpop.eup %7168 }
 0xb45   :  { %v1224_v39 = vmul.f32 %v7169_v38, %v1208_v8  ;;  %v7070_v8 = vld [vmem:[%s9354_s7 + $0x38] sm:$0xff]  }
 0xb46   :  { %6585 = vmatpush3.bf16.msra.mxu0 %v7070_v8 }
 0xb47   :  { %v1230_v47 = vmul.f32 %v1229_v40, %v1224_v39  ;;  %6586 = vmatprep.subr.bf16.mxu0 %v9421_v2  ;;  %v1518_v39 = vrot.slane %v7822_v57, %v7896_v30 }
 0xb48   :  { %v7171_v42 = vpop.eup %7170 }
 0xb49   :  { %v1225_v46 = vmul.f32 %v7171_v42, %v1209_v14  ;;  %v1236_v54 = vadd.f32 %v1235_v48, %v1230_v47  ;;  %v7074_v14 = vld [vmem:[%s9354_s7 + $0x18] sm:$0xff]   ;;  %v1533_v47 = vrot.slane %v7822_v57, %v7812_v41 }
 0xb4a   :  { %6587 = vmatpush3.bf16.msra.mxu0 %v7071_v10 }
 0xb4b   :  { %v1231_v50 = vmul.f32 %v1229_v40, %v1225_v46  ;;  %6588 = vmatprep.subr.bf16.mxu0 %v9421_v2 }
 0xb4c   :  { %v7173_v51 = vpop.eup %7172 }
 0xb4d   :  { %v1237_v55 = vadd.f32 %v1235_v48, %v1231_v50  ;;  %v7175_v53 = vpop.eup %7174  ;;  %v1451_v62 = vmul.f32 %v7173_v51, %v7578_v22  ;;  %v1550_v51 = vrot.slane %v7822_v57, %v7905_v45 }
 0xb4e   :  { %v1450_v63 = vmul.f32 %v7175_v53, %v7571_v17  ;;  %6589 = vmatpush3.bf16.msra.mxu0 %v7072_v11  ;;  %v1567_v53 = vrot.slane %v7822_v57, %v7888_v25 }
 0xb4f   :  { %v1238_v59 = vpack.c.bf16 %v1237_v55, %v1236_v54  ;;  %v1457_v5 = vmul.f32 %v1455_v0, %v1451_v62  ;;  %6590 = vmatprep.subr.bf16.mxu0 %v9421_v2 }
 0xb50   :  { %v1456_v6 = vmul.f32 %v1455_v0, %v1450_v63 }
 0xb51   :  { %6581 = vmatmul.mubr.msk.bf16.vlgmr.msra.gmra.mxu1 %vm9409_vm4, %v1238_v59 }
 0xb52   :  { %6605 = vmatpush3.bf16.msra.mxu1 %v7068_v56  ;;  %6608 = vmatprep.mubr.msk.bf16.mxu1 %vm7415_vm0, %v9421_v2  ;;  %v1458_v7 = vpack.c.bf16 %v1457_v5, %v1456_v6 }
 0xb53   :  { %6606 = vmatprep.subr.bf16.mxu1 %v9421_v2  ;;  %6591 = vmatpush3.bf16.msra.mxu0 %v7073_v12 }
 0xb54   :  { %6592 = vmatprep.subr.bf16.mxu0 %v9421_v2 }
 0xb56   :  { %6607 = vmatpush3.bf16.msra.mxu1 %v7069_v3 }
 0xb57   :  { %6612 = vmatprep.subr.bf16.mxu1 %v9421_v2  ;;  %6593 = vmatpush3.bf16.msra.mxu0 %v7074_v14 }
 0xb58   :  { %6594 = vmatprep.subr.bf16.mxu0 %v9421_v2 }
 0xb59   :  { %6609 = vmatmul.mubr.msk.bf16.vlgmr.msra.gmra.mxu1 %vm9409_vm4, %v1458_v7 }
 0xb5a   :  { %6620 = vmatprep.mubr.msk.bf16.mxu1 %vm7415_vm0, %v9421_v2  ;;  %6613 = vmatpush3.bf16.msra.mxu1 %v7078_v20 }
 0xb5b   :  { %6595 = vmatpush3.bf16.msra.mxu0 %v7075_v16  ;;  %6614 = vmatprep.subr.bf16.mxu1 %v9421_v2 }
 0xb5c   :  { %6596 = vmatprep.subr.bf16.mxu0 %v9421_v2 }
 0xb5e   :  { %6615 = vmatpush3.bf16.msra.mxu1 %v7079_v21 }
 0xb5f   :  { %6597 = vmatpush3.bf16.msra.mxu0 %v7076_v18  ;;  %6616 = vmatprep.subr.bf16.mxu1 %v9421_v2 }
 0xb60   :  { %6598 = vmatprep.subr.bf16.mxu0 %v9421_v2 }
 0xb62   :  { %6617 = vmatpush3.bf16.msra.mxu1 %v7080_v23 }
 0xb63   :  { %6599 = vmatpush3.bf16.msra.mxu0 %v7077_v60  ;;  %6618 = vmatprep.subr.bf16.mxu1 %v9421_v2 }
 0xb64   :  { %6630 = vmatprep.subr.bf16.mxu0 %v9421_v2 }
 0xb66   :  { %6619 = vmatpush3.bf16.msra.mxu1 %v7081_v24 }
 0xb67   :  { %6624 = vmatprep.subr.bf16.mxu1 %v9421_v2 }
 0xc11   :  { %v1292_v27 = vpop.f32.mrf.mxu1 }
 0xc12   :  { %v7892_v28 = vadd.f32 %v1292_v27, %v1242_v26 }
 0xc13   :  { %v6582_v29 = vpop.f32.mrf.mxu1 }
 0xc14   :  { %v1301_v9 = vmul.f32 0.044715, %v7892_v28 }
 0xc15   :  { %v1295_v58 = vpop.f32.mrf.mxu1 }
 0xc16   :  { %v1303_v31 = vmul.f32 %v1301_v9, %v7892_v28  ;;  %v7899_v32 = vadd.f32 %v1295_v58, %v1242_v26 }
 0xc17   :  { %v6583_v34 = vpop.f32.mrf.mxu1 }
 0xc18   :  { %v1305_v35 = vmul.f32 %v1303_v31, %v7892_v28  ;;  %v1302_v36 = vmul.f32 0.044715, %v7899_v32 }
 0xc19   :  { %v7909_v38 = vpop.f32.mrf.mxu1 }
 0xc1a   :  { %v1307_v40 = vadd.f32 %v1305_v35, %v7892_v28  ;;  %v1304_v42 = vmul.f32 %v1302_v36, %v7899_v32  ;;  %v1519_v54 = vmul.f32 %v1518_v39, %v7909_v38  ;;  %v1521_v59 = vrot.slane %v7909_v38, 5 }
 0xc1b   :  { %v6610_v46 = vpop.f32.mrf.mxu1  ;;  %v1538_v63 = vrot.slane %v7909_v38, 6  ;;  %v1555_v0 = vrot.slane %v7909_v38, 7  ;;  %v1575_v35 = vrot.slane %v7822_v57, %v7606_v49 }
 0xc1c   :  { %v1309_v48 = vmul.f32 0.7978846, %v1307_v40  ;;  %v1306_v50 = vmul.f32 %v1304_v42, %v7899_v32 }
 0xc1d   :  { %v7928_v55 = vpop.f32.mrf.mxu1 }
 0xc1e   :  { %7176 = vtanh.f32 %v1309_v48  ;;  %v1308_v56 = vadd.f32 %v1306_v50, %v7899_v32  ;;  %v1522_v62 = vrot.slane %v7928_v55, 5  ;;  %v1539_v3 = vrot.slane %v7928_v55, 6 }
 0xc1f   :  { %v1556_v5 = vrot.slane %v7928_v55, 7  ;;  %v6611_v6 = vpop.f32.mrf.mxu1  ;;  %v1520_v8 = vmul.f32 %v1518_v39, %v7928_v55 }
 0xc20   :  { %v1310_v7 = vmul.f32 0.7978846, %v1308_v56  ;;  %v1524_v10 = vsel %vm1523_vm12, %v1521_v59, %v1522_v62  ;;  %v1525_v11 = vsel %vm1523_vm12, %v1522_v62, %v1521_v59  ;;  %v1541_v16 = vsel %vm9411_vm14, %v1538_v63, %v1539_v3 }
 0xc21   :  { %v1528_v12 = vsel %vm9412_vm13, %v1525_v11, 0.0  ;;  %v1529_v14 = vsel %vm1527_vm15, %v1524_v10, 0.0  ;;  %v1542_v18 = vsel %vm9411_vm14, %v1539_v3, %v1538_v63  ;;  %v1546_v23 = vsel %vm9403_vm2, %v1541_v16, 0.0 }
 0xc22   :  { %7178 = vtanh.f32 %v1310_v7  ;;  %v1534_v60 = vmul.f32 %v1533_v47, %v1528_v12  ;;  %v1535_v20 = vmul.f32 %v1533_v47, %v1529_v14  ;;  %v1545_v21 = vsel %vm9404_vm1, %v1542_v18, 0.0 }
 0xc23   :  { %v1551_v24 = vmul.f32 %v1550_v51, %v1545_v21  ;;  %v1558_v26 = vsel %vm9402_vm6, %v1555_v0, %v1556_v5  ;;  %v1559_v27 = vsel %vm9402_vm6, %v1556_v5, %v1555_v0  ;;  %v1552_v58 = vmul.f32 %v1550_v51, %v1546_v23 }
 0xc24   :  { %v1536_v29 = vadd.f32 %v1534_v60, %v1519_v54  ;;  %v1537_v9 = vadd.f32 %v1535_v20, %v1520_v8  ;;  %v1562_v31 = vsel %vm9401_vm7, %v1559_v27, 0.0  ;;  %v1563_v34 = vsel %vm9400_vm11, %v1558_v26, 0.0  ;;  %v1426_v20 = vld [vmem:[%s9358_s11] sm:$0x3] }
 0xc25   :  { %v1568_v40 = vmul.f32 %v1567_v53, %v1562_v31  ;;  %v1569_v42 = vmul.f32 %v1567_v53, %v1563_v34  ;;  %v1299_v3 = vmul.f32 0.5, %v7892_v28  ;;  %v1300_v5 = vmul.f32 0.5, %v7899_v32 }
 0xc26   :  { %v1553_v36 = vadd.f32 %v1551_v24, %v1536_v29  ;;  %v1554_v39 = vadd.f32 %v1552_v58, %v1537_v9  ;;  %v1672_v21 = vsel %vm1670_vm9, %v1426_v20, 0  ;;  %v9387_v20 = vmov 11  }
 0xc27   :  { %vm9434_vm11 = vcmask 1042432   ;;  %vm9433_vm7 = vcmask 1043456   ;;  %vm9432_vm6 = vcmask 1044480   ;;  %vm9431_vm2 = vcmask 1045504  }
 0xc28   :  { %v1570_v46 = vadd.f32 %v1568_v40, %v1553_v36  ;;  %v1571_v47 = vadd.f32 %v1569_v42, %v1554_v39  ;;  %v9419_v42 = vmov 8   ;;  %vm9410_vm1 = vcmask 1046528  }
 0xc2a   :  { %v1576_v48 = vadd.f32 %v1575_v35, %v1570_v46  ;;  %v1577_v50 = vadd.f32 %v1575_v35, %v1571_v47  ;;  %v1665_v46 = vrot.slane %v7822_v57, %v7774_v52  ;;  %v9415_v57 = vmov 1  }
 0xc2b   :  { %v7177_v54 = vpop.eup %7176 }
 0xc2c   :  { %v1578_v56 = vsub.f32 0.0, %v1576_v48  ;;  %v1579_v51 = vsub.f32 0.0, %v1577_v50  ;;  %v1313_v59 = vadd.f32 1.0, %v7177_v54 }
 0xc2e   :  { %v1580_v62 = vmul.f32 1.442695, %v1578_v56  ;;  %v1582_v63 = vmul.f32 1.442695, %v1579_v51  ;;  %v1315_v7 = vmul.f32 %v1313_v59, %v1299_v3 }
 0xc2f   :  { %v7179_v0 = vpop.eup %7178 }
 0xc30   :  { %v1314_v6 = vadd.f32 1.0, %v7179_v0  ;;  %7180 = vpow2.f32 %v1580_v62 }
 0xc31   :  { %7182 = vpow2.f32 %v1582_v63 }
 0xc32   :  { %v1316_v53 = vmul.f32 %v1314_v6, %v1300_v5  ;;  %v9413_v6 = vmov 10  }
 0xc34   :  { %v1317_v8 = vpack.c.bf16 %v1316_v53, %v1315_v7  ;;  %v9397_v7 = vmov 9   ;;  %v9395_v53 = vmov 4  }
 0xc36   :  { %6601 = vmatmul.mubr.bf16.vlgmr.msra.gmra.mxu0 %v1317_v8 }
 0xc37   :  { %6638 = vmatprep.mubr.msk.bf16.mxu0 %vm7415_vm0, %v9421_v2 }
 0xc3d   :  { %v7181_v10 = vpop.eup %7180 }
 0xc3e   :  { %v7183_v11 = vpop.eup %7182  ;;  %v1584_v12 = vadd.f32 1.0, %v7181_v10 }
 0xc3f   :  { %v1585_v14 = vadd.f32 1.0, %v7183_v11  ;;  %v9393_v11 = vmov 2  }
 0xc40   :  { %7184 = vrcp.f32 %v1584_v12  ;;  %v9391_v12 = vmov 13  }
 0xc41   :  { %7186 = vrcp.f32 %v1585_v14 }
 0xc4d   :  { %v7185_v16 = vpop.eup %7184 }
 0xc4e   :  { %v7187_v28 = vpop.eup %7186  ;;  %v7972_v18 = vmul.f32 %v7185_v16, %v1576_v48 }
 0xc4f   :  { %v7974_v32 = vmul.f32 %v7187_v28, %v1577_v50  ;;  %v9389_v28 = vmov 3  }
 0xc51   :  { %v1592_v60 = vpack.c.bf16 %v7974_v32, %v7972_v18 }
 0xc53   :  { %6621 = vmatmul.mubr.msk.bf16.vlgmr.msra.gmra.mxu1 %vm106_vm3, %v1592_v60 }
 0xc54   :  { %6626 = vmatprep.mubr.msk.bf16.mxu1 %vm7415_vm0, %v9421_v2  ;;  %6625 = vmatpush3.bf16.msra.mxu1 %v1672_v21  ;;  %v9385_v21 = vmov 12  }
 0xc55   :  { %6642 = vmatprep.subr.bf16.mxu1 %v9421_v2 }
 0xcf6   :  { %v7986_v23 = vpop.f32.mrf.mxu0 }
 0xcf8   :  { %v6602_v24 = vpop.f32.mrf.mxu0 }
 0xcfa   :  { %v7988_v26 = vpop.f32.mrf.mxu0 }
 0xcfc   :  { %v6603_v27 = vpop.f32.mrf.mxu0 }
 0xcfd   :  { %v9383_v27 = vmov 5  }
 0xd13   :  { %v1654_v29 = vpop.f32.mrf.mxu1 }
 0xd14   :  { %1773 = vrot.lane.b32.xlu1 %v1654_v29, %s7430_s22  ;;  %1735 = vrot.lane.b32.xlu0 %v1654_v29, %s7431_s25 }
 0xd15   :  { %v6622_v9 = vpop.f32.mrf.mxu1 }
 0xd16   :  { %v9379_v9 = vmov 15  }
 0xd17   :  { %v1657_v58 = vpop.f32.mrf.mxu1 }
 0xd18   :  { %v1661_v31 = vpack.c.bf16 %v1657_v58, %v1654_v29  ;;  %1775 = vrot.lane.b32.xlu0 %v1657_v58, %s7430_s22  ;;  %1737 = vrot.lane.b32.xlu1 %v1657_v58, %s7431_s25  ;;  %v9381_v29 = vmov 6   ;;  %v9377_v58 = vmov 14  }
 0xd19   :  { %v6623_v34 = vpop.f32.mrf.mxu1 }
 0xd1a   :  { %6627 = vmatmul.mubr.msk.bf16.vlgmr.msra.gmra.mxu1 %vm9399_vm5, %v1661_v31  ;;  %v2153_v31 = vsub.f32 0.0, %v7909_v38  ;;  %vm9435_vm5 = vcmask 1040384  }
 0xd1b   :  { %6646 = vmatprep.mubr.msk.bf16.mxu1 %vm7415_vm0, %v9421_v2 }
 0xd1c   :  { %v2155_v34 = vmul.f32 1.442695, %v2153_v31 }
 0xd86   :  { %v1774_v35 = vpop.permute.xlu1 %1773  ;;  %v1736_v36 = vpop.permute.xlu0 %1735 }
 0xd87   :  { %1779 = vxpose.xlu0.b32.start [1/2] (short) (narrow) %v1774_v35, 8  ;;  %1741 = vxpose.xlu1.b32.start [1/2] (short) (narrow) %v1736_v36, 8  ;;  %v9375_v35 = vmov 7  }
 0xd8a   :  { %v1776_v39 = vpop.permute.xlu0 %1775  ;;  %v1738_v40 = vpop.permute.xlu1 %1737 }
 0xd8b   :  { %1780 = vxpose.xlu0.b32.end [2/2] (short) (narrow) %v1776_v39, 8  ;;  %1742 = vxpose.xlu1.b32.end [2/2] (short) (narrow) %v1738_v40, 8 }
 0xda9   :  { %6915 = vset.pattern.permute.xlu1 %v9419_v42 }
 0xdda   :  { %v1708_v47 = vpop.f32.mrf.mxu1 }
 0xddb   :  { %v8000_v48 = vadd.f32 %v1708_v47, %v1665_v46 }
 0xddc   :  { %v6628_v50 = vpop.f32.mrf.mxu1 }
 0xddd   :  { %v1717_v40 = vand.u32 2147483647, %v8000_v48 }
 0xdde   :  { %v1711_v54 = vpop.f32.mrf.mxu1 }
 0xddf   :  { %v1712_v56 = vadd.f32 %v1711_v54, %v1665_v46  ;;  %v1719_v46 = vsub.f32 0.0, %v1717_v40 }
 0xde0   :  { %v6629_v51 = vpop.f32.mrf.mxu1 }
 0xde1   :  { %v1718_v59 = vand.u32 2147483647, %v1712_v56  ;;  %v1716_v14 = vmax.f32 %v1712_v56, 0.0  ;;  %v1721_v47 = vmul.f32 1.442695, %v1719_v46  ;;  %v8096_v46 = vld [vmem:[%s9359_s12] sm:$0xff] }
 0xde3   :  { %v1720_v62 = vsub.f32 0.0, %v1718_v59  ;;  %v7082_v59 = vld [vmem:[%s9360_s13 + $0x18] sm:$0xff]  }
 0xde4   :  { %6631 = vmatpush3.bf16.msra.mxu0 %v7082_v59 }
 0xde5   :  { %v1723_v63 = vmul.f32 1.442695, %v1720_v62  ;;  %6632 = vmatprep.subr.bf16.mxu0 %v9421_v2 }
 0xde7   :  { %7188 = vpow2.f32 %v1723_v63 }
 0xdf4   :  { %v7189_v0 = vpop.eup %7188 }
 0xdf5   :  { %v1726_v3 = vadd.f32 1.0, %v7189_v0  ;;  %v7083_v0 = vld [vmem:[%s9360_s13 + $0x10] sm:$0xff]  }
 0xdf6   :  { %6633 = vmatpush3.bf16.msra.mxu0 %v7083_v0 }
 0xdf7   :  { %7190 = vlog2.f32 %v1726_v3  ;;  %6634 = vmatprep.subr.bf16.mxu0 %v9421_v2 }
 0xdf8   :  { %7192 = vpow2.f32 %v2155_v34 }
 0xe03   :  { %v8002_v5 = vpop.trf.xlu1  ;;  %v8021_v60 = vpop.trf.xlu0 }
 0xe04   :  { %1829 = vperm.xlu1 %6915, %v8002_v5   ;;  %1825 = vperm.xlu0 %6899, %v8002_v5   ;;  %v7191_v8 = vpop.eup %7190 }
 0xe05   :  { %v1730_v10 = vmul.f32 0.6931472, %v7191_v8  ;;  %v7193_v36 = vpop.eup %7192 }
 0xe06   :  { %v2159_v39 = vadd.f32 1.0, %v7193_v36 }
 0xe07   :  { %v1732_v16 = vadd.f32 %v1730_v10, %v1716_v14 }
 0xe08   :  { %6916 = vset.pattern.permute.xlu1 %v9415_v57  ;;  %6919 = vset.pattern.permute.xlu0 %v9413_v6  ;;  %7194 = vrcp.f32 %v2159_v39 }
 0xe09   :  { %1856 = vperm.xlu1 %6916, %v8002_v5   ;;  %1899 = vperm.xlu0 %6919, %v8002_v5   ;;  %v1817_v24 = vmul.f32 %v1732_v16, %v7974_v32  ;;  %7196 = vpow2.f32 %v1721_v47 }
 0xe0d   :  { %6917 = vset.pattern.permute.xlu1 %v9397_v7  ;;  %6922 = vset.pattern.permute.xlu0 %v9395_v53 }
 0xe0e   :  { %1860 = vperm.xlu1 %6917, %v8002_v5   ;;  %1973 = vperm.xlu0 %6922, %v8002_v5  }
 0xe12   :  { %6918 = vset.pattern.permute.xlu1 %v9393_v11  ;;  %6925 = vset.pattern.permute.xlu0 %v9391_v12 }
 0xe13   :  { %1895 = vperm.xlu1 %6918, %v8002_v5   ;;  %2016 = vperm.xlu0 %6925, %v8002_v5  }
 0xe15   :  { %v7195_v50 = vpop.eup %7194 }
 0xe16   :  { %v2165_v54 = vmul.f32 %v7195_v50, %v7909_v38  ;;  %v7197_v56 = vpop.eup %7196 }
 0xe17   :  { %6920 = vset.pattern.permute.xlu1 %v9389_v28  ;;  %1812 = vrot.lane.b32.xlu0 %v1732_v16, %s7421_s17  ;;  %v1725_v51 = vadd.f32 1.0, %v7197_v56 }
 0xe18   :  { %1934 = vperm.xlu1 %6920, %v8002_v5   ;;  %6928 = vset.pattern.permute.xlu0 %v9417_v1 }
 0xe19   :  { %7198 = vlog2.f32 %v1725_v51 }
 0xe1b   :  { %1835 = vperm.xlu0 %6928, %v8021_v60  }
 0xe1c   :  { %6921 = vset.pattern.permute.xlu1 %v9387_v20 }
 0xe1d   :  { %1938 = vperm.xlu1 %6921, %v8002_v5  }
 0xe1f   :  { %6931 = vset.pattern.permute.xlu0 %v9397_v7 }
 0xe20   :  { %1869 = vperm.xlu0 %6931, %v8021_v60  }
 0xe21   :  { %6923 = vset.pattern.permute.xlu1 %v9385_v21 }
 0xe22   :  { %1977 = vperm.xlu1 %6923, %v8002_v5  }
 0xe24   :  { %1819 = vrot.lane.b32.xlu0 %v1817_v24, %s7421_s17  ;;  %v1715_v24 = vmax.f32 %v8000_v48, 0.0 }
 0xe25   :  { %6934 = vset.pattern.permute.xlu0 %v9389_v28 }
 0xe26   :  { %6924 = vset.pattern.permute.xlu1 %v9383_v27  ;;  %v7199_v10 = vpop.eup %7198 }
 0xe27   :  { %2012 = vperm.xlu1 %6924, %v8002_v5   ;;  %v1728_v14 = vmul.f32 0.6931472, %v7199_v10 }
 0xe28   :  { %1943 = vperm.xlu0 %6934, %v8021_v60  }
 0xe29   :  { %v1731_v31 = vadd.f32 %v1728_v14, %v1715_v24 }
 0xe2b   :  { %6926 = vset.pattern.permute.xlu1 %v9381_v29  ;;  %v1816_v24 = vmul.f32 %v1731_v31, %v7972_v18 }
 0xe2c   :  { %2051 = vperm.xlu1 %6926, %v8002_v5   ;;  %6937 = vset.pattern.permute.xlu0 %v9379_v9 }
 0xe2d   :  { %2094 = vperm.xlu0 %6937, %v8002_v5  }
 0xe30   :  { %6927 = vset.pattern.permute.xlu1 %v9377_v58 }
 0xe31   :  { %2055 = vperm.xlu1 %6927, %v8002_v5   ;;  %6940 = vset.pattern.permute.xlu0 %v9383_v27 }
 0xe32   :  { %2021 = vperm.xlu0 %6940, %v8021_v60  }
 0xe35   :  { %6929 = vset.pattern.permute.xlu1 %v9419_v42 }
 0xe36   :  { %1839 = vperm.xlu1 %6929, %v8021_v60   ;;  %6943 = vset.pattern.permute.xlu0 %v9377_v58 }
 0xe37   :  { %2064 = vperm.xlu0 %6943, %v8021_v60  }
 0xe3a   :  { %6930 = vset.pattern.permute.xlu1 %v9415_v57 }
 0xe3b   :  { %1865 = vperm.xlu1 %6930, %v8021_v60  }
 0xe3f   :  { %6932 = vset.pattern.permute.xlu1 %v9393_v11 }
 0xe40   :  { %1904 = vperm.xlu1 %6932, %v8021_v60  }
 0xe44   :  { %6933 = vset.pattern.permute.xlu1 %v9413_v6 }
 0xe45   :  { %1908 = vperm.xlu1 %6933, %v8021_v60  }
 0xe49   :  { %6935 = vset.pattern.permute.xlu1 %v9387_v20 }
 0xe4a   :  { %1947 = vperm.xlu1 %6935, %v8021_v60  }
 0xe4e   :  { %6936 = vset.pattern.permute.xlu1 %v9375_v35 }
 0xe4f   :  { %2090 = vperm.xlu1 %6936, %v8002_v5  }
 0xe53   :  { %6938 = vset.pattern.permute.xlu1 %v9395_v53 }
 0xe54   :  { %1982 = vperm.xlu1 %6938, %v8021_v60  }
 0xe58   :  { %6939 = vset.pattern.permute.xlu1 %v9385_v21 }
 0xe59   :  { %1986 = vperm.xlu1 %6939, %v8021_v60  }
 0xe5d   :  { %6941 = vset.pattern.permute.xlu1 %v9391_v12 }
 0xe5e   :  { %2025 = vperm.xlu1 %6941, %v8021_v60  }
 0xe62   :  { %6942 = vset.pattern.permute.xlu1 %v9381_v29 }
 0xe63   :  { %2060 = vperm.xlu1 %6942, %v8021_v60  }
 0xe67   :  { %6944 = vset.pattern.permute.xlu1 %v9375_v35 }
 0xe68   :  { %2099 = vperm.xlu1 %6944, %v8021_v60  }
 0xe6c   :  { %6945 = vset.pattern.permute.xlu1 %v9379_v9 }
 0xe6d   :  { %2103 = vperm.xlu1 %6945, %v8021_v60  }
 0xe71   :  { %2169 = vrot.lane.b32.xlu1 %v2165_v54, %s7421_s17 }
 0xe7f   :  { %v1830_v62 = vpop.permute.xlu1 %1829  ;;  %v1826_v63 = vpop.permute.xlu0 %1825 }
 0xe84   :  { %v1857_v38 = vpop.permute.xlu1 %1856  ;;  %v1900_v3 = vpop.permute.xlu0 %1899 }
 0xe89   :  { %v1861_v5 = vpop.permute.xlu1 %1860  ;;  %v8083_v8 = vpop.permute.xlu0 %1973 }
 0xe8e   :  { %v1896_v16 = vpop.permute.xlu1 %1895  ;;  %v8085_v60 = vpop.permute.xlu0 %2016 }
 0xe8f   :  { %v1902_v11 = vsel %vm106_vm3, %v1896_v16, %v1900_v3 }
 0xe92   :  { %v1813_v34 = vpop.permute.xlu0 %1812 }
 0xe93   :  { %v8089_v36 = vsel %vm106_vm3, %v1731_v31, %v1813_v34  ;;  %v1935_v39 = vpop.permute.xlu1 %1934  ;;  %v1832_v31 = vsel %vm106_vm3, %v1826_v63, %v1830_v62 }
 0xe94   :  { %v1881_v40 = vrot.slane %v8089_v36, %v7606_v49  ;;  %v1920_v51 = vrot.slane %v8089_v36, %v7774_v52  ;;  %v1959_v35 = vrot.slane %v8089_v36, %v7807_v37  ;;  %v2037_v63 = vrot.slane %v8089_v36, %v7905_v45 }
 0xe96   :  { %v1882_v50 = vmul.f32 %v1881_v40, %v8096_v46  ;;  %v8099_v54 = vpop.permute.xlu0 %1835  ;;  %v1921_v10 = vmul.f32 %v1920_v51, %v8096_v46  ;;  %v1960_v58 = vmul.f32 %v1959_v35, %v8096_v46 }
 0xe98   :  { %v1939_v47 = vpop.permute.xlu1 %1938  ;;  %v1883_v56 = vmul.f32 1.442695, %v1882_v50  ;;  %v1922_v40 = vmul.f32 1.442695, %v1921_v10  ;;  %v1961_v29 = vmul.f32 1.442695, %v1960_v58  ;;  %v1998_v10 = vrot.slane %v8089_v36, %v7812_v41 }
 0xe9a   :  { %7200 = vpow2.f32 %v1883_v56  ;;  %v1999_v21 = vmul.f32 %v1998_v10, %v8096_v46 }
 0xe9b   :  { %v8103_v59 = vpop.permute.xlu0 %1869  ;;  %7202 = vpow2.f32 %v1922_v40  ;;  %v1863_v40 = vsel %vm106_vm3, %v1857_v38, %v1861_v5 }
 0xe9c   :  { %7204 = vpow2.f32 %v1961_v29  ;;  %v2000_v58 = vmul.f32 1.442695, %v1999_v21  ;;  %v2038_v29 = vmul.f32 %v2037_v63, %v8096_v46 }
 0xe9d   :  { %v1978_v48 = vpop.permute.xlu1 %1977 }
 0xe9e   :  { %7206 = vpow2.f32 %v2000_v58  ;;  %v2039_v10 = vmul.f32 1.442695, %v2038_v29  ;;  %v1980_v53 = vsel %vm106_vm3, %v8083_v8, %v1978_v48 }
 0xe9f   :  { %v1820_v14 = vpop.permute.xlu0 %1819 }
 0xea0   :  { %v8114_v50 = vsel %vm106_vm3, %v1816_v24, %v1820_v14  ;;  %7208 = vpow2.f32 %v2039_v10 }
 0xea1   :  { %v1846_v51 = vrot.slane %v8114_v50, %v7596_v44  ;;  %v1876_v14 = vrot.slane %v8114_v50, %v7606_v49 }
 0xea2   :  { %v8105_v0 = vpop.permute.xlu1 %2012 }
 0xea3   :  { %v8124_v27 = vmul.f32 %v1846_v51, %v1832_v31  ;;  %v1877_v20 = vmul.f32 %v1876_v14, %v1863_v40  ;;  %v1915_v51 = vrot.slane %v8114_v50, %v7774_v52  ;;  %v1954_v14 = vrot.slane %v8114_v50, %v7807_v37  ;;  %v1944_v10 = vpop.permute.xlu0 %1943 }
 0xea4   :  { %v2019_v8 = vsel %vm106_vm3, %v8105_v0, %v8085_v60 }
 0xea5   :  { %v1916_v38 = vmul.f32 %v1915_v51, %v1902_v11 }
 0xea7   :  { %v8109_v34 = vpop.permute.xlu1 %2051  ;;  %v7201_v9 = vpop.eup %7200 }
 0xea8   :  { %v1885_v35 = vmul.f32 %v7201_v9, %v8124_v27  ;;  %v7203_v31 = vpop.eup %7202 }
 0xeaa   :  { %v1886_v62 = vadd.f32 %v1885_v35, %v1877_v20  ;;  %v2076_v20 = vrot.slane %v8089_v36, %v7888_v25  ;;  %v7205_v35 = vpop.eup %7204 }
 0xeab   :  { %v7207_v51 = vpop.eup %7206 }
 0xeac   :  { %v8117_v56 = vpop.permute.xlu1 %2055  ;;  %v1924_v12 = vmul.f32 %v7203_v31, %v1886_v62  ;;  %v1941_v31 = vsel %vm106_vm3, %v1935_v39, %v1939_v47  ;;  %v2077_v3 = vmul.f32 %v2076_v20, %v8096_v46  ;;  %v2115_v39 = vrot.slane %v8089_v36, %v7896_v30 }
 0xead   :  { %v1955_v16 = vmul.f32 %v1954_v14, %v1941_v31  ;;  %v2154_v14 = vsub.f32 0.0, %v7928_v55  ;;  %v2032_v31 = vrot.slane %v8114_v50, %v7905_v45 }
 0xeae   :  { %v1925_v5 = vadd.f32 %v1924_v12, %v1916_v38  ;;  %v2078_v11 = vmul.f32 1.442695, %v2077_v3  ;;  %v1993_v12 = vrot.slane %v8114_v50, %v7812_v41  ;;  %v7209_v3 = vpop.eup %7208 }
 0xeb0   :  { %v1963_v40 = vmul.f32 %v7205_v35, %v1925_v5  ;;  %7210 = vpow2.f32 %v2078_v11  ;;  %v1994_v47 = vmul.f32 %v1993_v12, %v1980_v53  ;;  %v2033_v11 = vmul.f32 %v2032_v31, %v2019_v8  ;;  %v2095_v12 = vpop.permute.xlu0 %2094 }
 0xeb1   :  { %v1840_v24 = vpop.permute.xlu1 %1839 }
 0xeb2   :  { %v1964_v63 = vadd.f32 %v1963_v40, %v1955_v16  ;;  %v2116_v40 = vmul.f32 %v2115_v39, %v8096_v46  ;;  %v2157_v16 = vmul.f32 1.442695, %v2154_v14  ;;  %v1842_v46 = vsel %vm106_vm3, %v8099_v54, %v1840_v24 }
 0xeb3   :  { %v2071_v24 = vrot.slane %v8114_v50, %v7888_v25 }
 0xeb4   :  { %v2002_v38 = vmul.f32 %v7207_v51, %v1964_v63  ;;  %v2117_v36 = vmul.f32 1.442695, %v2116_v40  ;;  %7212 = vpow2.f32 %v2157_v16  ;;  %v2022_v14 = vpop.permute.xlu0 %2021 }
 0xeb6   :  { %v1866_v28 = vpop.permute.xlu1 %1865  ;;  %v2003_v20 = vadd.f32 %v2002_v38, %v1994_v47  ;;  %7214 = vpow2.f32 %v2117_v36 }
 0xeb7   :  { %v1872_v53 = vsel %vm106_vm3, %v1866_v28, %v8103_v59  ;;  %v1848_v28 = vmul.f32 %v8124_v27, %v1842_v46 }
 0xeb8   :  { %v2041_v48 = vmul.f32 %v7209_v3, %v2003_v20  ;;  %v1887_v47 = vmul.f32 %v1886_v62, %v1872_v53  ;;  %v2065_v8 = vpop.permute.xlu0 %2064 }
 0xeb9   :  { %v1849_v3 = vrot.slane %v1848_v28, 4 }
 0xeba   :  { %v2042_v60 = vadd.f32 %v2041_v48, %v2033_v11  ;;  %v1888_v62 = vrot.slane %v1887_v47, 4 }
 0xebb   :  { %v1905_v9 = vpop.permute.xlu1 %1904 }
 0xebc   :  { %v1889_v48 = vadd.f32 %v1888_v62, %v1887_v47 }
 0xebd   :  { %v7211_v40 = vpop.eup %7210 }
 0xebe   :  { %v1890_v46 = vrot.slane %v1889_v48, 2 }
 0xec0   :  { %v1909_v21 = vpop.permute.xlu1 %1908 }
 0xec1   :  { %v1911_v51 = vsel %vm106_vm3, %v1905_v9, %v1909_v21  ;;  %v2058_v9 = vsel %vm106_vm3, %v8109_v34, %v8117_v56 }
 0xec2   :  { %v1926_v0 = vmul.f32 %v1925_v5, %v1911_v51  ;;  %v2072_v31 = vmul.f32 %v2071_v24, %v2058_v9  ;;  %v7213_v9 = vpop.eup %7212 }
 0xec4   :  { %v1927_v5 = vrot.slane %v1926_v0, 4 }
 0xec5   :  { %v1948_v58 = vpop.permute.xlu1 %1947 }
 0xec6   :  { %v1950_v39 = vsel %vm106_vm3, %v1944_v10, %v1948_v58  ;;  %v2080_v10 = vmul.f32 %v7211_v40, %v2042_v60 }
 0xec7   :  { %v1965_v59 = vmul.f32 %v1964_v63, %v1950_v39  ;;  %v2110_v39 = vrot.slane %v8114_v50, %v7896_v30 }
 0xec8   :  { %v2081_v34 = vadd.f32 %v2080_v10, %v2072_v31 }
 0xec9   :  { %v1966_v27 = vrot.slane %v1965_v59, 4 }
 0xeca   :  { %v2091_v29 = vpop.permute.xlu1 %2090 }
 0xecb   :  { %v1967_v36 = vadd.f32 %v1966_v27, %v1965_v59  ;;  %v2097_v51 = vsel %vm106_vm3, %v2091_v29, %v2095_v12  ;;  %v1891_v59 = vadd.f32 %v1890_v46, %v1889_v48  ;;  %v2160_v29 = vadd.f32 1.0, %v7213_v9 }
 0xecd   :  { %v1968_v24 = vrot.slane %v1967_v36, 2  ;;  %7216 = vrcp.f32 %v2160_v29 }
 0xecf   :  { %v1983_v35 = vpop.permute.xlu1 %1982 }
 0xed4   :  { %v1987_v38 = vpop.permute.xlu1 %1986 }
 0xed5   :  { %v1989_v7 = vsel %vm106_vm3, %v1983_v35, %v1987_v38 }
 0xed6   :  { %v2004_v21 = vmul.f32 %v2003_v20, %v1989_v7  ;;  %v1928_v7 = vadd.f32 %v1927_v5, %v1926_v0  ;;  %v1850_v20 = vadd.f32 %v1849_v3, %v1848_v28  ;;  %v2111_v0 = vmul.f32 %v2110_v39, %v2097_v51 }
 0xed7   :  { %v1969_v3 = vadd.f32 %v1968_v24, %v1967_v36 }
 0xed8   :  { %v2005_v63 = vrot.slane %v2004_v21, 4  ;;  %v1929_v40 = vrot.slane %v1928_v7, 2 }
 0xed9   :  { %v2026_v54 = vpop.permute.xlu1 %2025  ;;  %v1970_v48 = vrot.slane %v1969_v3, 1 }
 0xeda   :  { %v2028_v58 = vsel %vm106_vm3, %v2022_v14, %v2026_v54  ;;  %v2006_v38 = vadd.f32 %v2005_v63, %v2004_v21  ;;  %v1851_v54 = vrot.slane %v1850_v20, 2  ;;  %v1930_v12 = vadd.f32 %v1929_v40, %v1928_v7 }
 0xedb   :  { %v2043_v35 = vmul.f32 %v2042_v60, %v2028_v58  ;;  %v7215_v58 = vpop.eup %7214  ;;  %v1971_v40 = vadd.f32 %v1970_v48, %v1969_v3 }
 0xedc   :  { %v2007_v28 = vrot.slane %v2006_v38, 2  ;;  %v2119_v5 = vmul.f32 %v7215_v58, %v2081_v34  ;;  %v1852_v31 = vadd.f32 %v1851_v54, %v1850_v20 }
 0xedd   :  { %v2044_v16 = vrot.slane %v2043_v35, 4 }
 0xede   :  { %v2061_v53 = vpop.permute.xlu1 %2060  ;;  %v2008_v27 = vadd.f32 %v2007_v28, %v2006_v38  ;;  %v1853_v51 = vrot.slane %v1852_v31, 1 }
 0xedf   :  { %v2067_v56 = vsel %vm106_vm3, %v2061_v53, %v2065_v8  ;;  %v2045_v60 = vadd.f32 %v2044_v16, %v2043_v35  ;;  %v2120_v35 = vadd.f32 %v2119_v5, %v2111_v0  ;;  %v1892_v8 = vrot.slane %v1891_v59, 1 }
 0xee0   :  { %v2082_v11 = vmul.f32 %v2081_v34, %v2067_v56  ;;  %v1931_v56 = vrot.slane %v1930_v12, 1  ;;  %v7084_v34 = vld [vmem:[%s9360_s13 + $0x8] sm:$0xff]   ;;  %v2009_v7 = vrot.slane %v2008_v27, 1 }
 0xee1   :  { %v2046_v10 = vrot.slane %v2045_v60, 2  ;;  %v1893_v20 = vadd.f32 %v1892_v8, %v1891_v59  ;;  %6635 = vmatpush3.bf16.msra.mxu0 %v7084_v34 }
 0xee2   :  { %v2083_v14 = vrot.slane %v2082_v11, 4  ;;  %v1932_v38 = vadd.f32 %v1931_v56, %v1930_v12  ;;  %6636 = vmatprep.subr.bf16.mxu0 %v9421_v2  ;;  %v2010_v9 = vadd.f32 %v2009_v7, %v2008_v27 }
 0xee3   :  { %v2100_v47 = vpop.permute.xlu1 %2099  ;;  %v2047_v16 = vadd.f32 %v2046_v10, %v2045_v60  ;;  %v1854_v60 = vadd.f32 %v1853_v51, %v1852_v31  ;;  %v7217_v31 = vpop.eup %7216 }
 0xee4   :  { %v2084_v62 = vadd.f32 %v2083_v14, %v2082_v11 }
 0xee5   :  { %v2048_v36 = vrot.slane %v2047_v16, 1  ;;  %v2129_v54 = vsel %vm9435_vm5, %v1854_v60, %v1893_v20 }
 0xee6   :  { %v2085_v21 = vrot.slane %v2084_v62, 2  ;;  %v2130_v58 = vsel %vm1670_vm9, %v2129_v54, %v1932_v38 }
 0xee7   :  { %v2049_v24 = vadd.f32 %v2048_v36, %v2047_v16  ;;  %v2132_v59 = vsel %vm9434_vm11, %v2130_v58, %v1971_v40  ;;  %v8225_v58 = vld [vmem:[%s9355_s8 + $0x8] sm:$0xff] }
 0xee8   :  { %v2104_v50 = vpop.permute.xlu1 %2103  ;;  %v2086_v11 = vadd.f32 %v2085_v21, %v2084_v62  ;;  %v7085_v62 = vld [vmem:[%s9360_s13] sm:$0xff]   ;;  %v2134_v5 = vsel %vm9433_vm7, %v2132_v59, %v2010_v9  ;;  %v2296_v59 = vrot.slane %v8225_v58, %v7596_v44 }
 0xee9   :  { %v2106_v63 = vsel %vm106_vm3, %v2100_v47, %v2104_v50  ;;  %6637 = vmatpush3.bf16.msra.mxu0 %v7085_v62  ;;  %v2136_v12 = vsel %vm9432_vm6, %v2134_v5, %v2049_v24  ;;  %v2166_v50 = vmul.f32 %v7217_v31, %v7928_v55  ;;  %v7088_v31 = vld [vmem:[%s9357_s10 + $0x38] sm:$0xff]  }
 0xeea   :  { %v2121_v53 = vmul.f32 %v2120_v35, %v2106_v63  ;;  %v2087_v14 = vrot.slane %v2086_v11, 1  ;;  %6662 = vmatprep.subr.bf16.mxu0 %v9421_v2  ;;  %v7388_v35 = vld [vmem:[%s9355_s8] sm:$0xff] }
 0xeeb   :  { %v2148_v27 = vrot.slane %v7388_v35, %v7807_v37  ;;  %v7091_v35 = vld [vmem:[%s9357_s10 + $0x20] sm:$0xff]  }
 0xeec   :  { %v2122_v46 = vrot.slane %v2121_v53, 4  ;;  %v2088_v28 = vadd.f32 %v2087_v14, %v2086_v11  ;;  %v2170_v11 = vpop.permute.xlu1 %2169 }
 0xeed   :  { %v2149_v63 = vmul.f32 %v2148_v27, %v7972_v18 }
 0xeee   :  { %v2123_v39 = vadd.f32 %v2122_v46, %v2121_v53  ;;  %v2138_v21 = vsel %vm9431_vm2, %v2136_v12, %v2088_v28  ;;  %v2150_v53 = vmul.f32 %v2148_v27, %v7974_v32 }
 0xef0   :  { %v2124_v47 = vrot.slane %v2123_v39, 2 }
 0xef2   :  { %v2125_v0 = vadd.f32 %v2124_v47, %v2123_v39 }
 0xef4   :  { %v2126_v10 = vrot.slane %v2125_v0, 1 }
 0xef6   :  { %v2127_v29 = vadd.f32 %v2126_v10, %v2125_v0 }
 0xef8   :  { %v2140_v3 = vsel %vm9410_vm1, %v2138_v21, %v2127_v29  ;;  %vm9457_vm1 = vcmp.ge.s32.totalorder %v7660_v13, 2 }
 0xef9   :  { %2142 = vrot.lane.b32.xlu0 %v2140_v3, %s7421_s17  ;;  %v2151_v16 = vadd.f32 %v2149_v63, %v2140_v3  ;;  %v7089_v3 = vld [vmem:[%s9357_s10 + $0x30] sm:$0xff]  }
 0xefb   :  { %v2175_v48 = vmul.f32 %v2170_v11, %v2151_v16 }
 0xefd   :  { %2171 = vrot.lane.b32.xlu0 %v2166_v50, %s7421_s17  ;;  %v7090_v50 = vld [vmem:[%s9357_s10 + $0x28] sm:$0xff]  }
 0xf6b   :  { %v2143_v8 = vpop.permute.xlu0 %2142 }
 0xf6c   :  { %v2152_v56 = vadd.f32 %v2150_v53, %v2143_v8  ;;  %v2359_v8 = vrot.slane %v8225_v58, %v7896_v30  ;;  %v2371_v53 = vrot.slane %v8225_v58, %v7812_v41 }
 0xf6f   :  { %v2172_v51 = vpop.permute.xlu0 %2171 }
 0xf70   :  { %v2176_v46 = vmul.f32 %v2172_v51, %v2152_v56 }
 0xf72   :  { %v2177_v55 = vpack.c.bf16 %v2176_v46, %v2175_v48 }
 0xf74   :  { %6639 = vmatmul.mubr.msk.bf16.vlgmr.msra.gmra.mxu0 %vm106_vm3, %v2177_v55  ;;  %v2385_v55 = vrot.slane %v8225_v58, %v7905_v45 }
 0xf75   :  { %6664 = vmatprep.mubr.msk.bf16.mxu0 %vm7415_vm0, %v9421_v2 }
0x1034   :  { %v2239_v34 = vpop.f32.mrf.mxu0 }
0x1035   :  { %v8203_v7 = vadd.f32 %v2239_v34, %v7571_v17  ;;  %v7086_v17 = vld [vmem:[%s9356_s9 + $0x18] sm:$0xff]  }
0x1036   :  { %v6640_v18 = vpop.f32.mrf.mxu0  ;;  %6643 = vmatpush3.bf16.msra.mxu1 %v7086_v17 }
0x1037   :  { %v2277_v20 = vmul.f32 %v8203_v7, %v8203_v7  ;;  %6644 = vmatprep.subr.bf16.mxu1 %v9421_v2  ;;  %v2399_v18 = vrot.slane %v8225_v58, %v7888_v25 }
0x1038   :  { %v2242_v32 = vpop.f32.mrf.mxu0 }
0x1039   :  { %v8208_v36 = vadd.f32 %v2242_v32, %v7578_v22  ;;  %v2279_v39 = vsel %vm9409_vm4, %v2277_v20, 0.0  ;;  %v7087_v22 = vld [vmem:[%s9356_s9 + $0x10] sm:$0xff]  }
0x103a   :  { %2280 = vadd.xlane.f32.xlu1 %v2279_v39  ;;  %v6641_v38 = vpop.f32.mrf.mxu0  ;;  %6645 = vmatpush3.bf16.msra.mxu1 %v7087_v22 }
0x103b   :  { %v2278_v14 = vmul.f32 %v8208_v36, %v8208_v36  ;;  %6650 = vmatprep.subr.bf16.mxu1 %v9421_v2 }
0x103d   :  { %v2282_v60 = vsel %vm9409_vm4, %v2278_v14, 0.0 }
0x103e   :  { %2283 = vadd.xlane.f32.xlu0 %v2282_v60 }
0x10c3   :  { %v2281_v40 = vpop.xlane.xlu1 %2280 }
0x10c4   :  { %v2285_v47 = vmul.f32 0.03125, %v2281_v40 }
0x10c6   :  { %v2287_v9 = vadd.f32 1e-05, %v2285_v47 }
0x10c7   :  { %v2284_v54 = vpop.xlane.xlu0 %2283 }
0x10c8   :  { %7218 = vrsqrt.f32 %v2287_v9  ;;  %v2286_v24 = vmul.f32 0.03125, %v2284_v54 }
0x10ca   :  { %v2288_v0 = vadd.f32 1e-05, %v2286_v24 }
0x10cc   :  { %7220 = vrsqrt.f32 %v2288_v0 }
0x10d5   :  { %v7219_v62 = vpop.eup %7218 }
0x10d6   :  { %v2291_v28 = vmul.f32 %v7219_v62, %v8203_v7 }
0x10d8   :  { %v2297_v29 = vmul.f32 %v2296_v59, %v2291_v28 }
0x10d9   :  { %v7221_v10 = vpop.eup %7220 }
0x10da   :  { %v2292_v5 = vmul.f32 %v7221_v10, %v8208_v36 }
0x10dc   :  { %v2298_v12 = vmul.f32 %v2296_v59, %v2292_v5 }
0x10de   :  { %v2299_v21 = vpack.c.bf16 %v2298_v12, %v2297_v29 }
0x10e0   :  { %6647 = vmatmul.mubr.msk.bf16.vlgmr.msra.gmra.mxu1 %vm9409_vm4, %v2299_v21  ;;  %vm9456_vm4 = vcmp.ge.s32.totalorder %v7902_v33, 2  ;;  %v2407_v21 = vrot.slane %v8225_v58, %v7606_v49 }
0x10e1   :  { %6658 = vmatprep.mubr.msk.bf16.mxu1 %vm7415_vm0, %v9421_v2  ;;  %6651 = vmatpush3.bf16.msra.mxu1 %v7088_v31 }
0x10e2   :  { %6652 = vmatprep.subr.bf16.mxu1 %v9421_v2 }
0x10e5   :  { %6653 = vmatpush3.bf16.msra.mxu1 %v7089_v3 }
0x10e6   :  { %6654 = vmatprep.subr.bf16.mxu1 %v9421_v2 }
0x10e9   :  { %6655 = vmatpush3.bf16.msra.mxu1 %v7090_v50 }
0x10ea   :  { %6656 = vmatprep.subr.bf16.mxu1 %v9421_v2 }
0x10ed   :  { %6657 = vmatpush3.bf16.msra.mxu1 %v7091_v35 }
0x10ee   :  { %6680 = vmatprep.subr.bf16.mxu1 %v9421_v2 }
0x11a0   :  { %v8250_v27 = vpop.f32.mrf.mxu1 }
0x11a1   :  { %v2362_v56 = vrot.slane %v8250_v27, 5  ;;  %v2376_v11 = vrot.slane %v8250_v27, 6  ;;  %v2390_v46 = vrot.slane %v8250_v27, 7  ;;  %v2360_v47 = vmul.f32 %v2359_v8, %v8250_v27 }
0x11a2   :  { %v6648_v63 = vpop.f32.mrf.mxu1 }
0x11a4   :  { %v8254_v16 = vpop.f32.mrf.mxu1 }
0x11a5   :  { %v2363_v51 = vrot.slane %v8254_v16, 5  ;;  %v2377_v48 = vrot.slane %v8254_v16, 6  ;;  %v2391_v34 = vrot.slane %v8254_v16, 7  ;;  %v2361_v9 = vmul.f32 %v2359_v8, %v8254_v16 }
0x11a6   :  { %v6649_v20 = vpop.f32.mrf.mxu1 }
0x11a7   :  { %v2364_v32 = vsel %vm1523_vm12, %v2362_v56, %v2363_v51  ;;  %v2365_v39 = vsel %vm1523_vm12, %v2363_v51, %v2362_v56  ;;  %v2378_v38 = vsel %vm9411_vm14, %v2376_v11, %v2377_v48  ;;  %v2379_v14 = vsel %vm9411_vm14, %v2377_v48, %v2376_v11 }
0x11a8   :  { %v2366_v60 = vsel %vm9412_vm13, %v2365_v39, 0.0  ;;  %v2367_v17 = vsel %vm1527_vm15, %v2364_v32, 0.0  ;;  %v2380_v22 = vsel %vm9456_vm4, %v2379_v14, 0.0  ;;  %v2381_v40 = vsel %vm9457_vm1, %v2378_v38, 0.0 }
0x11a9   :  { %v2372_v54 = vmul.f32 %v2371_v53, %v2366_v60  ;;  %v2373_v24 = vmul.f32 %v2371_v53, %v2367_v17  ;;  %v2386_v0 = vmul.f32 %v2385_v55, %v2380_v22  ;;  %v2387_v62 = vmul.f32 %v2385_v55, %v2381_v40  ;;  %v6152_v17 = vld [vmem:[%s9358_s11 + $0x2] sm:$0x3] }
0x11aa   :  { %vm9458_vm14 = vcmp.lt.s32.totalorder %v7593_v43, 1  ;;  %vm9460_vm4 = vcmp.ge.s32.totalorder %v7902_v33, 1  ;;  %vm9461_vm1 = vcmp.ge.s32.totalorder %v7660_v13, 1  ;;  %v2502_v22 = vsel %vm1670_vm9, %v6152_v17, 0 }
0x11ab   :  { %v2392_v28 = vsel %vm9458_vm14, %v2390_v46, %v2391_v34  ;;  %vm9459_vm13 = vmmov %vm9458_vm14  ;;  %v2374_v10 = vadd.f32 %v2372_v54, %v2360_v47  ;;  %v2375_v5 = vadd.f32 %v2373_v24, %v2361_v9  ;;  %6663 = vmatpush3.bf16.msra.mxu0 %v2502_v22  ;;  %v9469_v17 = vmov 12  }
0x11ac   :  { %v2393_v59 = vsel %vm9459_vm13, %v2391_v34, %v2390_v46  ;;  %v2395_v12 = vsel %vm9461_vm1, %v2392_v28, 0.0  ;;  %6668 = vmatprep.subr.bf16.mxu0 %v9421_v2  ;;  %vm9462_vm13 = vcmask 31744   ;;  %vm9476_vm14 = vcmask 1046528  }
0x11ad   :  { %v2394_v29 = vsel %vm9460_vm4, %v2393_v59, 0.0  ;;  %v2388_v31 = vadd.f32 %v2386_v0, %v2374_v10  ;;  %v2389_v3 = vadd.f32 %v2387_v62, %v2375_v5  ;;  %v2401_v35 = vmul.f32 %v2399_v18, %v2395_v12 }
0x11ae   :  { %v2400_v50 = vmul.f32 %v2399_v18, %v2394_v29  ;;  %v2497_v10 = vrot.slane %v8225_v58, %v7774_v52  ;;  %vm9477_vm4 = vcmask 261120  }
0x11af   :  { %v2403_v8 = vadd.f32 %v2401_v35, %v2389_v3  ;;  %vm9478_vm1 = vmmov %vm9477_vm4 }
0x11b0   :  { %v2402_v63 = vadd.f32 %v2400_v50, %v2388_v31 }
0x11b1   :  { %v2409_v56 = vadd.f32 %v2407_v21, %v2403_v8 }
0x11b2   :  { %v2408_v53 = vadd.f32 %v2407_v21, %v2402_v63 }
0x11b3   :  { %v2411_v51 = vsub.f32 0.0, %v2409_v56 }
0x11b4   :  { %v2410_v11 = vsub.f32 0.0, %v2408_v53 }
0x11b5   :  { %v2414_v46 = vmul.f32 1.442695, %v2411_v51  ;;  %v9464_v51 = vmov 4  }
0x11b6   :  { %v2412_v48 = vmul.f32 1.442695, %v2410_v11  ;;  %v9463_v11 = vmov 9  }
0x11b8   :  { %7222 = vpow2.f32 %v2412_v48 }
0x11b9   :  { %7224 = vpow2.f32 %v2414_v46 }
0x11c5   :  { %v7223_v55 = vpop.eup %7222 }
0x11c6   :  { %v7225_v34 = vpop.eup %7224  ;;  %v2416_v20 = vadd.f32 1.0, %v7223_v55  ;;  %v9465_v55 = vmov 2  }
0x11c7   :  { %v2417_v32 = vadd.f32 1.0, %v7225_v34  ;;  %v9466_v34 = vmov 13  }
0x11c8   :  { %7226 = vrcp.f32 %v2416_v20 }
0x11c9   :  { %7228 = vrcp.f32 %v2417_v32 }
0x11d5   :  { %v7227_v39 = vpop.eup %7226 }
0x11d6   :  { %v7229_v38 = vpop.eup %7228  ;;  %v8296_v14 = vmul.f32 %v7227_v39, %v2408_v53  ;;  %v9467_v39 = vmov 3  }
0x11d7   :  { %v8298_v18 = vmul.f32 %v7229_v38, %v2409_v56 }
0x11d9   :  { %v2424_v60 = vpack.c.bf16 %v8298_v18, %v8296_v14 }
0x11db   :  { %6659 = vmatmul.mubr.msk.bf16.vlgmr.msra.gmra.mxu1 %vm106_vm3, %v2424_v60  ;;  %v9468_v60 = vmov 11  }
0x11dc   :  { %6684 = vmatprep.mubr.msk.bf16.mxu1 %vm7415_vm0, %v9421_v2 }
0x129b   :  { %v2486_v40 = vpop.f32.mrf.mxu1 }
0x129c   :  { %2603 = vrot.lane.b32.xlu1 %v2486_v40, %s7430_s22  ;;  %2565 = vrot.lane.b32.xlu0 %v2486_v40, %s7431_s25 }
0x129d   :  { %v6660_v47 = vpop.f32.mrf.mxu1 }
0x129e   :  { %v9471_v47 = vmov 6  }
0x129f   :  { %v2489_v9 = vpop.f32.mrf.mxu1 }
0x12a0   :  { %v2493_v54 = vpack.c.bf16 %v2489_v9, %v2486_v40  ;;  %2605 = vrot.lane.b32.xlu0 %v2489_v9, %s7430_s22  ;;  %2567 = vrot.lane.b32.xlu1 %v2489_v9, %s7431_s25  ;;  %v9470_v40 = vmov 5   ;;  %v9472_v9 = vmov 15  }
0x12a1   :  { %v6661_v24 = vpop.f32.mrf.mxu1 }
0x12a2   :  { %6665 = vmatmul.mubr.msk.bf16.vlgmr.msra.gmra.mxu0 %vm9462_vm13, %v2493_v54  ;;  %v9473_v54 = vmov 14   ;;  %v2977_v24 = vsub.f32 0.0, %v8250_v27  ;;  %vm9479_vm13 = vmmov %vm9478_vm1 }
0x12a3   :  { %6676 = vmatprep.mubr.msk.bf16.mxu0 %vm7415_vm0, %v9421_v2 }
0x130e   :  { %v2604_v0 = vpop.permute.xlu1 %2603  ;;  %v2566_v62 = vpop.permute.xlu0 %2565 }
0x130f   :  { %2609 = vxpose.xlu0.b32.start [1/2] (short) (narrow) %v2604_v0, 8  ;;  %2571 = vxpose.xlu1.b32.start [1/2] (short) (narrow) %v2566_v62, 8  ;;  %v2979_v0 = vmul.f32 1.442695, %v2977_v24  ;;  %v9474_v62 = vmov 7  }
0x1312   :  { %v2606_v28 = vpop.permute.xlu0 %2605  ;;  %v2568_v59 = vpop.permute.xlu1 %2567 }
0x1313   :  { %2610 = vxpose.xlu0.b32.end [2/2] (short) (narrow) %v2606_v28, 8  ;;  %2572 = vxpose.xlu1.b32.end [2/2] (short) (narrow) %v2568_v59, 8 }
0x1331   :  { %6947 = vset.pattern.permute.xlu1 %v9419_v42 }
0x133c   :  { %6946 = vset.pattern.permute.xlu0 %v9417_v1 }
0x1362   :  { %v2538_v5 = vpop.f32.mrf.mxu0 }
0x1363   :  { %v8321_v29 = vadd.f32 %v2538_v5, %v2497_v10 }
0x1364   :  { %v6666_v12 = vpop.f32.mrf.mxu0 }
0x1365   :  { %v2545_v24 = vmax.f32 %v8321_v29, 0.0 }
0x1366   :  { %v2541_v21 = vpop.f32.mrf.mxu0 }
0x1367   :  { %v2542_v31 = vadd.f32 %v2541_v21, %v2497_v10  ;;  %v2547_v10 = vand.u32 2147483647, %v8321_v29 }
0x1368   :  { %v6667_v3 = vpop.f32.mrf.mxu0 }
0x1369   :  { %v2548_v50 = vand.u32 2147483647, %v2542_v31  ;;  %v2546_v20 = vmax.f32 %v2542_v31, 0.0  ;;  %v2549_v5 = vsub.f32 0.0, %v2547_v10 }
0x136b   :  { %v2550_v35 = vsub.f32 0.0, %v2548_v50  ;;  %v2551_v12 = vmul.f32 1.442695, %v2549_v5 }
0x136d   :  { %v2553_v63 = vmul.f32 1.442695, %v2550_v35  ;;  %v7092_v35 = vld [vmem:[%s9360_s13 + $0x38] sm:$0xff]  }
0x136e   :  { %6669 = vmatpush3.bf16.msra.mxu0 %v7092_v35 }
0x136f   :  { %7230 = vpow2.f32 %v2553_v63  ;;  %6670 = vmatprep.subr.bf16.mxu0 %v9421_v2 }
0x137c   :  { %v7231_v8 = vpop.eup %7230 }
0x137d   :  { %v2556_v53 = vadd.f32 1.0, %v7231_v8 }
0x137f   :  { %7232 = vlog2.f32 %v2556_v53  ;;  %v7093_v53 = vld [vmem:[%s9360_s13 + $0x30] sm:$0xff]  }
0x1380   :  { %7234 = vpow2.f32 %v2979_v0  ;;  %6671 = vmatpush3.bf16.msra.mxu0 %v7093_v53 }
0x1381   :  { %6672 = vmatprep.subr.bf16.mxu0 %v9421_v2 }
0x138b   :  { %v2587_v56 = vpop.trf.xlu1  ;;  %v2625_v38 = vpop.trf.xlu0 }
0x138c   :  { %2659 = vperm.xlu1 %6947, %v2587_v56   ;;  %2655 = vperm.xlu0 %6946, %v2587_v56   ;;  %v7233_v48 = vpop.eup %7232 }
0x138d   :  { %v2560_v46 = vmul.f32 0.6931472, %v7233_v48  ;;  %v7235_v28 = vpop.eup %7234 }
0x138e   :  { %v2983_v59 = vadd.f32 1.0, %v7235_v28 }
0x138f   :  { %v2562_v32 = vadd.f32 %v2560_v46, %v2546_v20 }
0x1390   :  { %6948 = vset.pattern.permute.xlu1 %v9415_v57  ;;  %6951 = vset.pattern.permute.xlu0 %v9413_v6  ;;  %7236 = vrcp.f32 %v2983_v59 }
0x1391   :  { %2686 = vperm.xlu1 %6948, %v2587_v56   ;;  %2729 = vperm.xlu0 %6951, %v2587_v56   ;;  %v2647_v22 = vmul.f32 %v2562_v32, %v8298_v18  ;;  %7238 = vpow2.f32 %v2551_v12  ;;  %v8381_v12 = vld [vmem:[%s9359_s12 + $0x8] sm:$0xff] }
0x1395   :  { %6949 = vset.pattern.permute.xlu1 %v9463_v11  ;;  %6954 = vset.pattern.permute.xlu0 %v9464_v51 }
0x1396   :  { %2690 = vperm.xlu1 %6949, %v2587_v56   ;;  %2803 = vperm.xlu0 %6954, %v2587_v56  }
0x139a   :  { %6950 = vset.pattern.permute.xlu1 %v9465_v55  ;;  %6957 = vset.pattern.permute.xlu0 %v9466_v34 }
0x139b   :  { %2725 = vperm.xlu1 %6950, %v2587_v56   ;;  %2846 = vperm.xlu0 %6957, %v2587_v56  }
0x139d   :  { %v7237_v21 = vpop.eup %7236 }
0x139e   :  { %v2989_v31 = vmul.f32 %v7237_v21, %v8250_v27  ;;  %v7239_v3 = vpop.eup %7238 }
0x139f   :  { %6952 = vset.pattern.permute.xlu1 %v9467_v39  ;;  %2642 = vrot.lane.b32.xlu0 %v2562_v32, %s7421_s17  ;;  %v2555_v50 = vadd.f32 1.0, %v7239_v3 }
0x13a0   :  { %2764 = vperm.xlu1 %6952, %v2587_v56   ;;  %6960 = vset.pattern.permute.xlu0 %v9417_v1 }
0x13a1   :  { %7240 = vlog2.f32 %v2555_v50 }
0x13a3   :  { %2665 = vperm.xlu0 %6960, %v2625_v38  }
0x13a4   :  { %6953 = vset.pattern.permute.xlu1 %v9468_v60 }
0x13a5   :  { %2768 = vperm.xlu1 %6953, %v2587_v56  }
0x13a7   :  { %6963 = vset.pattern.permute.xlu0 %v9463_v11 }
0x13a8   :  { %2699 = vperm.xlu0 %6963, %v2625_v38  }
0x13a9   :  { %6955 = vset.pattern.permute.xlu1 %v9469_v17 }
0x13aa   :  { %2807 = vperm.xlu1 %6955, %v2587_v56  }
0x13ac   :  { %2649 = vrot.lane.b32.xlu0 %v2647_v22, %s7421_s17 }
0x13ad   :  { %6966 = vset.pattern.permute.xlu0 %v9467_v39 }
0x13ae   :  { %6956 = vset.pattern.permute.xlu1 %v9470_v40  ;;  %v7241_v20 = vpop.eup %7240 }
0x13af   :  { %2842 = vperm.xlu1 %6956, %v2587_v56   ;;  %v2558_v32 = vmul.f32 0.6931472, %v7241_v20 }
0x13b0   :  { %2773 = vperm.xlu0 %6966, %v2625_v38  }
0x13b1   :  { %v2561_v0 = vadd.f32 %v2558_v32, %v2545_v24 }
0x13b3   :  { %6958 = vset.pattern.permute.xlu1 %v9471_v47 }
0x13b4   :  { %2881 = vperm.xlu1 %6958, %v2587_v56   ;;  %6969 = vset.pattern.permute.xlu0 %v9472_v9 }
0x13b5   :  { %2924 = vperm.xlu0 %6969, %v2587_v56  }
0x13b8   :  { %6959 = vset.pattern.permute.xlu1 %v9473_v54 }
0x13b9   :  { %2885 = vperm.xlu1 %6959, %v2587_v56   ;;  %6972 = vset.pattern.permute.xlu0 %v9470_v40 }
0x13ba   :  { %2851 = vperm.xlu0 %6972, %v2625_v38  }
0x13bd   :  { %6961 = vset.pattern.permute.xlu1 %v9419_v42 }
0x13be   :  { %2669 = vperm.xlu1 %6961, %v2625_v38   ;;  %6975 = vset.pattern.permute.xlu0 %v9473_v54 }
0x13bf   :  { %2894 = vperm.xlu0 %6975, %v2625_v38  }
0x13c2   :  { %6962 = vset.pattern.permute.xlu1 %v9415_v57 }
0x13c3   :  { %2695 = vperm.xlu1 %6962, %v2625_v38  }
0x13c7   :  { %6964 = vset.pattern.permute.xlu1 %v9465_v55 }
0x13c8   :  { %2734 = vperm.xlu1 %6964, %v2625_v38  }
0x13cc   :  { %6965 = vset.pattern.permute.xlu1 %v9413_v6 }
0x13cd   :  { %2738 = vperm.xlu1 %6965, %v2625_v38  }
0x13d1   :  { %6967 = vset.pattern.permute.xlu1 %v9468_v60 }
0x13d2   :  { %2777 = vperm.xlu1 %6967, %v2625_v38  }
0x13d6   :  { %6968 = vset.pattern.permute.xlu1 %v9474_v62 }
0x13d7   :  { %2920 = vperm.xlu1 %6968, %v2587_v56  }
0x13db   :  { %6970 = vset.pattern.permute.xlu1 %v9464_v51 }
0x13dc   :  { %2812 = vperm.xlu1 %6970, %v2625_v38  }
0x13e0   :  { %6971 = vset.pattern.permute.xlu1 %v9469_v17 }
0x13e1   :  { %2816 = vperm.xlu1 %6971, %v2625_v38  }
0x13e5   :  { %6973 = vset.pattern.permute.xlu1 %v9466_v34 }
0x13e6   :  { %2855 = vperm.xlu1 %6973, %v2625_v38  }
0x13ea   :  { %6974 = vset.pattern.permute.xlu1 %v9471_v47 }
0x13eb   :  { %2890 = vperm.xlu1 %6974, %v2625_v38  }
0x13ef   :  { %6976 = vset.pattern.permute.xlu1 %v9474_v62 }
0x13f0   :  { %2929 = vperm.xlu1 %6976, %v2625_v38  }
0x13f4   :  { %6977 = vset.pattern.permute.xlu1 %v9472_v9 }
0x13f5   :  { %2933 = vperm.xlu1 %6977, %v2625_v38  }
0x13f9   :  { %2993 = vrot.lane.b32.xlu1 %v2989_v31, %s7421_s17 }
0x1407   :  { %v2660_v63 = vpop.permute.xlu1 %2659  ;;  %v2656_v8 = vpop.permute.xlu0 %2655 }
0x140c   :  { %v2687_v27 = vpop.permute.xlu1 %2686  ;;  %v2730_v56 = vpop.permute.xlu0 %2729 }
0x1411   :  { %v2691_v48 = vpop.permute.xlu1 %2690  ;;  %v8368_v46 = vpop.permute.xlu0 %2803 }
0x1416   :  { %v2726_v38 = vpop.permute.xlu1 %2725  ;;  %v8370_v22 = vpop.permute.xlu0 %2846 }
0x1417   :  { %v2732_v17 = vsel %vm106_vm3, %v2726_v38, %v2730_v56 }
0x141a   :  { %v2643_v28 = vpop.permute.xlu0 %2642 }
0x141b   :  { %v8374_v59 = vsel %vm106_vm3, %v2561_v0, %v2643_v28  ;;  %v2765_v10 = vpop.permute.xlu1 %2764  ;;  %v2646_v28 = vmul.f32 %v2561_v0, %v8296_v14  ;;  %v2662_v0 = vsel %vm106_vm3, %v2656_v8, %v2660_v63 }
0x141c   :  { %v2711_v5 = vrot.slane %v8374_v59, %v7606_v49  ;;  %v2750_v35 = vrot.slane %v8374_v59, %v7774_v52  ;;  %v2789_v57 = vrot.slane %v8374_v59, %v7807_v37  ;;  %v2867_v8 = vrot.slane %v8374_v59, %v7905_v45 }
0x141e   :  { %v2712_v31 = vmul.f32 %v8381_v12, %v2711_v5  ;;  %v8384_v3 = vpop.permute.xlu0 %2665  ;;  %v2751_v32 = vmul.f32 %v8381_v12, %v2750_v35  ;;  %v2790_v1 = vmul.f32 %v8381_v12, %v2789_v57 }
0x1420   :  { %v2769_v21 = vpop.permute.xlu1 %2768  ;;  %v2713_v50 = vmul.f32 1.442695, %v2712_v31  ;;  %v2752_v5 = vmul.f32 1.442695, %v2751_v32  ;;  %v2791_v2 = vmul.f32 1.442695, %v2790_v1  ;;  %v2828_v32 = vrot.slane %v8374_v59, %v7812_v41 }
0x1422   :  { %7242 = vpow2.f32 %v2713_v50  ;;  %v2829_v9 = vmul.f32 %v8381_v12, %v2828_v32 }
0x1423   :  { %v8388_v53 = vpop.permute.xlu0 %2699  ;;  %7244 = vpow2.f32 %v2752_v5  ;;  %v2693_v5 = vsel %vm106_vm3, %v2687_v27, %v2691_v48 }
0x1424   :  { %7246 = vpow2.f32 %v2791_v2  ;;  %v2830_v1 = vmul.f32 1.442695, %v2829_v9  ;;  %v2868_v2 = vmul.f32 %v8381_v12, %v2867_v8  ;;  %v2906_v9 = vrot.slane %v8374_v59, %v7888_v25 }
0x1425   :  { %v2808_v29 = vpop.permute.xlu1 %2807 }
0x1426   :  { %7248 = vpow2.f32 %v2830_v1  ;;  %v2869_v32 = vmul.f32 1.442695, %v2868_v2  ;;  %v2907_v56 = vmul.f32 %v8381_v12, %v2906_v9  ;;  %v2810_v34 = vsel %vm106_vm3, %v8368_v46, %v2808_v29 }
0x1427   :  { %v2650_v24 = vpop.permute.xlu0 %2649 }
0x1428   :  { %v8399_v31 = vsel %vm106_vm3, %v2646_v28, %v2650_v24  ;;  %7250 = vpow2.f32 %v2869_v32 }
0x1429   :  { %v2676_v35 = vrot.slane %v8399_v31, %v7596_v44  ;;  %v2706_v24 = vrot.slane %v8399_v31, %v7606_v49 }
0x142a   :  { %v8390_v20 = vpop.permute.xlu1 %2842 }
0x142b   :  { %v8409_v62 = vmul.f32 %v2676_v35, %v2662_v0  ;;  %v2707_v54 = vmul.f32 %v2706_v24, %v2693_v5  ;;  %v2745_v35 = vrot.slane %v8399_v31, %v7774_v52  ;;  %v2784_v24 = vrot.slane %v8399_v31, %v7807_v37  ;;  %v2774_v32 = vpop.permute.xlu0 %2773 }
0x142c   :  { %v2849_v46 = vsel %vm106_vm3, %v8390_v20, %v8370_v22 }
0x142d   :  { %v2746_v27 = vmul.f32 %v2745_v35, %v2732_v17  ;;  %v2908_v17 = vmul.f32 1.442695, %v2907_v56 }
0x142f   :  { %v8394_v6 = vpop.permute.xlu1 %2881  ;;  %v7243_v42 = vpop.eup %7242  ;;  %7252 = vpow2.f32 %v2908_v17 }
0x1430   :  { %v2715_v57 = vmul.f32 %v7243_v42, %v8409_v62  ;;  %v7245_v0 = vpop.eup %7244 }
0x1432   :  { %v2716_v63 = vadd.f32 %v2715_v57, %v2707_v54  ;;  %v7247_v57 = vpop.eup %7246 }
0x1433   :  { %v7249_v35 = vpop.eup %7248 }
0x1434   :  { %v8402_v50 = vpop.permute.xlu1 %2885  ;;  %v2754_v40 = vmul.f32 %v7245_v0, %v2716_v63  ;;  %v2771_v0 = vsel %vm106_vm3, %v2765_v10, %v2769_v21  ;;  %v2945_v10 = vrot.slane %v8374_v59, %v7896_v30 }
0x1435   :  { %v2785_v38 = vmul.f32 %v2784_v24, %v2771_v0  ;;  %v2978_v24 = vsub.f32 0.0, %v8254_v16  ;;  %v2862_v0 = vrot.slane %v8399_v31, %v7905_v45  ;;  %v7251_v56 = vpop.eup %7250 }
0x1436   :  { %v2755_v48 = vadd.f32 %v2754_v40, %v2746_v27  ;;  %v2823_v40 = vrot.slane %v8399_v31, %v7812_v41 }
0x1437   :  { %v2863_v17 = vmul.f32 %v2862_v0, %v2849_v46 }
0x1438   :  { %v2793_v5 = vmul.f32 %v7247_v57, %v2755_v48  ;;  %v2824_v21 = vmul.f32 %v2823_v40, %v2810_v34  ;;  %v2925_v40 = vpop.permute.xlu0 %2924 }
0x1439   :  { %v2670_v28 = vpop.permute.xlu1 %2669 }
0x143a   :  { %v2794_v8 = vadd.f32 %v2793_v5, %v2785_v38  ;;  %v2946_v5 = vmul.f32 %v8381_v12, %v2945_v10  ;;  %v2981_v38 = vmul.f32 1.442695, %v2978_v24  ;;  %v2672_v12 = vsel %vm106_vm3, %v8384_v3, %v2670_v28 }
0x143b   :  { %v2901_v28 = vrot.slane %v8399_v31, %v7888_v25 }
0x143c   :  { %v2832_v27 = vmul.f32 %v7249_v35, %v2794_v8  ;;  %v2947_v59 = vmul.f32 1.442695, %v2946_v5  ;;  %7254 = vpow2.f32 %v2981_v38  ;;  %v2852_v24 = vpop.permute.xlu0 %2851  ;;  %v7253_v5 = vpop.eup %7252 }
0x143e   :  { %v2696_v47 = vpop.permute.xlu1 %2695  ;;  %v2833_v9 = vadd.f32 %v2832_v27, %v2824_v21  ;;  %7256 = vpow2.f32 %v2947_v59 }
0x143f   :  { %v2702_v34 = vsel %vm106_vm3, %v2696_v47, %v8388_v53  ;;  %v2678_v47 = vmul.f32 %v8409_v62, %v2672_v12 }
0x1440   :  { %v2871_v29 = vmul.f32 %v7251_v56, %v2833_v9  ;;  %v2717_v21 = vmul.f32 %v2716_v63, %v2702_v34  ;;  %v2895_v46 = vpop.permute.xlu0 %2894 }
0x1441   :  { %v2679_v56 = vrot.slane %v2678_v47, 4 }
0x1442   :  { %v2872_v22 = vadd.f32 %v2871_v29, %v2863_v17  ;;  %v2718_v63 = vrot.slane %v2717_v21, 4 }
0x1443   :  { %v2735_v42 = vpop.permute.xlu1 %2734 }
0x1444   :  { %v2719_v29 = vadd.f32 %v2718_v63, %v2717_v21 }
0x1446   :  { %v2720_v12 = vrot.slane %v2719_v29, 2 }
0x1448   :  { %v2739_v54 = vpop.permute.xlu1 %2738 }
0x1449   :  { %v2741_v35 = vsel %vm106_vm3, %v2735_v42, %v2739_v54  ;;  %v2888_v42 = vsel %vm106_vm3, %v8394_v6, %v8402_v50 }
0x144a   :  { %v2756_v20 = vmul.f32 %v2755_v48, %v2741_v35  ;;  %v2902_v0 = vmul.f32 %v2901_v28, %v2888_v42  ;;  %v7255_v42 = vpop.eup %7254 }
0x144c   :  { %v2757_v48 = vrot.slane %v2756_v20, 4 }
0x144d   :  { %v2778_v1 = vpop.permute.xlu1 %2777 }
0x144e   :  { %v2780_v10 = vsel %vm106_vm3, %v2774_v32, %v2778_v1  ;;  %v2910_v32 = vmul.f32 %v7253_v5, %v2872_v22 }
0x144f   :  { %v2795_v53 = vmul.f32 %v2794_v8, %v2780_v10  ;;  %v2940_v10 = vrot.slane %v8399_v31, %v7896_v30 }
0x1450   :  { %v2911_v6 = vadd.f32 %v2910_v32, %v2902_v0 }
0x1451   :  { %v2796_v62 = vrot.slane %v2795_v53, 4 }
0x1452   :  { %v2921_v2 = vpop.permute.xlu1 %2920 }
0x1453   :  { %v2797_v59 = vadd.f32 %v2796_v62, %v2795_v53  ;;  %v2927_v35 = vsel %vm106_vm3, %v2921_v2, %v2925_v40  ;;  %v2721_v53 = vadd.f32 %v2720_v12, %v2719_v29  ;;  %v2984_v2 = vadd.f32 1.0, %v7255_v42 }
0x1455   :  { %v2798_v28 = vrot.slane %v2797_v59, 2  ;;  %7258 = vrcp.f32 %v2984_v2 }
0x1457   :  { %v2813_v57 = vpop.permute.xlu1 %2812 }
0x145c   :  { %v2817_v27 = vpop.permute.xlu1 %2816 }
0x145d   :  { %v2819_v60 = vsel %vm106_vm3, %v2813_v57, %v2817_v27 }
0x145e   :  { %v2834_v54 = vmul.f32 %v2833_v9, %v2819_v60  ;;  %v2758_v60 = vadd.f32 %v2757_v48, %v2756_v20  ;;  %v2680_v9 = vadd.f32 %v2679_v56, %v2678_v47  ;;  %v2941_v20 = vmul.f32 %v2940_v10, %v2927_v35 }
0x145f   :  { %v2799_v56 = vadd.f32 %v2798_v28, %v2797_v59 }
0x1460   :  { %v2835_v8 = vrot.slane %v2834_v54, 4  ;;  %v2759_v5 = vrot.slane %v2758_v60, 2 }
0x1461   :  { %v2856_v3 = vpop.permute.xlu1 %2855  ;;  %v2800_v29 = vrot.slane %v2799_v56, 1 }
0x1462   :  { %v2858_v1 = vsel %vm106_vm3, %v2852_v24, %v2856_v3  ;;  %v2836_v27 = vadd.f32 %v2835_v8, %v2834_v54  ;;  %v2681_v3 = vrot.slane %v2680_v9, 2  ;;  %v2760_v40 = vadd.f32 %v2759_v5, %v2758_v60 }
0x1463   :  { %v2873_v57 = vmul.f32 %v2872_v22, %v2858_v1  ;;  %v7257_v1 = vpop.eup %7256  ;;  %v9475_v5 = vmov 0.0  }
0x1464   :  { %v2837_v47 = vrot.slane %v2836_v27, 2  ;;  %v2949_v48 = vmul.f32 %v7257_v1, %v2911_v6  ;;  %v2682_v0 = vadd.f32 %v2681_v3, %v2680_v9  ;;  %v7095_v1 = vld [vmem:[%s9360_s13 + $0x20] sm:$0xff]  }
0x1465   :  { %v2874_v38 = vrot.slane %v2873_v57, 4 }
0x1466   :  { %v2891_v34 = vpop.permute.xlu1 %2890  ;;  %v2838_v62 = vadd.f32 %v2837_v47, %v2836_v27  ;;  %v2683_v35 = vrot.slane %v2682_v0, 1 }
0x1467   :  { %v2897_v50 = vsel %vm106_vm3, %v2891_v34, %v2895_v46  ;;  %v2875_v22 = vadd.f32 %v2874_v38, %v2873_v57  ;;  %v2950_v57 = vadd.f32 %v2949_v48, %v2941_v20  ;;  %v2722_v46 = vrot.slane %v2721_v53, 1 }
0x1468   :  { %v2912_v17 = vmul.f32 %v2911_v6, %v2897_v50  ;;  %v2761_v50 = vrot.slane %v2760_v40, 1  ;;  %v7094_v6 = vld [vmem:[%s9360_s13 + $0x28] sm:$0xff]   ;;  %v2839_v60 = vrot.slane %v2838_v62, 1 }
0x1469   :  { %v2876_v32 = vrot.slane %v2875_v22, 2  ;;  %v2723_v9 = vadd.f32 %v2722_v46, %v2721_v53  ;;  %6673 = vmatpush3.bf16.msra.mxu0 %v7094_v6 }
0x146a   :  { %v2913_v24 = vrot.slane %v2912_v17, 4  ;;  %v2762_v27 = vadd.f32 %v2761_v50, %v2760_v40  ;;  %6674 = vmatprep.subr.bf16.mxu0 %v9475_v5  ;;  %v2840_v3 = vadd.f32 %v2839_v60, %v2838_v62  ;;  %v2972_v62 = vrot.slane %v8225_v58, %v7807_v37 }
0x146b   :  { %v2930_v21 = vpop.permute.xlu1 %2929  ;;  %v2877_v38 = vadd.f32 %v2876_v32, %v2875_v22  ;;  %v2684_v22 = vadd.f32 %v2683_v35, %v2682_v0 }
0x146c   :  { %v2914_v63 = vadd.f32 %v2913_v24, %v2912_v17 }
0x146d   :  { %v2878_v59 = vrot.slane %v2877_v38, 1  ;;  %v2958_v28 = vsel %vm9435_vm5, %v2684_v22, %v2723_v9  ;;  %6675 = vmatpush3.bf16.msra.mxu0 %v7095_v1 }
0x146e   :  { %v2915_v54 = vrot.slane %v2914_v63, 2  ;;  %v2959_v47 = vsel %vm1670_vm9, %v2958_v28, %v2762_v27 }
0x146f   :  { %v2879_v20 = vadd.f32 %v2878_v59, %v2877_v38 }
0x1470   :  { %v2934_v31 = vpop.permute.xlu1 %2933  ;;  %v2916_v17 = vadd.f32 %v2915_v54, %v2914_v63 }
0x1471   :  { %v2936_v8 = vsel %vm106_vm3, %v2930_v21, %v2934_v31  ;;  %v2801_v21 = vadd.f32 %v2800_v29, %v2799_v56  ;;  %v7259_v56 = vpop.eup %7258 }
0x1472   :  { %v2951_v34 = vmul.f32 %v2950_v57, %v2936_v8  ;;  %v2917_v24 = vrot.slane %v2916_v17, 1  ;;  %v2990_v57 = vmul.f32 %v7259_v56, %v8254_v16  ;;  %v2973_v8 = vmul.f32 %v2972_v62, %v8296_v14  ;;  %v7389_v16 = vld [vmem:[%s9350_s3] sm:$0xff] }
0x1473   :  { %v2960_v32 = vsel %vm9434_vm11, %v2959_v47, %v2801_v21  ;;  %v1321_v58 = vrot.slane %v7389_v16, %v7905_v45 }
0x1474   :  { %v2952_v12 = vrot.slane %v2951_v34, 4  ;;  %v2918_v53 = vadd.f32 %v2917_v24, %v2916_v17  ;;  %v2961_v2 = vsel %vm9433_vm7, %v2960_v32, %v2840_v3  ;;  %v2994_v17 = vpop.permute.xlu1 %2993 }
0x1475   :  { %v2962_v54 = vsel %vm9432_vm6, %v2961_v2, %v2879_v20  ;;  %v1405_v14 = vadd.f32 %v7986_v23, %v1321_v58  ;;  %v7096_v2 = vld [vmem:[%s9351_s4 + $0x18] sm:$0xff]  }
0x1476   :  { %v2953_v10 = vadd.f32 %v2952_v12, %v2951_v34  ;;  %v2963_v0 = vsel %vm9431_vm2, %v2962_v54, %v2918_v53  ;;  %v2974_v34 = vmul.f32 %v2972_v62, %v8298_v18  ;;  %v1408_v18 = vadd.f32 %v7988_v26, %v1321_v58  ;;  %6681 = vmatpush3.bf16.msra.mxu1 %v7096_v2 }
0x1477   :  { %v1411_v9 = vadd.f32 %v1405_v14, %v7779_v61  ;;  %6682 = vmatprep.subr.bf16.mxu1 %v9475_v5 }
0x1478   :  { %v2954_v42 = vrot.slane %v2953_v10, 2  ;;  %v1412_v22 = vadd.f32 %v1408_v18, %v7784_v4 }
0x147a   :  { %v2955_v63 = vadd.f32 %v2954_v42, %v2953_v10 }
0x147c   :  { %v2956_v48 = vrot.slane %v2955_v63, 1 }
0x147e   :  { %v2957_v40 = vadd.f32 %v2956_v48, %v2955_v63 }
0x1480   :  { %v2964_v31 = vsel %vm9476_vm14, %v2963_v0, %v2957_v40  ;;  %vm9480_vm14 = vmmov %vm9478_vm1  ;;  %v7097_v40 = vld [vmem:[%s9351_s4 + $0x10] sm:$0xff]   ;;  %s9504_s4 = smov 48  }
0x1481   :  { %2966 = vrot.lane.b32.xlu0 %v2964_v31, %s7421_s17  ;;  %v2975_v38 = vadd.f32 %v2973_v8, %v2964_v31  ;;  %6683 = vmatpush3.bf16.msra.mxu1 %v7097_v40  ;;  %v8514_v8 = vld [vmem:[%s9350_s3 + $0x8] sm:$0xff] }
0x1483   :  { %v2999_v29 = vmul.f32 %v2994_v17, %v2975_v38 }
0x1485   :  { %2995 = vrot.lane.b32.xlu0 %v2990_v57, %s7421_s17 }
0x14f3   :  { %v2967_v46 = vpop.permute.xlu0 %2966 }
0x14f4   :  { %v2976_v50 = vadd.f32 %v2974_v34, %v2967_v46  ;;  %v3139_v34 = vrot.slane %v8514_v8, %v7596_v44 }
0x14f7   :  { %v2996_v35 = vpop.permute.xlu0 %2995 }
0x14f8   :  { %v3000_v12 = vmul.f32 %v2996_v35, %v2976_v50 }
0x14fa   :  { %v3001_v6 = vpack.c.bf16 %v3000_v12, %v2999_v29  ;;  %v3145_v29 = vrot.slane %v8514_v8, %v7606_v49 }
0x14fc   :  { %6677 = vmatmul.mubr.msk.bf16.vlgmr.msra.gmra.mxu0 %vm106_vm3, %v3001_v6 }
0x15bc   :  { %v3063_v60 = vpop.f32.mrf.mxu0 }
0x15bd   :  { %v3070_v59 = vadd.f32 %v3063_v60, %v8203_v7 }
0x15be   :  { %v6678_v10 = vpop.f32.mrf.mxu0 }
0x15bf   :  { %v3072_v27 = vadd.f32 %v3070_v59, %v1411_v9 }
0x15c0   :  { %v3066_v24 = vpop.f32.mrf.mxu0 }
0x15c1   :  { %v8491_v21 = vmul.f32 0.5, %v3072_v27  ;;  %v3071_v42 = vadd.f32 %v3066_v24, %v8208_v36 }
0x15c2   :  { %v6679_v3 = vpop.f32.mrf.mxu0 }
0x15c3   :  { %v3073_v28 = vadd.f32 %v3071_v42, %v1412_v22  ;;  %v3110_v23 = vsel %vm9477_vm4, %v8491_v21, 0.0  ;;  %vm9481_vm4 = vmmov %vm9478_vm1 }
0x15c4   :  { %3111 = vadd.xlane.f32.xlu1 %v3110_v23 }
0x15c5   :  { %v8496_v61 = vmul.f32 0.5, %v3073_v28 }
0x15c7   :  { %v3113_v26 = vsel %vm9478_vm1, %v8496_v61, 0.0  ;;  %vm9482_vm1 = vcmask 64512  }
0x15c8   :  { %3114 = vadd.xlane.f32.xlu0 %v3113_v26  ;;  %vm9486_vm2 = vmmov %vm9482_vm1 }
0x15c9   :  { %vm9487_vm6 = vmmov %vm9482_vm1 }
0x15ca   :  { %vm9488_vm7 = vmmov %vm9482_vm1 }
0x15cb   :  { %vm9489_vm11 = vmmov %vm9482_vm1 }
0x15cc   :  { %vm9497_vm5 = vmmov %vm9482_vm1 }
0x164d   :  { %v3112_v7 = vpop.xlane.xlu1 %3111 }
0x164e   :  { %v3116_v20 = vmul.f32 0.03125, %v3112_v7 }
0x1650   :  { %v3118_v4 = vsub.f32 %v8491_v21, %v3116_v20 }
0x1651   :  { %v3115_v63 = vpop.xlane.xlu0 %3114 }
0x1652   :  { %v3117_v1 = vmul.f32 0.03125, %v3115_v63  ;;  %v3120_v47 = vmul.f32 %v3118_v4, %v3118_v4 }
0x1654   :  { %v3119_v36 = vsub.f32 %v8496_v61, %v3117_v1  ;;  %v3122_v53 = vsel %vm9479_vm13, %v3120_v47, 0.0  ;;  %vm9483_vm13 = vmmov %vm9482_vm1 }
0x1655   :  { %3123 = vadd.xlane.f32.xlu0 %v3122_v53 }
0x1656   :  { %v3121_v32 = vmul.f32 %v3119_v36, %v3119_v36 }
0x1658   :  { %v3125_v48 = vsel %vm9480_vm14, %v3121_v32, 0.0  ;;  %vm9484_vm14 = vmmov %vm9482_vm1 }
0x1659   :  { %3126 = vadd.xlane.f32.xlu1 %v3125_v48 }
0x16de   :  { %v3124_v54 = vpop.xlane.xlu0 %3123 }
0x16df   :  { %v3128_v0 = vmul.f32 0.03125, %v3124_v54 }
0x16e1   :  { %v3130_v56 = vadd.f32 1e-05, %v3128_v0 }
0x16e2   :  { %v3127_v31 = vpop.xlane.xlu1 %3126 }
0x16e3   :  { %7260 = vrsqrt.f32 %v3130_v56  ;;  %v3129_v57 = vmul.f32 0.03125, %v3127_v31 }
0x16e5   :  { %v3131_v62 = vadd.f32 1e-05, %v3129_v57 }
0x16e7   :  { %7262 = vrsqrt.f32 %v3131_v62 }
0x16f0   :  { %v7261_v46 = vpop.eup %7260 }
0x16f1   :  { %v3134_v38 = vmul.f32 %v7261_v46, %v3118_v4 }
0x16f3   :  { %v3140_v35 = vmul.f32 %v3139_v34, %v3134_v38 }
0x16f4   :  { %v7263_v50 = vpop.eup %7262 }
0x16f5   :  { %v3135_v17 = vmul.f32 %v7263_v50, %v3119_v36  ;;  %v3146_v6 = vadd.f32 %v3145_v29, %v3140_v35 }
0x16f7   :  { %v3141_v12 = vmul.f32 %v3139_v34, %v3135_v17 }
0x16f9   :  { %v3147_v16 = vadd.f32 %v3145_v29, %v3141_v12 }
0x16fb   :  { %v3148_v58 = vpack.c.bf16 %v3147_v16, %v3146_v6 }
0x16fd   :  { %6685 = vmatmul.mubr.msk.bf16.vlgmr.msra.gmra.mxu1 %vm9481_vm4, %v3148_v58  ;;  %vm9485_vm4 = vmmov %vm9482_vm1 }
0x17bd   :  { %v8521_v14 = vpop.f32.mrf.mxu1 }
0x17be   :  { %6692 = vmatprep.mubr.msk.f32.mxu1 %vm9482_vm1, %v8521_v14 }
0x17bf   :  { %v6686_v60 = vpop.f32.mrf.mxu1 }
0x17c1   :  { %v8525_v9 = vpop.f32.mrf.mxu1 }
0x17c2   :  { %3413 = vrot.lane.b32.xlu1 %v8525_v9, %s7418_s29  ;;  %3209 = vrot.lane.b32.xlu0 %v8525_v9, %s7417_s28 }
0x17c3   :  { %v6687_v18 = vpop.f32.mrf.mxu1 }
0x17c6   :  { %3207 = vrot.lane.b32.xlu1 %v8521_v14, %s7417_s28  ;;  %3411 = vrot.lane.b32.xlu0 %v8521_v14, %s7418_s29  ;;  %s9512_s28 = smov 104   ;;  %s9527_s29 = smov 40  }
0x17ca   :  { %3407 = vrot.lane.b32.xlu1 %v8521_v14, %s7416_s27  ;;  %3617 = vrot.lane.b32.xlu0 %v8525_v9, %s7419_s30 }
0x17ce   :  { %3409 = vrot.lane.b32.xlu1 %v8525_v9, %s7416_s27  ;;  %3615 = vrot.lane.b32.xlu0 %v8521_v14, %s7419_s30  ;;  %s9511_s27 = smov 72   ;;  %s9528_s30 = smov 8  }
0x17d2   :  { %3611 = vrot.lane.b32.xlu1 %v8521_v14, %s7420_s0  ;;  %3613 = vrot.lane.b32.xlu0 %v8525_v9, %s7420_s0  ;;  %s9529_s0 = smov 16  }
0x1834   :  { %v3414_v59 = vpop.permute.xlu1 %3413  ;;  %v3210_v10 = vpop.permute.xlu0 %3209 }
0x1835   :  { %6688 = vmatprep.subr.msk.mxu1 %vm9483_vm13, %v3210_v10  ;;  %6702 = vmatprep.subr.msk.mxu0 %vm9484_vm14, %v3414_v59  ;;  %vm9490_vm13 = vmmov %vm9482_vm1 }
0x1836   :  { %6689 = vmatpush3.xpose.msk.msra.mxu1 %vm9485_vm4, %v3210_v10  ;;  %6703 = vmatpush3.xpose.msk.msra.mxu0 %vm9482_vm1, %v3414_v59  ;;  %vm9491_vm14 = vmmov %vm9482_vm1 }
0x1837   :  { %vm9492_vm4 = vmmov %vm9482_vm1 }
0x1838   :  { %v3208_v27 = vpop.permute.xlu1 %3207  ;;  %v3412_v24 = vpop.permute.xlu0 %3411 }
0x1839   :  { %6690 = vmatprep.subr.msk.mxu1 %vm9486_vm2, %v3208_v27  ;;  %6704 = vmatprep.subr.msk.mxu0 %vm9487_vm6, %v3412_v24  ;;  %vm9493_vm2 = vmmov %vm9482_vm1 }
0x183a   :  { %6691 = vmatpush3.xpose.msk.msra.mxu1 %vm9488_vm7, %v3208_v27  ;;  %6705 = vmatpush3.xpose.msk.msra.mxu0 %vm9489_vm11, %v3412_v24  ;;  %vm9494_vm6 = vmmov %vm9482_vm1 }
0x183b   :  { %vm9495_vm7 = vmmov %vm9482_vm1 }
0x183c   :  { %v3408_v22 = vpop.permute.xlu1 %3407  ;;  %v3618_v42 = vpop.permute.xlu0 %3617  ;;  %vm9496_vm11 = vmmov %vm9482_vm1 }
0x183d   :  { %6693 = vmatmul.mubr.msk.f32.vlgmr.msra.gmra.mxu1 %vm9490_vm13, %v8525_v9  ;;  %6706 = vmatprep.mubr.msk.f32.mxu0 %vm9491_vm14, %v3408_v22  ;;  %vm9498_vm13 = vcmask 130048  }
0x183e   :  { %6716 = vmatprep.subr.msk.mxu0 %vm9492_vm4, %v3618_v42  ;;  %vm9499_vm14 = vmmov %vm9498_vm13 }
0x1840   :  { %v3410_v3 = vpop.permute.xlu1 %3409  ;;  %v3616_v28 = vpop.permute.xlu0 %3615 }
0x1841   :  { %6707 = vmatmul.mubr.msk.f32.vlgmr.msra.gmra.mxu0 %vm9482_vm1, %v3410_v3 }
0x1842   :  { %6717 = vmatpush3.xpose.msk.msra.mxu0 %vm9493_vm2, %v3618_v42 }
0x1843   :  { %6718 = vmatprep.subr.msk.mxu0 %vm9494_vm6, %v3616_v28 }
0x1844   :  { %v3612_v23 = vpop.permute.xlu1 %3611  ;;  %v3614_v26 = vpop.permute.xlu0 %3613 }
0x1845   :  { %6720 = vmatprep.mubr.msk.f32.mxu0 %vm9495_vm7, %v3612_v23 }
0x1846   :  { %6719 = vmatpush3.xpose.msk.msra.mxu0 %vm9496_vm11, %v3616_v28 }
0x1849   :  { %6721 = vmatmul.mubr.msk.f32.vlgmr.msra.gmra.mxu0 %vm9497_vm5, %v3614_v26  ;;  %vm9500_vm5 = vmmov %vm9498_vm13 }
0x184a   :  { %vm9501_vm4 = vmmov %vm9500_vm5 }
0x184b   :  { %vm9502_vm1 = vmmov %vm9501_vm4 }
0x184c   :  { %vm9503_vm2 = vmmov %vm9502_vm1 }
0x184d   :  { %vm9505_vm6 = vmmov %vm9502_vm1 }
0x184e   :  { %vm9506_vm7 = vmmov %vm9502_vm1 }
0x184f   :  { %vm9507_vm11 = vmmov %vm9502_vm1 }
0x18fd   :  { %v6694_v7 = vpop.f32.mrf.mxu1 }
0x18fe   :  { %v3295_v20 = vmul.f32 0.35355338, %v6694_v7 }
0x18ff   :  { %v3285_v4 = vpop.f32.mrf.mxu1 }
0x1900   :  { %v3297_v63 = vsel %vm7664_vm8, %v3295_v20, -1e+30  ;;  %v3294_v1 = vmul.f32 0.35355338, %v3285_v4 }
0x1901   :  { %v6708_v47 = vpop.f32.mrf.mxu0  ;;  %v3301_v36 = vsel %vm9498_vm13, %v3297_v63, -inf  ;;  %vm9508_vm13 = vmmov %vm9502_vm1 }
0x1902   :  { %v3296_v53 = vsel %vm7670_vm10, %v3294_v1, -1e+30  ;;  %v3499_v32 = vmul.f32 0.35355338, %v6708_v47  ;;  %3302 = vmax.xlane.f32.xlu0 %v3301_v36 }
0x1903   :  { %v3489_v48 = vpop.f32.mrf.mxu0  ;;  %v3298_v2 = vsel %vm9499_vm14, %v3296_v53, -inf  ;;  %vm9509_vm14 = vmmov %vm9502_vm1 }
0x1904   :  { %v3501_v40 = vsel %vm7664_vm8, %v3499_v32, -1e+30  ;;  %v3498_v54 = vmul.f32 0.35355338, %v3489_v48  ;;  %3299 = vmax.xlane.f32.xlu1 %v3298_v2 }
0x1905   :  { %v3505_v56 = vsel %vm9500_vm5, %v3501_v40, -inf  ;;  %vm9510_vm5 = vmmov %vm9502_vm1 }
0x1906   :  { %v3500_v0 = vsel %vm7670_vm10, %v3498_v54, -1e+30 }
0x1907   :  { %v3502_v31 = vsel %vm9501_vm4, %v3500_v0, -inf  ;;  %vm9513_vm4 = vmmov %vm9502_vm1 }
0x1908   :  { %3506 = vmax.xlane.f32.xlu1 %v3505_v56  ;;  %3503 = vmax.xlane.f32.xlu0 %v3502_v31 }
0x1909   :  { %v6722_v57 = vpop.f32.mrf.mxu0 }
0x190a   :  { %v3703_v62 = vmul.f32 0.35355338, %v6722_v57 }
0x190b   :  { %v3693_v46 = vpop.f32.mrf.mxu0 }
0x190c   :  { %v3705_v38 = vsel %vm7664_vm8, %v3703_v62, -1e+30  ;;  %v3702_v34 = vmul.f32 0.35355338, %v3693_v46 }
0x190d   :  { %v3709_v50 = vsel %vm9502_vm1, %v3705_v38, -inf }
0x190e   :  { %v3704_v17 = vsel %vm7670_vm10, %v3702_v34, -1e+30  ;;  %3710 = vmax.xlane.f32.xlu1 %v3709_v50 }
0x190f   :  { %v3706_v35 = vsel %vm9503_vm2, %v3704_v17, -inf  ;;  %vm9514_vm2 = vmmov %vm9502_vm1 }
0x1910   :  { %3707 = vmax.xlane.f32.xlu0 %v3706_v35 }
0x191f   :  { %3320 = vrot.lane.b32.xlu1 %v8521_v14, %s7421_s17 }
0x1923   :  { %3526 = vrot.lane.b32.xlu1 %v8525_v9, %s7422_s18 }
0x1926   :  { %3322 = vrot.lane.b32.xlu0 %v8525_v9, %s7421_s17 }
0x1927   :  { %3730 = vrot.lane.b32.xlu1 %v8525_v9, %s9504_s4 }
0x192a   :  { %3524 = vrot.lane.b32.xlu0 %v8521_v14, %s7422_s18 }
0x198b   :  { %v3303_v29 = vpop.xlane.xlu0 %3302 }
0x198c   :  { %v3305_v12 = vsub.f32 %v3297_v63, %v3303_v29 }
0x198d   :  { %v3300_v6 = vpop.xlane.xlu1 %3299 }
0x198e   :  { %v3308_v16 = vmul.f32 1.442695, %v3305_v12  ;;  %v3304_v58 = vsub.f32 %v3296_v53, %v3300_v6 }
0x1990   :  { %7264 = vpow2.f32 %v3308_v16  ;;  %v3306_v60 = vmul.f32 1.442695, %v3304_v58 }
0x1991   :  { %v3507_v18 = vpop.xlane.xlu1 %3506  ;;  %v3504_v59 = vpop.xlane.xlu0 %3503 }
0x1992   :  { %7266 = vpow2.f32 %v3306_v60  ;;  %v3509_v10 = vsub.f32 %v3501_v40, %v3507_v18  ;;  %v3508_v27 = vsub.f32 %v3500_v0, %v3504_v59 }
0x1994   :  { %v3512_v24 = vmul.f32 1.442695, %v3509_v10  ;;  %v3510_v22 = vmul.f32 1.442695, %v3508_v27 }
0x1996   :  { %7268 = vpow2.f32 %v3512_v24 }
0x1997   :  { %7270 = vpow2.f32 %v3510_v22  ;;  %v3711_v42 = vpop.xlane.xlu1 %3710 }
0x1998   :  { %v3713_v3 = vsub.f32 %v3705_v38, %v3711_v42 }
0x1999   :  { %v3708_v28 = vpop.xlane.xlu0 %3707 }
0x199a   :  { %v3716_v23 = vmul.f32 1.442695, %v3713_v3  ;;  %v3712_v26 = vsub.f32 %v3704_v17, %v3708_v28 }
0x199b   :  { %v3321_v7 = vpop.permute.xlu1 %3320 }
0x199c   :  { %7272 = vpow2.f32 %v3716_v23  ;;  %v3714_v20 = vmul.f32 1.442695, %v3712_v26 }
0x199d   :  { %v7265_v4 = vpop.eup %7264  ;;  %v3323_v63 = vpop.permute.xlu0 %3322 }
0x199e   :  { %7274 = vpow2.f32 %v3714_v20  ;;  %6695 = vmatprep.subr.mxu1 %v3323_v63  ;;  %v3313_v1 = vsel %vm9505_vm6, %v7265_v4, 0.0  ;;  %vm9515_vm6 = vmmov %vm9502_vm1 }
0x199f   :  { %v7267_v47 = vpop.eup %7266  ;;  %6696 = vmatpush3.msra.mxu1 %v3323_v63  ;;  %3314 = vadd.xlane.f32.xlu1 %v3313_v1  ;;  %v3527_v53 = vpop.permute.xlu1 %3526 }
0x19a0   :  { %6697 = vmatprep.subr.mxu1 %v3321_v7  ;;  %v3310_v36 = vsel %vm9506_vm7, %v7267_v47, 0.0  ;;  %vm9516_vm7 = vcmask 64512  }
0x19a1   :  { %6698 = vmatpush3.msra.mxu1 %v3321_v7  ;;  %3311 = vadd.xlane.f32.xlu0 %v3310_v36  ;;  %v3525_v62 = vpop.permute.xlu0 %3524 }
0x19a2   :  { %6709 = vmatprep.subr.mxu1 %v3527_v53 }
0x19a3   :  { %v7269_v32 = vpop.eup %7268  ;;  %v3731_v57 = vpop.permute.xlu1 %3730 }
0x19a4   :  { %v7271_v48 = vpop.eup %7270  ;;  %v3517_v2 = vsel %vm9507_vm11, %v7269_v32, 0.0  ;;  %vm9517_vm11 = vmmov %vm9502_vm1 }
0x19a5   :  { %3518 = vadd.xlane.f32.xlu1 %v3517_v2  ;;  %v3514_v40 = vsel %vm9508_vm13, %v7271_v48, 0.0  ;;  %vm9518_vm13 = vmmov %vm9502_vm1 }
0x19a6   :  { %3515 = vadd.xlane.f32.xlu0 %v3514_v40 }
0x19a9   :  { %v7273_v54 = vpop.eup %7272 }
0x19aa   :  { %v3721_v0 = vsel %vm9509_vm14, %v7273_v54, 0.0  ;;  %vm9519_vm14 = vmmov %vm9516_vm7 }
0x19ab   :  { %v7275_v56 = vpop.eup %7274  ;;  %3722 = vadd.xlane.f32.xlu1 %v3721_v0 }
0x19ac   :  { %v3718_v31 = vsel %vm9510_vm5, %v7275_v56, 0.0  ;;  %vm9520_vm5 = vmmov %vm9516_vm7 }
0x19ad   :  { %3719 = vadd.xlane.f32.xlu0 %v3718_v31 }
0x19bc   :  { %3821 = vrot.lane.b32.xlu1 %v8525_v9, %s9511_s27 }
0x19c0   :  { %3815 = vrot.lane.b32.xlu1 %v8521_v14, %s9512_s28 }
0x19c3   :  { %3728 = vrot.lane.b32.xlu0 %v8521_v14, %s9504_s4 }
0x19c7   :  { %3819 = vrot.lane.b32.xlu0 %v8521_v14, %s9511_s27 }
0x19cb   :  { %3817 = vrot.lane.b32.xlu0 %v8525_v9, %s9512_s28 }
0x1a28   :  { %v3315_v46 = vpop.xlane.xlu1 %3314 }
0x1a29   :  { %7276 = vrcp.f32 %v3315_v46 }
0x1a2a   :  { %v3312_v38 = vpop.xlane.xlu0 %3311 }
0x1a2b   :  { %7278 = vrcp.f32 %v3312_v38 }
0x1a2e   :  { %v3519_v34 = vpop.xlane.xlu1 %3518 }
0x1a2f   :  { %7280 = vrcp.f32 %v3519_v34  ;;  %v3516_v50 = vpop.xlane.xlu0 %3515 }
0x1a30   :  { %7282 = vrcp.f32 %v3516_v50 }
0x1a34   :  { %v3723_v17 = vpop.xlane.xlu1 %3722 }
0x1a35   :  { %7284 = vrcp.f32 %v3723_v17 }
0x1a36   :  { %v3720_v35 = vpop.xlane.xlu0 %3719  ;;  %v7277_v29 = vpop.eup %7276 }
0x1a37   :  { %7286 = vrcp.f32 %v3720_v35  ;;  %v3319_v16 = vmul.f32 %v7277_v29, %v7265_v4 }
0x1a38   :  { %v7279_v12 = vpop.eup %7278  ;;  %v3822_v10 = vpop.permute.xlu1 %3821 }
0x1a39   :  { %v3318_v6 = vmul.f32 %v7279_v12, %v7267_v47 }
0x1a3a   :  { %v3729_v27 = vpop.permute.xlu0 %3728 }
0x1a3b   :  { %6699 = vmatprep.mubr.msk.f32.mxu1 %vm9513_vm4, %v3318_v6  ;;  %vm9521_vm4 = vmmov %vm9520_vm5 }
0x1a3c   :  { %v7281_v58 = vpop.eup %7280  ;;  %6700 = vmatmul.mubr.msk.f32.vlgmr.msra.gmra.mxu1 %vm9502_vm1, %v3319_v16  ;;  %v3816_v28 = vpop.permute.xlu1 %3815  ;;  %vm9522_vm1 = vmmov %vm9521_vm4 }
0x1a3d   :  { %v7283_v60 = vpop.eup %7282  ;;  %6710 = vmatpush3.msra.mxu1 %v3527_v53  ;;  %v3523_v18 = vmul.f32 %v7281_v58, %v7269_v32 }
0x1a3e   :  { %6711 = vmatprep.subr.mxu1 %v3525_v62  ;;  %v3522_v59 = vmul.f32 %v7283_v60, %v7271_v48  ;;  %v3820_v23 = vpop.permute.xlu0 %3819 }
0x1a3f   :  { %6712 = vmatpush3.msra.mxu1 %v3525_v62 }
0x1a40   :  { %6713 = vmatprep.mubr.msk.f32.mxu1 %vm9514_vm2, %v3522_v59  ;;  %6723 = vmatprep.subr.mxu1 %v3731_v57  ;;  %vm9523_vm2 = vmmov %vm9522_vm1  ;;  %v7099_v59 = vld [vmem:[%s9352_s5 + $0x10] sm:$0xff]  }
0x1a41   :  { %6714 = vmatmul.mubr.msk.f32.vlgmr.msra.gmra.mxu1 %vm9515_vm6, %v3523_v18 }
0x1a42   :  { %6724 = vmatpush3.msra.mxu1 %v3731_v57  ;;  %v7285_v24 = vpop.eup %7284  ;;  %v3818_v26 = vpop.permute.xlu0 %3817 }
0x1a43   :  { %6725 = vmatprep.subr.mxu1 %v3729_v27  ;;  %v3727_v3 = vmul.f32 %v7285_v24, %v7273_v54 }
0x1a44   :  { %v7287_v22 = vpop.eup %7286  ;;  %6726 = vmatpush3.msra.mxu1 %v3729_v27 }
0x1a45   :  { %6730 = vmatprep.subr.msk.mxu1 %vm9516_vm7, %v3822_v10  ;;  %v3726_v42 = vmul.f32 %v7287_v22, %v7275_v56  ;;  %vm9524_vm7 = vmmov %vm9515_vm6 }
0x1a47   :  { %6727 = vmatprep.mubr.msk.f32.mxu1 %vm9517_vm11, %v3726_v42  ;;  %vm9526_vm11 = vmmov %vm9515_vm6 }
0x1a48   :  { %6728 = vmatmul.mubr.msk.f32.vlgmr.msra.gmra.mxu1 %vm9518_vm13, %v3727_v3  ;;  %vm9531_vm13 = vmmov %vm9515_vm6 }
0x1a49   :  { %6731 = vmatpush3.xpose.msk.msra.mxu1 %vm9519_vm14, %v3822_v10  ;;  %6734 = vmatprep.mubr.msk.f32.mxu1 %vm9520_vm5, %v3816_v28  ;;  %vm9533_vm14 = vmmov %vm9522_vm1 }
0x1a4a   :  { %6732 = vmatprep.subr.msk.mxu1 %vm9521_vm4, %v3820_v23  ;;  %vm9534_vm5 = vmmov %vm9522_vm1 }
0x1a4b   :  { %vm9535_vm4 = vmmov %vm9515_vm6 }
0x1a4d   :  { %6733 = vmatpush3.xpose.msk.msra.mxu1 %vm9522_vm1, %v3820_v23  ;;  %vm9536_vm1 = vmmov %vm9535_vm4 }
0x1a4e   :  { %6752 = vmatprep.subr.bf16.mxu1 %v9475_v5 }
0x1a50   :  { %6735 = vmatmul.mubr.msk.f32.vlgmr.msra.gmra.mxu1 %vm9523_vm2, %v3818_v26  ;;  %vm9537_vm2 = vcmask 195584  }
0x1a51   :  { %6756 = vmatprep.mubr.msk.bf16.mxu1 %vm7415_vm0, %v9475_v5 }
0x1afc   :  { %v8624_v7 = vpop.f32.mrf.mxu1 }
0x1afe   :  { %v8626_v20 = vpop.f32.mrf.mxu1 }
0x1b01   :  { %v6715_v4 = vpop.f32.mrf.mxu1 }
0x1b03   :  { %v3602_v63 = vpop.f32.mrf.mxu1 }
0x1b04   :  { %v6978_v1 = vpack.i.bf16 %v6715_v4, %v3602_v63 }
0x1b08   :  { %v6729_v47 = vpop.f32.mrf.mxu1 }
0x1b0a   :  { %v3806_v36 = vpop.f32.mrf.mxu1 }
0x1b0b   :  { %v6983_v53 = vpack.i.bf16 %v6729_v47, %v3806_v36 }
0x1b10   :  { %v6736_v32 = vpop.f32.mrf.mxu1 }
0x1b11   :  { %v3907_v48 = vmul.f32 0.35355338, %v6736_v32 }
0x1b12   :  { %v3897_v2 = vpop.f32.mrf.mxu1 }
0x1b13   :  { %v3909_v40 = vsel %vm7664_vm8, %v3907_v48, -1e+30  ;;  %v3906_v54 = vmul.f32 0.35355338, %v3897_v2  ;;  %vm9525_vm8 = vmmov %vm9515_vm6 }
0x1b14   :  { %v3913_v0 = vsel %vm9515_vm6, %v3909_v40, -inf }
0x1b15   :  { %v3908_v56 = vsel %vm7670_vm10, %v3906_v54, -1e+30  ;;  %3914 = vmax.xlane.f32.xlu0 %v3913_v0  ;;  %vm9530_vm10 = vmmov %vm9515_vm6 }
0x1b16   :  { %v3910_v31 = vsel %vm9524_vm7, %v3908_v56, -inf  ;;  %vm9538_vm6 = vmmov %vm9537_vm2  ;;  %vm9539_vm7 = vcmask 261120  }
0x1b17   :  { %3911 = vmax.xlane.f32.xlu1 %v3910_v31 }
0x1b9e   :  { %v3915_v57 = vpop.xlane.xlu0 %3914 }
0x1b9f   :  { %v3917_v62 = vsub.f32 %v3909_v40, %v3915_v57 }
0x1ba0   :  { %v3912_v46 = vpop.xlane.xlu1 %3911 }
0x1ba1   :  { %v3920_v38 = vmul.f32 1.442695, %v3917_v62  ;;  %v3916_v34 = vsub.f32 %v3908_v56, %v3912_v46 }
0x1ba3   :  { %7288 = vpow2.f32 %v3920_v38  ;;  %v3918_v50 = vmul.f32 1.442695, %v3916_v34 }
0x1ba5   :  { %7290 = vpow2.f32 %v3918_v50  ;;  %v4354_v50 = vmul.f32 %v8491_v21, %v8491_v21 }
0x1bb0   :  { %v7289_v15 = vpop.eup %7288 }
0x1bb1   :  { %v3925_v17 = vsel %vm9525_vm8, %v7289_v15, 0.0  ;;  %vm9541_vm8 = vmmov %vm9539_vm7 }
0x1bb2   :  { %v7291_v35 = vpop.eup %7290  ;;  %3926 = vadd.xlane.f32.xlu1 %v3925_v17 }
0x1bb3   :  { %v3922_v19 = vsel %vm9526_vm11, %v7291_v35, 0.0  ;;  %vm9543_vm11 = vmmov %vm9539_vm7 }
0x1bb4   :  { %3923 = vadd.xlane.f32.xlu0 %v3922_v19 }
0x1bc3   :  { %3932 = vrot.lane.b32.xlu1 %v8521_v14, %s9527_s29 }
0x1bc7   :  { %6979 = vrot.lane.b32.xlu1 %v6978_v1, %s9528_s30 }
0x1bca   :  { %3934 = vrot.lane.b32.xlu0 %v8525_v9, %s9527_s29  ;;  %v7098_v9 = vld [vmem:[%s9352_s5 + $0x18] sm:$0xff]  }
0x1bce   :  { %6984 = vrot.lane.b32.xlu0 %v6983_v53, %s9529_s0 }
0x1c3b   :  { %v3927_v29 = vpop.xlane.xlu1 %3926 }
0x1c3c   :  { %7292 = vrcp.f32 %v3927_v29 }
0x1c3d   :  { %v3924_v12 = vpop.xlane.xlu0 %3923 }
0x1c3e   :  { %7294 = vrcp.f32 %v3924_v12 }
0x1c3f   :  { %v3933_v16 = vpop.permute.xlu1 %3932 }
0x1c41   :  { %v3935_v6 = vpop.permute.xlu0 %3934 }
0x1c42   :  { %6737 = vmatprep.subr.mxu0 %v3935_v6 }
0x1c43   :  { %6738 = vmatpush3.msra.mxu0 %v3935_v6  ;;  %v6980_v22 = vpop.permute.xlu1 %6979 }
0x1c44   :  { %6739 = vmatprep.subr.mxu0 %v3933_v16  ;;  %v6982_v42 = vunpack.i.h.bf16 %v6980_v22  ;;  %v6981_v3 = vunpack.i.l.bf16 %v6980_v22 }
0x1c45   :  { %6740 = vmatpush3.msra.mxu0 %v3933_v16  ;;  %v6985_v28 = vpop.permute.xlu0 %6984 }
0x1c46   :  { %6744 = vmatprep.subr.bf16.mxu0 %v9475_v5  ;;  %v6987_v23 = vunpack.i.h.bf16 %v6985_v28  ;;  %v6986_v26 = vunpack.i.l.bf16 %v6985_v28  ;;  %v4044_v4 = vsel %vm9533_vm14, %v8624_v7, %v6982_v42  ;;  %v4043_v63 = vsel %vm9534_vm5, %v8626_v20, %v6981_v3  ;;  %vm9546_vm14 = vmmov %vm9539_vm7 }
0x1c47   :  { %v4053_v7 = vrot.slane %v8514_v8, %v7774_v52  ;;  %vm9547_vm5 = vmmov %vm9539_vm7 }
0x1c48   :  { %v4045_v53 = vsel %vm9535_vm4, %v4043_v63, %v6986_v26  ;;  %v4046_v32 = vsel %vm9536_vm1, %v4044_v4, %v6987_v23  ;;  %vm9548_vm4 = vmmov %vm9547_vm5 }
0x1c49   :  { %v7293_v14 = vpop.eup %7292  ;;  %vm9549_vm1 = vmmov %vm9548_vm4 }
0x1c4a   :  { %v3931_v18 = vmul.f32 %v7293_v14, %v7289_v15 }
0x1c4b   :  { %v7295_v58 = vpop.eup %7294 }
0x1c4c   :  { %v3930_v60 = vmul.f32 %v7295_v58, %v7291_v35 }
0x1c4e   :  { %6741 = vmatprep.mubr.msk.f32.mxu0 %vm9530_vm10, %v3930_v60  ;;  %vm9544_vm10 = vmmov %vm9539_vm7 }
0x1c4f   :  { %6742 = vmatmul.mubr.msk.f32.vlgmr.msra.gmra.mxu0 %vm9531_vm13, %v3931_v18  ;;  %v4356_v15 = vsel %vm9544_vm10, %v4354_v50, 0.0  ;;  %vm9545_vm13 = vmmov %vm9539_vm7  ;;  %v4355_v18 = vmul.f32 %v8496_v61, %v8496_v61  ;;  %vm9555_vm10 = vcmp.lt.s32.totalorder %v7593_v43, 1 }
0x1c50   :  { %6748 = vmatprep.mubr.msk.bf16.mxu0 %vm7415_vm0, %v9475_v5  ;;  %6745 = vmatpush3.bf16.msra.mxu0 %v7098_v9 }
0x1c51   :  { %6746 = vmatprep.subr.bf16.mxu0 %v9475_v5  ;;  %v4359_v9 = vsel %vm9547_vm5, %v4355_v18, 0.0  ;;  %v7109_v18 = vld [vmem:[%s9354_s7 + $0x50] sm:$0xff]   ;;  %vm9558_vm5 = vcmp.ge.s32.totalorder %v7660_v13, 1 }
0x1c54   :  { %6747 = vmatpush3.bf16.msra.mxu0 %v7099_v59  ;;  %v7100_v59 = vld [vmem:[%s9353_s6 + $0x18] sm:$0xff]  }
0x1c55   :  { %6760 = vmatprep.subr.bf16.mxu0 %v9475_v5  ;;  %6753 = vmatpush3.bf16.msra.mxu1 %v7100_v59  ;;  %v7111_v59 = vld [vmem:[%s9354_s7 + $0x40] sm:$0xff]  }
0x1c56   :  { %6754 = vmatprep.subr.bf16.mxu1 %v9475_v5 }
0x1d0f   :  { %v6743_v10 = vpop.f32.mrf.mxu0 }
0x1d11   :  { %v4010_v27 = vpop.f32.mrf.mxu0 }
0x1d12   :  { %v6988_v24 = vpack.i.bf16 %v6743_v10, %v4010_v27  ;;  %v7101_v10 = vld [vmem:[%s9353_s6 + $0x10] sm:$0xff]  }
0x1d13   :  { %6755 = vmatpush3.bf16.msra.mxu1 %v7101_v10  ;;  %v7112_v10 = vld [vmem:[%s9357_s10 + $0x58] sm:$0xff]  }
0x1d14   :  { %6989 = vrot.lane.b32.xlu1 %v6988_v24, %s9532_s2  ;;  %6780 = vmatprep.subr.bf16.mxu1 %v9475_v5 }
0x1d86   :  { %v6990_v1 = vpop.permute.xlu1 %6989 }
0x1d87   :  { %v6992_v47 = vunpack.i.h.bf16 %v6990_v1  ;;  %v6991_v36 = vunpack.i.l.bf16 %v6990_v1 }
0x1d89   :  { %v4047_v48 = vsel %vm9537_vm2, %v4045_v53, %v6991_v36  ;;  %v4048_v2 = vsel %vm9538_vm6, %v4046_v32, %v6992_v47  ;;  %v4141_v32 = vrot.slane %v8514_v8, %v7807_v37  ;;  %vm9550_vm2 = vcmp.ge.s32.totalorder %v7902_v33, 3 }
0x1d8a   :  { %v4049_v40 = vpack.c.bf16 %v4048_v2, %v4047_v48  ;;  %vm9551_vm6 = vcmp.lt.s32.totalorder %v7593_v43, 2 }
0x1d8c   :  { %6749 = vmatmul.mubr.msk.bf16.vlgmr.msra.gmra.mxu0 %vm9539_vm7, %v4049_v40  ;;  %vm9552_vm7 = vmmov %vm9551_vm6 }
0x1d8d   :  { %6776 = vmatprep.mubr.msk.bf16.mxu0 %vm7415_vm0, %v9475_v5 }
0x1e4c   :  { %v4103_v20 = vpop.f32.mrf.mxu0 }
0x1e4d   :  { %v4104_v54 = vadd.f32 %v4103_v20, %v4053_v7 }
0x1e4e   :  { %v6750_v0 = vpop.f32.mrf.mxu0 }
0x1e4f   :  { %v8670_v56 = vadd.f32 %v4104_v54, %v8491_v21 }
0x1e50   :  { %v4106_v31 = vpop.f32.mrf.mxu0 }
0x1e51   :  { %9540 = vst [vmem:[#allocation5_spill] sm:$0xff] %v8670_v56  ;;  %v4107_v57 = vadd.f32 %v4106_v31, %v4053_v7  ;;  %v4112_v62 = vsel %vm9541_vm8, %v8670_v56, 0.0  ;;  %v4147_v7 = vrot.slane %v8514_v8, %v7812_v41  ;;  %vm9553_vm8 = vcmp.ge.s32.totalorder %v7902_v33, 2 }
0x1e52   :  { %4113 = vadd.xlane.f32.xlu0 %v4112_v62  ;;  %v6751_v46 = vpop.f32.mrf.mxu0  ;;  %v7102_v62 = vld [vmem:[%s9356_s9 + $0x28] sm:$0xff]  }
0x1e53   :  { %v8675_v38 = vadd.f32 %v4107_v57, %v8496_v61  ;;  %v8707_v46 = vld [vmem:[%s9355_s8 + $0x10] sm:$0xff] }
0x1e55   :  { %9542 = vst [vmem:[#allocation6_spill] sm:$0xff] %v8675_v38  ;;  %v4115_v34 = vsel %vm9543_vm11, %v8675_v38, 0.0  ;;  %vm9554_vm11 = vcmp.ge.s32.totalorder %v7660_v13, 2 }
0x1e56   :  { %4116 = vadd.xlane.f32.xlu1 %v4115_v34 }
0x1e5a   :  { %4357 = vadd.xlane.f32.xlu1 %v4356_v15 }
0x1edb   :  { %v4114_v17 = vpop.xlane.xlu0 %4113 }
0x1edc   :  { %v4118_v35 = vmul.f32 0.03125, %v4114_v17  ;;  %v4373_v17 = vrot.slane %v8707_v46, %v7596_v44 }
0x1ede   :  { %v4120_v19 = vsub.f32 %v8670_v56, %v4118_v35  ;;  %v7103_v35 = vld [vmem:[%s9356_s9 + $0x20] sm:$0xff]  }
0x1edf   :  { %v4117_v29 = vpop.xlane.xlu1 %4116 }
0x1ee0   :  { %v4119_v12 = vmul.f32 0.03125, %v4117_v29  ;;  %v4122_v6 = vmul.f32 %v4120_v19, %v4120_v19 }
0x1ee2   :  { %v4121_v16 = vsub.f32 %v8675_v38, %v4119_v12  ;;  %v4124_v14 = vsel %vm9545_vm13, %v4122_v6, 0.0  ;;  %v7104_v6 = vld [vmem:[%s9354_s7 + $0x78] sm:$0xff]   ;;  %vm9556_vm13 = vmmov %vm9555_vm10 }
0x1ee3   :  { %4125 = vadd.xlane.f32.xlu0 %v4124_v14  ;;  %v4358_v42 = vpop.xlane.xlu1 %4357  ;;  %6761 = vmatpush3.bf16.msra.mxu0 %v7104_v6  ;;  %v7106_v14 = vld [vmem:[%s9354_s7 + $0x68] sm:$0xff]  }
0x1ee4   :  { %v4123_v58 = vmul.f32 %v4121_v16, %v4121_v16  ;;  %v4362_v23 = vmul.f32 0.03125, %v4358_v42  ;;  %6762 = vmatprep.subr.bf16.mxu0 %v9475_v5  ;;  %v4154_v42 = vrot.slane %v8514_v8, %v7888_v25 }
0x1ee6   :  { %v4127_v60 = vsel %vm9546_vm14, %v4123_v58, 0.0  ;;  %v4364_v1 = vadd.f32 1e-05, %v4362_v23  ;;  %v7107_v58 = vld [vmem:[%s9354_s7 + $0x60] sm:$0xff]   ;;  %vm9557_vm14 = vcmp.ge.s32.totalorder %v7902_v33, 1 }
0x1ee7   :  { %4128 = vadd.xlane.f32.xlu0 %v4127_v60  ;;  %v7108_v60 = vld [vmem:[%s9354_s7 + $0x58] sm:$0xff]  }
0x1eeb   :  { %4360 = vadd.xlane.f32.xlu0 %v4359_v9  ;;  %v7110_v9 = vld [vmem:[%s9354_s7 + $0x48] sm:$0xff]  }
0x1f6c   :  { %v4126_v27 = vpop.xlane.xlu0 %4125 }
0x1f6d   :  { %v4130_v24 = vmul.f32 0.03125, %v4126_v27  ;;  %v7113_v27 = vld [vmem:[%s9357_s10 + $0x50] sm:$0xff]  }
0x1f6f   :  { %v4132_v22 = vadd.f32 1e-05, %v4130_v24  ;;  %v7114_v24 = vld [vmem:[%s9357_s10 + $0x48] sm:$0xff]  }
0x1f70   :  { %v4129_v3 = vpop.xlane.xlu0 %4128 }
0x1f71   :  { %7296 = vrsqrt.f32 %v4132_v22  ;;  %v4131_v28 = vmul.f32 0.03125, %v4129_v3  ;;  %v7115_v22 = vld [vmem:[%s9357_s10 + $0x40] sm:$0xff]  }
0x1f73   :  { %v4133_v26 = vadd.f32 1e-05, %v4131_v28 }
0x1f74   :  { %v4361_v4 = vpop.xlane.xlu0 %4360 }
0x1f75   :  { %7298 = vrsqrt.f32 %v4133_v26  ;;  %v4363_v63 = vmul.f32 0.03125, %v4361_v4 }
0x1f77   :  { %v4365_v47 = vadd.f32 1e-05, %v4363_v63 }
0x1f79   :  { %7300 = vrsqrt.f32 %v4365_v47 }
0x1f7a   :  { %7302 = vrsqrt.f32 %v4364_v1 }
0x1f7e   :  { %v7297_v36 = vpop.eup %7296 }
0x1f7f   :  { %v4136_v53 = vmul.f32 %v7297_v36, %v4120_v19 }
0x1f81   :  { %v4142_v40 = vmul.f32 %v4141_v32, %v4136_v53 }
0x1f82   :  { %v7299_v48 = vpop.eup %7298 }
0x1f83   :  { %v4137_v2 = vmul.f32 %v7299_v48, %v4121_v16  ;;  %v4148_v0 = vadd.f32 %v4147_v7, %v4142_v40  ;;  %v7105_v16 = vld [vmem:[%s9354_s7 + $0x70] sm:$0xff]   ;;  %v4436_v48 = vrot.slane %v8707_v46, %v7896_v30 }
0x1f84   :  { %6763 = vmatpush3.bf16.msra.mxu0 %v7105_v16 }
0x1f85   :  { %v4143_v20 = vmul.f32 %v4141_v32, %v4137_v2  ;;  %6764 = vmatprep.subr.bf16.mxu0 %v9475_v5 }
0x1f86   :  { %v7301_v54 = vpop.eup %7300 }
0x1f87   :  { %v4149_v31 = vadd.f32 %v4147_v7, %v4143_v20  ;;  %v7303_v57 = vpop.eup %7302  ;;  %v4369_v34 = vmul.f32 %v7301_v54, %v8496_v61 }
0x1f88   :  { %v4368_v15 = vmul.f32 %v7303_v57, %v8491_v21  ;;  %6765 = vmatpush3.bf16.msra.mxu0 %v7106_v14  ;;  %v4462_v57 = vrot.slane %v8707_v46, %v7905_v45 }
0x1f89   :  { %v4150_v50 = vpack.c.bf16 %v4149_v31, %v4148_v0  ;;  %v4375_v19 = vmul.f32 %v4373_v17, %v4369_v34  ;;  %6766 = vmatprep.subr.bf16.mxu0 %v9475_v5  ;;  %v4448_v31 = vrot.slane %v8707_v46, %v7812_v41 }
0x1f8a   :  { %v4374_v29 = vmul.f32 %v4373_v17, %v4368_v15 }
0x1f8b   :  { %6757 = vmatmul.mubr.msk.bf16.vlgmr.msra.gmra.mxu1 %vm9548_vm4, %v4150_v50  ;;  %vm9561_vm4 = vcmask 31744  }
0x1f8c   :  { %6781 = vmatpush3.bf16.msra.mxu1 %v7102_v62  ;;  %6784 = vmatprep.mubr.msk.bf16.mxu1 %vm7415_vm0, %v9475_v5  ;;  %v4376_v12 = vpack.c.bf16 %v4375_v19, %v4374_v29  ;;  %v4476_v62 = vrot.slane %v8707_v46, %v7888_v25 }
0x1f8d   :  { %6782 = vmatprep.subr.bf16.mxu1 %v9475_v5  ;;  %6767 = vmatpush3.bf16.msra.mxu0 %v7107_v58 }
0x1f8e   :  { %6768 = vmatprep.subr.bf16.mxu0 %v9475_v5 }
0x1f90   :  { %6783 = vmatpush3.bf16.msra.mxu1 %v7103_v35 }
0x1f91   :  { %6788 = vmatprep.subr.bf16.mxu1 %v9475_v5  ;;  %6769 = vmatpush3.bf16.msra.mxu0 %v7108_v60 }
0x1f92   :  { %6770 = vmatprep.subr.bf16.mxu0 %v9475_v5 }
0x1f93   :  { %6785 = vmatmul.mubr.msk.bf16.vlgmr.msra.gmra.mxu1 %vm9549_vm1, %v4376_v12  ;;  %vm9574_vm1 = vcmask 1040384  }
0x1f94   :  { %6796 = vmatprep.mubr.msk.bf16.mxu1 %vm7415_vm0, %v9475_v5  ;;  %6789 = vmatpush3.bf16.msra.mxu1 %v7112_v10 }
0x1f95   :  { %6771 = vmatpush3.bf16.msra.mxu0 %v7109_v18  ;;  %6790 = vmatprep.subr.bf16.mxu1 %v9475_v5 }
0x1f96   :  { %6772 = vmatprep.subr.bf16.mxu0 %v9475_v5 }
0x1f98   :  { %6791 = vmatpush3.bf16.msra.mxu1 %v7113_v27 }
0x1f99   :  { %6773 = vmatpush3.bf16.msra.mxu0 %v7110_v9  ;;  %6792 = vmatprep.subr.bf16.mxu1 %v9475_v5 }
0x1f9a   :  { %6774 = vmatprep.subr.bf16.mxu0 %v9475_v5 }
0x1f9c   :  { %6793 = vmatpush3.bf16.msra.mxu1 %v7114_v24 }
0x1f9d   :  { %6775 = vmatpush3.bf16.msra.mxu0 %v7111_v59  ;;  %6794 = vmatprep.subr.bf16.mxu1 %v9475_v5 }
0x1f9e   :  { %6806 = vmatprep.subr.bf16.mxu0 %v9475_v5 }
0x1fa0   :  { %6795 = vmatpush3.bf16.msra.mxu1 %v7115_v22 }
0x1fa1   :  { %6800 = vmatprep.subr.bf16.mxu1 %v9475_v5 }
0x204b   :  { %v4204_v3 = vpop.f32.mrf.mxu1 }
0x204c   :  { %v8774_v28 = vadd.f32 %v4204_v3, %v4154_v42 }
0x204d   :  { %v6758_v23 = vpop.f32.mrf.mxu1 }
0x204e   :  { %v4213_v26 = vmul.f32 0.044715, %v8774_v28 }
0x204f   :  { %v4207_v4 = vpop.f32.mrf.mxu1 }
0x2050   :  { %v4215_v63 = vmul.f32 %v4213_v26, %v8774_v28  ;;  %v4208_v1 = vadd.f32 %v4207_v4, %v4154_v42 }
0x2051   :  { %v6759_v47 = vpop.f32.mrf.mxu1 }
0x2052   :  { %v4217_v36 = vmul.f32 %v4215_v63, %v8774_v28  ;;  %v4214_v53 = vmul.f32 0.044715, %v4208_v1 }
0x2053   :  { %v8779_v32 = vpop.f32.mrf.mxu1 }
0x2054   :  { %v4219_v8 = vadd.f32 %v4217_v36, %v8774_v28  ;;  %v4216_v2 = vmul.f32 %v4214_v53, %v4208_v1  ;;  %v4437_v54 = vmul.f32 %v4436_v48, %v8779_v32  ;;  %v4439_v50 = vrot.slane %v8779_v32, 5 }
0x2055   :  { %v6786_v40 = vpop.f32.mrf.mxu1  ;;  %v4453_v17 = vrot.slane %v8779_v32, 6  ;;  %v4467_v35 = vrot.slane %v8779_v32, 7  ;;  %v4484_v53 = vrot.slane %v8707_v46, %v7606_v49 }
0x2056   :  { %v4221_v7 = vmul.f32 0.7978846, %v4219_v8  ;;  %v4218_v20 = vmul.f32 %v4216_v2, %v4208_v1 }
0x2057   :  { %v8785_v0 = vpop.f32.mrf.mxu1 }
0x2058   :  { %7304 = vtanh.f32 %v4221_v7  ;;  %v4220_v34 = vadd.f32 %v4218_v20, %v4208_v1  ;;  %v4440_v15 = vrot.slane %v8785_v0, 5  ;;  %v4454_v19 = vrot.slane %v8785_v0, 6 }
0x2059   :  { %v4468_v29 = vrot.slane %v8785_v0, 7  ;;  %v6787_v12 = vpop.f32.mrf.mxu1  ;;  %v4438_v16 = vmul.f32 %v4436_v48, %v8785_v0 }
0x205a   :  { %v4222_v6 = vmul.f32 0.7978846, %v4220_v34  ;;  %v4441_v14 = vsel %vm1523_vm12, %v4439_v50, %v4440_v15  ;;  %v4442_v58 = vsel %vm1523_vm12, %v4440_v15, %v4439_v50  ;;  %v4455_v9 = vsel %vm9551_vm6, %v4453_v17, %v4454_v19 }
0x205b   :  { %v4443_v60 = vsel %vm9550_vm2, %v4442_v58, 0.0  ;;  %v4444_v18 = vsel %vm1527_vm15, %v4441_v14, 0.0  ;;  %v4456_v59 = vsel %vm9552_vm7, %v4454_v19, %v4453_v17  ;;  %v4458_v22 = vsel %vm9554_vm11, %v4455_v9, 0.0 }
0x205c   :  { %7306 = vtanh.f32 %v4222_v6  ;;  %v4449_v10 = vmul.f32 %v4448_v31, %v4443_v60  ;;  %v4450_v27 = vmul.f32 %v4448_v31, %v4444_v18  ;;  %v4457_v24 = vsel %vm9553_vm8, %v4456_v59, 0.0 }
0x205d   :  { %v4463_v42 = vmul.f32 %v4462_v57, %v4457_v24  ;;  %v4469_v3 = vsel %vm9555_vm10, %v4467_v35, %v4468_v29  ;;  %v4470_v23 = vsel %vm9556_vm13, %v4468_v29, %v4467_v35  ;;  %v4464_v63 = vmul.f32 %v4462_v57, %v4458_v22  ;;  %v6259_v24 = vld [vmem:[%s9358_s11 + $0x4] sm:$0x3] }
0x205e   :  { %v4451_v26 = vadd.f32 %v4449_v10, %v4437_v54  ;;  %v4452_v4 = vadd.f32 %v4450_v27, %v4438_v16  ;;  %v4471_v47 = vsel %vm9557_vm14, %v4470_v23, 0.0  ;;  %v4472_v36 = vsel %vm9558_vm5, %v4469_v3, 0.0 }
0x205f   :  { %v4477_v2 = vmul.f32 %v4476_v62, %v4471_v47  ;;  %v4478_v40 = vmul.f32 %v4476_v62, %v4472_v36  ;;  %v4211_v29 = vmul.f32 0.5, %v8774_v28  ;;  %v4212_v12 = vmul.f32 0.5, %v4208_v1 }
0x2060   :  { %v4465_v48 = vadd.f32 %v4463_v42, %v4451_v26  ;;  %v4466_v8 = vadd.f32 %v4464_v63, %v4452_v4  ;;  %v4579_v22 = vsel %vm1670_vm9, %v6259_v24, 0  ;;  %vm9575_vm2 = vcmask 1042432  }
0x2061   :  { %vm9576_vm6 = vcmask 1043456   ;;  %vm9577_vm7 = vcmask 1044480   ;;  %vm9578_vm8 = vcmask 1045504   ;;  %vm9579_vm11 = vcmask 1046528  }
0x2062   :  { %v4479_v7 = vadd.f32 %v4477_v2, %v4465_v48  ;;  %v4480_v20 = vadd.f32 %v4478_v40, %v4466_v8  ;;  %vm9580_vm10 = vcmask 261120   ;;  %vm9583_vm5 = vcmp.lt.s32.totalorder %v7593_v43, 2 }
0x2063   :  { %vm9581_vm13 = vmmov %vm9580_vm10 }
0x2064   :  { %v4485_v31 = vadd.f32 %v4484_v53, %v4479_v7  ;;  %v4486_v34 = vadd.f32 %v4484_v53, %v4480_v20  ;;  %v9562_v7 = vmov 8   ;;  %v9563_v20 = vmov 0   ;;  %vm9582_vm14 = vmmov %vm9580_vm10 }
0x2065   :  { %v7305_v54 = vpop.eup %7304 }
0x2066   :  { %v4487_v50 = vsub.f32 0.0, %v4485_v31  ;;  %v4488_v57 = vsub.f32 0.0, %v4486_v34  ;;  %v4225_v15 = vadd.f32 1.0, %v7305_v54 }
0x2068   :  { %v4489_v17 = vmul.f32 1.442695, %v4487_v50  ;;  %v4491_v35 = vmul.f32 1.442695, %v4488_v57  ;;  %v4227_v16 = vmul.f32 %v4225_v15, %v4211_v29 }
0x2069   :  { %v7307_v19 = vpop.eup %7306 }
0x206a   :  { %v4226_v6 = vadd.f32 1.0, %v7307_v19  ;;  %7308 = vpow2.f32 %v4489_v17 }
0x206b   :  { %7310 = vpow2.f32 %v4491_v35 }
0x206c   :  { %v4228_v14 = vmul.f32 %v4226_v6, %v4212_v12 }
0x206e   :  { %v4229_v62 = vpack.c.bf16 %v4228_v14, %v4227_v16  ;;  %v9564_v14 = vmov 1  }
0x2070   :  { %6777 = vmatmul.mubr.bf16.vlgmr.msra.gmra.mxu0 %v4229_v62  ;;  %v9565_v62 = vmov 10  }
0x2071   :  { %6814 = vmatprep.mubr.msk.bf16.mxu0 %vm7415_vm0, %v9475_v5 }
0x2077   :  { %v7309_v58 = vpop.eup %7308 }
0x2078   :  { %v7311_v60 = vpop.eup %7310  ;;  %v4493_v18 = vadd.f32 1.0, %v7309_v58  ;;  %v9566_v58 = vmov 11  }
0x2079   :  { %v4494_v9 = vadd.f32 1.0, %v7311_v60  ;;  %v9567_v60 = vmov 13  }
0x207a   :  { %7312 = vrcp.f32 %v4493_v18 }
0x207b   :  { %7314 = vrcp.f32 %v4494_v9 }
0x2087   :  { %v7313_v59 = vpop.eup %7312 }
0x2088   :  { %v7315_v10 = vpop.eup %7314  ;;  %v8829_v28 = vmul.f32 %v7313_v59, %v4485_v31  ;;  %v4574_v31 = vrot.slane %v8707_v46, %v7774_v52 }
0x2089   :  { %v8831_v1 = vmul.f32 %v7315_v10, %v4486_v34  ;;  %v9568_v10 = vmov 12  }
0x208b   :  { %v4501_v27 = vpack.c.bf16 %v8831_v1, %v8829_v28 }
0x208d   :  { %6797 = vmatmul.mubr.msk.bf16.vlgmr.msra.gmra.mxu1 %vm106_vm3, %v4501_v27 }
0x208e   :  { %6802 = vmatprep.mubr.msk.bf16.mxu1 %vm7415_vm0, %v9475_v5  ;;  %6801 = vmatpush3.bf16.msra.mxu1 %v4579_v22  ;;  %v9569_v22 = vmov 5  }
0x208f   :  { %6818 = vmatprep.subr.bf16.mxu1 %v9475_v5 }
0x2130   :  { %v8843_v42 = vpop.f32.mrf.mxu0 }
0x2131   :  { %9559 = vst [vmem:[#allocation7_spill] sm:$0xff] %v8843_v42 }
0x2132   :  { %v6778_v3 = vpop.f32.mrf.mxu0 }
0x2134   :  { %v8845_v23 = vpop.f32.mrf.mxu0 }
0x2135   :  { %9560 = vst [vmem:[#allocation8_spill] sm:$0xff] %v8845_v23 }
0x2136   :  { %v6779_v26 = vpop.f32.mrf.mxu0 }
0x2137   :  { %v9570_v26 = vmov 6  }
0x214d   :  { %v4563_v4 = vpop.f32.mrf.mxu1 }
0x214e   :  { %4642 = vrot.lane.b32.xlu1 %v4563_v4, %s7431_s25 }
0x214f   :  { %v6798_v63 = vpop.f32.mrf.mxu1 }
0x2150   :  { %v9572_v63 = vmov 15  }
0x2151   :  { %v4566_v47 = vpop.f32.mrf.mxu1 }
0x2152   :  { %v4570_v36 = vpack.c.bf16 %v4566_v47, %v4563_v4  ;;  %4680 = vrot.lane.b32.xlu1 %v4563_v4, %s7430_s22  ;;  %4644 = vrot.lane.b32.xlu0 %v4566_v47, %s7431_s25  ;;  %v9571_v4 = vmov 14  }
0x2153   :  { %v6799_v53 = vpop.f32.mrf.mxu1 }
0x2154   :  { %6803 = vmatmul.mubr.msk.bf16.vlgmr.msra.gmra.mxu1 %vm9561_vm4, %v4570_v36  ;;  %v9573_v53 = vmov 7   ;;  %vm9584_vm4 = vmmov %vm9583_vm5 }
0x2155   :  { %6822 = vmatprep.mubr.msk.bf16.mxu1 %vm7415_vm0, %v9475_v5 }
0x2156   :  { %4682 = vrot.lane.b32.xlu1 %v4566_v47, %s7430_s22  ;;  %v5054_v47 = vsub.f32 0.0, %v8779_v32 }
0x2158   :  { %v5056_v36 = vmul.f32 1.442695, %v5054_v47 }
0x21c0   :  { %v4643_v48 = vpop.permute.xlu1 %4642 }
0x21c1   :  { %4648 = vxpose.xlu0.b32.start [1/2] (short) (narrow) %v4643_v48, 8 }
0x21c4   :  { %v4681_v8 = vpop.permute.xlu1 %4680  ;;  %v4645_v2 = vpop.permute.xlu0 %4644 }
0x21c5   :  { %4686 = vxpose.xlu1.b32.start [1/2] (short) (narrow) %v4681_v8, 8  ;;  %4649 = vxpose.xlu0.b32.end [2/2] (short) (narrow) %v4645_v2, 8 }
0x21c8   :  { %v4683_v40 = vpop.permute.xlu1 %4682 }
0x21c9   :  { %4687 = vxpose.xlu1.b32.end [2/2] (short) (narrow) %v4683_v40, 8 }
0x21e7   :  { %6994 = vset.pattern.permute.xlu1 %v9562_v7 }
0x21ee   :  { %6993 = vset.pattern.permute.xlu0 %v9563_v20 }
0x2214   :  { %v4615_v34 = vpop.f32.mrf.mxu1 }
0x2215   :  { %v8858_v54 = vadd.f32 %v4615_v34, %v4574_v31  ;;  %v7116_v34 = vld [vmem:[%s9360_s13 + $0x58] sm:$0xff]  }
0x2216   :  { %v6804_v50 = vpop.f32.mrf.mxu1  ;;  %6807 = vmatpush3.bf16.msra.mxu0 %v7116_v34 }
0x2217   :  { %v7117_v50 = vld [vmem:[%s9360_s13 + $0x50] sm:$0xff]   ;;  %6808 = vmatprep.subr.bf16.mxu0 %v9475_v5 }
0x2218   :  { %v4618_v57 = vpop.f32.mrf.mxu1 }
0x2219   :  { %v4619_v17 = vadd.f32 %v4618_v57, %v4574_v31  ;;  %v4624_v31 = vand.u32 2147483647, %v8858_v54 }
0x221a   :  { %v6805_v15 = vpop.f32.mrf.mxu1  ;;  %6809 = vmatpush3.bf16.msra.mxu0 %v7117_v50 }
0x221b   :  { %v4625_v35 = vand.u32 2147483647, %v4619_v17  ;;  %v4623_v27 = vmax.f32 %v4619_v17, 0.0  ;;  %v4626_v57 = vsub.f32 0.0, %v4624_v31  ;;  %6810 = vmatprep.subr.bf16.mxu0 %v9475_v5 }
0x221d   :  { %v4627_v19 = vsub.f32 0.0, %v4625_v35 }
0x221f   :  { %v4630_v29 = vmul.f32 1.442695, %v4627_v19 }
0x2221   :  { %7316 = vpow2.f32 %v4630_v29 }
0x222e   :  { %v7317_v6 = vpop.eup %7316 }
0x222f   :  { %v4633_v16 = vadd.f32 1.0, %v7317_v6 }
0x2231   :  { %7318 = vlog2.f32 %v4633_v16 }
0x2232   :  { %7320 = vpow2.f32 %v5056_v36 }
0x223d   :  { %v8860_v12 = vpop.trf.xlu0 }
0x223e   :  { %4736 = vperm.xlu1 %6994, %v8860_v12   ;;  %4732 = vperm.xlu0 %6993, %v8860_v12   ;;  %v7319_v18 = vpop.eup %7318 }
0x223f   :  { %v4637_v59 = vmul.f32 0.6931472, %v7319_v18  ;;  %v7321_v48 = vpop.eup %7320 }
0x2240   :  { %v5060_v8 = vadd.f32 1.0, %v7321_v48 }
0x2241   :  { %v4702_v9 = vpop.trf.xlu1  ;;  %v4639_v24 = vadd.f32 %v4637_v59, %v4623_v27 }
0x2242   :  { %6996 = vset.pattern.permute.xlu1 %v9463_v11  ;;  %6995 = vset.pattern.permute.xlu0 %v9564_v14  ;;  %7322 = vrcp.f32 %v5060_v8 }
0x2243   :  { %4767 = vperm.xlu1 %6996, %v8860_v12   ;;  %4763 = vperm.xlu0 %6995, %v8860_v12   ;;  %v4724_v3 = vmul.f32 %v4639_v24, %v8831_v1 }
0x2247   :  { %6997 = vset.pattern.permute.xlu1 %v9465_v55  ;;  %6998 = vset.pattern.permute.xlu0 %v9565_v62 }
0x2248   :  { %4802 = vperm.xlu1 %6997, %v8860_v12   ;;  %4806 = vperm.xlu0 %6998, %v8860_v12  }
0x224c   :  { %6999 = vset.pattern.permute.xlu1 %v9467_v39  ;;  %7001 = vset.pattern.permute.xlu0 %v9464_v51 }
0x224d   :  { %4841 = vperm.xlu1 %6999, %v8860_v12   ;;  %4880 = vperm.xlu0 %7001, %v8860_v12  }
0x224f   :  { %v7323_v2 = vpop.eup %7322 }
0x2250   :  { %v5066_v40 = vmul.f32 %v7323_v2, %v8779_v32  ;;  %v4628_v32 = vmul.f32 1.442695, %v4626_v57  ;;  %v6260_v57 = vld [vmem:[%s9359_s12 + $0x10] sm:$0xff] }
0x2251   :  { %7000 = vset.pattern.permute.xlu1 %v9566_v58  ;;  %7004 = vset.pattern.permute.xlu0 %v9567_v60 }
0x2252   :  { %4845 = vperm.xlu1 %7000, %v8860_v12   ;;  %4923 = vperm.xlu0 %7004, %v8860_v12   ;;  %7324 = vpow2.f32 %v4628_v32 }
0x2256   :  { %7002 = vset.pattern.permute.xlu1 %v9568_v10  ;;  %7007 = vset.pattern.permute.xlu0 %v9563_v20 }
0x2257   :  { %4884 = vperm.xlu1 %7002, %v8860_v12   ;;  %4742 = vperm.xlu0 %7007, %v4702_v9  }
0x225b   :  { %7003 = vset.pattern.permute.xlu1 %v9569_v22  ;;  %7010 = vset.pattern.permute.xlu0 %v9463_v11 }
0x225c   :  { %4919 = vperm.xlu1 %7003, %v8860_v12   ;;  %4776 = vperm.xlu0 %7010, %v4702_v9  }
0x225f   :  { %v7325_v6 = vpop.eup %7324 }
0x2260   :  { %7005 = vset.pattern.permute.xlu1 %v9570_v26  ;;  %4726 = vrot.lane.b32.xlu0 %v4724_v3, %s7421_s17  ;;  %v4632_v16 = vadd.f32 1.0, %v7325_v6 }
0x2261   :  { %4958 = vperm.xlu1 %7005, %v8860_v12   ;;  %7013 = vset.pattern.permute.xlu0 %v9467_v39 }
0x2262   :  { %7326 = vlog2.f32 %v4632_v16 }
0x2264   :  { %4850 = vperm.xlu0 %7013, %v4702_v9  }
0x2265   :  { %7006 = vset.pattern.permute.xlu1 %v9571_v4 }
0x2266   :  { %4962 = vperm.xlu1 %7006, %v8860_v12  }
0x2268   :  { %7016 = vset.pattern.permute.xlu0 %v9572_v63 }
0x2269   :  { %5001 = vperm.xlu0 %7016, %v8860_v12  }
0x226a   :  { %7008 = vset.pattern.permute.xlu1 %v9562_v7 }
0x226b   :  { %4746 = vperm.xlu1 %7008, %v4702_v9  }
0x226d   :  { %7019 = vset.pattern.permute.xlu0 %v9569_v22 }
0x226e   :  { %4928 = vperm.xlu0 %7019, %v4702_v9  }
0x226f   :  { %4719 = vrot.lane.b32.xlu1 %v4639_v24, %s7421_s17  ;;  %v7327_v36 = vpop.eup %7326 }
0x2270   :  { %7009 = vset.pattern.permute.xlu1 %v9564_v14  ;;  %v4635_v8 = vmul.f32 0.6931472, %v7327_v36 }
0x2272   :  { %7022 = vset.pattern.permute.xlu0 %v9571_v4 }
0x2273   :  { %4772 = vperm.xlu1 %7009, %v4702_v9   ;;  %4971 = vperm.xlu0 %7022, %v4702_v9  }
0x2277   :  { %7011 = vset.pattern.permute.xlu1 %v9465_v55 }
0x2278   :  { %4811 = vperm.xlu1 %7011, %v4702_v9  }
0x227c   :  { %7012 = vset.pattern.permute.xlu1 %v9565_v62 }
0x227d   :  { %4815 = vperm.xlu1 %7012, %v4702_v9  }
0x2281   :  { %7014 = vset.pattern.permute.xlu1 %v9566_v58 }
0x2282   :  { %4854 = vperm.xlu1 %7014, %v4702_v9  }
0x2286   :  { %7015 = vset.pattern.permute.xlu1 %v9573_v53 }
0x2287   :  { %4997 = vperm.xlu1 %7015, %v8860_v12  }
0x228b   :  { %7017 = vset.pattern.permute.xlu1 %v9464_v51 }
0x228c   :  { %4889 = vperm.xlu1 %7017, %v4702_v9  }
0x2290   :  { %7018 = vset.pattern.permute.xlu1 %v9568_v10 }
0x2291   :  { %4893 = vperm.xlu1 %7018, %v4702_v9  }
0x2295   :  { %7020 = vset.pattern.permute.xlu1 %v9567_v60 }
0x2296   :  { %4932 = vperm.xlu1 %7020, %v4702_v9  }
0x229a   :  { %7021 = vset.pattern.permute.xlu1 %v9570_v26 }
0x229b   :  { %4967 = vperm.xlu1 %7021, %v4702_v9  }
0x229f   :  { %7023 = vset.pattern.permute.xlu1 %v9573_v53 }
0x22a0   :  { %5006 = vperm.xlu1 %7023, %v4702_v9  }
0x22a4   :  { %7024 = vset.pattern.permute.xlu1 %v9572_v63 }
0x22a5   :  { %5010 = vperm.xlu1 %7024, %v4702_v9  }
0x22a9   :  { %5070 = vrot.lane.b32.xlu1 %v5066_v40, %s7421_s17  ;;  %v4622_v40 = vmax.f32 %v8858_v54, 0.0 }
0x22ab   :  { %v4638_v34 = vadd.f32 %v4635_v8, %v4622_v40 }
0x22ad   :  { %v4723_v63 = vmul.f32 %v4638_v34, %v8829_v28 }
0x22b9   :  { %v4737_v15 = vpop.permute.xlu1 %4736  ;;  %v4733_v29 = vpop.permute.xlu0 %4732 }
0x22be   :  { %v4768_v17 = vpop.permute.xlu1 %4767  ;;  %v4764_v18 = vpop.permute.xlu0 %4763 }
0x22c3   :  { %v8923_v35 = vpop.permute.xlu1 %4802  ;;  %v4807_v27 = vpop.permute.xlu0 %4806 }
0x22c8   :  { %v8925_v19 = vpop.permute.xlu1 %4841  ;;  %v8935_v3 = vpop.permute.xlu0 %4880 }
0x22cd   :  { %v8927_v12 = vpop.permute.xlu1 %4845  ;;  %v8939_v48 = vpop.permute.xlu0 %4923 }
0x22d2   :  { %v8929_v9 = vpop.permute.xlu1 %4884  ;;  %v8944_v31 = vpop.permute.xlu0 %4742 }
0x22d7   :  { %v8931_v59 = vpop.permute.xlu1 %4919  ;;  %v8952_v38 = vpop.permute.xlu0 %4776 }
0x22dc   :  { %v8933_v24 = vpop.permute.xlu1 %4958 }
0x22e1   :  { %v8937_v47 = vpop.permute.xlu1 %4962 }
0x22e6   :  { %v8941_v2 = vpop.permute.xlu1 %4746 }
0x22ea   :  { %v4720_v50 = vpop.permute.xlu1 %4719 }
0x22eb   :  { %v4722_v32 = vsel %vm106_vm3, %v4638_v34, %v4720_v50  ;;  %v4727_v50 = vpop.permute.xlu0 %4726 }
0x22ec   :  { %v4788_v6 = vrot.slane %v4722_v32, %v7606_v49  ;;  %v4827_v16 = vrot.slane %v4722_v32, %v7774_v52  ;;  %v4866_v54 = vrot.slane %v4722_v32, %v7807_v37  ;;  %v4905_v53 = vrot.slane %v4722_v32, %v7812_v41 }
0x22ee   :  { %v4789_v36 = vmul.f32 %v6260_v57, %v4788_v6  ;;  %v4828_v23 = vmul.f32 %v6260_v57, %v4827_v16  ;;  %v8955_v56 = vpop.permute.xlu1 %4772  ;;  %v4867_v42 = vmul.f32 %v6260_v57, %v4866_v54  ;;  %v4906_v22 = vmul.f32 %v6260_v57, %v4905_v53 }
0x22ef   :  { %v8960_v6 = vsel %vm106_vm3, %v4723_v63, %v4727_v50  ;;  %v4944_v16 = vrot.slane %v4722_v32, %v7905_v45  ;;  %v4770_v50 = vsel %vm106_vm3, %v4764_v18, %v4768_v17 }
0x22f0   :  { %v4790_v8 = vmul.f32 1.442695, %v4789_v36  ;;  %v4829_v40 = vmul.f32 1.442695, %v4828_v23  ;;  %v4868_v26 = vmul.f32 1.442695, %v4867_v42  ;;  %v4753_v36 = vrot.slane %v8960_v6, %v7596_v44 }
0x22f1   :  { %v4907_v23 = vmul.f32 1.442695, %v4906_v22  ;;  %v4945_v54 = vmul.f32 %v6260_v57, %v4944_v16  ;;  %v4783_v34 = vrot.slane %v8960_v6, %v7606_v49  ;;  %v4739_v42 = vsel %vm106_vm3, %v4733_v29, %v4737_v15 }
0x22f2   :  { %7328 = vpow2.f32 %v4790_v8  ;;  %v4983_v8 = vrot.slane %v4722_v32, %v7888_v25  ;;  %v4822_v22 = vrot.slane %v8960_v6, %v7774_v52  ;;  %v4809_v15 = vsel %vm106_vm3, %v8923_v35, %v4807_v27 }
0x22f3   :  { %v4812_v4 = vpop.permute.xlu1 %4811  ;;  %7330 = vpow2.f32 %v4829_v40  ;;  %v4754_v40 = vmul.f32 %v4753_v36, %v4739_v42  ;;  %v4946_v58 = vmul.f32 1.442695, %v4945_v54  ;;  %v4784_v60 = vmul.f32 %v4783_v34, %v4770_v50  ;;  %v4851_v36 = vpop.permute.xlu0 %4850 }
0x22f4   :  { %7332 = vpow2.f32 %v4868_v26  ;;  %v4984_v39 = vmul.f32 %v6260_v57, %v4983_v8  ;;  %v5022_v26 = vrot.slane %v4722_v32, %v7896_v30  ;;  %v4823_v17 = vmul.f32 %v4822_v22, %v4809_v15 }
0x22f5   :  { %7334 = vpow2.f32 %v4907_v23  ;;  %v4861_v23 = vrot.slane %v8960_v6, %v7807_v37  ;;  %v5055_v32 = vsub.f32 0.0, %v8785_v0  ;;  %v4887_v50 = vsel %vm106_vm3, %v8935_v3, %v8929_v9 }
0x22f6   :  { %7336 = vpow2.f32 %v4946_v58  ;;  %v4985_v29 = vmul.f32 1.442695, %v4984_v39  ;;  %v5023_v54 = vmul.f32 %v6260_v57, %v5022_v26  ;;  %v4900_v39 = vrot.slane %v8960_v6, %v7812_v41 }
0x22f7   :  { %v5058_v57 = vmul.f32 1.442695, %v5055_v32 }
0x22f8   :  { %v4816_v10 = vpop.permute.xlu1 %4815  ;;  %7338 = vpow2.f32 %v4985_v29  ;;  %v5024_v27 = vmul.f32 1.442695, %v5023_v54  ;;  %v4901_v26 = vmul.f32 %v4900_v39, %v4887_v50  ;;  %v4939_v29 = vrot.slane %v8960_v6, %v7905_v45 }
0x22fa   :  { %7340 = vpow2.f32 %v5024_v27 }
0x22fb   :  { %7342 = vpow2.f32 %v5058_v57 }
0x22fd   :  { %v4855_v53 = vpop.permute.xlu1 %4854 }
0x22fe   :  { %v4857_v3 = vsel %vm106_vm3, %v4851_v36, %v4855_v53  ;;  %v4978_v53 = vrot.slane %v8960_v6, %v7888_v25 }
0x22ff   :  { %v7329_v63 = vpop.eup %7328 }
0x2300   :  { %v4792_v55 = vmul.f32 %v7329_v63, %v4754_v40  ;;  %v7331_v11 = vpop.eup %7330 }
0x2301   :  { %v7333_v34 = vpop.eup %7332 }
0x2302   :  { %v4793_v16 = vadd.f32 %v4792_v55, %v4784_v60  ;;  %v8973_v51 = vpop.permute.xlu1 %4997  ;;  %v4848_v55 = vsel %vm106_vm3, %v8925_v19, %v8927_v12  ;;  %v7335_v63 = vpop.eup %7334  ;;  %v4749_v19 = vsel %vm106_vm3, %v8944_v31, %v8941_v2  ;;  %v4779_v12 = vsel %vm106_vm3, %v8955_v56, %v8952_v38 }
0x2303   :  { %v4862_v35 = vmul.f32 %v4861_v23, %v4848_v55  ;;  %v7337_v54 = vpop.eup %7336  ;;  %v4926_v2 = vsel %vm106_vm3, %v8931_v59, %v8939_v48  ;;  %v4755_v31 = vmul.f32 %v4754_v40, %v4749_v19 }
0x2304   :  { %v4831_v18 = vmul.f32 %v7331_v11, %v4793_v16  ;;  %v5002_v11 = vpop.permute.xlu0 %5001 }
0x2305   :  { %v7339_v40 = vpop.eup %7338 }
0x2306   :  { %v4832_v8 = vadd.f32 %v4831_v18, %v4823_v17  ;;  %v4794_v17 = vmul.f32 %v4793_v16, %v4779_v12  ;;  %v4818_v18 = vsel %vm106_vm3, %v4812_v4, %v4816_v10  ;;  %v4940_v16 = vmul.f32 %v4939_v29, %v4926_v2 }
0x2307   :  { %v4890_v60 = vpop.permute.xlu1 %4889  ;;  %v4965_v10 = vsel %vm106_vm3, %v8933_v24, %v8937_v47  ;;  %v5004_v2 = vsel %vm106_vm3, %v8973_v51, %v5002_v11 }
0x2308   :  { %v4870_v58 = vmul.f32 %v7333_v34, %v4832_v8  ;;  %v4833_v9 = vmul.f32 %v4832_v8, %v4818_v18  ;;  %v4929_v34 = vpop.permute.xlu0 %4928  ;;  %v4795_v4 = vrot.slane %v4794_v17, 4  ;;  %v4756_v8 = vrot.slane %v4755_v31, 4 }
0x230a   :  { %v4871_v42 = vadd.f32 %v4870_v58, %v4862_v35  ;;  %v4834_v36 = vrot.slane %v4833_v9, 4 }
0x230c   :  { %v4894_v22 = vpop.permute.xlu1 %4893  ;;  %v4909_v15 = vmul.f32 %v7335_v63, %v4871_v42  ;;  %v4872_v56 = vmul.f32 %v4871_v42, %v4857_v3  ;;  %v4796_v63 = vadd.f32 %v4795_v4, %v4794_v17  ;;  %v4972_v57 = vpop.permute.xlu0 %4971 }
0x230d   :  { %v4896_v38 = vsel %vm106_vm3, %v4890_v60, %v4894_v22  ;;  %v4979_v60 = vmul.f32 %v4978_v53, %v4965_v10  ;;  %v4835_v22 = vadd.f32 %v4834_v36, %v4833_v9  ;;  %v7341_v3 = vpop.eup %7340 }
0x230e   :  { %v4910_v23 = vadd.f32 %v4909_v15, %v4901_v26  ;;  %v4873_v58 = vrot.slane %v4872_v56, 4  ;;  %v4757_v15 = vadd.f32 %v4756_v8, %v4755_v31  ;;  %v4797_v18 = vrot.slane %v4796_v63, 2 }
0x2310   :  { %v4911_v32 = vmul.f32 %v4910_v23, %v4896_v38  ;;  %v4948_v35 = vmul.f32 %v7337_v54, %v4910_v23  ;;  %v4874_v19 = vadd.f32 %v4873_v58, %v4872_v56  ;;  %v4836_v54 = vrot.slane %v4835_v22, 2  ;;  %v7343_v38 = vpop.eup %7342 }
0x2311   :  { %v4933_v55 = vpop.permute.xlu1 %4932  ;;  %v5061_v53 = vadd.f32 1.0, %v7343_v38 }
0x2312   :  { %v4935_v59 = vsel %vm106_vm3, %v4929_v34, %v4933_v55  ;;  %v4949_v48 = vadd.f32 %v4948_v35, %v4940_v16  ;;  %v4912_v39 = vrot.slane %v4911_v32, 4  ;;  %v4758_v55 = vrot.slane %v4757_v15, 2 }
0x2313   :  { %v4875_v9 = vrot.slane %v4874_v19, 2  ;;  %v5017_v16 = vrot.slane %v8960_v6, %v7896_v30  ;;  %v4837_v36 = vadd.f32 %v4836_v54, %v4835_v22  ;;  %7344 = vrcp.f32 %v5061_v53  ;;  %v7118_v22 = vld [vmem:[%s9360_s13 + $0x48] sm:$0xff]  }
0x2314   :  { %v4950_v27 = vmul.f32 %v4949_v48, %v4935_v59  ;;  %v4987_v42 = vmul.f32 %v7339_v40, %v4949_v48  ;;  %v4913_v12 = vadd.f32 %v4912_v39, %v4911_v32  ;;  %v4798_v32 = vadd.f32 %v4797_v18, %v4796_v63  ;;  %6811 = vmatpush3.bf16.msra.mxu0 %v7118_v22 }
0x2315   :  { %v5018_v10 = vmul.f32 %v5017_v16, %v5004_v2  ;;  %v4759_v48 = vadd.f32 %v4758_v55, %v4757_v15  ;;  %v4876_v40 = vadd.f32 %v4875_v9, %v4874_v19  ;;  %v4838_v6 = vrot.slane %v4837_v36, 1  ;;  %6812 = vmatprep.subr.bf16.mxu0 %v9475_v5 }
0x2316   :  { %v4968_v50 = vpop.permute.xlu1 %4967  ;;  %v4951_v24 = vrot.slane %v4950_v27, 4  ;;  %v4988_v26 = vadd.f32 %v4987_v42, %v4979_v60  ;;  %v4914_v31 = vrot.slane %v4913_v12, 2  ;;  %v4799_v60 = vrot.slane %v4798_v32, 1 }
0x2317   :  { %v4974_v47 = vsel %vm106_vm3, %v4968_v50, %v4972_v57  ;;  %v4760_v57 = vrot.slane %v4759_v48, 1  ;;  %v4877_v63 = vrot.slane %v4876_v40, 1  ;;  %v4839_v19 = vadd.f32 %v4838_v6, %v4837_v36 }
0x2318   :  { %v4989_v29 = vmul.f32 %v4988_v26, %v4974_v47  ;;  %v4952_v23 = vadd.f32 %v4951_v24, %v4950_v27  ;;  %v5026_v35 = vmul.f32 %v7341_v3, %v4988_v26  ;;  %v4915_v8 = vadd.f32 %v4914_v31, %v4913_v12 }
0x2319   :  { %v4800_v47 = vadd.f32 %v4799_v60, %v4798_v32  ;;  %v4878_v18 = vadd.f32 %v4877_v63, %v4876_v40  ;;  %v5049_v36 = vrot.slane %v8707_v46, %v7807_v37 }
0x231a   :  { %v4990_v34 = vrot.slane %v4989_v29, 4  ;;  %v4953_v4 = vrot.slane %v4952_v23, 2  ;;  %v5027_v11 = vadd.f32 %v5026_v35, %v5018_v10  ;;  %v4916_v24 = vrot.slane %v4915_v8, 1 }
0x231b   :  { %v5007_v17 = vpop.permute.xlu1 %5006 }
0x231c   :  { %v4991_v56 = vadd.f32 %v4990_v34, %v4989_v29  ;;  %v4954_v39 = vadd.f32 %v4953_v4, %v4952_v23  ;;  %v4761_v29 = vadd.f32 %v4760_v57, %v4759_v48  ;;  %v4917_v3 = vadd.f32 %v4916_v24, %v4915_v8 }
0x231e   :  { %v4992_v59 = vrot.slane %v4991_v56, 2  ;;  %v4955_v26 = vrot.slane %v4954_v39, 1  ;;  %v5035_v54 = vsel %vm9574_vm1, %v4761_v29, %v4800_v47  ;;  %vm9585_vm1 = vcmp.ge.s32.totalorder %v7902_v33, 3 }
0x231f   :  { %v5036_v38 = vsel %vm1670_vm9, %v5035_v54, %v4839_v19 }
0x2320   :  { %v5011_v51 = vpop.permute.xlu1 %5010  ;;  %v4993_v42 = vadd.f32 %v4992_v59, %v4991_v56  ;;  %v4956_v2 = vadd.f32 %v4955_v26, %v4954_v39  ;;  %v5037_v16 = vsel %vm9575_vm2, %v5036_v38, %v4878_v18  ;;  %v7345_v10 = vpop.eup %7344  ;;  %v5050_v59 = vmul.f32 %v5049_v36, %v8829_v28  ;;  %v9062_v18 = vld [vmem:[%s9355_s8 + $0x18] sm:$0xff] }
0x2321   :  { %v5013_v58 = vsel %vm106_vm3, %v5007_v17, %v5011_v51  ;;  %v7119_v17 = vld [vmem:[%s9360_s13 + $0x40] sm:$0xff]   ;;  %v5038_v35 = vsel %vm9576_vm6, %v5037_v16, %v4917_v3  ;;  %v5067_v53 = vmul.f32 %v7345_v10, %v8785_v0  ;;  %v5051_v51 = vmul.f32 %v5049_v36, %v8831_v1  ;;  %v7124_v16 = vld [vmem:[%s9357_s10 + $0x68] sm:$0xff]  }
0x2322   :  { %v5028_v27 = vmul.f32 %v5027_v11, %v5013_v58  ;;  %v4994_v12 = vrot.slane %v4993_v42, 1  ;;  %6813 = vmatpush3.bf16.msra.mxu0 %v7119_v17  ;;  %v5039_v56 = vsel %vm9577_vm7, %v5038_v35, %v4956_v2  ;;  %v5197_v3 = vrot.slane %v9062_v18, %v7596_v44  ;;  %v7125_v35 = vld [vmem:[%s9357_s10 + $0x60] sm:$0xff]  }
0x2323   :  { %6838 = vmatprep.subr.bf16.mxu0 %v9475_v5  ;;  %vm9586_vm2 = vcmp.ge.s32.totalorder %v7902_v33, 2  ;;  %vm9587_vm6 = vcmp.ge.s32.totalorder %v7660_v13, 2 }
0x2324   :  { %v5029_v50 = vrot.slane %v5028_v27, 4  ;;  %v4995_v55 = vadd.f32 %v4994_v12, %v4993_v42  ;;  %v5071_v8 = vpop.permute.xlu1 %5070 }
0x2326   :  { %v5030_v15 = vadd.f32 %v5029_v50, %v5028_v27  ;;  %v5040_v32 = vsel %vm9578_vm8, %v5039_v56, %v4995_v55  ;;  %v7122_v55 = vld [vmem:[%s9357_s10 + $0x78] sm:$0xff]   ;;  %vm9591_vm8 = vcmp.ge.s32.totalorder %v7660_v13, 1 }
0x2328   :  { %v5031_v23 = vrot.slane %v5030_v15, 2 }
0x232a   :  { %v5032_v34 = vadd.f32 %v5031_v23, %v5030_v15 }
0x232c   :  { %v5033_v9 = vrot.slane %v5032_v34, 1 }
0x232e   :  { %v5034_v31 = vadd.f32 %v5033_v9, %v5032_v34  ;;  %v7123_v9 = vld [vmem:[%s9357_s10 + $0x70] sm:$0xff]  }
0x2330   :  { %v5041_v4 = vsel %vm9579_vm11, %v5040_v32, %v5034_v31  ;;  %v5260_v32 = vrot.slane %v9062_v18, %v7896_v30  ;;  %vm9592_vm11 = vcmask 31744  }
0x2331   :  { %5043 = vrot.lane.b32.xlu0 %v5041_v4, %s7421_s17  ;;  %v5052_v40 = vadd.f32 %v5050_v59, %v5041_v4  ;;  %v5272_v4 = vrot.slane %v9062_v18, %v7812_v41 }
0x2333   :  { %v5076_v60 = vmul.f32 %v5071_v8, %v5052_v40  ;;  %v5300_v8 = vrot.slane %v9062_v18, %v7888_v25 }
0x2335   :  { %5072 = vrot.lane.b32.xlu0 %v5067_v53, %s7421_s17 }
0x23a3   :  { %v5044_v48 = vpop.permute.xlu0 %5043 }
0x23a4   :  { %v5053_v11 = vadd.f32 %v5051_v51, %v5044_v48  ;;  %v5286_v51 = vrot.slane %v9062_v18, %v7905_v45 }
0x23a7   :  { %v5073_v58 = vpop.permute.xlu0 %5072 }
0x23a8   :  { %v5077_v39 = vmul.f32 %v5073_v58, %v5053_v11 }
0x23aa   :  { %v5078_v27 = vpack.c.bf16 %v5077_v39, %v5076_v60 }
0x23ac   :  { %6815 = vmatmul.mubr.msk.bf16.vlgmr.msra.gmra.mxu0 %vm106_vm3, %v5078_v27 }
0x23ad   :  { %6840 = vmatprep.mubr.msk.bf16.mxu0 %vm7415_vm0, %v9475_v5 }
0x246c   :  { %v5140_v0 = vpop.f32.mrf.mxu0 }
0x246d   :  { %v9040_v46 = vadd.f32 %v5140_v0, %v8491_v21  ;;  %v7120_v21 = vld [vmem:[%s9356_s9 + $0x38] sm:$0xff]  }
0x246e   :  { %v6816_v28 = vpop.f32.mrf.mxu0  ;;  %6819 = vmatpush3.bf16.msra.mxu1 %v7120_v21 }
0x246f   :  { %v5178_v6 = vmul.f32 %v9040_v46, %v9040_v46  ;;  %6820 = vmatprep.subr.bf16.mxu1 %v9475_v5 }
0x2470   :  { %v5143_v1 = vpop.f32.mrf.mxu0 }
0x2471   :  { %v9045_v42 = vadd.f32 %v5143_v1, %v8496_v61  ;;  %v5180_v57 = vsel %vm9580_vm10, %v5178_v6, 0.0  ;;  %v7121_v61 = vld [vmem:[%s9356_s9 + $0x30] sm:$0xff]   ;;  %vm9606_vm10 = vcmask 1042432   ;;  %s6069_s9 = sshll.u32 %s7447_s24, 4  ;;  %s6070_s9 = int_to_ptr.vmem [resolvable:$true] %s6069_s9 }
0x2472   :  { %5181 = vadd.xlane.f32.xlu1 %v5180_v57  ;;  %v6817_v63 = vpop.f32.mrf.mxu0  ;;  %6821 = vmatpush3.bf16.msra.mxu1 %v7121_v61  ;;  %s7391_s2 = scalar_lea.vmem %s6070_s9, 32  ;;  %p7396_p1 = scmp.lt.s32.totalorder %s6070_s9, %s6070_s9 }
0x2473   :  { %v5179_v50 = vmul.f32 %v9045_v42, %v9045_v42  ;;  %6826 = vmatprep.subr.bf16.mxu1 %v9475_v5  ;;  %p7392_p0 = scmp.ne.s32.totalorder %s6070_s9, %s7391_s2  ;;  %p7397_p2 = scmp.lt.s32.totalorder %s7391_s2, %s7391_s2 }
0x2475   :  { %v5183_v22 = vsel %vm9581_vm13, %v5179_v50, 0.0  ;;  %vm9607_vm13 = vcmask 1043456   ;;  %p7398_p3 = por %p7397_p2, %p7396_p1 }
0x2476   :  { %5184 = vadd.xlane.f32.xlu0 %v5183_v22 }
0x2477   :  { %p7399_p4 = pnand %p7398_p3, %p7392_p0 }
0x24fb   :  { %v5182_v24 = vpop.xlane.xlu1 %5181 }
0x24fc   :  { %v5186_v47 = vmul.f32 0.03125, %v5182_v24 }
0x24fe   :  { %v5188_v26 = vadd.f32 1e-05, %v5186_v47 }
0x24ff   :  { %v5185_v15 = vpop.xlane.xlu0 %5184 }
0x2500   :  { %7346 = vrsqrt.f32 %v5188_v26  ;;  %v5187_v19 = vmul.f32 0.03125, %v5185_v15 }
0x2502   :  { %v5189_v12 = vadd.f32 1e-05, %v5187_v19 }
0x2504   :  { %7348 = vrsqrt.f32 %v5189_v12 }
0x250d   :  { %v7347_v29 = vpop.eup %7346 }
0x250e   :  { %v5192_v23 = vmul.f32 %v7347_v29, %v9040_v46 }
0x2510   :  { %v5198_v34 = vmul.f32 %v5197_v3, %v5192_v23  ;;  %v5308_v23 = vrot.slane %v9062_v18, %v7606_v49 }
0x2511   :  { %v7349_v54 = vpop.eup %7348 }
0x2512   :  { %v5193_v2 = vmul.f32 %v7349_v54, %v9045_v42 }
0x2514   :  { %v5199_v17 = vmul.f32 %v5197_v3, %v5193_v2 }
0x2516   :  { %v5200_v38 = vpack.c.bf16 %v5199_v17, %v5198_v34 }
0x2518   :  { %6823 = vmatmul.mubr.msk.bf16.vlgmr.msra.gmra.mxu1 %vm9582_vm14, %v5200_v38  ;;  %vm9608_vm14 = vcmask 1044480  }
0x2519   :  { %6834 = vmatprep.mubr.msk.bf16.mxu1 %vm7415_vm0, %v9475_v5  ;;  %6827 = vmatpush3.bf16.msra.mxu1 %v7122_v55 }
0x251a   :  { %6828 = vmatprep.subr.bf16.mxu1 %v9475_v5 }
0x251d   :  { %6829 = vmatpush3.bf16.msra.mxu1 %v7123_v9 }
0x251e   :  { %6830 = vmatprep.subr.bf16.mxu1 %v9475_v5 }
0x2521   :  { %6831 = vmatpush3.bf16.msra.mxu1 %v7124_v16 }
0x2522   :  { %6832 = vmatprep.subr.bf16.mxu1 %v9475_v5 }
0x2525   :  { %6833 = vmatpush3.bf16.msra.mxu1 %v7125_v35 }
0x2526   :  { %6856 = vmatprep.subr.bf16.mxu1 %v9475_v5 }
0x25d8   :  { %v9087_v31 = vpop.f32.mrf.mxu1 }
0x25d9   :  { %v5263_v53 = vrot.slane %v9087_v31, 5  ;;  %v5277_v36 = vrot.slane %v9087_v31, 6  ;;  %v5291_v40 = vrot.slane %v9087_v31, 7  ;;  %v5261_v63 = vmul.f32 %v5260_v32, %v9087_v31 }
0x25da   :  { %v6824_v56 = vpop.f32.mrf.mxu1 }
0x25dc   :  { %v9091_v10 = vpop.f32.mrf.mxu1 }
0x25dd   :  { %v5264_v59 = vrot.slane %v9091_v10, 5  ;;  %v5278_v48 = vrot.slane %v9091_v10, 6  ;;  %v5292_v11 = vrot.slane %v9091_v10, 7  ;;  %v5262_v50 = vmul.f32 %v5260_v32, %v9091_v10 }
0x25de   :  { %v6825_v58 = vpop.f32.mrf.mxu1 }
0x25df   :  { %v5265_v60 = vsel %vm1523_vm12, %v5263_v53, %v5264_v59  ;;  %v5266_v39 = vsel %vm1523_vm12, %v5264_v59, %v5263_v53  ;;  %v5279_v27 = vsel %vm9583_vm5, %v5277_v36, %v5278_v48  ;;  %v5280_v0 = vsel %vm9584_vm4, %v5278_v48, %v5277_v36 }
0x25e0   :  { %v5267_v28 = vsel %vm9585_vm1, %v5266_v39, 0.0  ;;  %v5268_v6 = vsel %vm1527_vm15, %v5265_v60, 0.0  ;;  %v5281_v1 = vsel %vm9586_vm2, %v5280_v0, 0.0  ;;  %v5282_v57 = vsel %vm9587_vm6, %v5279_v27, 0.0 }
0x25e1   :  { %v5273_v22 = vmul.f32 %v5272_v4, %v5267_v28  ;;  %v5274_v21 = vmul.f32 %v5272_v4, %v5268_v6  ;;  %v5287_v61 = vmul.f32 %v5286_v51, %v5281_v1  ;;  %v5288_v24 = vmul.f32 %v5286_v51, %v5282_v57  ;;  %v6296_v51 = vld [vmem:[%s9358_s11 + $0x6] sm:$0x3] }
0x25e2   :  { %vm9588_vm12 = vcmp.lt.s32.totalorder %v7593_v43, 1  ;;  %vm9590_vm15 = vcmp.ge.s32.totalorder %v7902_v33, 1  ;;  %v5398_v57 = vrot.slane %v9062_v18, %v7774_v52  ;;  %vm9609_vm5 = vcmask 1045504  }
0x25e3   :  { %v5293_v47 = vsel %vm9588_vm12, %v5291_v40, %v5292_v11  ;;  %vm9589_vm7 = vmmov %vm9588_vm12  ;;  %v5275_v15 = vadd.f32 %v5273_v22, %v5261_v63  ;;  %v5276_v19 = vadd.f32 %v5274_v21, %v5262_v50  ;;  %vm9610_vm4 = vcmask 1046528  }
0x25e4   :  { %v5294_v26 = vsel %vm9589_vm7, %v5292_v11, %v5291_v40  ;;  %v5296_v29 = vsel %vm9591_vm8, %v5293_v47, 0.0  ;;  %v5403_v11 = vsel %vm1670_vm9, %v6296_v51, 0 }
0x25e5   :  { %v5295_v12 = vsel %vm9590_vm15, %v5294_v26, 0.0  ;;  %v5289_v3 = vadd.f32 %v5287_v61, %v5275_v15  ;;  %v5290_v54 = vadd.f32 %v5288_v24, %v5276_v19  ;;  %v5302_v34 = vmul.f32 %v5300_v8, %v5296_v29  ;;  %6839 = vmatpush3.bf16.msra.mxu0 %v5403_v11 }
0x25e6   :  { %v5301_v2 = vmul.f32 %v5300_v8, %v5295_v12  ;;  %6844 = vmatprep.subr.bf16.mxu0 %v9475_v5 }
0x25e7   :  { %v5304_v38 = vadd.f32 %v5302_v34, %v5290_v54  ;;  %v9595_v34 = vmov 2  }
0x25e8   :  { %v5303_v17 = vadd.f32 %v5301_v2, %v5289_v3  ;;  %v9594_v3 = vmov 4  }
0x25e9   :  { %v5310_v43 = vadd.f32 %v5308_v23, %v5304_v38 }
0x25ea   :  { %v5309_v55 = vadd.f32 %v5308_v23, %v5303_v17  ;;  %v9593_v23 = vmov 9   ;;  %v9596_v17 = vmov 13  }
0x25eb   :  { %v5312_v16 = vsub.f32 0.0, %v5310_v43 }
0x25ec   :  { %v5311_v9 = vsub.f32 0.0, %v5309_v55 }
0x25ed   :  { %v5315_v56 = vmul.f32 1.442695, %v5312_v16  ;;  %v9598_v16 = vmov 11  }
0x25ee   :  { %v5313_v35 = vmul.f32 1.442695, %v5311_v9 }
0x25f0   :  { %7350 = vpow2.f32 %v5313_v35  ;;  %v9599_v35 = vmov 12  }
0x25f1   :  { %7352 = vpow2.f32 %v5315_v56 }
0x25fd   :  { %v7351_v33 = vpop.eup %7350 }
0x25fe   :  { %v7353_v13 = vpop.eup %7352  ;;  %v5317_v32 = vadd.f32 1.0, %v7351_v33  ;;  %v9600_v33 = vmov 5  }
0x25ff   :  { %v5318_v4 = vadd.f32 1.0, %v7353_v13  ;;  %v9602_v13 = vmov 15  }
0x2600   :  { %7354 = vrcp.f32 %v5317_v32  ;;  %v9603_v32 = vmov 14  }
0x2601   :  { %7356 = vrcp.f32 %v5318_v4  ;;  %v5878_v4 = vsub.f32 0.0, %v9087_v31 }
0x260d   :  { %v7355_v53 = vpop.eup %7354 }
0x260e   :  { %v7357_v36 = vpop.eup %7356  ;;  %v9133_v59 = vmul.f32 %v7355_v53, %v5309_v55  ;;  %v5880_v53 = vmul.f32 1.442695, %v5878_v4 }
0x260f   :  { %v9135_v48 = vmul.f32 %v7357_v36, %v5310_v43  ;;  %v9597_v43 = vmov 3  }
0x2611   :  { %v5325_v40 = vpack.c.bf16 %v9135_v48, %v9133_v59 }
0x2613   :  { %6835 = vmatmul.mubr.msk.bf16.vlgmr.msra.gmra.mxu1 %vm106_vm3, %v5325_v40 }
0x2614   :  { %6860 = vmatprep.mubr.msk.bf16.mxu1 %vm7415_vm0, %v9475_v5 }
0x26d3   :  { %v5387_v8 = vpop.f32.mrf.mxu1 }
0x26d4   :  { %5504 = vrot.lane.b32.xlu1 %v5387_v8, %s7430_s22  ;;  %5466 = vrot.lane.b32.xlu0 %v5387_v8, %s7431_s25 }
0x26d5   :  { %v6836_v58 = vpop.f32.mrf.mxu1 }
0x26d7   :  { %v5390_v60 = vpop.f32.mrf.mxu1 }
0x26d8   :  { %v5394_v39 = vpack.c.bf16 %v5390_v60, %v5387_v8  ;;  %5506 = vrot.lane.b32.xlu0 %v5390_v60, %s7430_s22  ;;  %5468 = vrot.lane.b32.xlu1 %v5390_v60, %s7431_s25 }
0x26d9   :  { %v6837_v27 = vpop.f32.mrf.mxu1 }
0x26da   :  { %6841 = vmatmul.mubr.msk.bf16.vlgmr.msra.gmra.mxu0 %vm9592_vm11, %v5394_v39  ;;  %v7126_v39 = vld [vmem:[%s9360_s13 + $0x78] sm:$0xff]  }
0x26db   :  { %6852 = vmatprep.mubr.msk.bf16.mxu0 %vm7415_vm0, %v9475_v5  ;;  %6845 = vmatpush3.bf16.msra.mxu0 %v7126_v39  ;;  %vm9605_vm0 = vcmask 1040384  }
0x26dc   :  { %6846 = vmatprep.subr.bf16.mxu0 %v9475_v5  ;;  %vm9617_vm1 = vmmov %vm9605_vm0 }
0x2746   :  { %v5505_v0 = vpop.permute.xlu1 %5504  ;;  %v5467_v28 = vpop.permute.xlu0 %5466 }
0x2747   :  { %5510 = vxpose.xlu0.b32.start [1/2] (short) (narrow) %v5505_v0, 8  ;;  %5472 = vxpose.xlu1.b32.start [1/2] (short) (narrow) %v5467_v28, 8  ;;  %v7127_v28 = vld [vmem:[%s9360_s13 + $0x70] sm:$0xff]  }
0x2748   :  { %6847 = vmatpush3.bf16.msra.mxu0 %v7127_v28 }
0x2749   :  { %6848 = vmatprep.subr.bf16.mxu0 %v9475_v5 }
0x274a   :  { %v5507_v6 = vpop.permute.xlu0 %5506  ;;  %v5469_v1 = vpop.permute.xlu1 %5468 }
0x274b   :  { %5511 = vxpose.xlu0.b32.end [2/2] (short) (narrow) %v5507_v6, 8  ;;  %5473 = vxpose.xlu1.b32.end [2/2] (short) (narrow) %v5469_v1, 8 }
0x2769   :  { %7026 = vset.pattern.permute.xlu1 %v9562_v7 }
0x2774   :  { %7025 = vset.pattern.permute.xlu0 %v9563_v20 }
0x279a   :  { %v5439_v63 = vpop.f32.mrf.mxu0 }
0x279b   :  { %v9158_v50 = vadd.f32 %v5439_v63, %v5398_v57 }
0x279c   :  { %v6842_v22 = vpop.f32.mrf.mxu0 }
0x279d   :  { %v5448_v40 = vand.u32 2147483647, %v9158_v50 }
0x279e   :  { %v5442_v21 = vpop.f32.mrf.mxu0 }
0x279f   :  { %v5443_v61 = vadd.f32 %v5442_v21, %v5398_v57 }
0x27a0   :  { %v6843_v24 = vpop.f32.mrf.mxu0 }
0x27a1   :  { %v5449_v47 = vand.u32 2147483647, %v5443_v61  ;;  %v5447_v38 = vmax.f32 %v5443_v61, 0.0  ;;  %v5446_v24 = vmax.f32 %v9158_v50, 0.0 }
0x27a3   :  { %v5451_v26 = vsub.f32 0.0, %v5449_v47 }
0x27a5   :  { %v5454_v15 = vmul.f32 1.442695, %v5451_v26 }
0x27a7   :  { %7358 = vpow2.f32 %v5454_v15 }
0x27b4   :  { %v7359_v19 = vpop.eup %7358 }
0x27b5   :  { %v5457_v12 = vadd.f32 1.0, %v7359_v19 }
0x27b7   :  { %7360 = vlog2.f32 %v5457_v12 }
0x27b8   :  { %7362 = vpow2.f32 %v5880_v53 }
0x27c3   :  { %v5488_v29 = vpop.trf.xlu1  ;;  %v5526_v9 = vpop.trf.xlu0 }
0x27c4   :  { %5560 = vperm.xlu1 %7026, %v5488_v29   ;;  %5556 = vperm.xlu0 %7025, %v5488_v29   ;;  %v7361_v54 = vpop.eup %7360 }
0x27c5   :  { %v5461_v2 = vmul.f32 0.6931472, %v7361_v54 }
0x27c7   :  { %v5463_v55 = vadd.f32 %v5461_v2, %v5447_v38 }
0x27c8   :  { %7027 = vset.pattern.permute.xlu1 %v9564_v14  ;;  %7030 = vset.pattern.permute.xlu0 %v9565_v62 }
0x27c9   :  { %5587 = vperm.xlu1 %7027, %v5488_v29   ;;  %5630 = vperm.xlu0 %7030, %v5488_v29   ;;  %v5548_v56 = vmul.f32 %v5463_v55, %v9135_v48 }
0x27cd   :  { %7028 = vset.pattern.permute.xlu1 %v9593_v23  ;;  %7033 = vset.pattern.permute.xlu0 %v9594_v3 }
0x27ce   :  { %5591 = vperm.xlu1 %7028, %v5488_v29   ;;  %5704 = vperm.xlu0 %7033, %v5488_v29  }
0x27d2   :  { %7029 = vset.pattern.permute.xlu1 %v9595_v34  ;;  %7036 = vset.pattern.permute.xlu0 %v9596_v17 }
0x27d3   :  { %5626 = vperm.xlu1 %7029, %v5488_v29   ;;  %5747 = vperm.xlu0 %7036, %v5488_v29  }
0x27d7   :  { %7031 = vset.pattern.permute.xlu1 %v9597_v43  ;;  %5543 = vrot.lane.b32.xlu0 %v5463_v55, %s7421_s17 }
0x27d8   :  { %5665 = vperm.xlu1 %7031, %v5488_v29   ;;  %7039 = vset.pattern.permute.xlu0 %v9563_v20  ;;  %v9601_v20 = vmov 6  }
0x27db   :  { %5566 = vperm.xlu0 %7039, %v5526_v9  }
0x27dc   :  { %7032 = vset.pattern.permute.xlu1 %v9598_v16 }
0x27dd   :  { %5669 = vperm.xlu1 %7032, %v5488_v29  }
0x27df   :  { %7042 = vset.pattern.permute.xlu0 %v9593_v23 }
0x27e0   :  { %5600 = vperm.xlu0 %7042, %v5526_v9  }
0x27e1   :  { %7034 = vset.pattern.permute.xlu1 %v9599_v35 }
0x27e2   :  { %5708 = vperm.xlu1 %7034, %v5488_v29  }
0x27e4   :  { %5550 = vrot.lane.b32.xlu0 %v5548_v56, %s7421_s17 }
0x27e5   :  { %7045 = vset.pattern.permute.xlu0 %v9597_v43 }
0x27e6   :  { %7035 = vset.pattern.permute.xlu1 %v9600_v33 }
0x27e7   :  { %5743 = vperm.xlu1 %7035, %v5488_v29  }
0x27e8   :  { %5674 = vperm.xlu0 %7045, %v5526_v9  }
0x27eb   :  { %7037 = vset.pattern.permute.xlu1 %v9601_v20 }
0x27ec   :  { %5782 = vperm.xlu1 %7037, %v5488_v29   ;;  %7048 = vset.pattern.permute.xlu0 %v9602_v13 }
0x27ed   :  { %5825 = vperm.xlu0 %7048, %v5488_v29  }
0x27f0   :  { %7038 = vset.pattern.permute.xlu1 %v9603_v32 }
0x27f1   :  { %5786 = vperm.xlu1 %7038, %v5488_v29   ;;  %7051 = vset.pattern.permute.xlu0 %v9600_v33 }
0x27f2   :  { %5752 = vperm.xlu0 %7051, %v5526_v9  }
0x27f5   :  { %7040 = vset.pattern.permute.xlu1 %v9562_v7  ;;  %v9604_v7 = vmov 7  }
0x27f6   :  { %5570 = vperm.xlu1 %7040, %v5526_v9   ;;  %7054 = vset.pattern.permute.xlu0 %v9603_v32 }
0x27f7   :  { %5795 = vperm.xlu0 %7054, %v5526_v9  }
0x27fa   :  { %7041 = vset.pattern.permute.xlu1 %v9564_v14  ;;  %v7363_v14 = vpop.eup %7362 }
0x27fb   :  { %5596 = vperm.xlu1 %7041, %v5526_v9   ;;  %7057 = vset.pattern.permute.xlu0 %v9602_v13  ;;  %v5884_v36 = vadd.f32 1.0, %v7363_v14 }
0x27fd   :  { %7364 = vrcp.f32 %v5884_v36 }
0x27ff   :  { %7043 = vset.pattern.permute.xlu1 %v9595_v34 }
0x2800   :  { %5635 = vperm.xlu1 %7043, %v5526_v9  }
0x2804   :  { %7044 = vset.pattern.permute.xlu1 %v9565_v62  ;;  %v5450_v62 = vsub.f32 0.0, %v5448_v40 }
0x2805   :  { %5639 = vperm.xlu1 %7044, %v5526_v9  }
0x2806   :  { %v5452_v51 = vmul.f32 1.442695, %v5450_v62 }
0x2808   :  { %7366 = vpow2.f32 %v5452_v51 }
0x2809   :  { %7046 = vset.pattern.permute.xlu1 %v9598_v16 }
0x280a   :  { %5678 = vperm.xlu1 %7046, %v5526_v9   ;;  %v7365_v11 = vpop.eup %7364 }
0x280b   :  { %v5890_v8 = vmul.f32 %v7365_v11, %v9087_v31 }
0x280e   :  { %7047 = vset.pattern.permute.xlu1 %v9604_v7 }
0x280f   :  { %5821 = vperm.xlu1 %7047, %v5488_v29   ;;  %v9219_v29 = vld [vmem:[%s9359_s12 + $0x18] sm:$0xff] }
0x2813   :  { %7049 = vset.pattern.permute.xlu1 %v9594_v3 }
0x2814   :  { %5713 = vperm.xlu1 %7049, %v5526_v9  }
0x2815   :  { %v7367_v58 = vpop.eup %7366 }
0x2816   :  { %v5456_v60 = vadd.f32 1.0, %v7367_v58 }
0x2818   :  { %7050 = vset.pattern.permute.xlu1 %v9599_v35  ;;  %7368 = vlog2.f32 %v5456_v60 }
0x2819   :  { %5717 = vperm.xlu1 %7050, %v5526_v9  }
0x281d   :  { %7052 = vset.pattern.permute.xlu1 %v9596_v17 }
0x281e   :  { %5756 = vperm.xlu1 %7052, %v5526_v9  }
0x2822   :  { %7053 = vset.pattern.permute.xlu1 %v9601_v20 }
0x2823   :  { %5791 = vperm.xlu1 %7053, %v5526_v9  }
0x2825   :  { %v7369_v63 = vpop.eup %7368 }
0x2826   :  { %v5459_v22 = vmul.f32 0.6931472, %v7369_v63 }
0x2827   :  { %7055 = vset.pattern.permute.xlu1 %v9604_v7 }
0x2828   :  { %5830 = vperm.xlu1 %7055, %v5526_v9   ;;  %v5462_v47 = vadd.f32 %v5459_v22, %v5446_v24 }
0x282c   :  { %7056 = vset.pattern.permute.xlu1 %v9602_v13 }
0x282d   :  { %5834 = vperm.xlu1 %7056, %v5526_v9   ;;  %v5547_v9 = vmul.f32 %v5462_v47, %v9133_v59 }
0x2831   :  { %5894 = vrot.lane.b32.xlu1 %v5890_v8, %s7421_s17 }
0x283f   :  { %v5561_v27 = vpop.permute.xlu1 %5560  ;;  %v5557_v0 = vpop.permute.xlu0 %5556 }
0x2840   :  { %v5563_v53 = vsel %vm106_vm3, %v5557_v0, %v5561_v27 }
0x2844   :  { %v5588_v31 = vpop.permute.xlu1 %5587  ;;  %v5631_v6 = vpop.permute.xlu0 %5630 }
0x2849   :  { %v5592_v1 = vpop.permute.xlu1 %5591  ;;  %v9206_v57 = vpop.permute.xlu0 %5704 }
0x284a   :  { %v5594_v11 = vsel %vm106_vm3, %v5588_v31, %v5592_v1 }
0x284e   :  { %v5627_v21 = vpop.permute.xlu1 %5626  ;;  %v9208_v61 = vpop.permute.xlu0 %5747 }
0x284f   :  { %v5633_v63 = vsel %vm106_vm3, %v5627_v21, %v5631_v6 }
0x2852   :  { %v5544_v26 = vpop.permute.xlu0 %5543 }
0x2853   :  { %v9212_v15 = vsel %vm106_vm3, %v5462_v47, %v5544_v26  ;;  %v5666_v19 = vpop.permute.xlu1 %5665 }
0x2854   :  { %v5612_v12 = vrot.slane %v9212_v15, %v7606_v49  ;;  %v5651_v34 = vrot.slane %v9212_v15, %v7774_v52  ;;  %v5690_v56 = vrot.slane %v9212_v15, %v7807_v37  ;;  %v5729_v14 = vrot.slane %v9212_v15, %v7812_v41 }
0x2855   :  { %v5768_v27 = vrot.slane %v9212_v15, %v7905_v45  ;;  %v5807_v26 = vrot.slane %v9212_v15, %v7888_v25 }
0x2856   :  { %v5613_v3 = vmul.f32 %v9219_v29, %v5612_v12  ;;  %v9222_v54 = vpop.permute.xlu0 %5566  ;;  %v5652_v55 = vmul.f32 %v9219_v29, %v5651_v34  ;;  %v5691_v20 = vmul.f32 %v9219_v29, %v5690_v56 }
0x2857   :  { %v5769_v31 = vmul.f32 %v9219_v29, %v5768_v27  ;;  %v5808_v6 = vmul.f32 %v9219_v29, %v5807_v26 }
0x2858   :  { %v5670_v23 = vpop.permute.xlu1 %5669  ;;  %v5614_v2 = vmul.f32 1.442695, %v5613_v3  ;;  %v5653_v35 = vmul.f32 1.442695, %v5652_v55  ;;  %v5692_v7 = vmul.f32 1.442695, %v5691_v20 }
0x2859   :  { %v5770_v47 = vmul.f32 1.442695, %v5769_v31  ;;  %v5672_v34 = vsel %vm106_vm3, %v5666_v19, %v5670_v23  ;;  %v5846_v19 = vrot.slane %v9212_v15, %v7896_v30 }
0x285a   :  { %7370 = vpow2.f32 %v5614_v2 }
0x285b   :  { %v9226_v17 = vpop.permute.xlu0 %5600  ;;  %7372 = vpow2.f32 %v5653_v35 }
0x285c   :  { %7374 = vpow2.f32 %v5692_v7 }
0x285d   :  { %v5709_v50 = vpop.permute.xlu1 %5708 }
0x285f   :  { %v5551_v43 = vpop.permute.xlu0 %5550 }
0x2860   :  { %v9237_v33 = vsel %vm106_vm3, %v5547_v9, %v5551_v43  ;;  %v5809_v9 = vmul.f32 1.442695, %v5808_v6 }
0x2861   :  { %v5577_v32 = vrot.slane %v9237_v33, %v7596_v44  ;;  %v5607_v40 = vrot.slane %v9237_v33, %v7606_v49  ;;  %v5730_v44 = vmul.f32 %v9219_v29, %v5729_v14  ;;  %v5646_v0 = vrot.slane %v9237_v33, %v7774_v52 }
0x2862   :  { %v9228_v38 = vpop.permute.xlu1 %5743  ;;  %v5685_v3 = vrot.slane %v9237_v33, %v7807_v37  ;;  %v5724_v35 = vrot.slane %v9237_v33, %v7812_v41  ;;  %v5879_v14 = vsub.f32 0.0, %v9091_v10  ;;  %v5763_v41 = vrot.slane %v9237_v33, %v7905_v45 }
0x2863   :  { %v9247_v36 = vmul.f32 %v5577_v32, %v5563_v53  ;;  %v5608_v8 = vmul.f32 %v5607_v40, %v5594_v11  ;;  %v5731_v39 = vmul.f32 1.442695, %v5730_v44  ;;  %v5647_v1 = vmul.f32 %v5646_v0, %v5633_v63  ;;  %v5675_v53 = vpop.permute.xlu0 %5674 }
0x2864   :  { %v5686_v21 = vmul.f32 %v5685_v3, %v5672_v34  ;;  %v5882_v44 = vmul.f32 1.442695, %v5879_v14 }
0x2865   :  { %7376 = vpow2.f32 %v5731_v39 }
0x2866   :  { %7378 = vpow2.f32 %v5770_v47 }
0x2867   :  { %v9232_v16 = vpop.permute.xlu1 %5782  ;;  %v7371_v4 = vpop.eup %7370  ;;  %7380 = vpow2.f32 %v5809_v9 }
0x2868   :  { %v5616_v51 = vmul.f32 %v7371_v4, %v9247_v36  ;;  %v7373_v28 = vpop.eup %7372  ;;  %v5711_v4 = vsel %vm106_vm3, %v9206_v57, %v5709_v50  ;;  %v5750_v57 = vsel %vm106_vm3, %v9228_v38, %v9208_v61  ;;  %v5826_v27 = vpop.permute.xlu0 %5825  ;;  %7382 = vpow2.f32 %v5882_v44 }
0x2869   :  { %v7375_v2 = vpop.eup %7374  ;;  %v5725_v23 = vmul.f32 %v5724_v35, %v5711_v4  ;;  %v5764_v39 = vmul.f32 %v5763_v41, %v5750_v57 }
0x286a   :  { %v5617_v60 = vadd.f32 %v5616_v51, %v5608_v8  ;;  %v5847_v51 = vmul.f32 %v9219_v29, %v5846_v19 }
0x286c   :  { %v9240_v13 = vpop.permute.xlu1 %5786  ;;  %v5655_v49 = vmul.f32 %v7373_v28, %v5617_v60  ;;  %v5848_v8 = vmul.f32 1.442695, %v5847_v51 }
0x286e   :  { %v5656_v24 = vadd.f32 %v5655_v49, %v5647_v1  ;;  %7384 = vpow2.f32 %v5848_v8  ;;  %v5753_v1 = vpop.permute.xlu0 %5752 }
0x2870   :  { %v5694_v52 = vmul.f32 %v7375_v2, %v5656_v24 }
0x2871   :  { %v5571_v62 = vpop.permute.xlu1 %5570 }
0x2872   :  { %v5695_v43 = vadd.f32 %v5694_v52, %v5686_v21  ;;  %v7377_v56 = vpop.eup %7376  ;;  %v5573_v29 = vsel %vm106_vm3, %v9222_v54, %v5571_v62  ;;  %v5802_v62 = vrot.slane %v9237_v33, %v7888_v25  ;;  %v5796_v21 = vpop.permute.xlu0 %5795 }
0x2873   :  { %v7379_v11 = vpop.eup %7378 }
0x2874   :  { %v5733_v32 = vmul.f32 %v7377_v56, %v5695_v43  ;;  %v7381_v47 = vpop.eup %7380 }
0x2875   :  { %v7383_v41 = vpop.eup %7382 }
0x2876   :  { %v5597_v58 = vpop.permute.xlu1 %5596  ;;  %v5734_v7 = vadd.f32 %v5733_v32, %v5725_v23 }
0x2877   :  { %v5603_v15 = vsel %vm106_vm3, %v5597_v58, %v9226_v17  ;;  %v5579_v17 = vmul.f32 %v9247_v36, %v5573_v29 }
0x2878   :  { %v5772_v50 = vmul.f32 %v7379_v11, %v5734_v7  ;;  %v5618_v63 = vmul.f32 %v5617_v60, %v5603_v15 }
0x2879   :  { %v5580_v34 = vrot.slane %v5579_v17, 4 }
0x287a   :  { %v5773_v61 = vadd.f32 %v5772_v50, %v5764_v39  ;;  %v5619_v60 = vrot.slane %v5618_v63, 4 }
0x287b   :  { %v5636_v22 = vpop.permute.xlu1 %5635  ;;  %v5581_v56 = vadd.f32 %v5580_v34, %v5579_v17  ;;  %v7385_v15 = vpop.eup %7384 }
0x287c   :  { %v5811_v3 = vmul.f32 %v7381_v47, %v5773_v61 }
0x287d   :  { %v5582_v11 = vrot.slane %v5581_v56, 2 }
0x2880   :  { %v5640_v12 = vpop.permute.xlu1 %5639 }
0x2881   :  { %v5642_v0 = vsel %vm106_vm3, %v5636_v22, %v5640_v12  ;;  %v5789_v22 = vsel %vm106_vm3, %v9232_v16, %v9240_v13 }
0x2882   :  { %v5657_v38 = vmul.f32 %v5656_v24, %v5642_v0  ;;  %v5803_v52 = vmul.f32 %v5802_v62, %v5789_v22  ;;  %v7128_v62 = vld [vmem:[%s9360_s13 + $0x68] sm:$0xff]  }
0x2883   :  { %6849 = vmatpush3.bf16.msra.mxu0 %v7128_v62 }
0x2884   :  { %v5658_v24 = vrot.slane %v5657_v38, 4  ;;  %v5812_v16 = vadd.f32 %v5811_v3, %v5803_v52  ;;  %6850 = vmatprep.subr.bf16.mxu0 %v9475_v5 }
0x2885   :  { %v5679_v55 = vpop.permute.xlu1 %5678 }
0x2886   :  { %v5681_v49 = vsel %vm106_vm3, %v5675_v53, %v5679_v55  ;;  %v5620_v55 = vadd.f32 %v5619_v60, %v5618_v63  ;;  %v5659_v13 = vadd.f32 %v5658_v24, %v5657_v38  ;;  %v5841_v53 = vrot.slane %v9237_v33, %v7896_v30 }
0x2887   :  { %v5696_v58 = vmul.f32 %v5695_v43, %v5681_v49  ;;  %v5583_v49 = vadd.f32 %v5582_v11, %v5581_v56 }
0x2888   :  { %v5621_v23 = vrot.slane %v5620_v55, 2 }
0x2889   :  { %v5697_v36 = vrot.slane %v5696_v58, 4  ;;  %v5584_v22 = vrot.slane %v5583_v49, 1 }
0x288a   :  { %v5822_v20 = vpop.permute.xlu1 %5821  ;;  %v5622_v39 = vadd.f32 %v5621_v23, %v5620_v55 }
0x288b   :  { %v5698_v25 = vadd.f32 %v5697_v36, %v5696_v58  ;;  %v5828_v4 = vsel %vm106_vm3, %v5822_v20, %v5826_v27  ;;  %v5885_v20 = vadd.f32 1.0, %v7383_v41  ;;  %v5585_v34 = vadd.f32 %v5584_v22, %v5583_v49  ;;  %v9613_v49 = vld [vmem:[#allocation8_spill] sm:$0xff] }
0x288c   :  { %v5842_v50 = vmul.f32 %v5841_v53, %v5828_v4  ;;  %v5623_v38 = vrot.slane %v5622_v39, 1 }
0x288d   :  { %v5699_v57 = vrot.slane %v5698_v25, 2  ;;  %7386 = vrcp.f32 %v5885_v20 }
0x288f   :  { %v5714_v40 = vpop.permute.xlu1 %5713  ;;  %v5700_v63 = vadd.f32 %v5699_v57, %v5698_v25 }
0x2894   :  { %v5718_v28 = vpop.permute.xlu1 %5717 }
0x2895   :  { %v5720_v31 = vsel %vm106_vm3, %v5714_v40, %v5718_v28  ;;  %v5660_v40 = vrot.slane %v5659_v13, 2  ;;  %v5850_v28 = vmul.f32 %v7385_v15, %v5812_v16 }
0x2896   :  { %v5735_v26 = vmul.f32 %v5734_v7, %v5720_v31 }
0x2897   :  { %v5661_v27 = vadd.f32 %v5660_v40, %v5659_v13  ;;  %v5851_v33 = vadd.f32 %v5850_v28, %v5842_v50  ;;  %v5873_v40 = vrot.slane %v9062_v18, %v7807_v37  ;;  %v7131_v37 = vld [vmem:[%s9361_s14] sm:$0xff]   ;;  %v7390_v18 = vld [vmem:[%s9350_s3 + $0x8] sm:$0xff] }
0x2898   :  { %v5736_v6 = vrot.slane %v5735_v26, 4 }
0x2899   :  { %v5757_v54 = vpop.permute.xlu1 %5756  ;;  %v5662_v58 = vrot.slane %v5661_v27, 1  ;;  %v5875_v57 = vmul.f32 %v5873_v40, %v9135_v48  ;;  %v9611_v48 = vld [vmem:[#allocation7_spill] sm:$0xff] }
0x289a   :  { %v5759_v12 = vsel %vm106_vm3, %v5753_v1, %v5757_v54  ;;  %v5737_v19 = vadd.f32 %v5736_v6, %v5735_v26  ;;  %v5701_v26 = vrot.slane %v5700_v63, 1  ;;  %v7387_v53 = vpop.eup %7386 }
0x289b   :  { %v5774_v2 = vmul.f32 %v5773_v61, %v5759_v12  ;;  %v5624_v12 = vadd.f32 %v5623_v38, %v5622_v39 }
0x289c   :  { %v5738_v8 = vrot.slane %v5737_v19, 2  ;;  %v5702_v36 = vadd.f32 %v5701_v26, %v5700_v63 }
0x289d   :  { %v5775_v43 = vrot.slane %v5774_v2, 4  ;;  %v5859_v55 = vsel %vm9605_vm0, %v5585_v34, %v5624_v12 }
0x289e   :  { %v5792_v9 = vpop.permute.xlu1 %5791  ;;  %v5739_v31 = vadd.f32 %v5738_v8, %v5737_v19 }
0x289f   :  { %v5798_v35 = vsel %vm106_vm3, %v5792_v9, %v5796_v21  ;;  %v5776_v7 = vadd.f32 %v5775_v43, %v5774_v2  ;;  %v5663_v2 = vadd.f32 %v5662_v58, %v5661_v27  ;;  %v9612_v27 = vld [vmem:[#allocation5_spill] sm:$0xff] }
0x28a0   :  { %v5813_v32 = vmul.f32 %v5812_v16, %v5798_v35  ;;  %v5740_v60 = vrot.slane %v5739_v31, 1  ;;  %v7129_v16 = vld [vmem:[%s9360_s13 + $0x60] sm:$0xff]  }
0x28a1   :  { %v5777_v0 = vrot.slane %v5776_v7, 2  ;;  %v5860_v13 = vsel %vm1670_vm9, %v5859_v55, %v5663_v2  ;;  %6851 = vmatpush3.bf16.msra.mxu0 %v7129_v16 }
0x28a2   :  { %v5814_v14 = vrot.slane %v5813_v32, 4  ;;  %v5741_v21 = vadd.f32 %v5740_v60, %v5739_v31  ;;  %v5861_v25 = vsel %vm9606_vm10, %v5860_v13, %v5702_v36 }
0x28a3   :  { %v5831_v51 = vpop.permute.xlu1 %5830  ;;  %v5778_v1 = vadd.f32 %v5777_v0, %v5776_v7 }
0x28a4   :  { %v5815_v44 = vadd.f32 %v5814_v14, %v5813_v32  ;;  %v5862_v32 = vsel %vm9607_vm13, %v5861_v25, %v5741_v21  ;;  %v5891_v14 = vmul.f32 %v7387_v53, %v9091_v10  ;;  %v7130_v10 = vld [vmem:[%s9361_s14 + $0x8] sm:$0xff]  }
0x28a5   :  { %v5779_v3 = vrot.slane %v5778_v1, 1  ;;  %6857 = vmatpush3.bf16.msra.mxu1 %v7130_v10 }
0x28a6   :  { %v5816_v29 = vrot.slane %v5815_v44, 2  ;;  %6858 = vmatprep.subr.bf16.mxu1 %v9475_v5  ;;  %v9614_v5 = vld [vmem:[#allocation6_spill] sm:$0xff] }
0x28a7   :  { %v5780_v43 = vadd.f32 %v5779_v3, %v5778_v1 }
0x28a8   :  { %v5835_v30 = vpop.permute.xlu1 %5834  ;;  %v5817_v47 = vadd.f32 %v5816_v29, %v5815_v44 }
0x28a9   :  { %v5837_v61 = vsel %vm106_vm3, %v5831_v51, %v5835_v30  ;;  %v5863_v19 = vsel %vm9608_vm14, %v5862_v32, %v5780_v43  ;;  %v5874_v51 = vmul.f32 %v5873_v40, %v9133_v59  ;;  %6859 = vmatpush3.bf16.msra.mxu1 %v7131_v37  ;;  %v4233_v59 = vrot.slane %v7390_v18, %v7905_v45 }
0x28aa   :  { %v5852_v17 = vmul.f32 %v5851_v33, %v5837_v61  ;;  %v5818_v52 = vrot.slane %v5817_v47, 1 }
0x28ab   :  { %v4317_v28 = vadd.f32 %v9611_v48, %v4233_v59  ;;  %v4320_v63 = vadd.f32 %v9613_v49, %v4233_v59 }
0x28ac   :  { %v5853_v54 = vrot.slane %v5852_v17, 4  ;;  %v5819_v35 = vadd.f32 %v5818_v52, %v5817_v47  ;;  %v5895_v44 = vpop.permute.xlu1 %5894 }
0x28ad   :  { %v4323_v29 = vadd.f32 %v4317_v28, %v9612_v27  ;;  %v4324_v38 = vadd.f32 %v4320_v63, %v9614_v5 }
0x28ae   :  { %v5854_v24 = vadd.f32 %v5853_v54, %v5852_v17  ;;  %v5864_v23 = vsel %vm9609_vm5, %v5863_v19, %v5819_v35 }
0x28b0   :  { %v5855_v6 = vrot.slane %v5854_v24, 2 }
0x28b2   :  { %v5856_v9 = vadd.f32 %v5855_v6, %v5854_v24 }
0x28b4   :  { %v5857_v56 = vrot.slane %v5856_v9, 1 }
0x28b6   :  { %v5858_v4 = vadd.f32 %v5857_v56, %v5856_v9  ;;  %v6320_v9 = vld [vmem:[%s9362_s15] ss:$0 sm:$0xff] }
0x28b8   :  { %v5865_v7 = vsel %vm9610_vm4, %v5864_v23, %v5858_v4 }
0x28b9   :  { %5867 = vrot.lane.b32.xlu0 %v5865_v7, %s7421_s17  ;;  %v5876_v11 = vadd.f32 %v5874_v51, %v5865_v7 }
0x28bb   :  { %v5900_v8 = vmul.f32 %v5895_v44, %v5876_v11 }
0x28bd   :  { %5896 = vrot.lane.b32.xlu0 %v5891_v14, %s7421_s17 }
0x292b   :  { %v5868_v41 = vpop.permute.xlu0 %5867 }
0x292c   :  { %v5877_v50 = vadd.f32 %v5875_v57, %v5868_v41 }
0x292f   :  { %v5897_v15 = vpop.permute.xlu0 %5896 }
0x2930   :  { %v5901_v39 = vmul.f32 %v5897_v15, %v5877_v50 }
0x2932   :  { %v5902_v0 = vpack.c.bf16 %v5901_v39, %v5900_v8 }
0x2934   :  { %6853 = vmatmul.mubr.msk.bf16.vlgmr.msra.gmra.mxu0 %vm106_vm3, %v5902_v0  ;;  %vm9615_vm3 = vcmask 261120  }
0x2935   :  { %vm9616_vm9 = vmmov %vm9615_vm3 }
0x2936   :  { %vm9618_vm2 = vmmov %vm9615_vm3 }
0x29f4   :  { %v5964_v20 = vpop.f32.mrf.mxu0 }
0x29f5   :  { %v5971_v30 = vadd.f32 %v5964_v20, %v9040_v46 }
0x29f6   :  { %v6854_v33 = vpop.f32.mrf.mxu0 }
0x29f7   :  { %v5973_v31 = vadd.f32 %v5971_v30, %v4323_v29 }
0x29f8   :  { %v5967_v61 = vpop.f32.mrf.mxu0 }
0x29f9   :  { %v5975_v1 = vmul.f32 0.5, %v5973_v31  ;;  %v5972_v17 = vadd.f32 %v5967_v61, %v9045_v42 }
0x29fa   :  { %v6855_v58 = vpop.f32.mrf.mxu0 }
0x29fb   :  { %v5977_v45 = vsel %vm9615_vm3, %v5975_v1, 0.0  ;;  %v5974_v47 = vadd.f32 %v5972_v17, %v4324_v38 }
0x29fc   :  { %v5978_v22 = vrot.slane %v5977_v45, 4 }
0x29fd   :  { %v5976_v26 = vmul.f32 0.5, %v5974_v47 }
0x29fe   :  { %v5979_v54 = vadd.f32 %v5978_v22, %v5977_v45 }
0x29ff   :  { %v5986_v62 = vsel %vm9616_vm9, %v5976_v26, 0.0 }
0x2a00   :  { %v5980_v60 = vrot.slane %v5979_v54, 2  ;;  %v5987_v12 = vrot.slane %v5986_v62, 4 }
0x2a02   :  { %v5981_v46 = vadd.f32 %v5980_v60, %v5979_v54  ;;  %v5988_v3 = vadd.f32 %v5987_v12, %v5986_v62 }
0x2a04   :  { %v5982_v24 = vrot.slane %v5981_v46, 1  ;;  %v5989_v2 = vrot.slane %v5988_v3, 2 }
0x2a06   :  { %v5990_v52 = vadd.f32 %v5989_v2, %v5988_v3  ;;  %v5983_v34 = vadd.f32 %v5982_v24, %v5981_v46 }
0x2a08   :  { %v5991_v36 = vrot.slane %v5990_v52, 1  ;;  %v5985_v42 = vmul.f32 0.125, %v5983_v34 }
0x2a0a   :  { %v5992_v6 = vadd.f32 %v5991_v36, %v5990_v52 }
0x2a0c   :  { %v5993_v21 = vmul.f32 0.125, %v5992_v6 }
0x2a0e   :  { %v5994_v55 = vsel %vm9617_vm1, %v5985_v42, %v5993_v21 }
0x2a0f   :  { %v5999_v43 = vpack.c.bf16 %v5994_v55, %v5994_v55 }
0x2a11   :  { %6861 = vmatmul.mubr.msk.bf16.vlgmr.msra.gmra.mxu1 %vm9618_vm2, %v5999_v43 }
0x2ad1   :  { %v6056_v16 = vpop.f32.mrf.mxu1 }
0x2ad2   :  { %v6057_v13 = vadd.f32 %v6320_v9, %v6056_v16 }
0x2ad3   :  { %v6862_v35 = vpop.f32.mrf.mxu1 }
0x2ad4   :  { %6062 = vst [vmem:[#allocation2] sm:$0x3] %v6057_v13 }
0x2ad5   :  { %v6059_v56 = vpop.f32.mrf.mxu1 }
0x2ad6   :  { %7402 = shalt.err (!%p7399_p4)
}
0x2ad7   :  { %6072 = dma.vmem_to_hbm [thread:$0]  %s6070_s9, 32, %s9363_s16, [#allocation3]   ;;  %v6863_v25 = vpop.f32.mrf.mxu1 }
0x2ad8   :  { %7411 = dma.done.wait [#allocation3], 32  }
0x2ad9   :  { %7412 = vsyncadd [#allocation3], 4294967264 }
0x2ada   :  { %6076 = vsyncpa [#allocation3], 1 }

</bundles_post_ra>
